<compile_context>
chip_gen: v5e
topology: v5e:2x2
jax: 0.10.0
libtpu: 0.0.40
codegen_flags: <defaults>
</compile_context>

<pallas_src>
import functools
import math

import jax
import jax.numpy as jnp
from jax.experimental import pallas as pl
from jax.experimental.pallas import tpu as pltpu


def _round_up(x, m):
    return (x + m - 1) // m * m


def _attn_kernel(x_ref, kv_ref, bias_ref,
                 wq_ref, bq_ref, wkv_ref, bkv_ref, wo_ref, bo_ref,
                 o_ref, *, batch, n_heads_p, dph_p):
    B = batch
    Hp = n_heads_p
    dphp = dph_p
    Pp = Hp * dphp
    Lq = x_ref.shape[0]          # B * qlen_p
    Lk = kv_ref.shape[0]         # B * klen_p
    qlen = Lq // B
    klen = Lk // B

    x = x_ref[...]               # (Lq, Dp)   bf16
    kvx = kv_ref[...]            # (Lk, Dp)   bf16
    bias = bias_ref[...]         # (B, klen)  f32 additive mask (0 / -1e30)

    # Fused, lane-dense projections for ALL batches at once.
    # Scale is already folded into Wq/bq; K and V are fused into one matmul.
    q = (jnp.dot(x, wq_ref[...], preferred_element_type=jnp.float32)
         + bq_ref[...]).astype(jnp.bfloat16)                       # (Lq, Pp)
    kv_proj = (jnp.dot(kvx, wkv_ref[...], preferred_element_type=jnp.float32)
               + bkv_ref[...]).astype(jnp.bfloat16)                # (Lk, 2*Pp)
    k = kv_proj[:, :Pp]
    v = kv_proj[:, Pp:]

    # Split heads (bf16 -> half the relayout bytes):
    # (B*L, Hp*dphp) -> (B*Hp, L, dphp)
    def split_heads(t, L):
        return (t.reshape(B, L, Hp, dphp)
                 .transpose(0, 2, 1, 3)
                 .reshape(B * Hp, L, dphp))

    qh = split_heads(q, qlen)
    kh = split_heads(k, klen)
    vh = split_heads(v, klen)

    # Scores + masked softmax (f32) + context, batched over all B*Hp heads.
    s = jnp.einsum('hqd,hkd->hqk', qh, kh,
                   preferred_element_type=jnp.float32)             # (B*Hp, q, k)
    s = s.reshape(B, Hp, qlen, klen) + bias[:, None, None, :]
    s = s - jnp.max(s, axis=-1, keepdims=True)
    p = jnp.exp(s)
    w = p * pl.reciprocal(jnp.sum(p, axis=-1, keepdims=True), approx=True)
    w = w.reshape(B * Hp, qlen, klen).astype(jnp.bfloat16)
    ctx = jnp.einsum('hqk,hkd->hqd', w, vh,
                     preferred_element_type=jnp.float32)           # (B*Hp, q, dphp)

    # Merge heads and apply the output projection in one lane-dense matmul.
    ctx_f = (ctx.reshape(B, Hp, qlen, dphp)
                .transpose(0, 2, 1, 3)
                .reshape(Lq, Pp)).astype(jnp.bfloat16)
    o_ref[...] = (jnp.dot(ctx_f, wo_ref[...], preferred_element_type=jnp.float32)
                  + bo_ref[...])


def prepare_xlm_attention(params, n_heads):
    """One-time init: pad / fuse / bf16-cast torch-layout Linear weights.

    torch Linear: y = x @ w.T + b, w: (out, in).
    Returns (weights dict, static config dict). Call once, reuse every forward.
      wq:  (Dp, Pp)      bf16   (head-major output columns, 1/sqrt(dph) folded in)
      wkv: (Dp, 2*Pp)    bf16   (K columns then V columns, both head-major)
      wo:  (Pp, Dp)      bf16   (head-major rows)
      biases stay f32.
    """
    (wq, bq), (wk, bk), (wv, bv), (wo, bo) = params
    D = wq.shape[0]
    dph = D // n_heads
    Dp = _round_up(D, 128)
    dphp = max(8, pl.next_power_of_2(dph))
    Pp = _round_up(n_heads * dphp, 128)
    Hp = Pp // dphp
    scale = jnp.float32(1.0 / math.sqrt(dph))

    def prep_in(w, b, s):
        wt = (w.T * s).reshape(D, n_heads, dph)                    # (in, H, dph)
        wt = jnp.pad(wt, ((0, Dp - D), (0, Hp - n_heads), (0, dphp - dph)))
        bb = jnp.pad((b * s).reshape(n_heads, dph),
                     ((0, Hp - n_heads), (0, dphp - dph)))
        return wt.reshape(Dp, Pp), bb.reshape(1, Pp)

    wq_p, bq_p = prep_in(wq, bq, scale)
    wk_p, bk_p = prep_in(wk, bk, jnp.float32(1.0))
    wv_p, bv_p = prep_in(wv, bv, jnp.float32(1.0))
    wkv_p = jnp.concatenate([wk_p, wv_p], axis=1)                  # (Dp, 2*Pp)
    bkv_p = jnp.concatenate([bk_p, bv_p], axis=1)                  # (1, 2*Pp)

    wot = wo.T.reshape(n_heads, dph, D)                            # (H, dph, out)
    wot = jnp.pad(wot, ((0, Hp - n_heads), (0, dphp - dph), (0, Dp - D)))
    wo_p = wot.reshape(Pp, Dp)
    bo_p = jnp.pad(bo, (0, Dp - D)).reshape(1, Dp)

    weights = dict(
        wq=jnp.asarray(wq_p, jnp.bfloat16), bq=jnp.asarray(bq_p, jnp.float32),
        wkv=jnp.asarray(wkv_p, jnp.bfloat16), bkv=jnp.asarray(bkv_p, jnp.float32),
        wo=jnp.asarray(wo_p, jnp.bfloat16), bo=jnp.asarray(bo_p, jnp.float32))
    cfg = dict(D=D, Dp=Dp, dphp=dphp, Hp=Hp, Pp=Pp, n_heads=n_heads)
    return weights, cfg


def xlm_attention_forward(x, kv, mask, weights, cfg):
    """x: (B, qlen, D); kv: (B, klen, D); mask: (B, klen) of {0,1}."""
    B, qlen, D = x.shape
    klen = kv.shape[1]
    Dp, Hp, dphp, Pp = cfg["Dp"], cfg["Hp"], cfg["dphp"], cfg["Pp"]
    qlen_p = _round_up(qlen, 8)
    klen_p = _round_up(klen, 8)

    # Fold batch into sublanes; pad seq dims to sublane multiples and D to Dp.
    x_p = jnp.pad(x, ((0, 0), (0, qlen_p - qlen), (0, Dp - D))) \
             .reshape(B * qlen_p, Dp).astype(jnp.bfloat16)
    kv_p = jnp.pad(kv, ((0, 0), (0, klen_p - klen), (0, Dp - D))) \
              .reshape(B * klen_p, Dp).astype(jnp.bfloat16)
    # Additive mask bias: 0 keep, -1e30 masked (padded key positions masked too).
    bias = jnp.where(mask.astype(jnp.float32) == 0.0,
                     jnp.float32(-1e30), jnp.float32(0.0))
    bias = jnp.pad(bias, ((0, 0), (0, klen_p - klen)), constant_values=-1e30)

    kernel = functools.partial(_attn_kernel, batch=B, n_heads_p=Hp, dph_p=dphp)
    full = lambda i: (0, 0)

    out = pl.pallas_call(
        kernel,
        out_shape=jax.ShapeDtypeStruct((B * qlen_p, Dp), jnp.float32),
        grid_spec=pltpu.PrefetchScalarGridSpec(
            num_scalar_prefetch=0,
            grid=(1,),
            in_specs=[
                pl.BlockSpec((B * qlen_p, Dp), full),
                pl.BlockSpec((B * klen_p, Dp), full),
                pl.BlockSpec((B, klen_p), full),
                pl.BlockSpec((Dp, Pp), full),
                pl.BlockSpec((1, Pp), full),
                pl.BlockSpec((Dp, 2 * Pp), full),
                pl.BlockSpec((1, 2 * Pp), full),
                pl.BlockSpec((Pp, Dp), full),
                pl.BlockSpec((1, Dp), full),
            ],
            out_specs=pl.BlockSpec((B * qlen_p, Dp), full),
        ),
        compiler_params=pltpu.CompilerParams(
            dimension_semantics=("arbitrary",)),
    )(x_p, kv_p, bias, weights["wq"], weights["bq"],
      weights["wkv"], weights["bkv"], weights["wo"], weights["bo"])

    return out.reshape(B, qlen_p, Dp)[:, :qlen, :D]


def _ref_attention(x, kv, mask, params, n_heads):
    # Pure-JAX f32 reference mirroring transformers' XLM MultiHeadAttention.
    (wq, bq), (wk, bk), (wv, bv), (wo, bo) = params
    B, qlen, D = x.shape
    klen = kv.shape[1]
    dph = D // n_heads

    def shape(t):
        return t.reshape(B, -1, n_heads, dph).transpose(0, 2, 1, 3)

    q = shape(x @ wq.T + bq) / math.sqrt(dph)
    k = shape(kv @ wk.T + bk)
    v = shape(kv @ wv.T + bv)
    s = jnp.einsum('bhqd,bhkd->bhqk', q, k)
    m = (mask == 0).reshape(B, 1, 1, klen)
    s = jnp.where(m, jnp.finfo(jnp.float32).min, s)
    w = jax.nn.softmax(s, axis=-1)
    ctx = jnp.einsum('bhqk,bhkd->bhqd', w, v)
    ctx = ctx.transpose(0, 2, 1, 3).reshape(B, qlen, D)
    return ctx @ wo.T + bo


def _make_linear_params(key, dim):
    k1, k2 = jax.random.split(key)
    w = jax.random.normal(k1, (dim, dim), jnp.float32) * 0.05   # (out, in) like torch
    b = jax.random.normal(k2, (dim,), jnp.float32) * 0.05
    return w, b


if __name__ == "__main__":
    key = jax.random.PRNGKey(0)
    keys = jax.random.split(key, 16)

    B = 2
    # attn0: emb_dim=192, n_heads=12, cross-attention (kv provided)
    D0, H0, qlen0, klen0 = 192, 12, 8, 10
    # attn1: emb_dim=66, n_heads=6, self-attention (kv=None -> kv=input)
    D1, H1, qlen1 = 66, 6, 6

    x = jax.random.normal(keys[0], (B, qlen0, D0), jnp.float32)
    kv = jax.random.normal(keys[1], (B, klen0, D0), jnp.float32)
    y = jax.random.normal(keys[2], (B, qlen1, D1), jnp.float32)
    mask0 = (jax.random.uniform(keys[3], (B, klen0)) > 0.3).astype(jnp.float32)
    mask0 = mask0.at[:, 0].set(1.0)
    mask1 = (jax.random.uniform(keys[4], (B, qlen1)) > 0.3).astype(jnp.float32)
    mask1 = mask1.at[:, 0].set(1.0)

    params0 = tuple(_make_linear_params(keys[5 + i], D0) for i in range(4))
    params1 = tuple(_make_linear_params(keys[9 + i], D1) for i in range(4))

    # One-time weight prep (hoisted out of the forward path).
    w0, cfg0 = prepare_xlm_attention(params0, H0)
    w1, cfg1 = prepare_xlm_attention(params1, H1)

    out0 = xlm_attention_forward(x, kv, mask0, w0, cfg0)   # attn0: cross-attn
    out1 = xlm_attention_forward(y, y, mask1, w1, cfg1)    # attn1: self-attn (kv=y)
    (out0, out1) = jax.block_until_ready((out0, out1))

    ref0 = _ref_attention(x, kv, mask0, params0, H0)
    ref1 = _ref_attention(y, y, mask1, params1, H1)
    assert out0.shape == (B, qlen0, D0) and out1.shape == (B, qlen1, D1)
    # bf16 weights/activations (f32 accumulation): compare to the f32 reference
    # at bf16-level tolerance.
    assert jnp.allclose(out0, ref0, atol=2e-2, rtol=2e-2), \
        float(jnp.max(jnp.abs(out0 - ref0)))
    assert jnp.allclose(out1, ref1, atol=2e-2, rtol=2e-2), \
        float(jnp.max(jnp.abs(out1 - ref1)))
    print("KERNEL_OK")
</pallas_src>

<mosaic_0001>
module attributes {stable_mosaic.version = 11 : i64} {
  func.func @_attn_kernel(%arg0: i32, %arg1: memref<16x256xbf16, #tpu.memory_space<vmem>>, %arg2: memref<32x256xbf16, #tpu.memory_space<vmem>>, %arg3: memref<2x16xf32, #tpu.memory_space<vmem>>, %arg4: memref<256x256xbf16, #tpu.memory_space<vmem>>, %arg5: memref<1x256xf32, #tpu.memory_space<vmem>>, %arg6: memref<256x512xbf16, #tpu.memory_space<vmem>>, %arg7: memref<1x512xf32, #tpu.memory_space<vmem>>, %arg8: memref<256x256xbf16, #tpu.memory_space<vmem>>, %arg9: memref<1x256xf32, #tpu.memory_space<vmem>>, %arg10: memref<16x256xf32, #tpu.memory_space<vmem>>) attributes {dimension_semantics = [#tpu.dimension_semantics<arbitrary>], iteration_bounds = array<i64: 1>, scalar_prefetch = 0 : i64, scratch_operands = 0 : i64, tpu.core_type = #tpu.core_type<tc>, window_params = [{pipeline_mode = #tpu.pipeline_mode<synchronous>, transform_indices = @transform_0, window_bounds = array<i64: 16, 256>}, {pipeline_mode = #tpu.pipeline_mode<synchronous>, transform_indices = @transform_1, window_bounds = array<i64: 32, 256>}, {pipeline_mode = #tpu.pipeline_mode<synchronous>, transform_indices = @transform_2, window_bounds = array<i64: 2, 16>}, {pipeline_mode = #tpu.pipeline_mode<synchronous>, transform_indices = @transform_3, window_bounds = array<i64: 256, 256>}, {pipeline_mode = #tpu.pipeline_mode<synchronous>, transform_indices = @transform_4, window_bounds = array<i64: 1, 256>}, {pipeline_mode = #tpu.pipeline_mode<synchronous>, transform_indices = @transform_5, window_bounds = array<i64: 256, 512>}, {pipeline_mode = #tpu.pipeline_mode<synchronous>, transform_indices = @transform_6, window_bounds = array<i64: 1, 512>}, {pipeline_mode = #tpu.pipeline_mode<synchronous>, transform_indices = @transform_7, window_bounds = array<i64: 256, 256>}, {pipeline_mode = #tpu.pipeline_mode<synchronous>, transform_indices = @transform_8, window_bounds = array<i64: 1, 256>}, {pipeline_mode = #tpu.pipeline_mode<synchronous>, transform_indices = @transform_9, window_bounds = array<i64: 16, 256>}]} {
    %c0 = arith.constant 0 : index
    %c0_0 = arith.constant 0 : index
    %0 = vector.load %arg1[%c0, %c0_0] : memref<16x256xbf16, #tpu.memory_space<vmem>>, vector<16x256xbf16>
    %c0_1 = arith.constant 0 : index
    %c0_2 = arith.constant 0 : index
    %1 = vector.load %arg2[%c0_1, %c0_2] : memref<32x256xbf16, #tpu.memory_space<vmem>>, vector<32x256xbf16>
    %c0_3 = arith.constant 0 : index
    %c0_4 = arith.constant 0 : index
    %2 = vector.load %arg3[%c0_3, %c0_4] : memref<2x16xf32, #tpu.memory_space<vmem>>, vector<2x16xf32>
    %c0_5 = arith.constant 0 : index
    %c0_6 = arith.constant 0 : index
    %3 = vector.load %arg4[%c0_5, %c0_6] : memref<256x256xbf16, #tpu.memory_space<vmem>>, vector<256x256xbf16>
    %cst = arith.constant dense<0.000000e+00> : vector<16x256xf32>
    %4 = tpu.matmul %0, %3, %cst {dimension_numbers = #tpu.dot_dimension_numbers<[1], [0], [0], [1], [0, 0, 1, 1], [], []>} : vector<16x256xbf16>, vector<256x256xbf16>, vector<16x256xf32> -> vector<16x256xf32>
    %c0_7 = arith.constant 0 : index
    %c0_8 = arith.constant 0 : index
    %5 = vector.load %arg5[%c0_7, %c0_8] : memref<1x256xf32, #tpu.memory_space<vmem>>, vector<1x256xf32>
    %6 = vector.broadcast %5 : vector<1x256xf32> to vector<16x256xf32>
    %7 = arith.addf %4, %6 : vector<16x256xf32>
    %8 = arith.truncf %7 : vector<16x256xf32> to vector<16x256xbf16>
    %c0_9 = arith.constant 0 : index
    %c0_10 = arith.constant 0 : index
    %9 = vector.load %arg6[%c0_9, %c0_10] : memref<256x512xbf16, #tpu.memory_space<vmem>>, vector<256x512xbf16>
    %cst_11 = arith.constant dense<0.000000e+00> : vector<32x512xf32>
    %10 = tpu.matmul %1, %9, %cst_11 {dimension_numbers = #tpu.dot_dimension_numbers<[1], [0], [0], [1], [0, 0, 1, 1], [], []>} : vector<32x256xbf16>, vector<256x512xbf16>, vector<32x512xf32> -> vector<32x512xf32>
    %c0_12 = arith.constant 0 : index
    %c0_13 = arith.constant 0 : index
    %11 = vector.load %arg7[%c0_12, %c0_13] : memref<1x512xf32, #tpu.memory_space<vmem>>, vector<1x512xf32>
    %12 = vector.broadcast %11 : vector<1x512xf32> to vector<32x512xf32>
    %13 = arith.addf %10, %12 : vector<32x512xf32>
    %14 = arith.truncf %13 : vector<32x512xf32> to vector<32x512xbf16>
    %15 = vector.extract_strided_slice %14 {offsets = [0, 0], sizes = [32, 256], strides = [1, 1]} : vector<32x512xbf16> to vector<32x256xbf16>
    %16 = vector.extract_strided_slice %14 {offsets = [0, 256], sizes = [32, 256], strides = [1, 1]} : vector<32x512xbf16> to vector<32x256xbf16>
    %17 = vector.shape_cast %8 : vector<16x256xbf16> to vector<2x8x16x16xbf16>
    %18 = tpu.transpose %17, [0, 2, 1, 3] : vector<2x8x16x16xbf16> -> vector<2x16x8x16xbf16>
    %19 = vector.shape_cast %18 : vector<2x16x8x16xbf16> to vector<32x8x16xbf16>
    %20 = vector.shape_cast %15 : vector<32x256xbf16> to vector<2x16x16x16xbf16>
    %21 = tpu.transpose %20, [0, 2, 1, 3] : vector<2x16x16x16xbf16> -> vector<2x16x16x16xbf16>
    %22 = vector.shape_cast %21 : vector<2x16x16x16xbf16> to vector<32x16x16xbf16>
    %23 = vector.shape_cast %16 : vector<32x256xbf16> to vector<2x16x16x16xbf16>
    %24 = tpu.transpose %23, [0, 2, 1, 3] : vector<2x16x16x16xbf16> -> vector<2x16x16x16xbf16>
    %25 = vector.shape_cast %24 : vector<2x16x16x16xbf16> to vector<32x16x16xbf16>
    "tpu.trace_start"() <{level = 10 : i32, message = "hqd,hkd->hqk"}> : () -> ()
    %cst_14 = arith.constant dense<0.000000e+00> : vector<32x8x16xf32>
    %26 = tpu.matmul %19, %22, %cst_14 {dimension_numbers = #tpu.dot_dimension_numbers<[2], [2], [1], [1], [0, 0, 0, 1, 1, 1], [0], [0]>} : vector<32x8x16xbf16>, vector<32x16x16xbf16>, vector<32x8x16xf32> -> vector<32x8x16xf32>
    "tpu.trace_stop"() : () -> ()
    %27 = vector.shape_cast %26 : vector<32x8x16xf32> to vector<2x16x8x16xf32>
    %28 = vector.shape_cast %2 : vector<2x16xf32> to vector<2x1x1x16xf32>
    %29 = vector.broadcast %28 : vector<2x1x1x16xf32> to vector<2x16x8x16xf32>
    %30 = arith.addf %27, %29 : vector<2x16x8x16xf32>
    %cst_15 = arith.constant dense<0xFF800000> : vector<2x16x8xf32>
    %31 = vector.multi_reduction <maximumf>, %30, %cst_15 [3] : vector<2x16x8x16xf32> to vector<2x16x8xf32>
    %32 = vector.shape_cast %31 : vector<2x16x8xf32> to vector<2x16x8x1xf32>
    %33 = vector.broadcast %32 : vector<2x16x8x1xf32> to vector<2x16x8x16xf32>
    %34 = arith.subf %30, %33 : vector<2x16x8x16xf32>
    %35 = math.exp %34 : vector<2x16x8x16xf32>
    %cst_16 = arith.constant dense<0.000000e+00> : vector<2x16x8xf32>
    %36 = vector.multi_reduction <add>, %35, %cst_16 [3] : vector<2x16x8x16xf32> to vector<2x16x8xf32>
    %37 = vector.shape_cast %36 : vector<2x16x8xf32> to vector<2x16x8x1xf32>
    %38 = tpu.reciprocal %37 {approx = true} : vector<2x16x8x1xf32> -> vector<2x16x8x1xf32>
    %39 = vector.broadcast %38 : vector<2x16x8x1xf32> to vector<2x16x8x16xf32>
    %40 = arith.mulf %35, %39 : vector<2x16x8x16xf32>
    %41 = vector.shape_cast %40 : vector<2x16x8x16xf32> to vector<32x8x16xf32>
    %42 = arith.truncf %41 : vector<32x8x16xf32> to vector<32x8x16xbf16>
    "tpu.trace_start"() <{level = 10 : i32, message = "hqk,hkd->hqd"}> : () -> ()
    %cst_17 = arith.constant dense<0.000000e+00> : vector<32x8x16xf32>
    %43 = tpu.matmul %42, %25, %cst_17 {dimension_numbers = #tpu.dot_dimension_numbers<[2], [1], [1], [2], [0, 0, 0, 1, 1, 2], [0], [0]>} : vector<32x8x16xbf16>, vector<32x16x16xbf16>, vector<32x8x16xf32> -> vector<32x8x16xf32>
    "tpu.trace_stop"() : () -> ()
    %44 = vector.shape_cast %43 : vector<32x8x16xf32> to vector<2x16x8x16xf32>
    %45 = tpu.transpose %44, [0, 2, 1, 3] : vector<2x16x8x16xf32> -> vector<2x8x16x16xf32>
    %46 = vector.shape_cast %45 : vector<2x8x16x16xf32> to vector<16x256xf32>
    %47 = arith.truncf %46 : vector<16x256xf32> to vector<16x256xbf16>
    %c0_18 = arith.constant 0 : index
    %c0_19 = arith.constant 0 : index
    %48 = vector.load %arg8[%c0_18, %c0_19] : memref<256x256xbf16, #tpu.memory_space<vmem>>, vector<256x256xbf16>
    %cst_20 = arith.constant dense<0.000000e+00> : vector<16x256xf32>
    %49 = tpu.matmul %47, %48, %cst_20 {dimension_numbers = #tpu.dot_dimension_numbers<[1], [0], [0], [1], [0, 0, 1, 1], [], []>} : vector<16x256xbf16>, vector<256x256xbf16>, vector<16x256xf32> -> vector<16x256xf32>
    %c0_21 = arith.constant 0 : index
    %c0_22 = arith.constant 0 : index
    %50 = vector.load %arg9[%c0_21, %c0_22] : memref<1x256xf32, #tpu.memory_space<vmem>>, vector<1x256xf32>
    %51 = vector.broadcast %50 : vector<1x256xf32> to vector<16x256xf32>
    %52 = arith.addf %49, %51 : vector<16x256xf32>
    %c0_23 = arith.constant 0 : index
    %c0_24 = arith.constant 0 : index
    %53 = vector.load %arg10[%c0_23, %c0_24] : memref<16x256xf32, #tpu.memory_space<vmem>>, vector<16x256xf32>
    tpu.vector_store %arg10[%c0_23, %c0_24], %52 {strides = array<i32>} : memref<16x256xf32, #tpu.memory_space<vmem>>, vector<16x256xf32>,
    return
  }
  func.func @transform_0(%arg0: i32) -> (i32, i32) {
    %c0_i32 = arith.constant 0 : i32
    %c0_i32_0 = arith.constant 0 : i32
    %c0_i32_1 = arith.constant 0 : i32
    return %c0_i32, %c0_i32_0 : i32, i32
  }
  func.func @transform_1(%arg0: i32) -> (i32, i32) {
    %c0_i32 = arith.constant 0 : i32
    %c0_i32_0 = arith.constant 0 : i32
    %c0_i32_1 = arith.constant 0 : i32
    return %c0_i32, %c0_i32_0 : i32, i32
  }
  func.func @transform_2(%arg0: i32) -> (i32, i32) {
    %c0_i32 = arith.constant 0 : i32
    %c0_i32_0 = arith.constant 0 : i32
    %c0_i32_1 = arith.constant 0 : i32
    return %c0_i32, %c0_i32_0 : i32, i32
  }
  func.func @transform_3(%arg0: i32) -> (i32, i32) {
    %c0_i32 = arith.constant 0 : i32
    %c0_i32_0 = arith.constant 0 : i32
    %c0_i32_1 = arith.constant 0 : i32
    return %c0_i32, %c0_i32_0 : i32, i32
  }
  func.func @transform_4(%arg0: i32) -> (i32, i32) {
    %c0_i32 = arith.constant 0 : i32
    %c0_i32_0 = arith.constant 0 : i32
    %c0_i32_1 = arith.constant 0 : i32
    return %c0_i32, %c0_i32_0 : i32, i32
  }
  func.func @transform_5(%arg0: i32) -> (i32, i32) {
    %c0_i32 = arith.constant 0 : i32
    %c0_i32_0 = arith.constant 0 : i32
    %c0_i32_1 = arith.constant 0 : i32
    return %c0_i32, %c0_i32_0 : i32, i32
  }
  func.func @transform_6(%arg0: i32) -> (i32, i32) {
    %c0_i32 = arith.constant 0 : i32
    %c0_i32_0 = arith.constant 0 : i32
    %c0_i32_1 = arith.constant 0 : i32
    return %c0_i32, %c0_i32_0 : i32, i32
  }
  func.func @transform_7(%arg0: i32) -> (i32, i32) {
    %c0_i32 = arith.constant 0 : i32
    %c0_i32_0 = arith.constant 0 : i32
    %c0_i32_1 = arith.constant 0 : i32
    return %c0_i32, %c0_i32_0 : i32, i32
  }
  func.func @transform_8(%arg0: i32) -> (i32, i32) {
    %c0_i32 = arith.constant 0 : i32
    %c0_i32_0 = arith.constant 0 : i32
    %c0_i32_1 = arith.constant 0 : i32
    return %c0_i32, %c0_i32_0 : i32, i32
  }
  func.func @transform_9(%arg0: i32) -> (i32, i32) {
    %c0_i32 = arith.constant 0 : i32
    %c0_i32_0 = arith.constant 0 : i32
    %c0_i32_1 = arith.constant 0 : i32
    return %c0_i32, %c0_i32_0 : i32, i32
  }
}

</mosaic_0001>

<bundles_post_ra>
// kernel: tpu_custom_call.1
= control target key start
LH: loop header
LB: loop body
LE: loop exit
PB: predicated region body
PF: predicated region fallthrough
CT: control target
= control target key end

     0   :  { %14 = vsyncpa [#allocation3], 0  ;;  %s13209_s0 = inlined_call_operand.hbm [shape: bf16[16,256], index: 0, kind: input, shape index: {}]   ;;  %s13210_s1 = inlined_call_operand.hbm [shape: bf16[32,256], index: 1, kind: input, shape index: {}]   ;;  %s13211_s2 = inlined_call_operand.hbm [shape: f32[2,16], index: 2, kind: input, shape index: {}]   ;;  %s13212_s3 = inlined_call_operand.hbm [shape: bf16[256,256], index: 3, kind: input, shape index: {}]   ;;  %s13213_s4 = inlined_call_operand.hbm [shape: f32[1,256], index: 4, kind: input, shape index: {}]   ;;  %s13214_s5 = inlined_call_operand.hbm [shape: bf16[256,512], index: 5, kind: input, shape index: {}]   ;;  %s13215_s6 = inlined_call_operand.vmem [shape: f32[1,512], index: 6, kind: input, shape index: {}]   ;;  %s13216_s7 = inlined_call_operand.hbm [shape: bf16[256,256], index: 7, kind: input, shape index: {}]   ;;  %s13217_s8 = inlined_call_operand.vmem [shape: f32[1,256], index: 8, kind: input, shape index: {}]   ;;  %s13218_s9 = inlined_call_operand.hbm [shape: f32[16,256], index: 9, kind: output, shape index: {}]  }
   0x1   :  { %15 = vsyncpa [#allocation6], 0 }
   0x2   :  { %16 = vsyncpa [#allocation9], 0 }
   0x3   :  { %17 = vsyncpa [#allocation12], 0 }
   0x4   :  { %18 = vsyncpa [#allocation4], 0  ;;  %s36_s11 = sshll.u32 %s13210_s1, 4  ;;  %s9013_s12 = smov [#allocation5]   ;;  %s37_s11 = int_to_ptr.hbm [resolvable:$true] %s36_s11 }
   0x5   :  { %s38_s13 = sshll.u32 %s9013_s12, 4  ;;  %s60_s16 = sshll.u32 %s13212_s3, 4  ;;  %s39_s13 = int_to_ptr.vmem [resolvable:$true] %s38_s13  ;;  %s61_s16 = int_to_ptr.hbm [resolvable:$true] %s60_s16 }
   0x6   :  { %s9014_s17 = smov 128   ;;  %s9015_s18 = smov 8  }
   0x7   :  { %44 = dma.hbm_to_vmem [thread:$0]  %s37_s11, 512, %s39_s13, [#allocation6], %s9014_s17, %s9014_s17, %s9015_s18  }
   0x8   :  { %s9016_s19 = smov [#allocation8]   ;;  %s84_s1 = sshll.u32 %s13214_s5, 4  ;;  %s85_s1 = int_to_ptr.hbm [resolvable:$true] %s84_s1 }
   0x9   :  { %s62_s20 = sshll.u32 %s9016_s19, 4  ;;  %s9017_s3 = smov [#allocation11]   ;;  %s63_s20 = int_to_ptr.vmem [resolvable:$true] %s62_s20 }
   0xa   :  { %68 = dma.hbm_to_vmem [thread:$0]  %s61_s16, 4096, %s63_s20, [#allocation9], %s9014_s17, %s9014_s17, %s9015_s18  }
   0xb   :  { %s86_s23 = sshll.u32 %s9017_s3, 4  ;;  %s23_s26 = sshll.u32 %s13209_s0, 4  ;;  %s87_s23 = int_to_ptr.vmem [resolvable:$true] %s86_s23  ;;  %s24_s26 = int_to_ptr.hbm [resolvable:$true] %s23_s26 }
   0xc   :  { %s9018_s27 = smov 256   ;;  %s9019_s28 = smov 16  }
   0xd   :  { %92 = dma.hbm_to_vmem [thread:$0]  %s85_s1, 8192, %s87_s23, [#allocation12], %s9018_s27, %s9018_s27, %s9019_s28  }
   0xe   :  { %s9020_s5 = smov [#allocation2]   ;;  %s50_s11 = sshll.u32 %s13211_s2, 4  ;;  %s51_s11 = int_to_ptr.hbm [resolvable:$true] %s50_s11 }
   0xf   :  { %s25_s29 = sshll.u32 %s9020_s5, 4  ;;  %s74_s13 = sshll.u32 %s13213_s4, 4  ;;  %s26_s29 = int_to_ptr.vmem [resolvable:$true] %s25_s29  ;;  %s75_s13 = int_to_ptr.hbm [resolvable:$true] %s74_s13 }
  0x10   :  { %31 = dma.hbm_to_vmem [thread:$0]  %s24_s26, 256, %s26_s29, [#allocation3], %s9014_s17, %s9014_s17, %s9015_s18  }
  0x11   :  { %s9021_s14 = smov [#allocation7]   ;;  %s9022_s16 = smov [#allocation10]  }
  0x12   :  { %s52_s15 = sshll.u32 %s9021_s14, 4  ;;  %s76_s19 = sshll.u32 %s9022_s16, 4  ;;  %s53_s15 = int_to_ptr.vmem [resolvable:$true] %s52_s15  ;;  %s77_s19 = int_to_ptr.vmem [resolvable:$true] %s76_s19 }
  0x13   :  { %55 = dma.hbm_to_vmem [thread:$0]  %s51_s11, 32, %s53_s15, [#allocation6]  }
  0x14   :  { %s99_s2 = sshll.u32 %s13216_s7, 4  ;;  %s9023_s22 = smov [#allocation13]   ;;  %s100_s2 = int_to_ptr.hbm [resolvable:$true] %s99_s2 }
  0x15   :  { %79 = dma.hbm_to_vmem [thread:$0]  %s75_s13, 32, %s77_s19, [#allocation9]  }
  0x16   :  { %s101_s1 = sshll.u32 %s9023_s22, 4  ;;  %s102_s1 = int_to_ptr.vmem [resolvable:$true] %s101_s1 }
  0x17   :  { %107 = dma.hbm_to_vmem [thread:$0]  %s100_s2, 4096, %s102_s1, [#allocation12], %s9014_s17, %s9014_s17, %s9015_s18  }
  0x18   :  { %9003 = dma.done.wait [#allocation3], 256  }
  0x19   :  { %9004 = vsyncadd [#allocation3], 4294967040 }
  0x1a   :  { %9005 = dma.done.wait [#allocation6], 544  }
  0x1b   :  { %9006 = vsyncadd [#allocation6], 4294966752 }
  0x1c   :  { %9007 = dma.done.wait [#allocation9], 4128  }
  0x1d   :  { %9008 = vsyncadd [#allocation9], 4294963168 }
  0x1e   :  { %9009 = dma.done.wait [#allocation12], 12288  }
  0x1f   :  { %9010 = vsyncadd [#allocation12], 4294955008  ;;  %v7885_v0 = vld [vmem:[#allocation8 + $0x70] sm:$0xf]  ;;  %v8480_v1 = vld [vmem:[#allocation8 + $0x74] sm:$0xf0] }
  0x20   :  { %v7949_v2 = vld [vmem:[#allocation8 + $0xf0] sm:$0xf]  ;;  %v7886_v3 = vor.u32 %v8480_v1, %v7885_v0  ;;  %v8496_v4 = vld [vmem:[#allocation8 + $0xf4] sm:$0xf0]  ;;  %v8479_v5 = vld [vmem:[#allocation8 + $0x74] sm:$0xf] }
  0x21   :  { %v7887_v6 = vld [vmem:[#allocation8 + $0x78] sm:$0xf0]  ;;  %v7950_v7 = vor.u32 %v8496_v4, %v7949_v2  ;;  %v8495_v9 = vld [vmem:[#allocation8 + $0xf4] sm:$0xf]  ;;  %v7877_v11 = vld [vmem:[#allocation8 + $0x60] sm:$0xf] }
  0x22   :  { %v7890_v8 = vor.u32 %v8479_v5, %v7887_v6  ;;  %v7951_v10 = vld [vmem:[#allocation8 + $0xf8] sm:$0xf0]  ;;  %354 = vmatpush.bf16.msra.mxu0 %v7886_v3  ;;  %v8478_v13 = vld [vmem:[#allocation8 + $0x64] sm:$0xf0]  ;;  %v7941_v14 = vld [vmem:[#allocation8 + $0xe0] sm:$0xf] }
  0x23   :  { %v7954_v12 = vor.u32 %v8495_v9, %v7951_v10  ;;  %v8494_v15 = vld [vmem:[#allocation8 + $0xe4] sm:$0xf0]  ;;  %368 = vmatpush.bf16.msra.mxu1 %v7950_v7  ;;  %v7878_v16 = vor.u32 %v8478_v13, %v7877_v11  ;;  %v8477_v18 = vld [vmem:[#allocation8 + $0x64] sm:$0xf]  ;;  %v7879_v19 = vld [vmem:[#allocation8 + $0x68] sm:$0xf0] }
  0x24   :  { %382 = vmatpush.bf16.msra.mxu2 %v7890_v8  ;;  %v7942_v17 = vor.u32 %v8494_v15, %v7941_v14  ;;  %v8493_v20 = vld [vmem:[#allocation8 + $0xe4] sm:$0xf]  ;;  %v7882_v21 = vor.u32 %v8477_v18, %v7879_v19  ;;  %v7943_v22 = vld [vmem:[#allocation8 + $0xe8] sm:$0xf0]  ;;  %v7869_v23 = vld [vmem:[#allocation8 + $0x50] sm:$0xf] }
  0x25   :  { %396 = vmatpush.bf16.msra.mxu3 %v7954_v12  ;;  %v8476_v24 = vld [vmem:[#allocation8 + $0x54] sm:$0xf0]  ;;  %v7946_v25 = vor.u32 %v8493_v20, %v7943_v22  ;;  %v7933_v26 = vld [vmem:[#allocation8 + $0xd0] sm:$0xf]  ;;  %v8475_v28 = vld [vmem:[#allocation8 + $0x54] sm:$0xf] }
  0x26   :  { %v8492_v27 = vld [vmem:[#allocation8 + $0xd4] sm:$0xf0]  ;;  %355 = vmatpush.bf16.msra.mxu0 %v7878_v16  ;;  %v7870_v29 = vor.u32 %v8476_v24, %v7869_v23  ;;  %v7871_v30 = vld [vmem:[#allocation8 + $0x58] sm:$0xf0]  ;;  %v8491_v31 = vld [vmem:[#allocation8 + $0xd4] sm:$0xf] }
  0x27   :  { %v7935_v32 = vld [vmem:[#allocation8 + $0xd8] sm:$0xf0]  ;;  %369 = vmatpush.bf16.msra.mxu1 %v7942_v17  ;;  %v7934_v33 = vor.u32 %v8492_v27, %v7933_v26  ;;  %v7874_v34 = vor.u32 %v8475_v28, %v7871_v30  ;;  %v7861_v35 = vld [vmem:[#allocation8 + $0x40] sm:$0xf]  ;;  %v8474_v36 = vld [vmem:[#allocation8 + $0x44] sm:$0xf0] }
  0x28   :  { %383 = vmatpush.bf16.msra.mxu2 %v7882_v21  ;;  %v7925_v37 = vld [vmem:[#allocation8 + $0xc0] sm:$0xf]  ;;  %v7938_v38 = vor.u32 %v8491_v31, %v7935_v32  ;;  %v8490_v39 = vld [vmem:[#allocation8 + $0xc4] sm:$0xf0]  ;;  %v8473_v40 = vld [vmem:[#allocation8 + $0x44] sm:$0xf]  ;;  %v7862_v44 = vor.u32 %v8474_v36, %v7861_v35 }
  0x29   :  { %397 = vmatpush.bf16.msra.mxu3 %v7946_v25  ;;  %v7863_v41 = vld [vmem:[#allocation8 + $0x48] sm:$0xf0]  ;;  %v8489_v42 = vld [vmem:[#allocation8 + $0xc4] sm:$0xf]  ;;  %v7926_v45 = vor.u32 %v8490_v39, %v7925_v37  ;;  %v7853_v47 = vld [vmem:[#allocation8 + $0x30] sm:$0xf] }
  0x2a   :  { %v7927_v43 = vld [vmem:[#allocation8 + $0xc8] sm:$0xf0]  ;;  %356 = vmatpush.bf16.msra.mxu0 %v7870_v29  ;;  %v7866_v46 = vor.u32 %v8473_v40, %v7863_v41  ;;  %v8472_v48 = vld [vmem:[#allocation8 + $0x34] sm:$0xf0]  ;;  %v7917_v49 = vld [vmem:[#allocation8 + $0xb0] sm:$0xf] }
  0x2b   :  { %370 = vmatpush.bf16.msra.mxu1 %v7934_v33  ;;  %v7930_v50 = vor.u32 %v8489_v42, %v7927_v43  ;;  %v8488_v51 = vld [vmem:[#allocation8 + $0xb4] sm:$0xf0]  ;;  %v8471_v52 = vld [vmem:[#allocation8 + $0x34] sm:$0xf]  ;;  %v7855_v53 = vld [vmem:[#allocation8 + $0x38] sm:$0xf0]  ;;  %v7854_v56 = vor.u32 %v8472_v48, %v7853_v47 }
  0x2c   :  { %384 = vmatpush.bf16.msra.mxu2 %v7874_v34  ;;  %v8487_v54 = vld [vmem:[#allocation8 + $0xb4] sm:$0xf]  ;;  %v7919_v55 = vld [vmem:[#allocation8 + $0xb8] sm:$0xf0]  ;;  %v7918_v57 = vor.u32 %v8488_v51, %v7917_v49  ;;  %v7858_v58 = vor.u32 %v8471_v52, %v7855_v53  ;;  %v7845_v59 = vld [vmem:[#allocation8 + $0x20] sm:$0xf] }
  0x2d   :  { %398 = vmatpush.bf16.msra.mxu3 %v7938_v38  ;;  %v8470_v60 = vld [vmem:[#allocation8 + $0x24] sm:$0xf0]  ;;  %v7909_v61 = vld [vmem:[#allocation8 + $0xa0] sm:$0xf]  ;;  %v7922_v62 = vor.u32 %v8487_v54, %v7919_v55  ;;  %v8469_v0 = vld [vmem:[#allocation8 + $0x24] sm:$0xf] }
  0x2e   :  { %357 = vmatpush.bf16.msra.mxu0 %v7862_v44  ;;  %v8486_v63 = vld [vmem:[#allocation8 + $0xa4] sm:$0xf0]  ;;  %v7847_v1 = vld [vmem:[#allocation8 + $0x28] sm:$0xf0]  ;;  %v8485_v2 = vld [vmem:[#allocation8 + $0xa4] sm:$0xf]  ;;  %v7846_v4 = vor.u32 %v8470_v60, %v7845_v59 }
  0x2f   :  { %371 = vmatpush.bf16.msra.mxu1 %v7926_v45  ;;  %v7911_v3 = vld [vmem:[#allocation8 + $0xa8] sm:$0xf0]  ;;  %v7910_v5 = vor.u32 %v8486_v63, %v7909_v61  ;;  %v7850_v6 = vor.u32 %v8469_v0, %v7847_v1  ;;  %v7837_v7 = vld [vmem:[#allocation8 + $0x10] sm:$0xf]  ;;  %v8468_v8 = vld [vmem:[#allocation8 + $0x14] sm:$0xf0] }
  0x30   :  { %385 = vmatpush.bf16.msra.mxu2 %v7866_v46  ;;  %v7901_v9 = vld [vmem:[#allocation8 + $0x90] sm:$0xf]  ;;  %v7914_v10 = vor.u32 %v8485_v2, %v7911_v3  ;;  %v8484_v11 = vld [vmem:[#allocation8 + $0x94] sm:$0xf0]  ;;  %v8467_v12 = vld [vmem:[#allocation8 + $0x14] sm:$0xf]  ;;  %v7838_v16 = vor.u32 %v8468_v8, %v7837_v7 }
  0x31   :  { %399 = vmatpush.bf16.msra.mxu3 %v7930_v50  ;;  %v7839_v13 = vld [vmem:[#allocation8 + $0x18] sm:$0xf0]  ;;  %v8483_v14 = vld [vmem:[#allocation8 + $0x94] sm:$0xf]  ;;  %v7829_v17 = vld [vmem:[#allocation8] sm:$0xf]  ;;  %v7902_v20 = vor.u32 %v8484_v11, %v7901_v9 }
  0x32   :  { %358 = vmatpush.bf16.msra.mxu0 %v7854_v56  ;;  %v7903_v15 = vld [vmem:[#allocation8 + $0x98] sm:$0xf0]  ;;  %v8466_v18 = vld [vmem:[#allocation8 + $0x4] sm:$0xf0]  ;;  %v7893_v19 = vld [vmem:[#allocation8 + $0x80] sm:$0xf]  ;;  %v7842_v21 = vor.u32 %v8467_v12, %v7839_v13 }
  0x33   :  { %372 = vmatpush.bf16.msra.mxu1 %v7918_v57  ;;  %v8482_v22 = vld [vmem:[#allocation8 + $0x84] sm:$0xf0]  ;;  %v8465_v23 = vld [vmem:[#allocation8 + $0x4] sm:$0xf]  ;;  %v7831_v24 = vld [vmem:[#allocation8 + $0x8] sm:$0xf0]  ;;  %v7906_v25 = vor.u32 %v8483_v14, %v7903_v15  ;;  %v7830_v32 = vor.u32 %v8466_v18, %v7829_v17 }
  0x34   :  { %386 = vmatpush.bf16.msra.mxu2 %v7858_v58  ;;  %v8481_v26 = vld [vmem:[#allocation8 + $0x84] sm:$0xf]  ;;  %v7895_v27 = vld [vmem:[#allocation8 + $0x88] sm:$0xf0]  ;;  %v8527_v29 = vld [vmem:[#allocation11 + $0xec] sm:$0xf0]  ;;  %v7894_v36 = vor.u32 %v8482_v22, %v7893_v19  ;;  %v7834_v37 = vor.u32 %v8465_v23, %v7831_v24 }
  0x35   :  { %400 = vmatpush.bf16.msra.mxu3 %v7922_v62  ;;  %v8085_v28 = vld [vmem:[#allocation11 + $0xe0] sm:$0xf]  ;;  %v8559_v31 = vld [vmem:[#allocation11 + $0x1ec] sm:$0xf0]  ;;  %v8525_v33 = vld [vmem:[#allocation11 + $0xe4] sm:$0xf]  ;;  %v7898_v41 = vor.u32 %v8481_v26, %v7895_v27 }
  0x36   :  { %359 = vmatpush.bf16.msra.mxu0 %v7846_v4  ;;  %v8213_v30 = vld [vmem:[#allocation11 + $0x1e0] sm:$0xf]  ;;  %v8087_v34 = vld [vmem:[#allocation11 + $0xf0] sm:$0xf0]  ;;  %v8557_v35 = vld [vmem:[#allocation11 + $0x1e4] sm:$0xf]  ;;  %v8086_v42 = vor.u32 %v8527_v29, %v8085_v28 }
  0x37   :  { %373 = vmatpush.bf16.msra.mxu1 %v7910_v5  ;;  %v8215_v38 = vld [vmem:[#allocation11 + $0x1f0] sm:$0xf0]  ;;  %v7821_v39 = vld [vmem:[#allocation2] sm:$0xf]  ;;  %v8459_v43 = vld [vmem:[#allocation2 + $0x4] sm:$0xf]  ;;  %v8214_v45 = vor.u32 %v8559_v31, %v8213_v30  ;;  %v8090_v46 = vor.u32 %v8525_v33, %v8087_v34 }
  0x38   :  { %387 = vmatpush.bf16.msra.mxu2 %v7850_v6  ;;  %v8460_v40 = vld [vmem:[#allocation2 + $0x4] sm:$0xf0]  ;;  %v7823_v44 = vld [vmem:[#allocation2 + $0x8] sm:$0xf0]  ;;  %v8069_v47 = vld [vmem:[#allocation11 + $0xc0] sm:$0xf]  ;;  %v8218_v50 = vor.u32 %v8557_v35, %v8215_v38 }
  0x39   :  { %401 = vmatpush.bf16.msra.mxu3 %v7914_v10  ;;  %v8523_v48 = vld [vmem:[#allocation11 + $0xcc] sm:$0xf0]  ;;  %v8197_v49 = vld [vmem:[#allocation11 + $0x1c0] sm:$0xf]  ;;  %v7822_v51 = vor.u32 %v8460_v40, %v7821_v39  ;;  %v8521_v53 = vld [vmem:[#allocation11 + $0xc4] sm:$0xf]  ;;  %v7826_v55 = vor.u32 %v8459_v43, %v7823_v44 }
  0x3a   :  { %360 = vmatpush.bf16.msra.mxu0 %v7838_v16  ;;  %v8555_v52 = vld [vmem:[#allocation11 + $0x1cc] sm:$0xf0]  ;;  %v8071_v54 = vld [vmem:[#allocation11 + $0xd0] sm:$0xf0]  ;;  %v8553_v56 = vld [vmem:[#allocation11 + $0x1c4] sm:$0xf]  ;;  %v8070_v58 = vor.u32 %v8523_v48, %v8069_v47 }
  0x3b   :  { %374 = vmatpush.bf16.msra.mxu1 %v7902_v20  ;;  %v8199_v57 = vld [vmem:[#allocation11 + $0x1d0] sm:$0xf0]  ;;  %v8198_v59 = vor.u32 %v8555_v52, %v8197_v49  ;;  %v8074_v60 = vor.u32 %v8521_v53, %v8071_v54  ;;  %v8053_v61 = vld [vmem:[#allocation11 + $0xa0] sm:$0xf]  ;;  %v8519_v62 = vld [vmem:[#allocation11 + $0xac] sm:$0xf0] }
  0x3c   :  { %388 = vmatpush.bf16.msra.mxu2 %v7842_v21  ;;  %v8181_v63 = vld [vmem:[#allocation11 + $0x1a0] sm:$0xf]  ;;  %v8202_v0 = vor.u32 %v8553_v56, %v8199_v57  ;;  %v8551_v1 = vld [vmem:[#allocation11 + $0x1ac] sm:$0xf0]  ;;  %v8517_v2 = vld [vmem:[#allocation11 + $0xa4] sm:$0xf]  ;;  %v8054_v6 = vor.u32 %v8519_v62, %v8053_v61 }
  0x3d   :  { %402 = vmatpush.bf16.msra.mxu3 %v7906_v25  ;;  %v8055_v3 = vld [vmem:[#allocation11 + $0xb0] sm:$0xf0]  ;;  %v8549_v4 = vld [vmem:[#allocation11 + $0x1a4] sm:$0xf]  ;;  %v8182_v7 = vor.u32 %v8551_v1, %v8181_v63  ;;  %v8037_v9 = vld [vmem:[#allocation11 + $0x80] sm:$0xf] }
  0x3e   :  { %361 = vmatpush.bf16.msra.mxu0 %v7830_v32  ;;  %v8183_v5 = vld [vmem:[#allocation11 + $0x1b0] sm:$0xf0]  ;;  %v8058_v8 = vor.u32 %v8517_v2, %v8055_v3  ;;  %v8515_v10 = vld [vmem:[#allocation11 + $0x8c] sm:$0xf0]  ;;  %v8165_v11 = vld [vmem:[#allocation11 + $0x180] sm:$0xf] }
  0x3f   :  { %375 = vmatpush.bf16.msra.mxu1 %v7894_v36  ;;  %v8186_v12 = vor.u32 %v8549_v4, %v8183_v5  ;;  %v8547_v13 = vld [vmem:[#allocation11 + $0x18c] sm:$0xf0]  ;;  %v8513_v14 = vld [vmem:[#allocation11 + $0x84] sm:$0xf]  ;;  %v8039_v15 = vld [vmem:[#allocation11 + $0x90] sm:$0xf0]  ;;  %v8038_v18 = vor.u32 %v8515_v10, %v8037_v9 }
  0x40   :  { %389 = vmatpush.bf16.msra.mxu2 %v7834_v37  ;;  %v8545_v16 = vld [vmem:[#allocation11 + $0x184] sm:$0xf]  ;;  %v8167_v17 = vld [vmem:[#allocation11 + $0x190] sm:$0xf0]  ;;  %v8166_v19 = vor.u32 %v8547_v13, %v8165_v11  ;;  %v8042_v20 = vor.u32 %v8513_v14, %v8039_v15  ;;  %v8021_v21 = vld [vmem:[#allocation11 + $0x60] sm:$0xf] }
  0x41   :  { %403 = vmatpush.bf16.msra.mxu3 %v7898_v41  ;;  %362 = vmatmul.bf16.vlgmr.msra.gmra.mxu0 %v7822_v51  ;;  %v8511_v22 = vld [vmem:[#allocation11 + $0x6c] sm:$0xf0]  ;;  %v8149_v23 = vld [vmem:[#allocation11 + $0x160] sm:$0xf]  ;;  %v8170_v24 = vor.u32 %v8545_v16, %v8167_v17  ;;  %v8509_v26 = vld [vmem:[#allocation11 + $0x64] sm:$0xf] }
  0x42   :  { %826 = vmatpush.bf16.msrb.mxu0 %v8086_v42  ;;  %376 = vmatmul.bf16.vlgmr.msra.gmra.mxu1 %v7826_v55  ;;  %v8543_v25 = vld [vmem:[#allocation11 + $0x16c] sm:$0xf0]  ;;  %v8023_v27 = vld [vmem:[#allocation11 + $0x70] sm:$0xf0]  ;;  %v8541_v28 = vld [vmem:[#allocation11 + $0x164] sm:$0xf]  ;;  %v8022_v30 = vor.u32 %v8511_v22, %v8021_v21 }
  0x43   :  { %845 = vmatpush.bf16.msrb.mxu1 %v8214_v45  ;;  %390 = vmatmul.bf16.vlgmr.msra.gmra.mxu2 %v7822_v51  ;;  %v8151_v29 = vld [vmem:[#allocation11 + $0x170] sm:$0xf0]  ;;  %v8150_v31 = vor.u32 %v8543_v25, %v8149_v23  ;;  %v8026_v32 = vor.u32 %v8509_v26, %v8023_v27  ;;  %v8005_v33 = vld [vmem:[#allocation11 + $0x40] sm:$0xf]  ;;  %v8507_v34 = vld [vmem:[#allocation11 + $0x4c] sm:$0xf0] }
  0x44   :  { %864 = vmatpush.bf16.msrb.mxu2 %v8090_v46  ;;  %404 = vmatmul.bf16.vlgmr.msra.gmra.mxu3 %v7826_v55  ;;  %v8133_v35 = vld [vmem:[#allocation11 + $0x140] sm:$0xf]  ;;  %v8154_v36 = vor.u32 %v8541_v28, %v8151_v29  ;;  %v8539_v37 = vld [vmem:[#allocation11 + $0x14c] sm:$0xf0]  ;;  %v8505_v38 = vld [vmem:[#allocation11 + $0x44] sm:$0xf]  ;;  %v8006_v42 = vor.u32 %v8507_v34, %v8005_v33 }
  0x45   :  { %883 = vmatpush.bf16.msrb.mxu3 %v8218_v50  ;;  %v8007_v39 = vld [vmem:[#allocation11 + $0x50] sm:$0xf0]  ;;  %v8537_v40 = vld [vmem:[#allocation11 + $0x144] sm:$0xf]  ;;  %v8134_v43 = vor.u32 %v8539_v37, %v8133_v35  ;;  %v7989_v45 = vld [vmem:[#allocation11 + $0x20] sm:$0xf] }
  0x46   :  { %827 = vmatpush.bf16.msrb.mxu0 %v8070_v58  ;;  %v8135_v41 = vld [vmem:[#allocation11 + $0x150] sm:$0xf0]  ;;  %v8010_v44 = vor.u32 %v8505_v38, %v8007_v39  ;;  %v8503_v46 = vld [vmem:[#allocation11 + $0x2c] sm:$0xf0]  ;;  %v8117_v47 = vld [vmem:[#allocation11 + $0x120] sm:$0xf] }
  0x47   :  { %846 = vmatpush.bf16.msrb.mxu1 %v8198_v59  ;;  %v8138_v48 = vor.u32 %v8537_v40, %v8135_v41  ;;  %v8535_v49 = vld [vmem:[#allocation11 + $0x12c] sm:$0xf0]  ;;  %v8501_v50 = vld [vmem:[#allocation11 + $0x24] sm:$0xf]  ;;  %v7991_v51 = vld [vmem:[#allocation11 + $0x30] sm:$0xf0]  ;;  %v7990_v54 = vor.u32 %v8503_v46, %v7989_v45 }
  0x48   :  { %865 = vmatpush.bf16.msrb.mxu2 %v8074_v60  ;;  %v8533_v52 = vld [vmem:[#allocation11 + $0x124] sm:$0xf]  ;;  %v8119_v53 = vld [vmem:[#allocation11 + $0x130] sm:$0xf0]  ;;  %v7973_v55 = vld [vmem:[#allocation11] sm:$0xf]  ;;  %v8118_v57 = vor.u32 %v8535_v49, %v8117_v47  ;;  %v7994_v58 = vor.u32 %v8501_v50, %v7991_v51 }
  0x49   :  { %884 = vmatpush.bf16.msrb.mxu3 %v8202_v0  ;;  %v8499_v56 = vld [vmem:[#allocation11 + $0xc] sm:$0xf0]  ;;  %v8101_v59 = vld [vmem:[#allocation11 + $0x100] sm:$0xf]  ;;  %v8497_v61 = vld [vmem:[#allocation11 + $0x4] sm:$0xf]  ;;  %v8122_v62 = vor.u32 %v8533_v52, %v8119_v53 }
  0x4a   :  { %828 = vmatpush.bf16.msrb.mxu0 %v8054_v6  ;;  %v8531_v60 = vld [vmem:[#allocation11 + $0x10c] sm:$0xf0]  ;;  %v7975_v63 = vld [vmem:[#allocation11 + $0x10] sm:$0xf0]  ;;  %v8529_v0 = vld [vmem:[#allocation11 + $0x104] sm:$0xf]  ;;  %v7974_v5 = vor.u32 %v8499_v56, %v7973_v55 }
  0x4b   :  { %847 = vmatpush.bf16.msrb.mxu1 %v8182_v7  ;;  %v8103_v1 = vld [vmem:[#allocation11 + $0x110] sm:$0xf0]  ;;  %v7957_v2 = vld [vmem:[#allocation5] sm:$0xf]  ;;  %v8526_v3 = vld [vmem:[#allocation11 + $0xec] sm:$0xf]  ;;  %v8102_v9 = vor.u32 %v8531_v60, %v8101_v59  ;;  %v7978_v10 = vor.u32 %v8497_v61, %v7975_v63 }
  0x4c   :  { %866 = vmatpush.bf16.msrb.mxu2 %v8058_v8  ;;  %v8095_v4 = vld [vmem:[#allocation11 + $0xf8] sm:$0xf0]  ;;  %v8462_v6 = vld [vmem:[#allocation5 + $0x4] sm:$0xf0]  ;;  %v8558_v7 = vld [vmem:[#allocation11 + $0x1ec] sm:$0xf]  ;;  %v8106_v13 = vor.u32 %v8529_v0, %v8103_v1 }
  0x4d   :  { %885 = vmatpush.bf16.msrb.mxu3 %v8186_v12  ;;  %v8223_v8 = vld [vmem:[#allocation11 + $0x1f8] sm:$0xf0]  ;;  %v8461_v11 = vld [vmem:[#allocation5 + $0x4] sm:$0xf]  ;;  %v7959_v12 = vld [vmem:[#allocation5 + $0x8] sm:$0xf0]  ;;  %v8098_v14 = vor.u32 %v8526_v3, %v8095_v4 }
  0x4e   :  { %829 = vmatpush.bf16.msrb.mxu0 %v8038_v18  ;;  %v8522_v15 = vld [vmem:[#allocation11 + $0xcc] sm:$0xf]  ;;  %v8093_v16 = vld [vmem:[#allocation11 + $0xe8] sm:$0xf]  ;;  %v8528_v17 = vld [vmem:[#allocation11 + $0xf4] sm:$0xf0]  ;;  %v9119_v18 = vor.u32 %v8462_v6, %v7957_v2  ;;  %v9121_v23 = vor.u32 %v8461_v11, %v7959_v12 }
  0x4f   :  { %848 = vmatpush.bf16.msrb.mxu1 %v8166_v19  ;;  %v8226_v19 = vor.u32 %v8558_v7, %v8223_v8  ;;  %v8221_v21 = vld [vmem:[#allocation11 + $0x1e8] sm:$0xf]  ;;  %v8560_v22 = vld [vmem:[#allocation11 + $0x1f4] sm:$0xf0]  ;;  %v8207_v25 = vld [vmem:[#allocation11 + $0x1d8] sm:$0xf0]  ;;  %v8094_v26 = vor.u32 %v8528_v17, %v8093_v16 }
  0x50   :  { %867 = vmatpush.bf16.msrb.mxu2 %v8042_v20  ;;  %v8079_v20 = vld [vmem:[#allocation11 + $0xd8] sm:$0xf0]  ;;  %v8222_v28 = vor.u32 %v8560_v22, %v8221_v21  ;;  %v8518_v29 = vld [vmem:[#allocation11 + $0xac] sm:$0xf]  ;;  %v8205_v34 = vld [vmem:[#allocation11 + $0x1c8] sm:$0xf] }
  0x51   :  { %886 = vmatpush.bf16.msrb.mxu3 %v8170_v24  ;;  %v8554_v24 = vld [vmem:[#allocation11 + $0x1cc] sm:$0xf]  ;;  %v8082_v27 = vor.u32 %v8522_v15, %v8079_v20  ;;  %v8063_v33 = vld [vmem:[#allocation11 + $0xb8] sm:$0xf0]  ;;  %v8556_v35 = vld [vmem:[#allocation11 + $0x1d4] sm:$0xf0] }
  0x52   :  { %830 = vmatpush.bf16.msrb.mxu0 %v8022_v30  ;;  %v8077_v30 = vld [vmem:[#allocation11 + $0xc8] sm:$0xf]  ;;  %v8191_v37 = vld [vmem:[#allocation11 + $0x1b8] sm:$0xf0]  ;;  %v8066_v39 = vor.u32 %v8518_v29, %v8063_v33  ;;  %v8206_v40 = vor.u32 %v8556_v35, %v8205_v34  ;;  %v8514_v41 = vld [vmem:[#allocation11 + $0x8c] sm:$0xf] }
  0x53   :  { %849 = vmatpush.bf16.msrb.mxu1 %v8150_v31  ;;  %v8524_v31 = vld [vmem:[#allocation11 + $0xd4] sm:$0xf0]  ;;  %v8047_v45 = vld [vmem:[#allocation11 + $0x98] sm:$0xf0]  ;;  %v8189_v46 = vld [vmem:[#allocation11 + $0x1a8] sm:$0xf] }
  0x54   :  { %868 = vmatpush.bf16.msrb.mxu2 %v8026_v32  ;;  %v8210_v32 = vor.u32 %v8554_v24, %v8207_v25  ;;  %v8078_v38 = vor.u32 %v8524_v31, %v8077_v30  ;;  %v8552_v47 = vld [vmem:[#allocation11 + $0x1b4] sm:$0xf0]  ;;  %v8175_v49 = vld [vmem:[#allocation11 + $0x198] sm:$0xf0]  ;;  %v8050_v51 = vor.u32 %v8514_v41, %v8047_v45  ;;  %v8510_v53 = vld [vmem:[#allocation11 + $0x6c] sm:$0xf] }
  0x55   :  { %887 = vmatpush.bf16.msrb.mxu3 %v8154_v36  ;;  %v8550_v36 = vld [vmem:[#allocation11 + $0x1ac] sm:$0xf]  ;;  %v8190_v52 = vor.u32 %v8552_v47, %v8189_v46  ;;  %v8516_v55 = vld [vmem:[#allocation11 + $0x94] sm:$0xf0]  ;;  %v8159_v61 = vld [vmem:[#allocation11 + $0x178] sm:$0xf0] }
  0x56   :  { %831 = vmatpush.bf16.msrb.mxu0 %v8006_v42  ;;  %v8061_v42 = vld [vmem:[#allocation11 + $0xa8] sm:$0xf]  ;;  %v8548_v59 = vld [vmem:[#allocation11 + $0x194] sm:$0xf0]  ;;  %v8542_v60 = vld [vmem:[#allocation11 + $0x16c] sm:$0xf] }
  0x57   :  { %850 = vmatpush.bf16.msrb.mxu1 %v8134_v43  ;;  %v8520_v43 = vld [vmem:[#allocation11 + $0xb4] sm:$0xf0]  ;;  %v8464_v63 = vld [vmem:[#allocation5 + $0x14] sm:$0xf0]  ;;  %v8463_v1 = vld [vmem:[#allocation5 + $0x14] sm:$0xf] }
  0x58   :  { %869 = vmatpush.bf16.msrb.mxu2 %v8010_v44  ;;  %v8194_v44 = vor.u32 %v8550_v36, %v8191_v37  ;;  %v8062_v50 = vor.u32 %v8520_v43, %v8061_v42  ;;  %v7967_v2 = vld [vmem:[#allocation5 + $0x18] sm:$0xf0]  ;;  %v8506_v6 = vld [vmem:[#allocation11 + $0x4c] sm:$0xf]  ;;  %v8015_v7 = vld [vmem:[#allocation11 + $0x58] sm:$0xf0] }
  0x59   :  { %888 = vmatpush.bf16.msrb.mxu3 %v8138_v48  ;;  %v8546_v48 = vld [vmem:[#allocation11 + $0x18c] sm:$0xf]  ;;  %v8029_v11 = vld [vmem:[#allocation11 + $0x68] sm:$0xf]  ;;  %v8512_v12 = vld [vmem:[#allocation11 + $0x74] sm:$0xf0] }
  0x5a   :  { %832 = vmatpush.bf16.msrb.mxu0 %v7990_v54  ;;  %v8045_v54 = vld [vmem:[#allocation11 + $0x88] sm:$0xf]  ;;  %v8178_v56 = vor.u32 %v8546_v48, %v8175_v49  ;;  %v8143_v15 = vld [vmem:[#allocation11 + $0x158] sm:$0xf0]  ;;  %v8502_v20 = vld [vmem:[#allocation11 + $0x2c] sm:$0xf] }
  0x5b   :  { %851 = vmatpush.bf16.msrb.mxu1 %v8118_v57  ;;  %v8031_v57 = vld [vmem:[#allocation11 + $0x78] sm:$0xf0]  ;;  %v8046_v0 = vor.u32 %v8516_v55, %v8045_v54  ;;  %v8157_v17 = vld [vmem:[#allocation11 + $0x168] sm:$0xf]  ;;  %v8540_v31 = vld [vmem:[#allocation11 + $0x154] sm:$0xf0] }
  0x5c   :  { %870 = vmatpush.bf16.msrb.mxu2 %v7994_v58  ;;  %v8173_v58 = vld [vmem:[#allocation11 + $0x188] sm:$0xf]  ;;  %v8034_v3 = vor.u32 %v8510_v53, %v8031_v57  ;;  %v7999_v22 = vld [vmem:[#allocation11 + $0x38] sm:$0xf0]  ;;  %v8498_v34 = vld [vmem:[#allocation11 + $0xc] sm:$0xf] }
  0x5d   :  { %889 = vmatpush.bf16.msrb.mxu3 %v8122_v62  ;;  %v7965_v62 = vld [vmem:[#allocation5 + $0x10] sm:$0xf]  ;;  %v8174_v4 = vor.u32 %v8548_v59, %v8173_v58  ;;  %v8002_v24 = vor.u32 %v8502_v20, %v7999_v22  ;;  %v8013_v25 = vld [vmem:[#allocation11 + $0x48] sm:$0xf]  ;;  %v8127_v29 = vld [vmem:[#allocation11 + $0x138] sm:$0xf0] }
  0x5e   :  { %833 = vmatpush.bf16.msrb.mxu0 %v7974_v5  ;;  %v8162_v5 = vor.u32 %v8542_v60, %v8159_v61  ;;  %v9127_v8 = vor.u32 %v8464_v63, %v7965_v62  ;;  %v8141_v30 = vld [vmem:[#allocation11 + $0x148] sm:$0xf]  ;;  %v7983_v35 = vld [vmem:[#allocation11 + $0x18] sm:$0xf0]  ;;  %v8536_v43 = vld [vmem:[#allocation11 + $0x134] sm:$0xf0] }
  0x5f   :  { %852 = vmatpush.bf16.msrb.mxu1 %v8102_v9  ;;  %v9129_v9 = vor.u32 %v8463_v1, %v7967_v2  ;;  %v8142_v33 = vor.u32 %v8540_v31, %v8141_v30  ;;  %v7986_v36 = vor.u32 %v8498_v34, %v7983_v35  ;;  %v7997_v37 = vld [vmem:[#allocation11 + $0x28] sm:$0xf]  ;;  %v8111_v41 = vld [vmem:[#allocation11 + $0x118] sm:$0xf0]  ;;  %v8500_v47 = vld [vmem:[#allocation11 + $0x14] sm:$0xf0] }
  0x60   :  { %871 = vmatpush.bf16.msrb.mxu2 %v7978_v10  ;;  %v8018_v10 = vor.u32 %v8506_v6, %v8015_v7  ;;  %v8125_v42 = vld [vmem:[#allocation11 + $0x128] sm:$0xf]  ;;  %s9024_s4 = smov 64   ;;  %v9152_v7 = vld [vmem:[%s13215_s6] sm:$0xf]  ;;  %s9025_s18 = smov 48  }
  0x61   :  { %890 = vmatpush.bf16.msrb.mxu3 %v8106_v13  ;;  %834 = vmatmul.bf16.vlgmr.msrb.gmra.mxu0 %v9119_v18  ;;  %v8538_v13 = vld [vmem:[#allocation11 + $0x14c] sm:$0xf]  ;;  %v8126_v45 = vor.u32 %v8536_v43, %v8125_v42  ;;  %v7981_v46 = vld [vmem:[#allocation11 + $0x8] sm:$0xf]  ;;  %s9026_s6 = smov 112   ;;  %s9027_s3 = smov 96  }
  0x62   :  { %853 = vmatmul.bf16.vlgmr.msrb.gmra.mxu1 %v9121_v23  ;;  %902 = vmatpush.bf16.msra.mxu0 %v8094_v26  ;;  %v8146_v16 = vor.u32 %v8538_v13, %v8143_v15  ;;  %v8508_v26 = vld [vmem:[#allocation11 + $0x54] sm:$0xf0]  ;;  %v7982_v48 = vor.u32 %v8500_v47, %v7981_v46  ;;  %v8109_v49 = vld [vmem:[#allocation11 + $0x108] sm:$0xf]  ;;  %s9028_s23 = smov 32   ;;  %s9029_s24 = smov 80  }
  0x63   :  { %872 = vmatmul.bf16.vlgmr.msrb.gmra.mxu2 %v9119_v18  ;;  %921 = vmatpush.bf16.msra.mxu1 %v8222_v28  ;;  %v8014_v28 = vor.u32 %v8508_v26, %v8013_v25  ;;  %vm1063_vm0 = vcmask 1047556   ;;  %vm4730_vm1 = vcmask 130048   ;;  %vm7505_vm2 = vcmask 261120   ;;  %s9032_s5 = smov [#allocation14]   ;;  %s7803_s10 = sshll.u32 %s13218_s9, 4  ;;  %s7804_s10 = int_to_ptr.hbm [resolvable:$true] %s7803_s10 }
  0x64   :  { %940 = vmatpush.bf16.msra.mxu2 %v8098_v14  ;;  %891 = vmatmul.bf16.vlgmr.msrb.gmra.mxu3 %v9121_v23  ;;  %v8030_v14 = vor.u32 %v8512_v12, %v8029_v11  ;;  %v479_v11 = vperm.slane %v9152_v7, 1  ;;  %vm7508_vm3 = vcmask 392192   ;;  %vm7511_vm4 = vcmask 523264  }
  0x65   :  { %959 = vmatpush.bf16.msra.mxu3 %v8226_v19  ;;  %v8544_v19 = vld [vmem:[#allocation11 + $0x174] sm:$0xf0]  ;;  %vm7514_vm5 = vcmask 654336   ;;  %vm7517_vm6 = vcmask 785408   ;;  %vm7520_vm7 = vcmask 916480  }
  0x66   :  { %903 = vmatpush.bf16.msra.mxu0 %v8078_v38  ;;  %v8158_v21 = vor.u32 %v8544_v19, %v8157_v17  ;;  %v8504_v38 = vld [vmem:[#allocation11 + $0x34] sm:$0xf0] }
  0x67   :  { %922 = vmatpush.bf16.msra.mxu1 %v8206_v40  ;;  %v7998_v40 = vor.u32 %v8504_v38, %v7997_v37 }
  0x68   :  { %941 = vmatpush.bf16.msra.mxu2 %v8082_v27  ;;  %v8534_v27 = vld [vmem:[#allocation11 + $0x12c] sm:$0xf] }
  0x69   :  { %960 = vmatpush.bf16.msra.mxu3 %v8210_v32  ;;  %v8130_v32 = vor.u32 %v8534_v27, %v8127_v29 }
  0x6a   :  { %904 = vmatpush.bf16.msra.mxu0 %v8062_v50  ;;  %v8532_v50 = vld [vmem:[#allocation11 + $0x114] sm:$0xf0] }
  0x6b   :  { %923 = vmatpush.bf16.msra.mxu1 %v8190_v52  ;;  %v178_v52 = vld [vmem:[#allocation10] sm:$0x3] }
  0x6c   :  { %942 = vmatpush.bf16.msra.mxu2 %v8066_v39  ;;  %v8530_v39 = vld [vmem:[#allocation11 + $0x10c] sm:$0xf]  ;;  %v180_v53 = vperm.slane %v178_v52, 0 }
  0x6d   :  { %961 = vmatpush.bf16.msra.mxu3 %v8194_v44  ;;  %v8114_v44 = vor.u32 %v8530_v39, %v8111_v41 }
  0x6e   :  { %905 = vmatpush.bf16.msra.mxu0 %v8046_v0 }
  0x6f   :  { %924 = vmatpush.bf16.msra.mxu1 %v8174_v4 }
  0x70   :  { %943 = vmatpush.bf16.msra.mxu2 %v8050_v51  ;;  %v8110_v51 = vor.u32 %v8532_v50, %v8109_v49  ;;  %v9239_v49 = vperm.slane %v9152_v7, 2  ;;  %v9242_v50 = vperm.slane %v9152_v7, 3 }
  0x71   :  { %962 = vmatpush.bf16.msra.mxu3 %v8178_v56  ;;  %839 = vmatmul.bf16.gmra.mxu0 %v9127_v8  ;;  %v181_v56 = vperm.slane %v178_v52, 1 }
  0x72   :  { %858 = vmatmul.bf16.gmra.mxu1 %v9129_v9  ;;  %906 = vmatpush.bf16.msra.mxu0 %v8030_v14 }
  0x73   :  { %877 = vmatmul.bf16.gmra.mxu2 %v9127_v8  ;;  %925 = vmatpush.bf16.msra.mxu1 %v8158_v21 }
  0x74   :  { %944 = vmatpush.bf16.msra.mxu2 %v8034_v3  ;;  %896 = vmatmul.bf16.gmra.mxu3 %v9129_v9 }
  0x75   :  { %963 = vmatpush.bf16.msra.mxu3 %v8162_v5 }
  0x76   :  { %907 = vmatpush.bf16.msra.mxu0 %v8014_v28 }
  0x77   :  { %926 = vmatpush.bf16.msra.mxu1 %v8142_v33 }
  0x78   :  { %945 = vmatpush.bf16.msra.mxu2 %v8018_v10 }
  0x79   :  { %964 = vmatpush.bf16.msra.mxu3 %v8146_v16 }
  0x7a   :  { %908 = vmatpush.bf16.msra.mxu0 %v7998_v40 }
  0x7b   :  { %927 = vmatpush.bf16.msra.mxu1 %v8126_v45 }
  0x7c   :  { %946 = vmatpush.bf16.msra.mxu2 %v8002_v24 }
  0x7d   :  { %965 = vmatpush.bf16.msra.mxu3 %v8130_v32 }
  0x7e   :  { %909 = vmatpush.bf16.msra.mxu0 %v7982_v48 }
  0x7f   :  { %928 = vmatpush.bf16.msra.mxu1 %v8110_v51 }
  0x80   :  { %947 = vmatpush.bf16.msra.mxu2 %v7986_v36 }
  0x81   :  { %966 = vmatpush.bf16.msra.mxu3 %v8114_v44  ;;  %910 = vmatmul.bf16.vlgmr.msra.gmra.mxu0 %v9119_v18 }
  0x82   :  { %929 = vmatmul.bf16.vlgmr.msra.gmra.mxu1 %v9121_v23 }
  0x83   :  { %948 = vmatmul.bf16.vlgmr.msra.gmra.mxu2 %v9119_v18 }
  0x84   :  { %967 = vmatmul.bf16.vlgmr.msra.gmra.mxu3 %v9121_v23 }
  0x91   :  { %915 = vmatmul.bf16.gmra.mxu0 %v9127_v8 }
  0x92   :  { %934 = vmatmul.bf16.gmra.mxu1 %v9129_v9 }
  0x93   :  { %953 = vmatmul.bf16.gmra.mxu2 %v9127_v8  ;;  %v478_v8 = vperm.slane %v9152_v7, 0 }
  0x94   :  { %972 = vmatmul.bf16.gmra.mxu3 %v9129_v9 }
  0xbe   :  { %v363_v54 = vpop.f32.mrf.mxu0 }
  0xbf   :  { %v364_v55 = vadd.f32 %v363_v54, %v180_v53  ;;  %v377_v57 = vpop.f32.mrf.mxu1 }
  0xc1   :  { %v378_v60 = vadd.f32 %v377_v57, %v364_v55 }
  0xc6   :  { %v391_v58 = vpop.f32.mrf.mxu2  ;;  %v365_v18 = vpop.f32.mrf.mxu0 }
  0xc7   :  { %v392_v59 = vadd.f32 %v391_v58, %v181_v56  ;;  %v405_v61 = vpop.f32.mrf.mxu3  ;;  %v366_v63 = vadd.f32 %v365_v18, %v180_v53  ;;  %v379_v0 = vpop.f32.mrf.mxu1 }
  0xc9   :  { %v406_v62 = vadd.f32 %v405_v61, %v392_v59  ;;  %v380_v3 = vadd.f32 %v379_v0, %v366_v63 }
  0xcb   :  { %v9143_v23 = vpack.c.bf16 %v406_v62, %v378_v60 }
  0xcd   :  { %1016 = vrot.lane.b32.xlu2 %v9143_v23, %s9024_s4 }
  0xce   :  { %v393_v1 = vpop.f32.mrf.mxu2 }
  0xcf   :  { %v394_v2 = vadd.f32 %v393_v1, %v181_v56  ;;  %v407_v4 = vpop.f32.mrf.mxu3 }
  0xd1   :  { %v408_v5 = vadd.f32 %v407_v4, %v394_v2 }
  0xd3   :  { %v9147_v6 = vpack.c.bf16 %v408_v5, %v380_v3 }
  0xde   :  { %v835_v9 = vpop.f32.mrf.mxu0 }
  0xdf   :  { %v836_v10 = vadd.f32 %v835_v9, %v478_v8  ;;  %v854_v12 = vpop.f32.mrf.mxu1 }
  0xe1   :  { %v855_v14 = vadd.f32 %v854_v12, %v836_v10  ;;  %v9030_v10 = vmov 1983009808  }
  0xe6   :  { %v873_v13 = vpop.f32.mrf.mxu2  ;;  %v837_v21 = vpop.f32.mrf.mxu0 }
  0xe7   :  { %v874_v15 = vadd.f32 %v873_v13, %v479_v11  ;;  %v892_v16 = vpop.f32.mrf.mxu3  ;;  %v838_v24 = vadd.f32 %v837_v21, %v478_v8  ;;  %v856_v27 = vpop.f32.mrf.mxu1 }
  0xe9   :  { %v893_v17 = vadd.f32 %v892_v16, %v874_v15  ;;  %v857_v28 = vadd.f32 %v856_v27, %v838_v24  ;;  %v988_v27 = vrot.slane %v9143_v23, 4 }
  0xeb   :  { %v9156_v19 = vpack.c.bf16 %v893_v17, %v855_v14 }
  0xed   :  { %1811 = vrot.lane.b32.xlu1 %v9156_v19, %s9025_s18  ;;  %1795 = vrot.lane.b32.xlu0 %v9156_v19, %s9024_s4  ;;  %v1739_v17 = vrot.slane %v9156_v19, 4 }
  0xee   :  { %1747 = vrot.lane.b32.xlu2 %v9156_v19, %s9026_s6  ;;  %v875_v20 = vpop.f32.mrf.mxu2  ;;  %v840_v30 = vpop.f32.mrf.mxu0 }
  0xef   :  { %v876_v22 = vadd.f32 %v875_v20, %v479_v11  ;;  %v894_v25 = vpop.f32.mrf.mxu3  ;;  %v859_v32 = vpop.f32.mrf.mxu1  ;;  %v841_v43 = vadd.f32 %v840_v30, %v478_v8 }
  0xf1   :  { %v895_v26 = vadd.f32 %v894_v25, %v876_v22  ;;  %v860_v45 = vadd.f32 %v859_v32, %v841_v43 }
  0xf3   :  { %v9170_v29 = vpack.c.bf16 %v895_v26, %v857_v28 }
  0xf5   :  { %1763 = vrot.lane.b32.xlu1 %v9156_v19, %s9027_s3  ;;  %1827 = vrot.lane.b32.xlu0 %v9156_v19, %s9028_s23 }
  0xf6   :  { %1843 = vrot.lane.b32.xlu2 %v9156_v19, %s9019_s28  ;;  %v878_v31 = vpop.f32.mrf.mxu2  ;;  %v842_v34 = vpop.f32.mrf.mxu0 }
  0xf7   :  { %v897_v33 = vpop.f32.mrf.mxu3  ;;  %v843_v36 = vadd.f32 %v842_v34, %v478_v8  ;;  %v861_v38 = vpop.f32.mrf.mxu1  ;;  %v879_v44 = vadd.f32 %v878_v31, %v479_v11 }
  0xf9   :  { %v862_v40 = vadd.f32 %v861_v38, %v843_v36  ;;  %v898_v46 = vadd.f32 %v897_v33, %v879_v44  ;;  %v9031_v36 = vmov 1934713408  }
  0xfb   :  { %v9204_v47 = vpack.c.bf16 %v898_v46, %v860_v45 }
  0xfd   :  { %1813 = vrot.lane.b32.xlu1 %v9170_v29, %s9025_s18  ;;  %1779 = vrot.lane.b32.xlu0 %v9156_v19, %s9029_s24 }
  0xfe   :  { %1749 = vrot.lane.b32.xlu2 %v9170_v29, %s9026_s6  ;;  %v880_v35 = vpop.f32.mrf.mxu2  ;;  %v911_v51 = vpop.f32.mrf.mxu0 }
  0xff   :  { %v881_v37 = vadd.f32 %v880_v35, %v479_v11  ;;  %v899_v39 = vpop.f32.mrf.mxu3  ;;  %v912_v53 = vadd.f32 %v911_v51, %v9239_v49  ;;  %v930_v55 = vpop.f32.mrf.mxu1  ;;  %v1066_v11 = vunpack.c.l.s4 %v9030_v10 }
 0x101   :  { %v900_v41 = vadd.f32 %v899_v39, %v881_v37  ;;  %v931_v58 = vadd.f32 %v930_v55, %v912_v53  ;;  %v9285_v22 = vunpack.c.0.s8 %v1066_v11  ;;  %v1080_v37 = vunpack.c.l.s4 %v9031_v36 }
 0x103   :  { %v9190_v42 = vpack.c.bf16 %v900_v41, %v862_v40  ;;  %v9321_v53 = vunpack.c.0.s8 %v1080_v37 }
 0x105   :  { %1829 = vrot.lane.b32.xlu1 %v9170_v29, %s9028_s23  ;;  %1797 = vrot.lane.b32.xlu0 %v9170_v29, %s9024_s4 }
 0x106   :  { %1765 = vrot.lane.b32.xlu2 %v9170_v29, %s9027_s3  ;;  %v949_v52 = vpop.f32.mrf.mxu2  ;;  %v913_v61 = vpop.f32.mrf.mxu0 }
 0x107   :  { %v950_v54 = vadd.f32 %v949_v52, %v9242_v50  ;;  %v968_v56 = vpop.f32.mrf.mxu3  ;;  %v914_v63 = vadd.f32 %v913_v61, %v9239_v49  ;;  %v932_v1 = vpop.f32.mrf.mxu1 }
 0x109   :  { %v969_v59 = vadd.f32 %v968_v56, %v950_v54  ;;  %v933_v3 = vadd.f32 %v932_v1, %v914_v63 }
 0x10b   :  { %v9254_v60 = vpack.c.bf16 %v969_v59, %v931_v58 }
 0x10d   :  { %1845 = vrot.lane.b32.xlu0 %v9170_v29, %s9019_s28  ;;  %992 = vrot.lane.b32.xlu1 %v9143_v23, %s9026_s6  ;;  %13295 = vst [vmem:[#allocation20_spill] sm:$0xff] %v9254_v60 }
 0x10e   :  { %1032 = vrot.lane.b32.xlu2 %v9143_v23, %s9028_s23  ;;  %v951_v62 = vpop.f32.mrf.mxu2 }
 0x10f   :  { %v952_v0 = vadd.f32 %v951_v62, %v9242_v50  ;;  %v970_v2 = vpop.f32.mrf.mxu3  ;;  %v1740_v62 = vrot.slane %v9170_v29, 4 }
 0x111   :  { %v971_v4 = vadd.f32 %v970_v2, %v952_v0 }
 0x113   :  { %v9270_v8 = vpack.c.bf16 %v971_v4, %v933_v3 }
 0x115   :  { %1000 = vrot.lane.b32.xlu1 %v9143_v23, %s9027_s3  ;;  %1024 = vrot.lane.b32.xlu0 %v9143_v23, %s9025_s18  ;;  %13296 = vst [vmem:[#allocation21_spill] sm:$0xff] %v9270_v8 }
 0x116   :  { %1008 = vrot.lane.b32.xlu2 %v9143_v23, %s9029_s24 }
 0x11d   :  { %1781 = vrot.lane.b32.xlu1 %v9170_v29, %s9029_s24  ;;  %1040 = vrot.lane.b32.xlu0 %v9143_v23, %s9019_s28 }
 0x11e   :  { %1018 = vrot.lane.b32.xlu2 %v9147_v6, %s9024_s4 }
 0x125   :  { %1751 = vrot.lane.b32.xlu1 %v9204_v47, %s9026_s6  ;;  %1799 = vrot.lane.b32.xlu0 %v9204_v47, %s9024_s4 }
 0x126   :  { %1815 = vrot.lane.b32.xlu2 %v9204_v47, %s9025_s18 }
 0x127   :  { %v9236_v48 = vpop.permute.xlu2 %1016 }
 0x128   :  { %v1062_v24 = vrot.slane %v9236_v48, 4 }
 0x12a   :  { %v1064_v35 = vsel %vm1063_vm0, %v1062_v24, %v9143_v23 }
 0x12b   :  { %v9317_v23 = vperm.slane %v1064_v35, %v9285_v22 }
 0x12d   :  { %1767 = vrot.lane.b32.xlu1 %v9204_v47, %s9027_s3  ;;  %1831 = vrot.lane.b32.xlu0 %v9204_v47, %s9028_s23 }
 0x12e   :  { %1847 = vrot.lane.b32.xlu2 %v9204_v47, %s9019_s28 }
 0x135   :  { %1801 = vrot.lane.b32.xlu1 %v9190_v42, %s9024_s4  ;;  %1783 = vrot.lane.b32.xlu0 %v9204_v47, %s9029_s24 }
 0x136   :  { %1753 = vrot.lane.b32.xlu2 %v9190_v42, %s9026_s6 }
 0x13d   :  { %1833 = vrot.lane.b32.xlu1 %v9190_v42, %s9028_s23  ;;  %1817 = vrot.lane.b32.xlu0 %v9190_v42, %s9025_s18 }
 0x13e   :  { %1769 = vrot.lane.b32.xlu2 %v9190_v42, %s9027_s3 }
 0x145   :  { %994 = vrot.lane.b32.xlu1 %v9147_v6, %s9026_s6  ;;  %1849 = vrot.lane.b32.xlu0 %v9190_v42, %s9019_s28 }
 0x146   :  { %1034 = vrot.lane.b32.xlu2 %v9147_v6, %s9028_s23 }
 0x148   :  { %v9252_v57 = vpop.permute.xlu2 %1747 }
 0x149   :  { %v1755_v43 = vrot.slane %v9252_v57, 4 }
 0x14d   :  { %1002 = vrot.lane.b32.xlu1 %v9147_v6, %s9027_s3  ;;  %1026 = vrot.lane.b32.xlu0 %v9147_v6, %s9025_s18 }
 0x14e   :  { %1010 = vrot.lane.b32.xlu2 %v9147_v6, %s9029_s24 }
 0x150   :  { %v9262_v18 = vpop.permute.xlu2 %1843 }
 0x151   :  { %v1921_v54 = vrot.slane %v9262_v18, 4 }
 0x155   :  { %1785 = vrot.lane.b32.xlu1 %v9190_v42, %s9029_s24  ;;  %1042 = vrot.lane.b32.xlu0 %v9147_v6, %s9019_s28 }
 0x156   :  { %3339 = vrot.lane.b32.xlu2 %v9254_v60, %s9019_s28 }
 0x158   :  { %v9274_v9 = vpop.permute.xlu2 %1749 }
 0x15d   :  { %3291 = vrot.lane.b32.xlu1 %v9254_v60, %s9024_s4  ;;  %3307 = vrot.lane.b32.xlu0 %v9254_v60, %s9025_s18 }
 0x15e   :  { %3293 = vrot.lane.b32.xlu2 %v9270_v8, %s9024_s4 }
 0x15f   :  { %v1812_v5 = vpop.permute.xlu1 %1811  ;;  %v1796_v7 = vpop.permute.xlu0 %1795 }
 0x160   :  { %v1887_v12 = vrot.slane %v1796_v7, 4  ;;  %v1944_v26 = vsel %vm1063_vm0, %v1796_v7, %v1739_v17  ;;  %v1915_v28 = vrot.slane %v1812_v5, 4  ;;  %v9292_v30 = vpop.permute.xlu2 %1765  ;;  %v1972_v52 = vsel %vm1063_vm0, %v1812_v5, %v1755_v43 }
 0x161   :  { %v1948_v34 = vperm.slane %v1944_v26, %v9285_v22  ;;  %v1976_v0 = vperm.slane %v1972_v52, %v9285_v22  ;;  %v1772_v17 = vrot.slane %v9292_v30, 4 }
 0x162   :  { %v1888_v25 = vsel %vm1063_vm0, %v1887_v12, %v9156_v19  ;;  %v1120_v19 = vsel %vm1063_vm0, %v9236_v48, %v988_v27  ;;  %v1916_v40 = vsel %vm1063_vm0, %v1915_v28, %v9252_v57  ;;  %v989_v57 = vrot.slane %v9147_v6, 4  ;;  %v916_v27 = vpop.f32.mrf.mxu0 }
 0x163   :  { %v1892_v33 = vperm.slane %v1888_v25, %v9285_v22  ;;  %v9311_v41 = vperm.slane %v1120_v19, %v9285_v22  ;;  %v1957_v48 = vrot.slane %v1948_v34, 4  ;;  %v1920_v51 = vperm.slane %v1916_v40, %v9285_v22 }
 0x164   :  { %v1756_v12 = vrot.slane %v9274_v9, 4  ;;  %v1985_v25 = vrot.slane %v1976_v0, 4 }
 0x165   :  { %3323 = vrot.lane.b32.xlu1 %v9254_v60, %s9028_s23  ;;  %3243 = vrot.lane.b32.xlu0 %v9254_v60, %s9026_s6  ;;  %v1901_v46 = vrot.slane %v1892_v33, 4  ;;  %v1929_v3 = vrot.slane %v1920_v51, 4 }
 0x166   :  { %3245 = vrot.lane.b32.xlu2 %v9270_v8, %s9026_s6 }
 0x167   :  { %v1764_v13 = vpop.permute.xlu1 %1763  ;;  %v1828_v14 = vpop.permute.xlu0 %1827 }
 0x168   :  { %v1771_v15 = vrot.slane %v1764_v13, 4  ;;  %v1893_v16 = vrot.slane %v1828_v14, 4  ;;  %v9344_v7 = vpop.permute.xlu2 %1032 }
 0x169   :  { %v1069_v40 = vrot.slane %v9344_v7, 4 }
 0x16a   :  { %v1894_v20 = vsel %vm1063_vm0, %v1893_v16, %v1764_v13  ;;  %v1950_v21 = vsel %vm1063_vm0, %v1828_v14, %v1771_v15 }
 0x16b   :  { %v1898_v31 = vperm.slane %v1894_v20, %v9285_v22  ;;  %v1954_v32 = vperm.slane %v1950_v21, %v9285_v22 }
 0x16d   :  { %3275 = vrot.lane.b32.xlu1 %v9254_v60, %s9029_s24  ;;  %3259 = vrot.lane.b32.xlu0 %v9254_v60, %s9027_s3  ;;  %v1899_v44 = vrot.slane %v1898_v31, 4  ;;  %v1955_v45 = vrot.slane %v1954_v32, 4  ;;  %v1902_v55 = vsel %vm1063_vm0, %v1898_v31, %v1901_v46  ;;  %v1958_v56 = vsel %vm1063_vm0, %v1954_v32, %v1957_v48 }
 0x16e   :  { %3261 = vrot.lane.b32.xlu2 %v9270_v8, %s9027_s3  ;;  %v9339_v4 = vperm.slane %v1902_v55, %v9321_v53  ;;  %v9342_v5 = vperm.slane %v1958_v56, %v9321_v53 }
 0x16f   :  { %v9306_v38 = vpop.permute.xlu1 %1813  ;;  %v1780_v39 = vpop.permute.xlu0 %1779  ;;  %v1900_v59 = vsel %vm1063_vm0, %v1899_v44, %v1892_v33  ;;  %v1956_v61 = vsel %vm1063_vm0, %v1955_v45, %v1948_v34  ;;  %v917_v45 = vadd.f32 %v916_v27, %v9239_v49 }
 0x170   :  { %v1787_v1 = vrot.slane %v1780_v39, 4  ;;  %v1922_v2 = vsel %vm1063_vm0, %v1921_v54, %v1780_v39  ;;  %v9349_v13 = vperm.slane %v1900_v59, %v9321_v53  ;;  %v9352_v14 = vperm.slane %v1956_v61, %v9321_v53  ;;  %v954_v34 = vpop.f32.mrf.mxu2 }
 0x171   :  { %v1926_v10 = vperm.slane %v1922_v2, %v9285_v22  ;;  %v2027_v26 = vrot.slane %v9306_v38, 4  ;;  %v1913_v32 = vrot.slane %v9339_v4, 4  ;;  %v2084_v37 = vsel %vm1063_vm0, %v9306_v38, %v1756_v12  ;;  %v9415_v12 = vpop.permute.xlu2 %1008 }
 0x172   :  { %13297 = vst [vmem:[#allocation22_spill] sm:$0xff] %v9349_v13  ;;  %v1978_v15 = vsel %vm1063_vm0, %v9262_v18, %v1787_v1  ;;  %v1969_v18 = vrot.slane %v9342_v5, 4  ;;  %v1911_v35 = vrot.slane %v9349_v13, 4  ;;  %v1967_v36 = vrot.slane %v9352_v14, 4 }
 0x173   :  { %13298 = vst [vmem:[#allocation23_spill] sm:$0xff] %v9352_v14  ;;  %v1927_v20 = vrot.slane %v1926_v10, 4  ;;  %v1930_v21 = vsel %vm1063_vm0, %v1926_v10, %v1929_v3  ;;  %v1982_v24 = vperm.slane %v1978_v15, %v9285_v22  ;;  %v2483_v46 = vshrl.u32 %v9342_v5, 16 }
 0x174   :  { %v9372_v39 = vperm.slane %v1930_v21, %v9321_v53  ;;  %v2028_v38 = vsel %vm1063_vm0, %v2027_v26, %v9274_v9  ;;  %v9389_v52 = vsel %vm1063_vm0, 0, %v1969_v18  ;;  %v9392_v54 = vperm.slane %v2084_v37, %v9285_v22 }
 0x175   :  { %3309 = vrot.lane.b32.xlu1 %v9270_v8, %s9025_s18  ;;  %3325 = vrot.lane.b32.xlu0 %v9270_v8, %s9028_s23  ;;  %v1928_v19 = vsel %vm1063_vm0, %v1927_v20, %v1920_v51  ;;  %v1983_v33 = vrot.slane %v1982_v24, 4  ;;  %v955_v51 = vadd.f32 %v954_v34, %v9242_v50  ;;  %v2355_v55 = vshrl.u32 %v9339_v4, 16 }
 0x176   :  { %v9376_v43 = vperm.slane %v1928_v19, %v9321_v53  ;;  %v1986_v56 = vsel %vm1063_vm0, %v1982_v24, %v1985_v25  ;;  %v9399_v61 = vsel %vm1063_vm0, 0, %v1967_v36  ;;  %v9402_v9 = vsel %vm1063_vm0, 0, %v1911_v35  ;;  %v973_v35 = vpop.f32.mrf.mxu3 }
 0x177   :  { %v1830_v11 = vpop.permute.xlu1 %1829  ;;  %v9356_v16 = vpop.permute.xlu0 %1797  ;;  %v1984_v48 = vsel %vm1063_vm0, %v1983_v33, %v1976_v0  ;;  %13300 = vst [vmem:[#allocation25_spill] sm:$0xff] %v9399_v61  ;;  %v9405_v0 = vsel %vm1063_vm0, 0, %v1913_v32  ;;  %v1941_v1 = vrot.slane %v9372_v39, 4  ;;  %v9409_v2 = vperm.slane %v2028_v38, %v9285_v22 }
 0x178   :  { %13299 = vst [vmem:[#allocation24_spill] sm:$0xff] %v9376_v43  ;;  %v2005_v44 = vrot.slane %v1830_v11, 4  ;;  %v1939_v3 = vrot.slane %v9376_v43, 4  ;;  %v9413_v10 = vperm.slane %v1984_v48, %v9321_v53  ;;  %v2467_v20 = vshrl.u32 %v9352_v14, 16 }
 0x179   :  { %13301 = vst [vmem:[#allocation26_spill] sm:$0xff] %v9402_v9  ;;  %v2491_v21 = vshrl.u32 %v9389_v52, 16  ;;  %v9422_v24 = vperm.slane %v1986_v56, %v9321_v53  ;;  %v2062_v25 = vsel %vm1063_vm0, %v1830_v11, %v1772_v17  ;;  %v2339_v18 = vshrl.u32 %v9349_v13, 16  ;;  %v935_v17 = vpop.f32.mrf.mxu1 }
 0x17a   :  { %13302 = vst [vmem:[#allocation27_spill] sm:$0xff] %v9413_v10  ;;  %v2006_v15 = vsel %vm1063_vm0, %v2005_v44, %v9292_v30  ;;  %v2347_v19 = vshrl.u32 %v9402_v9, 16  ;;  %v2363_v30 = vshrl.u32 %v9405_v0, 16  ;;  %v9433_v33 = vsel %vm1063_vm0, 0, %v1941_v1 }
 0x17b   :  { %v9436_v34 = vperm.slane %v2006_v15, %v9285_v22  ;;  %v1999_v11 = vrot.slane %v9356_v16, 4  ;;  %v9441_v37 = vsel %vm1063_vm0, 0, %v1939_v3  ;;  %v1995_v44 = vrot.slane %v9413_v10, 4 }
 0x17c   :  { %13303 = vst [vmem:[#allocation28_spill] sm:$0xff] %v9441_v37  ;;  %v2066_v38 = vperm.slane %v2062_v25, %v9285_v22  ;;  %v1997_v48 = vrot.slane %v9422_v24, 4  ;;  %v2356_v56 = vshrl.u32 %v9372_v39, 16  ;;  %v2056_v15 = vsel %vm1063_vm0, %v9356_v16, %v1740_v62  ;;  %v1019_v62 = vpop.permute.xlu2 %1018 }
 0x17d   :  { %3341 = vrot.lane.b32.xlu1 %v9270_v8, %s9019_s28  ;;  %3277 = vrot.lane.b32.xlu0 %v9270_v8, %s9029_s24  ;;  %v2340_v27 = vshrl.u32 %v9376_v43, 16  ;;  %v2364_v3 = vshrl.u32 %v9433_v33, 16  ;;  %v936_v31 = vadd.f32 %v935_v17, %v917_v45  ;;  %v974_v28 = vadd.f32 %v973_v35, %v955_v51 }
 0x17e   :  { %v2348_v36 = vshrl.u32 %v9441_v37, 16  ;;  %v2353_v25 = vpack.i.b16 %v9372_v39, %v9339_v4  ;;  %v2011_v32 = vrot.slane %v9436_v34, 4  ;;  %v2000_v1 = vsel %vm1063_vm0, %v1999_v11, %v9170_v29 }
 0x17f   :  { %v9396_v59 = vpop.permute.xlu1 %992  ;;  %v9425_v26 = vpop.permute.xlu0 %1845  ;;  %v9461_v63 = vsel %vm1063_vm0, 0, %v1995_v44  ;;  %v2067_v16 = vrot.slane %v2066_v38, 4  ;;  %v2060_v45 = vperm.slane %v2056_v15, %v9285_v22  ;;  %v1998_v17 = vsel %vm1063_vm0, 0, %v1997_v48 }
 0x180   :  { %13304 = vst [vmem:[#allocation29_spill] sm:$0xff] %v9461_v63  ;;  %v9467_v35 = vpack.i.b16 %v2356_v56, %v2355_v55  ;;  %v2361_v4 = vpack.i.b16 %v9433_v33, %v9405_v0  ;;  %v2468_v39 = vshrl.u32 %v9413_v10, 16  ;;  %v9472_v29 = vpack.i.b16 %v2340_v27, %v2339_v18 }
 0x181   :  { %v9476_v44 = vpack.i.b16 %v2364_v3, %v2363_v30  ;;  %v9480_v58 = vpack.i.b16 %v2348_v36, %v2347_v19  ;;  %v2481_v0 = vpack.i.b16 %v9422_v24, %v9342_v5  ;;  %v2004_v27 = vperm.slane %v2000_v1, %v9285_v22 }
 0x182   :  { %13305 = vst [vmem:[#allocation30_spill] sm:$0xff] %v9467_v35  ;;  %v2484_v33 = vshrl.u32 %v9422_v24, 16  ;;  %v2069_v30 = vrot.slane %v2060_v45, 4  ;;  %v996_v48 = vrot.slane %v9396_v59, 4  ;;  %v9491_v56 = vpack.c.bf16 %v974_v28, %v936_v31 }
 0x183   :  { %13306 = vst [vmem:[#allocation31_spill] sm:$0xff] %v9472_v29  ;;  %v9493_v3 = vpack.i.b16 %v2468_v39, %v2467_v20  ;;  %v2492_v36 = vshrl.u32 %v1998_v17, 16  ;;  %v2489_v15 = vpack.i.b16 %v1998_v17, %v9389_v52  ;;  %v1175_v11 = vrot.slane %v1019_v62, 4 }
 0x184   :  { %13307 = vst [vmem:[#allocation32_spill] sm:$0xff] %v9476_v44  ;;  %v1232_v1 = vsel %vm1063_vm0, %v1019_v62, %v989_v57  ;;  %v9506_v31 = vrot.slane %v2353_v25, 4  ;;  %v2013_v20 = vrot.slane %v2004_v27, 4  ;;  %v2068_v24 = vsel %vm1063_vm0, %v2067_v16, %v2060_v45 }
 0x185   :  { %13308 = vst [vmem:[#allocation33_spill] sm:$0xff] %v9480_v58  ;;  %3311 = vrot.lane.b32.xlu1 %v9491_v56, %s9025_s18  ;;  %3295 = vrot.lane.b32.xlu0 %v9491_v56, %s9024_s4  ;;  %v9513_v57 = vpack.i.b16 %v2484_v33, %v2483_v46  ;;  %v2070_v62 = vsel %vm1063_vm0, %v2066_v38, %v2069_v30  ;;  %v9524_v16 = vrot.slane %v2361_v4, 4  ;;  %v13317_v38 = vrot.slane %v9311_v41, 4 }
 0x186   :  { %13309 = vst [vmem:[#allocation34_spill] sm:$0xff] %v9491_v56  ;;  %v9522_v25 = vpack.i.b16 %v2492_v36, %v2491_v21  ;;  %v2012_v45 = vsel %vm1063_vm0, %v2011_v32, %v2004_v27  ;;  %v9528_v5 = vperm.slane %v1232_v1, %v9285_v22  ;;  %v9531_v46 = vperm.slane %v2068_v24, %v9321_v53 }
 0x187   :  { %v1001_v51 = vpop.permute.xlu1 %1000  ;;  %v9487_v18 = vpop.permute.xlu0 %1024  ;;  %13310 = vst [vmem:[#allocation35_spill] sm:$0xff] %v9493_v3  ;;  %v2014_v32 = vsel %vm1063_vm0, %v9436_v34, %v2013_v20  ;;  %v9542_v4 = vperm.slane %v2070_v62, %v9321_v53  ;;  %v9546_v33 = vrot.slane %v2481_v0, 4  ;;  %v9555_v36 = vrot.slane %v2489_v15, 4 }
 0x188   :  { %v1004_v55 = vrot.slane %v1001_v51, 4  ;;  %v1148_v28 = vsel %vm1063_vm0, %v9487_v18, %v996_v48  ;;  %13311 = vst [vmem:[#allocation36_spill] sm:$0xff] %v9506_v31  ;;  %v1070_v39 = vsel %vm1063_vm0, %v1069_v40, %v1001_v51  ;;  %v9563_v0 = vperm.slane %v2014_v32, %v9321_v53 }
 0x189   :  { %13312 = vst [vmem:[#allocation37_spill] sm:$0xff] %v9513_v57  ;;  %v2033_v15 = vrot.slane %v9425_v26, 4  ;;  %v2499_v32 = vshrl.u32 %v9531_v46, 16  ;;  %v956_v57 = vpop.f32.mrf.mxu2 }
 0x18a   :  { %v1126_v17 = vsel %vm1063_vm0, %v9344_v7, %v1004_v55  ;;  %13313 = vst [vmem:[#allocation38_spill] sm:$0xff] %v9522_v25  ;;  %v1176_v7 = vsel %vm1063_vm0, %v1175_v11, %v9147_v6  ;;  %v1074_v55 = vperm.slane %v1070_v39, %v9285_v22  ;;  %v9549_v6 = vperm.slane %v2012_v45, %v9321_v53  ;;  %v9551_v11 = vpop.permute.xlu2 %1815 }
 0x18b   :  { %v1130_v48 = vperm.slane %v1126_v17, %v9285_v22  ;;  %13314 = vst [vmem:[#allocation39_spill] sm:$0xff] %v9524_v16  ;;  %v9559_v1 = vperm.slane %v1176_v7, %v9285_v22  ;;  %v2079_v17 = vrot.slane %v9531_v46, 4 }
 0x18c   :  { %13315 = vst [vmem:[#allocation40_spill] sm:$0xff] %v9528_v5  ;;  %v1075_v39 = vrot.slane %v1074_v55, 4 }
 0x18d   :  { %13316 = vst [vmem:[#allocation41_spill] sm:$0xff] %v9531_v46  ;;  %v1131_v40 = vrot.slane %v1130_v48, 4  ;;  %v1134_v52 = vsel %vm1063_vm0, %v1130_v48, %v13317_v38  ;;  %3263 = vrot.lane.b32.xlu1 %v9491_v56, %s9027_s3  ;;  %3247 = vrot.lane.b32.xlu0 %v9491_v56, %s9026_s6 }
 0x18e   :  { %13318 = vst [vmem:[#allocation42_spill] sm:$0xff] %v9546_v33 }
 0x18f   :  { %v1782_v21 = vpop.permute.xlu1 %1781  ;;  %v1132_v30 = vsel %vm1063_vm0, %v1131_v40, %v9311_v41  ;;  %13319 = vst [vmem:[#allocation43_spill] sm:$0xff] %v9555_v36  ;;  %v2081_v41 = vrot.slane %v9542_v4, 4  ;;  %v1091_v40 = vrot.slane %v9487_v18, 4  ;;  %v9583_v19 = vpop.permute.xlu0 %1040 }
 0x190   :  { %13320 = vst [vmem:[#allocation44_spill] sm:$0xff] %v9559_v1  ;;  %v1788_v20 = vrot.slane %v1782_v21, 4  ;;  %v2034_v34 = vsel %vm1063_vm0, %v2033_v15, %v1782_v21  ;;  %v1076_v21 = vsel %vm1063_vm0, %v1075_v39, %v9317_v23  ;;  %v9600_v15 = vperm.slane %v1148_v28, %v9285_v22 }
 0x191   :  { %v9595_v62 = vsel %vm1063_vm0, 0, %v2081_v41  ;;  %v13324_v41 = vrot.slane %v9415_v12, 4  ;;  %v9657_v1 = vperm.slane %v1132_v30, %v9321_v53  ;;  %v1097_v5 = vrot.slane %v9583_v19, 4 }
 0x192   :  { %v2090_v48 = vsel %vm1063_vm0, %v9425_v26, %v1788_v20  ;;  %v9586_v26 = vsel %vm1063_vm0, 0, %v2079_v17  ;;  %v13322_v20 = vrot.slane %v9317_v23, 4  ;;  %v2515_v23 = vshrl.u32 %v9542_v4, 16 }
 0x193   :  { %v2094_v38 = vperm.slane %v2090_v48, %v9285_v22  ;;  %13321 = vst [vmem:[#allocation45_spill] sm:$0xff] %v9586_v26  ;;  %v13323_v48 = vrot.slane %v9392_v54, 4  ;;  %v1161_v45 = vrot.slane %v9600_v15, 4  ;;  %v1355_v10 = vshrl.u32 %v9657_v1, 16 }
 0x194   :  { %v1078_v27 = vsel %vm1063_vm0, %v1074_v55, %v13322_v20  ;;  %v1092_v55 = vsel %vm1063_vm0, %v1091_v40, %v9396_v59  ;;  %v2038_v20 = vperm.slane %v2034_v34, %v9285_v22  ;;  %v2507_v34 = vshrl.u32 %v9586_v26, 16 }
 0x195   :  { %v2095_v18 = vrot.slane %v2094_v38, 4  ;;  %v2098_v51 = vsel %vm1063_vm0, %v2094_v38, %v13323_v48  ;;  %v1154_v48 = vsel %vm1063_vm0, %v9583_v19, %v13324_v41  ;;  %v9616_v28 = vperm.slane %v1078_v27, %v9321_v53  ;;  %3327 = vrot.lane.b32.xlu0 %v9491_v56, %s9028_s23 }
 0x196   :  { %v9603_v17 = vperm.slane %v2098_v51, %v9321_v53  ;;  %v918_v51 = vpop.f32.mrf.mxu0  ;;  %v9625_v40 = vperm.slane %v1076_v21, %v9321_v53  ;;  %v9634_v27 = vperm.slane %v1092_v55, %v9285_v22  ;;  %v9640_v21 = vperm.slane %v1134_v52, %v9321_v53 }
 0x197   :  { %v2096_v38 = vsel %vm1063_vm0, %v2095_v18, %v9392_v54  ;;  %v2523_v54 = vshrl.u32 %v9595_v62, 16  ;;  %v9627_v18 = vpop.permute.xlu2 %1847  ;;  %v9644_v8 = vadd.f32 %v918_v51, %v9239_v49  ;;  %v2039_v41 = vrot.slane %v2038_v20, 4 }
 0x198   :  { %v9619_v39 = vperm.slane %v2096_v38, %v9321_v53  ;;  %v2109_v59 = vrot.slane %v9603_v17, 4  ;;  %v2516_v7 = vshrl.u32 %v9603_v17, 16  ;;  %v1089_v60 = vrot.slane %v9616_v28, 4 }
 0x199   :  { %v1087_v52 = vrot.slane %v9625_v40, 4  ;;  %v13327_v49 = vrot.slane %v9409_v2, 4  ;;  %v2040_v30 = vsel %vm1063_vm0, %v2039_v41, %v9409_v2  ;;  %v1371_v63 = vshrl.u32 %v9640_v21, 16 }
 0x19a   :  { %13325 = vst [vmem:[#allocation46_spill] sm:$0xff] %v9619_v39  ;;  %v2107_v24 = vrot.slane %v9619_v39, 4  ;;  %v9651_v38 = vsel %vm1063_vm0, 0, %v2109_v59  ;;  %v2500_v25 = vshrl.u32 %v9619_v39, 16  ;;  %v9666_v3 = vpack.i.b16 %v2516_v7, %v2515_v23 }
 0x19b   :  { %v2042_v51 = vsel %vm1063_vm0, %v2038_v20, %v13327_v49  ;;  %v2524_v49 = vshrl.u32 %v9651_v38, 16  ;;  %v1105_v39 = vrot.slane %v9634_v27, 4  ;;  %v9684_v19 = vsel %vm1063_vm0, 0, %v1087_v52 }
 0x19c   :  { %v9648_v55 = vsel %vm1063_vm0, 0, %v2107_v24  ;;  %v9671_v46 = vpack.i.b16 %v2500_v25, %v2499_v32  ;;  %v2025_v24 = vrot.slane %v9563_v0, 4  ;;  %v9679_v26 = vperm.slane %v2042_v51, %v9321_v53 }
 0x19d   :  { %13326 = vst [vmem:[#allocation47_spill] sm:$0xff] %v9648_v55  ;;  %v2508_v59 = vshrl.u32 %v9648_v55, 16  ;;  %v9687_v2 = vsel %vm1063_vm0, 0, %v1089_v60  ;;  %v957_v25 = vadd.f32 %v956_v57, %v9242_v50  ;;  %v9690_v32 = vpack.i.b16 %v2524_v49, %v2523_v54  ;;  %3343 = vrot.lane.b32.xlu0 %v9491_v56, %s9019_s28  ;;  %v9704_v60 = vpop.permute.xlu0 %1799 }
 0x19e   :  { %13328 = vst [vmem:[#allocation48_spill] sm:$0xff] %v9671_v46  ;;  %v1145_v23 = vrot.slane %v9640_v21, 4  ;;  %v9702_v52 = vperm.slane %v2040_v30, %v9321_v53  ;;  %v1143_v50 = vrot.slane %v9657_v1, 4  ;;  %v1098_v54 = vsel %vm1063_vm0, %v1097_v5, %v9415_v12 }
 0x19f   :  { %v9681_v7 = vpack.i.b16 %v2508_v59, %v2507_v34  ;;  %v13330_v34 = vrot.slane %v9549_v6, 4  ;;  %v1158_v59 = vperm.slane %v1154_v48, %v9285_v22  ;;  %v2053_v30 = vrot.slane %v9679_v26, 4 }
 0x1a0   :  { %v2388_v56 = vshrl.u32 %v9679_v26, 16  ;;  %v2051_v12 = vrot.slane %v9702_v52, 4  ;;  %v2387_v5 = vshrl.u32 %v9563_v0, 16  ;;  %v1102_v48 = vperm.slane %v1098_v54, %v9285_v22 }
 0x1a1   :  { %13329 = vst [vmem:[#allocation49_spill] sm:$0xff] %v9681_v7  ;;  %v9699_v51 = vsel %vm1063_vm0, 0, %v13330_v34  ;;  %v9714_v34 = vsel %vm1063_vm0, 0, %v2025_v24  ;;  %v1159_v7 = vrot.slane %v1158_v59, 4  ;;  %v1162_v57 = vsel %vm1063_vm0, %v1158_v59, %v1161_v45 }
 0x1a2   :  { %v1170_v49 = vperm.slane %v1162_v57, %v9321_v53  ;;  %v2395_v24 = vshrl.u32 %v9714_v34, 16  ;;  %v1144_v41 = vsel %vm1063_vm0, 0, %v1143_v50  ;;  %v1146_v46 = vsel %vm1063_vm0, 0, %v1145_v23  ;;  %v937_v50 = vpop.f32.mrf.mxu1 }
 0x1a3   :  { %v1160_v20 = vsel %vm1063_vm0, %v1159_v7, %v9600_v15  ;;  %v2054_v55 = vsel %vm1063_vm0, 0, %v2053_v30  ;;  %v2385_v45 = vpack.i.b16 %v9679_v26, %v9563_v0  ;;  %v2372_v54 = vshrl.u32 %v9702_v52, 16  ;;  %v975_v0 = vpop.f32.mrf.mxu3  ;;  %v9742_v26 = vpop.permute.xlu1 %1751 }
 0x1a4   :  { %v1166_v59 = vperm.slane %v1160_v20, %v9321_v53  ;;  %v1173_v36 = vrot.slane %v1170_v49, 4  ;;  %v9736_v33 = vpack.i.b16 %v2388_v56, %v2387_v5  ;;  %v1369_v23 = vpack.i.b16 %v1170_v49, %v9640_v21 }
 0x1a5   :  { %v9740_v15 = vsel %vm1063_vm0, 0, %v2051_v12  ;;  %v1103_v7 = vrot.slane %v1102_v48, 4  ;;  %v1372_v14 = vshrl.u32 %v1170_v49, 16  ;;  %v2396_v20 = vshrl.u32 %v2054_v55, 16  ;;  %v1832_v44 = vpop.permute.xlu0 %1831 }
 0x1a6   :  { %v1171_v30 = vrot.slane %v1166_v59, 4  ;;  %v1363_v57 = vshrl.u32 %v1144_v41, 16  ;;  %v1174_v5 = vsel %vm1063_vm0, 0, %v1173_v36  ;;  %v1353_v61 = vpack.i.b16 %v1166_v59, %v9657_v1 }
 0x1a7   :  { %v1379_v12 = vshrl.u32 %v1146_v46, 16  ;;  %v1106_v58 = vsel %vm1063_vm0, %v1102_v48, %v1105_v39  ;;  %v1356_v49 = vshrl.u32 %v1166_v59, 16  ;;  %v938_v35 = vadd.f32 %v937_v50, %v9644_v8 }
 0x1a8   :  { %v1172_v56 = vsel %vm1063_vm0, 0, %v1171_v30  ;;  %v976_v29 = vadd.f32 %v975_v0, %v957_v25  ;;  %v1104_v16 = vsel %vm1063_vm0, %v1103_v7, %v9634_v27  ;;  %v1373_v21 = vpack.i.b16 %v1372_v14, %v1371_v63 }
 0x1a9   :  { %v1361_v9 = vpack.i.b16 %v1172_v56, %v1144_v41  ;;  %v1364_v37 = vshrl.u32 %v1172_v56, 16  ;;  %v1357_v31 = vpack.i.b16 %v1356_v49, %v1355_v10  ;;  %v1377_v30 = vpack.i.b16 %v1174_v5, %v1146_v46 }
 0x1aa   :  { %v1380_v13 = vshrl.u32 %v1174_v5, 16  ;;  %v1757_v36 = vrot.slane %v9742_v26, 4  ;;  %v2380_v1 = vshrl.u32 %v9740_v15, 16  ;;  %v2393_v43 = vpack.i.b16 %v2054_v55, %v9714_v34 }
 0x1ab   :  { %v9757_v39 = vperm.slane %v1106_v58, %v9321_v53  ;;  %v1365_v8 = vpack.i.b16 %v1364_v37, %v1363_v57  ;;  %v9760_v25 = vperm.slane %v1104_v16, %v9321_v53  ;;  %v1471_v41 = vrot.slane %v1369_v23, 4  ;;  %v13366_v23 = vld [vmem:[#allocation31_spill] sm:$0xff]  ;;  %v13367_v57 = vld [vmem:[#allocation30_spill] sm:$0xff] }
 0x1ac   :  { %v1381_v27 = vpack.i.b16 %v1380_v13, %v1379_v12  ;;  %v1477_v48 = vrot.slane %v1377_v30, 4  ;;  %v2377_v63 = vpack.i.b16 %v9740_v15, %v9699_v51  ;;  %v9764_v14 = vpack.i.b16 %v2396_v20, %v2395_v24 }
 0x1ad   :  { %v1499_v10 = vrot.slane %v1373_v21, 4  ;;  %v9766_v46 = vpack.c.bf16 %v976_v29, %v938_v35  ;;  %v9769_v55 = vsel %vm1063_vm0, %v1471_v41, %v1353_v61  ;;  %v2196_v13 = vsel %vm1063_vm0, %v9551_v11, %v1757_v36  ;;  %v1768_v35 = vpop.permute.xlu1 %1767  ;;  %v1784_v7 = vpop.permute.xlu0 %1783 }
 0x1ae   :  { %v9772_v58 = vsel %vm1063_vm0, %v1477_v48, %v1361_v9  ;;  %v1505_v37 = vrot.slane %v1381_v27, 4  ;;  %v2647_v16 = vrot.slane %v2385_v45, 4  ;;  %v2653_v34 = vrot.slane %v2393_v43, 4 }
 0x1af   :  { %13331 = vst [vmem:[#allocation50_spill] sm:$0xff] %v9766_v46  ;;  %v1117_v59 = vrot.slane %v9757_v39, 4  ;;  %v9778_v24 = vsel %vm1063_vm0, %v1499_v10, %v1357_v31  ;;  %3249 = vrot.lane.b32.xlu1 %v9766_v46, %s9026_s6  ;;  %3297 = vrot.lane.b32.xlu2 %v9766_v46, %s9024_s4  ;;  %v13332_v61 = vshrl.u32 %v9549_v6, 16  ;;  %v13333_v29 = vshrl.u32 %v9699_v51, 16 }
 0x1b0   :  { %v1115_v43 = vrot.slane %v9760_v25, 4  ;;  %v9794_v31 = vsel %vm1063_vm0, %v1505_v37, %v1365_v8  ;;  %3313 = vrot.lane.b32.xlu0 %v9766_v46, %s9025_s18  ;;  %v13335_v51 = vrot.slane %v9204_v47, 4  ;;  %v13336_v0 = vpack.i.b16 %v9651_v38, %v9595_v62  ;;  %v9840_v37 = vpop.permute.xlu2 %1753 }
 0x1b1   :  { %v9786_v9 = vpack.i.b16 %v2372_v54, %v13332_v61  ;;  %v9790_v45 = vpack.i.b16 %v2380_v1, %v13333_v29  ;;  %v13334_v54 = vpack.i.b16 %v9603_v17, %v9542_v4  ;;  %v2111_v56 = vrot.slane %v9704_v60, 4  ;;  %13338 = vst [vmem:[#allocation51_spill] sm:$0xff] %v9840_v37 }
 0x1b2   :  { %v2168_v15 = vsel %vm1063_vm0, %v9704_v60, %v13335_v51  ;;  %v9812_v20 = vrot.slane %v13336_v0, 4  ;;  %v1773_v12 = vrot.slane %v1768_v35, 4  ;;  %v13337_v4 = vpack.i.b16 %v9702_v52, %v9549_v6 }
 0x1b3   :  { %v9803_v50 = vrot.slane %v13334_v54, 4  ;;  %v2172_v5 = vperm.slane %v2168_v15, %v9285_v22  ;;  %v9823_v49 = vsel %vm1063_vm0, %v2653_v34, %v2377_v63  ;;  %v1118_v21 = vsel %vm1063_vm0, 0, %v1117_v59  ;;  %v13359_v59 = vld [vmem:[#allocation22_spill] sm:$0xff] }
 0x1b4   :  { %v9820_v17 = vsel %vm1063_vm0, %v2647_v16, %v13337_v4  ;;  %v2117_v30 = vrot.slane %v1832_v44, 4  ;;  %v9827_v62 = vsel %vm1063_vm0, 0, %v1115_v43  ;;  %v1305_v38 = vpack.i.b16 %v9757_v39, %v9616_v28 }
 0x1b5   :  { %v2174_v60 = vsel %vm1063_vm0, %v1832_v44, %v1773_v12  ;;  %v1789_v36 = vrot.slane %v1784_v7, 4  ;;  %v1308_v6 = vshrl.u32 %v9757_v39, 16  ;;  %v2181_v52 = vrot.slane %v2172_v5, 4 }
 0x1b6   :  { %v2118_v1 = vsel %vm1063_vm0, %v2117_v30, %v1768_v35  ;;  %v2178_v8 = vperm.slane %v2174_v60, %v9285_v22  ;;  %v1292_v27 = vshrl.u32 %v9760_v25, 16  ;;  %v1313_v41 = vpack.i.b16 %v1118_v21, %v9687_v2 }
 0x1b7   :  { %v1316_v48 = vshrl.u32 %v1118_v21, 16  ;;  %v2112_v63 = vsel %vm1063_vm0, %v2111_v56, %v9204_v47  ;;  %v1300_v10 = vshrl.u32 %v9827_v62, 16  ;;  %3329 = vrot.lane.b32.xlu1 %v9766_v46, %s9028_s23  ;;  %v2202_v16 = vsel %vm1063_vm0, %v9627_v18, %v1789_v36 }
 0x1b8   :  { %v2179_v44 = vrot.slane %v2178_v8, 4  ;;  %v2182_v39 = vsel %vm1063_vm0, %v2178_v8, %v2181_v52  ;;  %v13339_v47 = vrot.slane %v9551_v11, 4  ;;  %v2122_v61 = vperm.slane %v2118_v1, %v9285_v22 }
 0x1b9   :  { %v13340_v29 = vshrl.u32 %v9616_v28, 16  ;;  %v2200_v54 = vperm.slane %v2196_v13, %v9285_v22  ;;  %v2116_v51 = vperm.slane %v2112_v63, %v9285_v22  ;;  %v1289_v0 = vpack.i.b16 %v9760_v25, %v9625_v40  ;;  %v1802_v25 = vpop.permute.xlu1 %1801  ;;  %v13363_v13 = vld [vmem:[#allocation26_spill] sm:$0xff] }
 0x1ba   :  { %v2140_v35 = vsel %vm1063_vm0, %v13339_v47, %v9742_v26  ;;  %v2180_v15 = vsel %vm1063_vm0, %v2179_v44, %v2172_v5  ;;  %v13341_v56 = vshrl.u32 %v9687_v2, 16  ;;  %v1415_v26 = vrot.slane %v1305_v38, 4 }
 0x1bb   :  { %v9856_v43 = vpack.i.b16 %v1308_v6, %v13340_v29  ;;  %v13342_v28 = vshrl.u32 %v9625_v40, 16  ;;  %v13343_v21 = vshrl.u32 %v9684_v19, 16  ;;  %v9878_v30 = vrot.slane %v1313_v41, 4  ;;  %v13361_v41 = vld [vmem:[#allocation36_spill] sm:$0xff] }
 0x1bc   :  { %v9865_v11 = vpack.i.b16 %v1316_v48, %v13341_v56  ;;  %v9881_v2 = vperm.slane %v2140_v35, %v9285_v22  ;;  %v2123_v38 = vrot.slane %v2122_v61, 4  ;;  %v9884_v60 = vperm.slane %v2182_v39, %v9321_v53  ;;  %v13362_v6 = vld [vmem:[#allocation28_spill] sm:$0xff] }
 0x1bd   :  { %v9870_v4 = vpack.i.b16 %v1292_v27, %v13342_v28  ;;  %v9876_v5 = vpack.i.b16 %v1300_v10, %v13343_v21  ;;  %v13344_v40 = vrot.slane %v9627_v18, 4  ;;  %v2209_v52 = vrot.slane %v2200_v54, 4 }
 0x1be   :  { %v2125_v1 = vrot.slane %v2116_v51, 4  ;;  %v9891_v8 = vperm.slane %v2180_v15, %v9321_v53  ;;  %v9894_v27 = vsel %vm1063_vm0, %v1415_v26, %v1289_v0  ;;  %v9899_v48 = vperm.slane %v9769_v55, %v9285_v22  ;;  %v9920_v15 = vpop.permute.xlu2 %1769 }
 0x1bf   :  { %v2146_v36 = vsel %vm1063_vm0, %v13344_v40, %v1784_v7  ;;  %v2223_v63 = vrot.slane %v1802_v25, 4  ;;  %3345 = vrot.lane.b32.xlu1 %v9766_v46, %s9019_s28  ;;  %v13347_v7 = vrot.slane %v9190_v42, 4  ;;  %v2206_v39 = vperm.slane %v2202_v16, %v9285_v22 }
 0x1c0   :  { %13345 = vst [vmem:[#allocation52_spill] sm:$0xff] %v9891_v8  ;;  %v2126_v18 = vsel %vm1063_vm0, %v2122_v61, %v2125_v1  ;;  %v2150_v44 = vperm.slane %v2146_v36, %v9285_v22  ;;  %v9911_v47 = vperm.slane %v9772_v58, %v9285_v22  ;;  %v2153_v55 = vrot.slane %v9881_v2, 4 }
 0x1c1   :  { %13346 = vst [vmem:[#allocation53_spill] sm:$0xff] %v9899_v48  ;;  %v2280_v10 = vsel %vm1063_vm0, %v1802_v25, %v13347_v7  ;;  %v2124_v35 = vsel %vm1063_vm0, %v2123_v38, %v2116_v51  ;;  %v2193_v61 = vrot.slane %v9884_v60, 4  ;;  %v9918_v29 = vperm.slane %v9778_v24, %v9285_v22 }
 0x1c2   :  { %13348 = vst [vmem:[#allocation54_spill] sm:$0xff] %v9911_v47  ;;  %v2191_v0 = vrot.slane %v9891_v8, 4  ;;  %v2207_v56 = vrot.slane %v2206_v39, 4  ;;  %v2210_v16 = vsel %vm1063_vm0, %v2206_v39, %v2209_v52  ;;  %v9925_v58 = vperm.slane %v2126_v18, %v9321_v53 }
 0x1c3   :  { %13349 = vst [vmem:[#allocation55_spill] sm:$0xff] %v9918_v29  ;;  %v2224_v26 = vsel %vm1063_vm0, %v2223_v63, %v9190_v42  ;;  %v9930_v51 = vperm.slane %v2280_v10, %v9285_v22  ;;  %v9933_v28 = vperm.slane %v2210_v16, %v9321_v53  ;;  %v9936_v24 = vperm.slane %v2124_v35, %v9321_v53 }
 0x1c4   :  { %v2547_v21 = vshrl.u32 %v9884_v60, 16  ;;  %v2151_v25 = vrot.slane %v2150_v44, 4  ;;  %v2208_v38 = vsel %vm1063_vm0, %v2207_v56, %v2200_v54  ;;  %v9941_v40 = vsel %vm1063_vm0, 0, %v2193_v61 }
 0x1c5   :  { %v2531_v36 = vshrl.u32 %v9891_v8, 16  ;;  %v9945_v42 = vperm.slane %v2208_v38, %v9321_v53  ;;  %v2221_v52 = vrot.slane %v9933_v28, 4  ;;  %v9949_v1 = vsel %vm1063_vm0, 0, %v2191_v0 }
 0x1c6   :  { %13351 = vst [vmem:[#allocation57_spill] sm:$0xff] %v9949_v1  ;;  %v2154_v63 = vsel %vm1063_vm0, %v2150_v44, %v2153_v55  ;;  %v2548_v54 = vshrl.u32 %v9933_v28, 16  ;;  %v2555_v61 = vshrl.u32 %v9941_v40, 16  ;;  %v9987_v56 = vperm.slane %v9794_v31, %v9285_v22  ;;  %v9997_v18 = vpop.permute.xlu2 %1034  ;;  %v13358_v31 = vld [vmem:[#allocation24_spill] sm:$0xff] }
 0x1c7   :  { %13350 = vst [vmem:[#allocation56_spill] sm:$0xff] %v9945_v42  ;;  %v2219_v7 = vrot.slane %v9945_v42, 4  ;;  %v9957_v10 = vsel %vm1063_vm0, 0, %v2221_v52  ;;  %v2532_v35 = vshrl.u32 %v9945_v42, 16  ;;  %3265 = vrot.lane.b32.xlu1 %v9766_v46, %s9027_s3  ;;  %v9972_v16 = vperm.slane %v2154_v63, %v9321_v53 }
 0x1c8   :  { %v9963_v0 = vpack.i.b16 %v2548_v54, %v2547_v21  ;;  %v2556_v55 = vshrl.u32 %v9957_v10, 16  ;;  %v2539_v21 = vshrl.u32 %v9949_v1, 16  ;;  %13356 = vst [vmem:[#allocation62_spill] sm:$0xff] %v9987_v56  ;;  %v1774_v63 = vrot.slane %v9920_v15, 4  ;;  %v13369_v1 = vld [vmem:[#allocation33_spill] sm:$0xff]  ;;  %v10120_v56 = vpop.permute.xlu0 %1817 }
 0x1c9   :  { %v9975_v38 = vsel %vm1063_vm0, 0, %v2219_v7  ;;  %v9977_v52 = vpack.i.b16 %v2532_v35, %v2531_v36  ;;  %v9991_v7 = vperm.slane %v2224_v26, %v9285_v22  ;;  %v2152_v36 = vsel %vm1063_vm0, %v2151_v25, %v9881_v2  ;;  %v13365_v2 = vld [vmem:[#allocation39_spill] sm:$0xff]  ;;  %13376 = vst [vmem:[#allocation36_spill] sm:$0xff] %v10120_v56 }
 0x1ca   :  { %13352 = vst [vmem:[#allocation58_spill] sm:$0xff] %v9963_v0  ;;  %v2540_v39 = vshrl.u32 %v9975_v38, 16  ;;  %v9983_v44 = vpack.i.b16 %v2556_v55, %v2555_v61  ;;  %v2135_v35 = vrot.slane %v9936_v24, 4  ;;  %v2137_v54 = vrot.slane %v9925_v58, 4 }
 0x1cb   :  { %13353 = vst [vmem:[#allocation59_spill] sm:$0xff] %v9975_v38  ;;  %v2293_v61 = vrot.slane %v9930_v51, 4  ;;  %v13360_v34 = vpack.i.b16 %v13358_v31, %v13359_v59  ;;  %v13364_v12 = vpack.i.b16 %v13362_v6, %v13363_v13  ;;  %v13368_v46 = vrot.slane %v13367_v57, 4  ;;  %v10030_v6 = vpop.permute.xlu1 %1833 }
 0x1cc   :  { %13354 = vst [vmem:[#allocation60_spill] sm:$0xff] %v9977_v52  ;;  %v10000_v55 = vpack.i.b16 %v2540_v39, %v2539_v21  ;;  %v13370_v39 = vld [vmem:[#allocation32_spill] sm:$0xff]  ;;  %v10021_v59 = vperm.slane %v2152_v36, %v9321_v53  ;;  %v10037_v57 = vperm.slane %v9823_v49, %v9285_v22  ;;  %v2419_v38 = vshrl.u32 %v9925_v58, 16 }
 0x1cd   :  { %13355 = vst [vmem:[#allocation61_spill] sm:$0xff] %v9983_v44  ;;  %v2592_v26 = vsel %vm1063_vm0, %v13361_v41, %v13360_v34  ;;  %v2598_v25 = vsel %vm1063_vm0, %v13365_v2, %v13364_v12  ;;  %v2620_v52 = vsel %vm1063_vm0, %v13368_v46, %v13366_v23  ;;  %v13371_v21 = vrot.slane %v13370_v39, 4 }
 0x1ce   :  { %13357 = vst [vmem:[#allocation63_spill] sm:$0xff] %v10000_v55  ;;  %v2165_v34 = vrot.slane %v9972_v16, 4  ;;  %v10025_v13 = vperm.slane %v2598_v25, %v9285_v22  ;;  %v10033_v46 = vperm.slane %v2592_v26, %v9285_v22  ;;  %v13372_v23 = vrot.slane %v9736_v33, 4 }
 0x1cf   :  { %v2626_v55 = vsel %vm1063_vm0, %v13371_v21, %v13369_v1  ;;  %v13373_v1 = vrot.slane %v9764_v14, 4  ;;  %v10049_v31 = vperm.slane %v2620_v52, %v9285_v22  ;;  %v10057_v33 = vperm.slane %v9820_v17, %v9285_v22 }
 0x1d0   :  { %v10028_v12 = vperm.slane %v2626_v55, %v9285_v22  ;;  %v2676_v41 = vsel %vm1063_vm0, %v13372_v23, %v9786_v9  ;;  %v2603_v55 = vrot.slane %v10025_v13, 4  ;;  %v2659_v9 = vrot.slane %v10037_v57, 4 }
 0x1d1   :  { %v2682_v36 = vsel %vm1063_vm0, %v13373_v1, %v9790_v45  ;;  %v2680_v14 = vperm.slane %v2676_v41, %v9285_v22  ;;  %v2286_v45 = vsel %vm1063_vm0, %v10030_v6, %v1774_v63  ;;  %v10070_v17 = vsel %vm1063_vm0, 0, %v2137_v54 }
 0x1d2   :  { %v2631_v26 = vrot.slane %v10028_v12, 4  ;;  %v10053_v49 = vperm.slane %v2682_v36, %v9285_v22  ;;  %v2604_v52 = vsel %vm1063_vm0, %v2603_v55, %v10033_v46  ;;  %v2290_v39 = vperm.slane %v2286_v45, %v9285_v22 }
 0x1d3   :  { %v10073_v21 = vperm.slane %v2604_v52, %v9321_v53  ;;  %v2660_v63 = vsel %vm1063_vm0, %v2659_v9, %v10057_v33  ;;  %v2163_v41 = vrot.slane %v10021_v59, 4  ;;  %v10082_v1 = vsel %vm1063_vm0, 0, %v2165_v34 }
 0x1d4   :  { %v2632_v2 = vsel %vm1063_vm0, %v2631_v26, %v10049_v31  ;;  %v2687_v25 = vrot.slane %v10053_v49, 4  ;;  %v2291_v55 = vrot.slane %v2290_v39, 4  ;;  %v10086_v54 = vperm.slane %v2660_v63, %v9321_v53 }
 0x1d5   :  { %v10076_v23 = vperm.slane %v2632_v2, %v9321_v53  ;;  %v10094_v52 = vsel %vm1063_vm0, %v2290_v39, %v2293_v61  ;;  %v10098_v34 = vsel %vm1063_vm0, 0, %v2135_v35  ;;  %v2404_v2 = vshrl.u32 %v10021_v59, 16 }
 0x1d6   :  { %v2688_v36 = vsel %vm1063_vm0, %v2687_v25, %v2680_v14  ;;  %v10101_v25 = vpop.permute.xlu2 %1010  ;;  %v10105_v63 = vsel %vm1063_vm0, %v2291_v55, %v9930_v51  ;;  %v2420_v61 = vshrl.u32 %v9972_v16, 16  ;;  %v2403_v35 = vshrl.u32 %v9936_v24, 16 }
 0x1d7   :  { %v10089_v26 = vperm.slane %v2688_v36, %v9321_v53  ;;  %v3041_v45 = vpack.i.b16 %v10076_v23, %v10073_v21  ;;  %13374 = vst [vmem:[#allocation24_spill] sm:$0xff] %v10101_v25  ;;  %v2427_v9 = vshrl.u32 %v10070_v17, 16  ;;  %v10115_v8 = vsel %vm1063_vm0, 0, %v2163_v41 }
 0x1d8   :  { %13375 = vst [vmem:[#allocation22_spill] sm:$0xff] %v10105_v63  ;;  %v2428_v42 = vshrl.u32 %v10082_v1, 16  ;;  %v10124_v47 = vpack.i.b16 %v2404_v2, %v2403_v35  ;;  %v2417_v63 = vpack.i.b16 %v9972_v16, %v9925_v58  ;;  %v13378_v41 = vrot.slane %v9840_v37, 4 }
 0x1d9   :  { %v3089_v39 = vpack.i.b16 %v10089_v26, %v10086_v54  ;;  %v4727_v36 = vunpack.c.l.b16 %v3041_v45  ;;  %v10137_v55 = vpack.i.b16 %v2420_v61, %v2419_v38  ;;  %v2605_v58 = vrot.slane %v10033_v46, 4 }
 0x1da   :  { %13377 = vst [vmem:[#allocation28_spill] sm:$0xff] %v10124_v47  ;;  %v10132_v44 = vsel %vm1063_vm0, %v10120_v56, %v13378_v41  ;;  %v10141_v35 = vpack.i.b16 %v2428_v42, %v2427_v9  ;;  %v2633_v41 = vrot.slane %v10049_v31, 4  ;;  %v2661_v48 = vrot.slane %v10057_v33, 4 }
 0x1db   :  { %v4728_v29 = vunpack.c.l.b16 %v3089_v39  ;;  %13379 = vst [vmem:[#allocation26_spill] sm:$0xff] %v10132_v44  ;;  %v2689_v45 = vrot.slane %v2680_v14, 4  ;;  %v10147_v47 = vrot.slane %v2417_v63, 4  ;;  %v3042_v38 = vshrl.u32 %v10073_v21, 16 }
 0x1dc   :  { %v3043_v42 = vshrl.u32 %v10076_v23, 16  ;;  %v2634_v46 = vsel %vm1063_vm0, %v10028_v12, %v2633_v41  ;;  %v2662_v31 = vsel %vm1063_vm0, %v10037_v57, %v2661_v48  ;;  %v3090_v61 = vshrl.u32 %v10086_v54, 16 }
 0x1dd   :  { %v4729_v51 = vpack.c.b16 %v4728_v29, %v4727_v36  ;;  %v2606_v29 = vsel %vm1063_vm0, %v10025_v13, %v2605_v58  ;;  %v2690_v33 = vsel %vm1063_vm0, %v10053_v49, %v2689_v45  ;;  %v2642_v14 = vperm.slane %v2634_v46, %v9321_v53 }
 0x1de   :  { %v2614_v9 = vperm.slane %v2606_v29, %v9321_v53  ;;  %v2670_v63 = vperm.slane %v2662_v31, %v9321_v53  ;;  %v2698_v13 = vperm.slane %v2690_v33, %v9321_v53  ;;  %v3044_v36 = vpack.i.b16 %v3043_v42, %v3042_v38 }
 0x1df   :  { %v4735_v16 = vsel %vm4730_vm1, %v4729_v51, 0  ;;  %v3091_v51 = vshrl.u32 %v10089_v26, 16  ;;  %v2615_v58 = vrot.slane %v10073_v21, 4  ;;  %v2643_v12 = vrot.slane %v10076_v23, 4 }
 0x1e0   :  { %4744 = vmatpush.bf16.xpose.msrb.mxu0 %v4735_v16  ;;  %v3053_v16 = vpack.i.b16 %v2642_v14, %v2614_v9  ;;  %v3101_v48 = vpack.i.b16 %v2698_v13, %v2670_v63  ;;  %v4750_v57 = vunpack.c.l.b16 %v3044_v36  ;;  %v2671_v49 = vrot.slane %v10086_v54, 4 }
 0x1e1   :  { %v3092_v45 = vpack.i.b16 %v3091_v51, %v3090_v61  ;;  %v2616_v41 = vsel %vm1063_vm0, 0, %v2615_v58  ;;  %v2644_v29 = vsel %vm1063_vm0, 0, %v2643_v12  ;;  %v2699_v38 = vrot.slane %v10089_v26, 4 }
 0x1e2   :  { %v4816_v42 = vunpack.c.l.b16 %v3053_v16  ;;  %v4817_v46 = vunpack.c.l.b16 %v3101_v48  ;;  %v2672_v31 = vsel %vm1063_vm0, 0, %v2671_v49  ;;  %v3047_v33 = vpack.i.b16 %v2644_v29, %v2616_v41 }
 0x1e3   :  { %v4751_v21 = vunpack.c.l.b16 %v3092_v45  ;;  %v2700_v23 = vsel %vm1063_vm0, 0, %v2699_v38  ;;  %v3054_v39 = vshrl.u32 %v2614_v9, 16  ;;  %v3055_v2 = vshrl.u32 %v2642_v14, 16 }
 0x1e4   :  { %v4818_v36 = vpack.c.b16 %v4817_v46, %v4816_v42  ;;  %v3095_v25 = vpack.i.b16 %v2700_v23, %v2672_v31  ;;  %v4772_v54 = vunpack.c.l.b16 %v3047_v33  ;;  %v3102_v61 = vshrl.u32 %v2670_v63, 16 }
 0x1e5   :  { %v4752_v51 = vpack.c.b16 %v4751_v21, %v4750_v57  ;;  %v3056_v58 = vpack.i.b16 %v3055_v2, %v3054_v39  ;;  %v3103_v44 = vshrl.u32 %v2698_v13, 16  ;;  %v2617_v12 = vrot.slane %v2614_v9, 4 }
 0x1e6   :  { %v4823_v26 = vsel %vm4730_vm1, %v4818_v36, 0  ;;  %v4773_v16 = vunpack.c.l.b16 %v3095_v25  ;;  %v2645_v48 = vrot.slane %v2642_v14, 4  ;;  %v2673_v37 = vrot.slane %v2670_v63, 4 }
 0x1e7   :  { %v4757_v49 = vsel %vm4730_vm1, %v4752_v51, 0  ;;  %v3104_v45 = vpack.i.b16 %v3103_v44, %v3102_v61  ;;  %v4838_v38 = vunpack.c.l.b16 %v3056_v58  ;;  %v2618_v56 = vsel %vm1063_vm0, 0, %v2617_v12 }
 0x1e8   :  { %4832 = vmatpush.bf16.xpose.msra.mxu0 %v4823_v26  ;;  %4766 = vmatpush.bf16.xpose.msrb.mxu1 %v4757_v49  ;;  %v4774_v42 = vpack.c.b16 %v4773_v16, %v4772_v54  ;;  %v2646_v46 = vsel %vm1063_vm0, 0, %v2645_v48  ;;  %v2674_v39 = vsel %vm1063_vm0, 0, %v2673_v37  ;;  %v2701_v2 = vrot.slane %v2698_v13, 4 }
 0x1e9   :  { %v4839_v9 = vunpack.c.l.b16 %v3104_v45  ;;  %v3059_v57 = vpack.i.b16 %v2646_v46, %v2618_v56  ;;  %v3048_v33 = vshrl.u32 %v2616_v41, 16  ;;  %v3049_v25 = vshrl.u32 %v2644_v29, 16 }
 0x1ea   :  { %v4779_v14 = vsel %vm4730_vm1, %v4774_v42, 0  ;;  %v2702_v63 = vsel %vm1063_vm0, 0, %v2701_v2  ;;  %v3096_v21 = vshrl.u32 %v2672_v31, 16  ;;  %v3097_v44 = vshrl.u32 %v2700_v23, 16 }
 0x1eb   :  { %v2229_v36 = vrot.slane %v10030_v6, 4  ;;  %4788 = vmatpush.bf16.xpose.msrb.mxu2 %v4779_v14  ;;  %v4840_v61 = vpack.c.b16 %v4839_v9, %v4838_v38  ;;  %v3107_v54 = vpack.i.b16 %v2702_v63, %v2674_v39  ;;  %v3050_v51 = vpack.i.b16 %v3049_v25, %v3048_v33 }
 0x1ec   :  { %v4860_v58 = vunpack.c.l.b16 %v3059_v57  ;;  %v3098_v12 = vpack.i.b16 %v3097_v44, %v3096_v21  ;;  %v3060_v37 = vshrl.u32 %v2618_v56, 16  ;;  %v3061_v13 = vshrl.u32 %v2646_v46, 16  ;;  %v13385_v21 = vld [vmem:[#allocation29_spill] sm:$0xff] }
 0x1ed   :  { %v4845_v26 = vsel %vm4730_vm1, %v4840_v61, 0  ;;  %v4861_v41 = vunpack.c.l.b16 %v3107_v54  ;;  %v3108_v29 = vshrl.u32 %v2674_v39, 16  ;;  %v3109_v16 = vshrl.u32 %v2702_v63, 16  ;;  %v13383_v63 = vld [vmem:[#allocation25_spill] sm:$0xff]  ;;  %v13387_v61 = vld [vmem:[#allocation27_spill] sm:$0xff] }
 0x1ee   :  { %v4794_v48 = vunpack.c.l.b16 %v3050_v51  ;;  %v4795_v49 = vunpack.c.l.b16 %v3098_v12  ;;  %v3062_v31 = vpack.i.b16 %v3061_v13, %v3060_v37  ;;  %v13380_v23 = vpack.i.b16 %v9827_v62, %v9684_v19  ;;  %v13392_v12 = vld [vmem:[#allocation43_spill] sm:$0xff] }
 0x1ef   :  { %v4862_v38 = vpack.c.b16 %v4861_v41, %v4860_v58  ;;  %v3110_v42 = vpack.i.b16 %v3109_v16, %v3108_v29  ;;  %v10189_v56 = vperm.slane %v9894_v27, %v9285_v22  ;;  %v13381_v9 = vrot.slane %v9856_v43, 4 }
 0x1f0   :  { %4854 = vmatpush.bf16.xpose.msra.mxu1 %v4845_v26  ;;  %v1422_v45 = vsel %vm1063_vm0, %v9878_v30, %v13380_v23  ;;  %v4796_v39 = vpack.c.b16 %v4795_v49, %v4794_v48  ;;  %v4882_v2 = vunpack.c.l.b16 %v3062_v31  ;;  %v13382_v19 = vrot.slane %v9865_v11, 4  ;;  %v13388_v11 = vld [vmem:[#allocation23_spill] sm:$0xff]  ;;  %v13394_v31 = vld [vmem:[#allocation37_spill] sm:$0xff] }
 0x1f1   :  { %v10192_v46 = vperm.slane %v1422_v45, %v9285_v22  ;;  %v1444_v57 = vsel %vm1063_vm0, %v13381_v9, %v9870_v4  ;;  %v4867_v30 = vsel %vm4730_vm1, %v4862_v38, 0  ;;  %v4883_v33 = vunpack.c.l.b16 %v3110_v42  ;;  %v13393_v49 = vld [vmem:[#allocation35_spill] sm:$0xff]  ;;  %v13396_v38 = vld [vmem:[#allocation38_spill] sm:$0xff] }
 0x1f2   :  { %v1450_v62 = vsel %vm1063_vm0, %v13382_v19, %v9876_v5  ;;  %v4801_v14 = vsel %vm4730_vm1, %v4796_v39, 0  ;;  %v13384_v43 = vshrl.u32 %v13383_v63, 16  ;;  %v13386_v4 = vshrl.u32 %v13385_v21, 16  ;;  %v13390_v5 = vld [vmem:[#allocation42_spill] sm:$0xff] }
 0x1f3   :  { %v1427_v27 = vrot.slane %v10192_v46, 4  ;;  %v10205_v25 = vperm.slane %v1450_v62, %v9285_v22  ;;  %4876 = vmatpush.bf16.xpose.msra.mxu2 %v4867_v30  ;;  %v13389_v54 = vpack.i.b16 %v13387_v61, %v13388_v11  ;;  %v13391_v58 = vpack.i.b16 %v13385_v21, %v13383_v63  ;;  %4810 = vmatpush.bf16.xpose.msrb.mxu3 %v4801_v14  ;;  %v13402_v21 = vld [vmem:[#allocation45_spill] sm:$0xff] }
 0x1f4   :  { %v2477_v44 = vpack.i.b16 %v13386_v4, %v13384_v43  ;;  %v4884_v13 = vpack.c.b16 %v4883_v33, %v4882_v2  ;;  %v10225_v41 = vperm.slane %v1444_v57, %v9285_v22  ;;  %v13395_v23 = vrot.slane %v13394_v31, 4  ;;  %v13398_v33 = vld [vmem:[#allocation46_spill] sm:$0xff]  ;;  %v13401_v43 = vld [vmem:[#allocation47_spill] sm:$0xff] }
 0x1f5   :  { %v2704_v51 = vsel %vm1063_vm0, %v13390_v5, %v13389_v54  ;;  %v2710_v37 = vsel %vm1063_vm0, %v13392_v12, %v13391_v58  ;;  %v1428_v26 = vsel %vm1063_vm0, %v1427_v27, %v10189_v56  ;;  %v1455_v29 = vrot.slane %v10205_v25, 4  ;;  %v13399_v27 = vld [vmem:[#allocation41_spill] sm:$0xff]  ;;  %v13404_v5 = vld [vmem:[#allocation48_spill] sm:$0xff] }
 0x1f6   :  { %v10229_v16 = vperm.slane %v2704_v51, %v9285_v22  ;;  %v10232_v48 = vperm.slane %v2710_v37, %v9285_v22  ;;  %v2732_v45 = vsel %vm1063_vm0, %v13395_v23, %v13393_v49  ;;  %v13397_v42 = vrot.slane %v13396_v38, 4  ;;  %v10287_v23 = vpop.permute.xlu1 %994 }
 0x1f7   :  { %v4889_v2 = vsel %vm4730_vm1, %v4884_v13, 0  ;;  %v1434_v9 = vperm.slane %v1428_v26, %v9321_v53  ;;  %v1456_v57 = vsel %vm1063_vm0, %v1455_v29, %v10225_v41  ;;  %v13400_v14 = vpack.i.b16 %v13398_v33, %v13399_v27 }
 0x1f8   :  { %v2738_v39 = vsel %vm1063_vm0, %v13397_v42, %v2477_v44  ;;  %v1462_v62 = vperm.slane %v1456_v57, %v9321_v53  ;;  %v2715_v30 = vrot.slane %v10232_v48, 4  ;;  %v13403_v4 = vpack.i.b16 %v13401_v43, %v13402_v21 }
 0x1f9   :  { %v10246_v19 = vperm.slane %v2738_v39, %v9285_v22  ;;  %v2760_v63 = vsel %vm1063_vm0, %v9803_v50, %v13400_v14  ;;  %v10261_v61 = vperm.slane %v2732_v45, %v9285_v22  ;;  %v13405_v51 = vrot.slane %v9666_v3, 4 }
 0x1fa   :  { %v2766_v44 = vsel %vm1063_vm0, %v9812_v20, %v13403_v4  ;;  %v1641_v50 = vpack.i.b16 %v1462_v62, %v1434_v9  ;;  %v2716_v12 = vsel %vm1063_vm0, %v2715_v30, %v10229_v16  ;;  %v10274_v37 = vperm.slane %v2760_v63, %v9285_v22  ;;  %v13406_v20 = vld [vmem:[#allocation49_spill] sm:$0xff] }
 0x1fb   :  { %4898 = vmatpush.bf16.xpose.msra.mxu3 %v4889_v2  ;;  %v2743_v11 = vrot.slane %v10246_v19, 4  ;;  %v10265_v54 = vperm.slane %v2766_v44, %v9285_v22  ;;  %v2788_v58 = vsel %vm1063_vm0, %v13405_v51, %v13404_v5  ;;  %v13407_v13 = vrot.slane %v9690_v32, 4 }
 0x1fc   :  { %v2722_v29 = vperm.slane %v2716_v12, %v9321_v53  ;;  %v10293_v45 = vsel %vm1063_vm0, %v2229_v36, %v9920_v15  ;;  %8267 = vmatmul.msk.bf16.vlgmr.msrb.gmra.mxu0 %vm4730_vm1, %v1641_v50  ;;  %v10298_v38 = vperm.slane %v2788_v58, %v9285_v22  ;;  %v1642_v42 = vshrl.u32 %v1434_v9, 16 }
 0x1fd   :  { %v2794_v26 = vsel %vm1063_vm0, %v13407_v13, %v13406_v20  ;;  %v2744_v49 = vsel %vm1063_vm0, %v2743_v11, %v10261_v61  ;;  %v2771_v3 = vrot.slane %v10265_v54, 4  ;;  %v1643_v57 = vshrl.u32 %v1462_v62, 16 }
 0x1fe   :  { %v10285_v31 = vperm.slane %v2794_v26, %v9285_v22  ;;  %v2750_v32 = vperm.slane %v2744_v49, %v9321_v53  ;;  %v1439_v30 = vrot.slane %v1434_v9, 4  ;;  %v1467_v15 = vrot.slane %v1462_v62, 4 }
 0x1ff   :  { %v2772_v39 = vsel %vm1063_vm0, %v2771_v3, %v10274_v37  ;;  %v3066_v36 = vshrl.u32 %v2722_v29, 16  ;;  %v1644_v14 = vpack.i.b16 %v1643_v57, %v1642_v42  ;;  %v2727_v51 = vrot.slane %v2722_v29, 4 }
 0x200   :  { %v2799_v2 = vrot.slane %v10285_v31, 4  ;;  %v2778_v6 = vperm.slane %v2772_v39, %v9321_v53  ;;  %v3065_v33 = vpack.i.b16 %v2750_v32, %v2722_v29  ;;  %v1440_v63 = vsel %vm1063_vm0, 0, %v1439_v30 }
 0x201   :  { %v3067_v43 = vshrl.u32 %v2750_v32, 16  ;;  %v1468_v44 = vsel %vm1063_vm0, 0, %v1467_v15  ;;  %8268 = vmatmul.msk.bf16.vlgmr.msrb.gmra.mxu1 %vm4730_vm1, %v1644_v14  ;;  %v2755_v62 = vrot.slane %v2750_v32, 4  ;;  %v2728_v26 = vsel %vm1063_vm0, 0, %v2727_v51 }
 0x202   :  { %v2800_v27 = vsel %vm1063_vm0, %v2799_v2, %v10298_v38  ;;  %v4904_v4 = vunpack.c.l.b16 %v3065_v33  ;;  %v3114_v11 = vshrl.u32 %v2778_v6, 16  ;;  %v1647_v9 = vpack.i.b16 %v1468_v44, %v1440_v63 }
 0x203   :  { %v2806_v21 = vperm.slane %v2800_v27, %v9321_v53  ;;  %v3068_v5 = vpack.i.b16 %v3067_v43, %v3066_v36  ;;  %v2783_v12 = vrot.slane %v2778_v6, 4  ;;  %v2756_v49 = vsel %vm1063_vm0, 0, %v2755_v62 }
 0x204   :  { %8269 = vmatmul.msk.bf16.vlgmr.msrb.gmra.mxu2 %vm4730_vm1, %v1647_v9  ;;  %v1648_v3 = vshrl.u32 %v1440_v63, 16  ;;  %v3071_v29 = vpack.i.b16 %v2756_v49, %v2728_v26  ;;  %v1649_v30 = vshrl.u32 %v1468_v44, 16  ;;  %v3072_v33 = vshrl.u32 %v2728_v26, 16 }
 0x205   :  { %v3113_v58 = vpack.i.b16 %v2806_v21, %v2778_v6  ;;  %v3115_v50 = vshrl.u32 %v2806_v21, 16  ;;  %v2811_v20 = vrot.slane %v2806_v21, 4  ;;  %v4926_v13 = vunpack.c.l.b16 %v3068_v5  ;;  %v1003_v6 = vpop.permute.xlu1 %1002 }
 0x206   :  { %v2784_v2 = vsel %vm1063_vm0, 0, %v2783_v12  ;;  %v3073_v27 = vshrl.u32 %v2756_v49, 16  ;;  %v4948_v43 = vunpack.c.l.b16 %v3071_v29  ;;  %v1650_v9 = vpack.i.b16 %v1649_v30, %v1648_v3 }
 0x207   :  { %v4905_v42 = vunpack.c.l.b16 %v3113_v58  ;;  %v3116_v39 = vpack.i.b16 %v3115_v50, %v3114_v11  ;;  %v2812_v57 = vsel %vm1063_vm0, 0, %v2811_v20  ;;  %v3120_v14 = vshrl.u32 %v2784_v2, 16 }
 0x208   :  { %v3119_v32 = vpack.i.b16 %v2812_v57, %v2784_v2  ;;  %v3121_v5 = vshrl.u32 %v2812_v57, 16  ;;  %v3074_v51 = vpack.i.b16 %v3073_v27, %v3072_v33  ;;  %v1005_v62 = vrot.slane %v1003_v6, 4  ;;  %8270 = vmatmul.msk.bf16.vlgmr.msrb.gmra.mxu3 %vm4730_vm1, %v1650_v9 }
 0x209   :  { %v4906_v15 = vpack.c.b16 %v4905_v42, %v4904_v4  ;;  %v4927_v36 = vunpack.c.l.b16 %v3116_v39  ;;  %v13408_v58 = vpack.i.b16 %v10082_v1, %v10070_v17  ;;  %v13409_v12 = vrot.slane %v9997_v18, 4  ;;  %v10329_v1 = vpop.permute.xlu0 %1849 }
 0x20a   :  { %v4949_v21 = vunpack.c.l.b16 %v3119_v32  ;;  %v3122_v4 = vpack.i.b16 %v3121_v5, %v3120_v14  ;;  %v2234_v26 = vperm.slane %v10293_v45, %v9285_v22  ;;  %v1238_v17 = vsel %vm1063_vm0, %v9997_v18, %v1005_v62  ;;  %v13412_v18 = vld [vmem:[#allocation44_spill] sm:$0xff] }
 0x20b   :  { %v4911_v63 = vsel %vm4730_vm1, %v4906_v15, 0  ;;  %v4928_v11 = vpack.c.b16 %v4927_v36, %v4926_v13  ;;  %v2821_v50 = vrot.slane %v13408_v58, 4  ;;  %v1182_v20 = vsel %vm1063_vm0, %v13409_v12, %v1003_v6 }
 0x20c   :  { %4920 = vmatpush.bf16.xpose.msrb.mxu0 %v4911_v63  ;;  %v4950_v44 = vpack.c.b16 %v4949_v21, %v4948_v43  ;;  %v1186_v49 = vperm.slane %v1182_v20, %v9285_v22  ;;  %v4970_v42 = vunpack.c.l.b16 %v3074_v51  ;;  %v4971_v39 = vunpack.c.l.b16 %v3122_v4  ;;  %v13415_v43 = vld [vmem:[#allocation40_spill] sm:$0xff] }
 0x20d   :  { %v4933_v13 = vsel %vm4730_vm1, %v4928_v11, 0  ;;  %v1242_v2 = vperm.slane %v1238_v17, %v9285_v22  ;;  %v13410_v57 = vshrl.u32 %v10098_v34, 16  ;;  %v13411_v45 = vshrl.u32 %v10115_v8, 16  ;;  %v13425_v17 = vld [vmem:[#allocation22_spill] sm:$0xff] }
 0x20e   :  { %4942 = vmatpush.bf16.xpose.msrb.mxu1 %v4933_v13  ;;  %v4955_v3 = vsel %vm4730_vm1, %v4950_v44, 0  ;;  %v1187_v30 = vrot.slane %v1186_v49, 4  ;;  %v13413_v33 = vrot.slane %v13412_v18, 4  ;;  %v13414_v15 = vpack.i.b16 %v10021_v59, %v9936_v24 }
 0x20f   :  { %v10337_v29 = vpack.i.b16 %v13411_v45, %v13410_v57  ;;  %4964 = vmatpush.bf16.xpose.msrb.mxu2 %v4955_v3  ;;  %v4972_v27 = vpack.c.b16 %v4971_v39, %v4970_v42  ;;  %v1243_v14 = vrot.slane %v1242_v2, 4  ;;  %v13416_v21 = vrot.slane %v13415_v43, 4 }
 0x210   :  { %v1190_v6 = vsel %vm1063_vm0, %v1186_v49, %v13413_v33  ;;  %v10348_v36 = vsel %vm1063_vm0, %v10147_v47, %v13414_v15  ;;  %v2235_v5 = vrot.slane %v2234_v26, 4  ;;  %v13417_v63 = vrot.slane %v9991_v7, 4 }
 0x211   :  { %v10353_v9 = vsel %vm1063_vm0, %v1242_v2, %v13416_v21  ;;  %v10360_v51 = vperm.slane %v10094_v52, %v9321_v53  ;;  %v1188_v47 = vsel %vm1063_vm0, %v1187_v30, %v13412_v18  ;;  %v13418_v24 = vpack.i.b16 %v10115_v8, %v10098_v34  ;;  %v10407_v30 = vpop.permute.xlu1 %1785  ;;  %v13428_v18 = vld [vmem:[#allocation26_spill] sm:$0xff]  ;;  %v1027_v15 = vpop.permute.xlu0 %1026 }
 0x212   :  { %v2238_v11 = vsel %vm1063_vm0, %v2234_v26, %v13417_v63  ;;  %v4977_v58 = vsel %vm4730_vm1, %v4972_v27, 0  ;;  %v10374_v44 = vsel %vm1063_vm0, %v1243_v14, %v13415_v43  ;;  %v13419_v52 = vpack.i.b16 %v9933_v28, %v9884_v60 }
 0x213   :  { %v10368_v59 = vsel %vm1063_vm0, %v2821_v50, %v13418_v24  ;;  %v13421_v12 = vpack.i.b16 %v9957_v10, %v9941_v40  ;;  %v13423_v50 = vld [vmem:[#allocation36_spill] sm:$0xff]  ;;  %4986 = vmatpush.bf16.xpose.msrb.mxu3 %v4977_v58  ;;  %v10390_v49 = vperm.slane %v2238_v11, %v9321_v53  ;;  %v10394_v60 = vperm.slane %v13425_v17, %v9321_v53 }
 0x214   :  { %v10379_v4 = vrot.slane %v13419_v52, 4  ;;  %v2251_v20 = vrot.slane %v13423_v50, 4  ;;  %v1429_v28 = vrot.slane %v10189_v56, 4  ;;  %v2236_v40 = vsel %vm1063_vm0, %v2235_v5, %v9991_v7  ;;  %v13427_v56 = vld [vmem:[#allocation51_spill] sm:$0xff] }
 0x215   :  { %v10384_v8 = vrot.slane %v13421_v12, 4  ;;  %13426 = vst [vmem:[#allocation30_spill] sm:$0xff] %v10394_v60  ;;  %v2305_v10 = vrot.slane %v10360_v51, 4  ;;  %v1457_v3 = vrot.slane %v10225_v41, 4  ;;  %v2717_v42 = vrot.slane %v10229_v16, 4 }
 0x216   :  { %13420 = vst [vmem:[#allocation39_spill] sm:$0xff] %v10379_v4  ;;  %v2579_v39 = vshrl.u32 %v10360_v51, 16  ;;  %v1430_v2 = vsel %vm1063_vm0, %v10192_v46, %v1429_v28  ;;  %v2745_v57 = vrot.slane %v10261_v61, 4  ;;  %v2773_v45 = vrot.slane %v10274_v37, 4 }
 0x217   :  { %13422 = vst [vmem:[#allocation31_spill] sm:$0xff] %v10384_v8  ;;  %v2252_v7 = vsel %vm1063_vm0, %v2251_v20, %v13427_v56  ;;  %v2312_v33 = vperm.slane %v13428_v18, %v9285_v22  ;;  %v1458_v41 = vsel %vm1063_vm0, %v10205_v25, %v1457_v3  ;;  %v2718_v16 = vsel %vm1063_vm0, %v10232_v48, %v2717_v42 }
 0x218   :  { %v10418_v46 = vperm.slane %v1430_v2, %v9321_v53  ;;  %v10421_v61 = vperm.slane %v1458_v41, %v9321_v53  ;;  %v2746_v37 = vsel %vm1063_vm0, %v10246_v19, %v2745_v57  ;;  %v2774_v27 = vsel %vm1063_vm0, %v10265_v54, %v2773_v45 }
 0x219   :  { %v10428_v14 = vperm.slane %v2236_v40, %v9321_v53  ;;  %v10431_v25 = vperm.slane %v2746_v37, %v9321_v53  ;;  %v2801_v48 = vrot.slane %v10298_v38, 4  ;;  %v1790_v43 = vrot.slane %v10407_v30, 4 }
 0x21a   :  { %v2249_v21 = vrot.slane %v10390_v49, 4  ;;  %v2303_v5 = vrot.slane %v10394_v60, 4  ;;  %v1653_v19 = vpack.i.b16 %v10421_v61, %v10418_v46  ;;  %v10440_v63 = vperm.slane %v2718_v16, %v9321_v53 }
 0x21b   :  { %v2321_v54 = vrot.slane %v2312_v33, 4  ;;  %v1203_v11 = vrot.slane %v1027_v15, 4  ;;  %v2802_v24 = vsel %vm1063_vm0, %v10285_v31, %v2801_v48  ;;  %v2314_v38 = vsel %vm1063_vm0, %v10329_v1, %v1790_v43 }
 0x21c   :  { %8271 = vmatmul.msk.bf16.vlgmr.msra.gmra.mxu0 %vm4730_vm1, %v1653_v19  ;;  %v10448_v58 = vperm.slane %v2774_v27, %v9321_v53  ;;  %v10451_v52 = vperm.slane %v2802_v24, %v9321_v53  ;;  %v3077_v12 = vpack.i.b16 %v10431_v25, %v10440_v63  ;;  %v2318_v50 = vperm.slane %v2314_v38, %v9285_v22 }
 0x21d   :  { %v10457_v20 = vsel %vm1063_vm0, 0, %v2305_v10  ;;  %v2563_v31 = vshrl.u32 %v10394_v60, 16  ;;  %v997_v17 = vrot.slane %v10287_v23, 4  ;;  %v10462_v28 = vperm.slane %v1190_v6, %v9321_v53 }
 0x21e   :  { %v10465_v40 = vperm.slane %v2252_v7, %v9285_v22  ;;  %v3125_v3 = vpack.i.b16 %v10451_v52, %v10448_v58  ;;  %v2319_v42 = vrot.slane %v2318_v50, 4  ;;  %v2322_v2 = vsel %vm1063_vm0, %v2318_v50, %v2321_v54 }
 0x21f   :  { %v10471_v57 = vsel %vm1063_vm0, 0, %v2303_v5  ;;  %v1204_v10 = vsel %vm1063_vm0, %v1203_v11, %v10287_v23  ;;  %v1260_v45 = vsel %vm1063_vm0, %v1027_v15, %v997_v17  ;;  %v10477_v6 = vperm.slane %v2322_v2, %v9321_v53 }
 0x220   :  { %13429 = vst [vmem:[#allocation33_spill] sm:$0xff] %v10471_v57  ;;  %v10480_v56 = vperm.slane %v1188_v47, %v9321_v53  ;;  %v4992_v7 = vunpack.c.l.b16 %v3077_v12  ;;  %v4993_v18 = vunpack.c.l.b16 %v3125_v3  ;;  %v2320_v41 = vsel %vm1063_vm0, %v2319_v42, %v2312_v33  ;;  %v1043_v12 = vpop.permute.xlu0 %1042 }
 0x221   :  { %v1201_v16 = vrot.slane %v10462_v28, 4  ;;  %v10486_v37 = vperm.slane %v10353_v9, %v9321_v53  ;;  %v10489_v23 = vperm.slane %v2320_v41, %v9321_v53  ;;  %v2333_v15 = vrot.slane %v10477_v6, 4 }
 0x222   :  { %v2247_v27 = vrot.slane %v10428_v14, 4  ;;  %v2587_v47 = vshrl.u32 %v10457_v20, 16  ;;  %v10496_v48 = vperm.slane %v10374_v44, %v9321_v53  ;;  %v4994_v33 = vpack.c.b16 %v4993_v18, %v4992_v7 }
 0x223   :  { %13430 = vst [vmem:[#allocation32_spill] sm:$0xff] %v10489_v23  ;;  %v2571_v43 = vshrl.u32 %v10471_v57, 16  ;;  %v2257_v9 = vrot.slane %v10329_v1, 4  ;;  %v2331_v19 = vrot.slane %v10489_v23, 4  ;;  %v1199_v54 = vrot.slane %v10480_v56, 4 }
 0x224   :  { %v1208_v11 = vperm.slane %v1204_v10, %v9285_v22  ;;  %v1264_v24 = vperm.slane %v1260_v45, %v9285_v22  ;;  %v4999_v38 = vsel %vm4730_vm1, %v4994_v33, 0  ;;  %v10507_v44 = vsel %vm1063_vm0, 0, %v1201_v16 }
 0x225   :  { %v1257_v50 = vrot.slane %v10486_v37, 4  ;;  %5008 = vmatpush.bf16.xpose.msra.mxu0 %v4999_v38  ;;  %v10511_v17 = vsel %vm1063_vm0, 0, %v2331_v19  ;;  %v10514_v1 = vsel %vm1063_vm0, 0, %v2333_v15  ;;  %v1255_v3 = vrot.slane %v10496_v48, 4 }
 0x226   :  { %13431 = vst [vmem:[#allocation25_spill] sm:$0xff] %v10511_v17  ;;  %v2564_v2 = vshrl.u32 %v10489_v23, 16  ;;  %v2572_v45 = vshrl.u32 %v10511_v17, 16  ;;  %v2580_v18 = vshrl.u32 %v10477_v6, 16  ;;  %v1209_v41 = vrot.slane %v1043_v12, 4 }
 0x227   :  { %v10527_v16 = vsel %vm1063_vm0, 0, %v1199_v54  ;;  %v2588_v19 = vshrl.u32 %v10514_v1, 16  ;;  %v1339_v38 = vshrl.u32 %v10462_v28, 16  ;;  %v1217_v10 = vrot.slane %v1208_v11, 4 }
 0x228   :  { %v10529_v15 = vpack.i.b16 %v2564_v2, %v2563_v31  ;;  %v10535_v42 = vpack.i.b16 %v2572_v45, %v2571_v43  ;;  %v10539_v13 = vpack.i.b16 %v2580_v18, %v2579_v39  ;;  %v1323_v34 = vshrl.u32 %v10480_v56, 16  ;;  %v13434_v43 = vld [vmem:[#allocation24_spill] sm:$0xff] }
 0x229   :  { %v1273_v54 = vrot.slane %v1264_v24, 4  ;;  %v2258_v31 = vsel %vm1063_vm0, %v2257_v9, %v10407_v30  ;;  %v10544_v2 = vpack.i.b16 %v2588_v19, %v2587_v47  ;;  %v1331_v62 = vshrl.u32 %v10527_v16, 16 }
 0x22a   :  { %13432 = vst [vmem:[#allocation29_spill] sm:$0xff] %v10529_v15  ;;  %v1347_v32 = vshrl.u32 %v10507_v44, 16  ;;  %v10549_v33 = vsel %vm1063_vm0, 0, %v2247_v27  ;;  %v1210_v45 = vsel %vm1063_vm0, %v1209_v41, %v13434_v43  ;;  %v10556_v39 = vsel %vm1063_vm0, 0, %v2249_v21 }
 0x22b   :  { %13433 = vst [vmem:[#allocation27_spill] sm:$0xff] %v10535_v42  ;;  %v1214_v18 = vperm.slane %v1210_v45, %v9285_v22  ;;  %v10560_v30 = vsel %vm1063_vm0, 0, %v1255_v3  ;;  %v10563_v47 = vsel %vm1063_vm0, 0, %v1257_v50  ;;  %v10566_v9 = vperm.slane %v2258_v31, %v9285_v22 }
 0x22c   :  { %v13435_v27 = vrot.slane %v13434_v43, 4  ;;  %v1387_v19 = vshrl.u32 %v10496_v48, 16  ;;  %v1395_v21 = vshrl.u32 %v10560_v30, 16  ;;  %v1403_v5 = vshrl.u32 %v10486_v37, 16 }
 0x22d   :  { %v1215_v7 = vrot.slane %v1214_v18, 4  ;;  %v1218_v45 = vsel %vm1063_vm0, %v1214_v18, %v1217_v10  ;;  %v1411_v31 = vshrl.u32 %v10563_v47, 16  ;;  %v1654_v42 = vshrl.u32 %v10418_v46, 16 }
 0x22e   :  { %v1266_v41 = vsel %vm1063_vm0, %v1043_v12, %v13435_v27  ;;  %v1226_v50 = vperm.slane %v1218_v45, %v9321_v53  ;;  %v1655_v43 = vshrl.u32 %v10421_v61, 16  ;;  %v3078_v57 = vshrl.u32 %v10440_v63, 16 }
 0x22f   :  { %v1270_v3 = vperm.slane %v1266_v41, %v9285_v22  ;;  %v1216_v12 = vsel %vm1063_vm0, %v1215_v7, %v1208_v11  ;;  %v3079_v26 = vshrl.u32 %v10431_v25, 16 }
 0x230   :  { %v1222_v10 = vperm.slane %v1216_v12, %v9321_v53  ;;  %v1229_v18 = vrot.slane %v1226_v50, 4  ;;  %v1337_v45 = vpack.i.b16 %v1226_v50, %v10462_v28  ;;  %v1340_v60 = vshrl.u32 %v1226_v50, 16 }
 0x231   :  { %v1271_v27 = vrot.slane %v1270_v3, 4  ;;  %v1274_v15 = vsel %vm1063_vm0, %v1270_v3, %v1273_v54  ;;  %v1656_v23 = vpack.i.b16 %v1655_v43, %v1654_v42 }
 0x232   :  { %v1282_v41 = vperm.slane %v1274_v15, %v9321_v53  ;;  %v1227_v0 = vrot.slane %v1222_v10, 4  ;;  %v10589_v11 = vsel %vm1063_vm0, 0, %v1229_v18  ;;  %v1321_v3 = vpack.i.b16 %v1222_v10, %v10480_v56 }
 0x233   :  { %v1272_v17 = vsel %vm1063_vm0, %v1271_v27, %v1264_v24  ;;  %v1324_v12 = vshrl.u32 %v1222_v10, 16  ;;  %v10593_v8 = vpack.i.b16 %v1340_v60, %v1339_v38  ;;  %8272 = vmatmul.msk.bf16.vlgmr.msra.gmra.mxu1 %vm4730_vm1, %v1656_v23  ;;  %v1348_v50 = vshrl.u32 %v10589_v11, 16 }
 0x234   :  { %v1278_v7 = vperm.slane %v1272_v17, %v9321_v53  ;;  %v1285_v54 = vrot.slane %v1282_v41, 4  ;;  %v10599_v24 = vsel %vm1063_vm0, 0, %v1227_v0  ;;  %v1401_v27 = vpack.i.b16 %v1282_v41, %v10486_v37 }
 0x235   :  { %v10603_v17 = vpack.i.b16 %v1324_v12, %v1323_v34  ;;  %v1332_v60 = vshrl.u32 %v10599_v24, 16  ;;  %v10610_v23 = vpack.i.b16 %v1348_v50, %v1347_v32  ;;  %v1527_v4 = vrot.slane %v1337_v45, 4 }
 0x236   :  { %v1283_v42 = vrot.slane %v1278_v7, 4  ;;  %v1286_v15 = vsel %vm1063_vm0, 0, %v1285_v54  ;;  %v1385_v38 = vpack.i.b16 %v1278_v7, %v10496_v48  ;;  %v1388_v0 = vshrl.u32 %v1278_v7, 16 }
 0x237   :  { %13436 = vst [vmem:[#allocation23_spill] sm:$0xff] %v10603_v17  ;;  %v10613_v10 = vpack.i.b16 %v1332_v60, %v1331_v62  ;;  %v1404_v54 = vshrl.u32 %v1282_v41, 16  ;;  %v1409_v56 = vpack.i.b16 %v1286_v15, %v10563_v47  ;;  %v1412_v28 = vshrl.u32 %v1286_v15, 16 }
 0x238   :  { %v1284_v43 = vsel %vm1063_vm0, 0, %v1283_v42  ;;  %v1389_v12 = vpack.i.b16 %v1388_v0, %v1387_v19  ;;  %v2263_v48 = vrot.slane %v10566_v9, 4  ;;  %v2435_v42 = vshrl.u32 %v10428_v14, 16 }
 0x239   :  { %13437 = vst [vmem:[#allocation42_spill] sm:$0xff] %v10613_v10  ;;  %v1393_v18 = vpack.i.b16 %v1284_v43, %v10560_v30  ;;  %v1396_v34 = vshrl.u32 %v1284_v43, 16  ;;  %v1405_v50 = vpack.i.b16 %v1404_v54, %v1403_v5  ;;  %v1413_v7 = vpack.i.b16 %v1412_v28, %v1411_v31  ;;  %v10622_v30 = vpop.permute.xlu1 %3291 }
 0x23a   :  { %v10620_v37 = vsel %vm1063_vm0, %v1527_v4, %v1321_v3  ;;  %v1583_v62 = vrot.slane %v1401_v27, 4  ;;  %v3080_v60 = vpack.i.b16 %v3079_v26, %v3078_v57  ;;  %v1589_v41 = vrot.slane %v1409_v56, 4  ;;  %v10634_v26 = vpop.permute.xlu0 %3307 }
 0x23b   :  { %v1397_v32 = vpack.i.b16 %v1396_v34, %v1395_v21  ;;  %13438 = vst [vmem:[#allocation43_spill] sm:$0xff] %v10620_v37  ;;  %v1611_v19 = vrot.slane %v1405_v50, 4  ;;  %v3126_v47 = vshrl.u32 %v10448_v58, 16  ;;  %v3127_v45 = vshrl.u32 %v10451_v52, 16 }
 0x23c   :  { %v13439_v15 = vrot.slane %v10465_v40, 4  ;;  %v10631_v5 = vsel %vm1063_vm0, %v1583_v62, %v1385_v38  ;;  %v1617_v4 = vrot.slane %v1413_v7, 4  ;;  %v1441_v31 = vrot.slane %v10418_v46, 4 }
 0x23d   :  { %v2264_v57 = vsel %vm1063_vm0, %v2263_v48, %v10465_v40  ;;  %v10639_v3 = vsel %vm1063_vm0, %v1589_v41, %v1393_v18  ;;  %v10642_v28 = vsel %vm1063_vm0, %v1611_v19, %v1389_v12  ;;  %v3128_v56 = vpack.i.b16 %v3127_v45, %v3126_v47 }
 0x23e   :  { %v2266_v21 = vsel %vm1063_vm0, %v10566_v9, %v13439_v15  ;;  %v2451_v38 = vshrl.u32 %v10390_v49, 16  ;;  %v10647_v43 = vsel %vm1063_vm0, %v1617_v4, %v1397_v32  ;;  %v1442_v46 = vsel %vm1063_vm0, 0, %v1441_v31 }
 0x23f   :  { %v10651_v0 = vperm.slane %v2266_v21, %v9321_v53  ;;  %v5014_v40 = vunpack.c.l.b16 %v3080_v60  ;;  %v5015_v27 = vunpack.c.l.b16 %v3128_v56  ;;  %v1469_v18 = vrot.slane %v10421_v61, 4 }
 0x240   :  { %v10655_v34 = vperm.slane %v2264_v57, %v9321_v53  ;;  %v2729_v54 = vrot.slane %v10440_v63, 4  ;;  %v2757_v12 = vrot.slane %v10431_v25, 4  ;;  %v2785_v48 = vrot.slane %v10448_v58, 4 }
 0x241   :  { %v5016_v32 = vpack.c.b16 %v5015_v27, %v5014_v40  ;;  %v1470_v50 = vsel %vm1063_vm0, 0, %v1469_v18  ;;  %v2813_v7 = vrot.slane %v10451_v52, 4  ;;  %v1660_v62 = vshrl.u32 %v1442_v46, 16  ;;  %v10669_v4 = vpop.permute.xlu1 %3323 }
 0x242   :  { %v1659_v41 = vpack.i.b16 %v1470_v50, %v1442_v46  ;;  %v2730_v60 = vsel %vm1063_vm0, 0, %v2729_v54  ;;  %v2758_v61 = vsel %vm1063_vm0, 0, %v2757_v12  ;;  %v2786_v19 = vsel %vm1063_vm0, 0, %v2785_v48  ;;  %v3244_v12 = vpop.permute.xlu0 %3243 }
 0x243   :  { %v5021_v47 = vsel %vm4730_vm1, %v5016_v32, 0  ;;  %v2814_v63 = vsel %vm1063_vm0, 0, %v2813_v7  ;;  %v3083_v25 = vpack.i.b16 %v2758_v61, %v2730_v60  ;;  %v1661_v45 = vshrl.u32 %v1470_v50, 16  ;;  %v13440_v7 = vld [vmem:[#allocation54_spill] sm:$0xff] }
 0x244   :  { %v2277_v58 = vrot.slane %v10651_v0, 4  ;;  %5030 = vmatpush.bf16.xpose.msra.mxu1 %v5021_v47  ;;  %8273 = vmatmul.msk.bf16.vlgmr.msra.gmra.mxu2 %vm4730_vm1, %v1659_v41  ;;  %v3131_v52 = vpack.i.b16 %v2814_v63, %v2786_v19  ;;  %v3084_v15 = vshrl.u32 %v2730_v60, 16  ;;  %v3085_v21 = vshrl.u32 %v2758_v61, 16 }
 0x245   :  { %v2459_v31 = vshrl.u32 %v10556_v39, 16  ;;  %v1662_v57 = vpack.i.b16 %v1661_v45, %v1660_v62  ;;  %v3132_v56 = vshrl.u32 %v2786_v19, 16  ;;  %v3133_v46 = vshrl.u32 %v2814_v63, 16 }
 0x246   :  { %v2452_v40 = vshrl.u32 %v10651_v0, 16  ;;  %v5036_v27 = vunpack.c.l.b16 %v3083_v25  ;;  %v5037_v18 = vunpack.c.l.b16 %v3131_v52  ;;  %v3086_v54 = vpack.i.b16 %v3085_v21, %v3084_v15  ;;  %v13441_v25 = vld [vmem:[#allocation53_spill] sm:$0xff]  ;;  %v13442_v52 = vld [vmem:[#allocation62_spill] sm:$0xff] }
 0x247   :  { %v2275_v48 = vrot.slane %v10655_v34, 4  ;;  %v2449_v32 = vpack.i.b16 %v10651_v0, %v10390_v49  ;;  %8274 = vmatmul.msk.bf16.vlgmr.msra.gmra.mxu3 %vm4730_vm1, %v1662_v57  ;;  %v3134_v50 = vpack.i.b16 %v3133_v46, %v3132_v56  ;;  %v1483_v41 = vrot.slane %v13440_v7, 4  ;;  %v3340_v46 = vpop.permute.xlu2 %3339 }
 0x248   :  { %v2278_v62 = vsel %vm1063_vm0, 0, %v2277_v58  ;;  %v2436_v60 = vshrl.u32 %v10655_v34, 16  ;;  %v5038_v61 = vpack.c.b16 %v5037_v18, %v5036_v27  ;;  %v3411_v19 = vrot.slane %v10634_v26, 4  ;;  %v13443_v27 = vld [vmem:[#allocation55_spill] sm:$0xff] }
 0x249   :  { %v5058_v47 = vunpack.c.l.b16 %v3086_v54  ;;  %v5059_v63 = vunpack.c.l.b16 %v3134_v50  ;;  %v1484_v45 = vsel %vm1063_vm0, %v1483_v41, %v13441_v25  ;;  %v1511_v15 = vrot.slane %v13442_v52, 4 }
 0x24a   :  { %v2433_v49 = vpack.i.b16 %v10655_v34, %v10428_v14  ;;  %v10686_v0 = vpack.i.b16 %v2452_v40, %v2451_v38  ;;  %v5043_v21 = vsel %vm4730_vm1, %v5038_v61, 0  ;;  %v1490_v58 = vperm.slane %v1484_v45, %v9321_v53 }
 0x24b   :  { %v2460_v57 = vshrl.u32 %v2278_v62, 16  ;;  %5052 = vmatpush.bf16.xpose.msra.mxu2 %v5043_v21  ;;  %v5060_v56 = vpack.c.b16 %v5059_v63, %v5058_v47  ;;  %v1512_v18 = vsel %vm1063_vm0, %v1511_v15, %v13443_v27  ;;  %v3251_v54 = vrot.slane %v3244_v12, 4 }
 0x24c   :  { %v10693_v50 = vsel %vm1063_vm0, 0, %v2275_v48  ;;  %v10697_v34 = vpack.i.b16 %v2436_v60, %v2435_v42  ;;  %v2457_v38 = vpack.i.b16 %v2278_v62, %v10556_v39  ;;  %v1518_v40 = vperm.slane %v1512_v18, %v9321_v53  ;;  %v3276_v42 = vpop.permute.xlu1 %3275 }
 0x24d   :  { %v5065_v41 = vsel %vm4730_vm1, %v5060_v56, 0  ;;  %v3417_v61 = vrot.slane %v3340_v46, 4  ;;  %v3412_v47 = vsel %vm1063_vm0, %v3411_v19, %v3244_v12  ;;  %v3468_v63 = vsel %vm1063_vm0, %v10634_v26, %v3251_v54  ;;  %v13444_v12 = vld [vmem:[#allocation20_spill] sm:$0xff]  ;;  %v3260_v54 = vpop.permute.xlu0 %3259 }
 0x24e   :  { %5074 = vmatpush.bf16.xpose.msra.mxu3 %v5065_v41  ;;  %v1665_v45 = vpack.i.b16 %v1518_v40, %v1490_v58  ;;  %v3472_v48 = vperm.slane %v3468_v63, %v9285_v22  ;;  %v1666_v15 = vshrl.u32 %v1490_v58, 16  ;;  %v1667_v14 = vshrl.u32 %v1518_v40, 16 }
 0x24f   :  { %v2441_v39 = vpack.i.b16 %v10693_v50, %v10549_v33  ;;  %v2444_v62 = vshrl.u32 %v10693_v50, 16  ;;  %v10709_v60 = vpack.i.b16 %v2460_v57, %v2459_v31  ;;  %v1495_v21 = vrot.slane %v1490_v58, 4 }
 0x250   :  { %v2871_v56 = vrot.slane %v2449_v32, 4  ;;  %v3235_v19 = vrot.slane %v13444_v12, 4  ;;  %8275 = vmatmul.msk.bf16.vlgmr.msrb.gmra.mxu0 %vm4730_vm1, %v1665_v45  ;;  %v1668_v26 = vpack.i.b16 %v1667_v14, %v1666_v15  ;;  %v1523_v18 = vrot.slane %v1518_v40, 4 }
 0x251   :  { %v3383_v41 = vrot.slane %v10622_v30, 4  ;;  %v10715_v63 = vperm.slane %v3412_v47, %v9285_v22  ;;  %v1496_v9 = vsel %vm1063_vm0, 0, %v1495_v21  ;;  %v3283_v10 = vrot.slane %v3276_v42, 4 }
 0x252   :  { %v3481_v50 = vrot.slane %v3472_v48, 4  ;;  %8276 = vmatmul.msk.bf16.vlgmr.msrb.gmra.mxu1 %vm4730_vm1, %v1668_v26  ;;  %v1524_v31 = vsel %vm1063_vm0, 0, %v1523_v18  ;;  %v1672_v32 = vshrl.u32 %v1496_v9, 16  ;;  %v3418_v58 = vsel %vm1063_vm0, %v3417_v61, %v3276_v42  ;;  %v3294_v61 = vpop.permute.xlu2 %3293 }
 0x253   :  { %v1671_v57 = vpack.i.b16 %v1524_v31, %v1496_v9  ;;  %v1673_v45 = vshrl.u32 %v1524_v31, 16  ;;  %v3474_v40 = vsel %vm1063_vm0, %v3340_v46, %v3283_v10  ;;  %v3267_v15 = vrot.slane %v3260_v54, 4 }
 0x254   :  { %v13445_v14 = vshrl.u32 %v10549_v33, 16  ;;  %v2877_v37 = vrot.slane %v2457_v38, 4  ;;  %v3440_v21 = vsel %vm1063_vm0, %v10622_v30, %v3235_v19  ;;  %v3478_v26 = vperm.slane %v3474_v40, %v9285_v22 }
 0x255   :  { %v2899_v18 = vrot.slane %v10686_v0, 4  ;;  %v3425_v17 = vrot.slane %v10715_v63, 4  ;;  %8277 = vmatmul.msk.bf16.vlgmr.msrb.gmra.mxu2 %vm4730_vm1, %v1671_v57  ;;  %v1674_v9 = vpack.i.b16 %v1673_v45, %v1672_v32  ;;  %v3446_v10 = vsel %vm1063_vm0, %v10669_v4, %v3267_v15  ;;  %v13446_v32 = vld [vmem:[#allocation21_spill] sm:$0xff] }
 0x256   :  { %v10724_v47 = vpack.i.b16 %v2444_v62, %v13445_v14  ;;  %v3422_v33 = vperm.slane %v3418_v58, %v9285_v22  ;;  %v3479_v46 = vrot.slane %v3478_v26, 4  ;;  %v3482_v38 = vsel %vm1063_vm0, %v3478_v26, %v3481_v50 }
 0x257   :  { %v3450_v30 = vperm.slane %v3446_v10, %v9285_v22  ;;  %v10738_v42 = vsel %vm1063_vm0, %v2871_v56, %v2433_v49  ;;  %v3384_v62 = vsel %vm1063_vm0, %v3383_v41, %v13444_v12  ;;  %v3444_v19 = vperm.slane %v3440_v21, %v9285_v22  ;;  %8278 = vmatmul.msk.bf16.vlgmr.msrb.gmra.mxu3 %vm4730_vm1, %v1674_v9 }
 0x258   :  { %v3389_v31 = vrot.slane %v10669_v4, 4  ;;  %v3236_v57 = vrot.slane %v13446_v32, 4  ;;  %v3495_v58 = vrot.slane %v3294_v61, 4  ;;  %v3480_v45 = vsel %vm1063_vm0, %v3479_v46, %v3472_v48 }
 0x259   :  { %v10748_v50 = vperm.slane %v3482_v38, %v9321_v53  ;;  %v2905_v49 = vrot.slane %v10709_v60, 4  ;;  %v13447_v56 = vpack.i.b16 %v10477_v6, %v10360_v51  ;;  %v10757_v41 = vperm.slane %v3480_v45, %v9321_v53 }
 0x25a   :  { %v3451_v4 = vrot.slane %v3450_v30, 4  ;;  %v10760_v40 = vsel %vm1063_vm0, %v2877_v37, %v2441_v39  ;;  %v13449_v48 = vpack.i.b16 %v10514_v1, %v10457_v20  ;;  %v3426_v21 = vsel %vm1063_vm0, %v3422_v33, %v3425_v17 }
 0x25b   :  { %v10754_v12 = vrot.slane %v13447_v56, 4  ;;  %13448 = vst [vmem:[#allocation35_spill] sm:$0xff] %v10757_v41  ;;  %v3388_v51 = vperm.slane %v3384_v62, %v9285_v22  ;;  %v3453_v6 = vrot.slane %v3444_v19, 4  ;;  %v3491_v26 = vrot.slane %v10757_v41, 4 }
 0x25c   :  { %v10765_v15 = vrot.slane %v13449_v48, 4  ;;  %v3390_v9 = vsel %vm1063_vm0, %v3389_v31, %v3260_v54  ;;  %v3496_v37 = vsel %vm1063_vm0, %v3495_v58, %v13446_v32  ;;  %v3552_v20 = vsel %vm1063_vm0, %v3294_v61, %v3236_v57 }
 0x25d   :  { %v3493_v1 = vrot.slane %v10748_v50, 4  ;;  %v3423_v39 = vrot.slane %v3422_v33, 4  ;;  %v10778_v46 = vperm.slane %v3426_v21, %v9321_v53  ;;  %v3452_v17 = vsel %vm1063_vm0, %v3451_v4, %v3444_v19 }
 0x25e   :  { %v3454_v38 = vsel %vm1063_vm0, %v3450_v30, %v3453_v6  ;;  %v13450_v54 = vpack.i.b16 %v10589_v11, %v10507_v44  ;;  %v3394_v32 = vperm.slane %v3390_v9, %v9285_v22  ;;  %v10790_v61 = vperm.slane %v3452_v17, %v9321_v53 }
 0x25f   :  { %v3397_v57 = vrot.slane %v3388_v51, 4  ;;  %v10794_v58 = vsel %vm1063_vm0, 0, %v3491_v26  ;;  %v10797_v30 = vperm.slane %v3454_v38, %v9321_v53  ;;  %v10800_v44 = vperm.slane %v3496_v37, %v9285_v22 }
 0x260   :  { %v10785_v62 = vrot.slane %v13450_v54, 4  ;;  %13451 = vst [vmem:[#allocation37_spill] sm:$0xff] %v10790_v61  ;;  %v10803_v11 = vperm.slane %v3552_v20, %v9285_v22  ;;  %v10806_v19 = vsel %vm1063_vm0, 0, %v3493_v1  ;;  %v3463_v45 = vrot.slane %v10790_v61, 4 }
 0x261   :  { %13452 = vst [vmem:[#allocation38_spill] sm:$0xff] %v10794_v58  ;;  %v3424_v56 = vsel %vm1063_vm0, %v3423_v39, %v10715_v63  ;;  %v3437_v4 = vrot.slane %v10778_v46, 4  ;;  %v3964_v48 = vshrl.u32 %v10757_v41, 16  ;;  %v3465_v21 = vrot.slane %v10797_v30, 4 }
 0x262   :  { %v3972_v6 = vshrl.u32 %v10794_v58, 16  ;;  %v3980_v26 = vshrl.u32 %v10748_v50, 16  ;;  %v3395_v9 = vrot.slane %v3394_v32, 4  ;;  %v10817_v37 = vsel %vm1063_vm0, 0, %v3463_v45 }
 0x263   :  { %13453 = vst [vmem:[#allocation46_spill] sm:$0xff] %v10817_v37  ;;  %v3988_v20 = vshrl.u32 %v10806_v19, 16  ;;  %v10821_v1 = vsel %vm1063_vm0, 0, %v3465_v21  ;;  %v3963_v39 = vshrl.u32 %v10790_v61, 16  ;;  %v10827_v17 = vperm.slane %v3424_v56, %v9321_v53 }
 0x264   :  { %13454 = vst [vmem:[#allocation41_spill] sm:$0xff] %v10821_v1  ;;  %v3971_v54 = vshrl.u32 %v10817_v37, 16  ;;  %v3979_v21 = vshrl.u32 %v10797_v30, 16  ;;  %v3987_v14 = vshrl.u32 %v10821_v1, 16  ;;  %v10842_v56 = vperm.slane %v10631_v5, %v9285_v22 }
 0x265   :  { %v10834_v10 = vpack.i.b16 %v3964_v48, %v3963_v39  ;;  %v10846_v38 = vperm.slane %v10639_v3, %v9285_v22  ;;  %v10849_v33 = vsel %vm1063_vm0, 0, %v3437_v4  ;;  %v3396_v39 = vsel %vm1063_vm0, %v3395_v9, %v3388_v51 }
 0x266   :  { %v10851_v48 = vpack.i.b16 %v3972_v6, %v3971_v54  ;;  %v3398_v45 = vsel %vm1063_vm0, %v3394_v32, %v3397_v57  ;;  %v10855_v63 = vpack.i.b16 %v3980_v26, %v3979_v21  ;;  %v10857_v31 = vpack.i.b16 %v3988_v20, %v3987_v14  ;;  %v10873_v26 = vpop.permute.xlu2 %3245  ;;  %v13460_v57 = vld [vmem:[#allocation28_spill] sm:$0xff] }
 0x267   :  { %13455 = vst [vmem:[#allocation47_spill] sm:$0xff] %v10834_v10  ;;  %v10861_v5 = vperm.slane %v10642_v28, %v9285_v22  ;;  %v10865_v3 = vperm.slane %v10647_v43, %v9285_v22  ;;  %v3435_v51 = vrot.slane %v10827_v17, 4  ;;  %v10876_v28 = vperm.slane %v3396_v39, %v9321_v53 }
 0x268   :  { %13456 = vst [vmem:[#allocation45_spill] sm:$0xff] %v10851_v48  ;;  %v10879_v43 = vperm.slane %v3398_v45, %v9321_v53  ;;  %v13459_v9 = vrot.slane %v13441_v25, 4  ;;  %v1513_v54 = vrot.slane %v13443_v27, 4  ;;  %v3252_v21 = vrot.slane %v10873_v26, 4 }
 0x269   :  { %13457 = vst [vmem:[#allocation48_spill] sm:$0xff] %v10855_v63  ;;  %v2826_v14 = vperm.slane %v10368_v59, %v9285_v22  ;;  %v13461_v4 = vrot.slane %v10137_v55, 4  ;;  %v13462_v45 = vrot.slane %v10141_v35, 4  ;;  %v2820_v27 = vperm.slane %v10348_v36, %v9285_v22 }
 0x26a   :  { %13458 = vst [vmem:[#allocation49_spill] sm:$0xff] %v10857_v31  ;;  %v1486_v20 = vsel %vm1063_vm0, %v13440_v7, %v13459_v9  ;;  %v1514_v7 = vsel %vm1063_vm0, %v13442_v52, %v1513_v54  ;;  %v2882_v35 = vperm.slane %v10760_v40, %v9285_v22  ;;  %v2876_v36 = vperm.slane %v10738_v42, %v9285_v22 }
 0x26b   :  { %v2844_v39 = vsel %vm1063_vm0, %v13461_v4, %v13460_v57  ;;  %v2850_v25 = vsel %vm1063_vm0, %v13462_v45, %v10337_v29  ;;  %v10898_v32 = vperm.slane %v1486_v20, %v9321_v53  ;;  %v10906_v55 = vperm.slane %v1514_v7, %v9321_v53 }
 0x26c   :  { %v2854_v59 = vperm.slane %v2850_v25, %v9285_v22  ;;  %v2827_v4 = vrot.slane %v2826_v14, 4  ;;  %v2900_v29 = vsel %vm1063_vm0, %v2899_v18, %v10697_v34  ;;  %v2848_v57 = vperm.slane %v2844_v39, %v9285_v22  ;;  %v3310_v34 = vpop.permute.xlu1 %3309 }
 0x26d   :  { %v2906_v9 = vsel %vm1063_vm0, %v2905_v49, %v10724_v47  ;;  %v1677_v20 = vpack.i.b16 %v10906_v55, %v10898_v32  ;;  %v2883_v54 = vrot.slane %v2882_v35, 4  ;;  %v10926_v18 = vsel %vm1063_vm0, 0, %v3435_v51  ;;  %v3326_v51 = vpop.permute.xlu0 %3325 }
 0x26e   :  { %v2855_v52 = vrot.slane %v2854_v59, 4  ;;  %v2828_v40 = vsel %vm1063_vm0, %v2827_v4, %v2820_v27  ;;  %v2910_v0 = vperm.slane %v2906_v9, %v9285_v22  ;;  %v2904_v42 = vperm.slane %v2900_v29, %v9285_v22 }
 0x26f   :  { %v10931_v60 = vsel %vm1063_vm0, %v3310_v34, %v3252_v21  ;;  %8279 = vmatmul.msk.bf16.vlgmr.msra.gmra.mxu0 %vm4730_vm1, %v1677_v20  ;;  %v10935_v47 = vperm.slane %v2828_v40, %v9321_v53  ;;  %v2884_v45 = vsel %vm1063_vm0, %v2883_v54, %v2876_v36  ;;  %v3407_v7 = vrot.slane %v10876_v28, 4  ;;  %v3262_v54 = vpop.permute.xlu2 %3261 }
 0x270   :  { %v2856_v39 = vsel %vm1063_vm0, %v2855_v52, %v2848_v57  ;;  %v2911_v25 = vrot.slane %v2910_v0, 4  ;;  %v3409_v4 = vrot.slane %v10879_v43, 4  ;;  %v10944_v29 = vperm.slane %v2884_v45, %v9321_v53 }
 0x271   :  { %v10938_v49 = vperm.slane %v2856_v39, %v9321_v53  ;;  %v3523_v21 = vrot.slane %v3310_v34, 4  ;;  %v1678_v20 = vshrl.u32 %v10898_v32, 16  ;;  %v1679_v40 = vshrl.u32 %v10906_v55, 16 }
 0x272   :  { %v2912_v52 = vsel %vm1063_vm0, %v2911_v25, %v2904_v42  ;;  %v3501_v6 = vrot.slane %v3326_v51, 4  ;;  %v2829_v48 = vrot.slane %v2820_v27, 4  ;;  %v2857_v31 = vrot.slane %v2848_v57, 4 }
 0x273   :  { %v3137_v9 = vpack.i.b16 %v10938_v49, %v10935_v47  ;;  %v10952_v39 = vperm.slane %v2912_v52, %v9321_v53  ;;  %v1680_v45 = vpack.i.b16 %v1679_v40, %v1678_v20  ;;  %v2885_v37 = vrot.slane %v2876_v36, 4 }
 0x274   :  { %v2913_v34 = vrot.slane %v2904_v42, 4  ;;  %v2830_v58 = vsel %vm1063_vm0, %v2826_v14, %v2829_v48  ;;  %v2858_v61 = vsel %vm1063_vm0, %v2854_v59, %v2857_v31  ;;  %v3268_v41 = vrot.slane %v3262_v54, 4 }
 0x275   :  { %v5080_v10 = vunpack.c.l.b16 %v3137_v9  ;;  %v3185_v25 = vpack.i.b16 %v10952_v39, %v10944_v29  ;;  %8280 = vmatmul.msk.bf16.vlgmr.msra.gmra.mxu1 %vm4730_vm1, %v1680_v45  ;;  %v10960_v52 = vperm.slane %v2830_v58, %v9321_v53  ;;  %v10963_v27 = vperm.slane %v2858_v61, %v9321_v53 }
 0x276   :  { %v2886_v57 = vsel %vm1063_vm0, %v2882_v35, %v2885_v37  ;;  %v2914_v36 = vsel %vm1063_vm0, %v2910_v0, %v2913_v34  ;;  %v3502_v31 = vsel %vm1063_vm0, %v3501_v6, %v3262_v54  ;;  %v3558_v61 = vsel %vm1063_vm0, %v3326_v51, %v3268_v41 }
 0x277   :  { %v5081_v42 = vunpack.c.l.b16 %v3185_v25  ;;  %v10968_v9 = vperm.slane %v2886_v57, %v9321_v53  ;;  %v10971_v48 = vperm.slane %v2914_v36, %v9321_v53  ;;  %v3149_v58 = vpack.i.b16 %v10963_v27, %v10960_v52 }
 0x278   :  { %v3506_v14 = vperm.slane %v3502_v31, %v9285_v22  ;;  %v1497_v37 = vrot.slane %v10898_v32, 4  ;;  %v3562_v0 = vperm.slane %v3558_v61, %v9285_v22  ;;  %v1525_v20 = vrot.slane %v10906_v55, 4 }
 0x279   :  { %v5082_v59 = vpack.c.b16 %v5081_v42, %v5080_v10  ;;  %v3197_v35 = vpack.i.b16 %v10971_v48, %v10968_v9  ;;  %v10985_v6 = vsel %vm1063_vm0, 0, %v3407_v7  ;;  %v3835_v54 = vshrl.u32 %v10876_v28, 16 }
 0x27a   :  { %v3524_v41 = vsel %vm1063_vm0, %v3523_v21, %v10873_v26  ;;  %v5168_v10 = vunpack.c.l.b16 %v3149_v58  ;;  %v3563_v45 = vrot.slane %v3562_v0, 4  ;;  %v10992_v34 = vsel %vm1063_vm0, 0, %v3409_v4 }
 0x27b   :  { %v5087_v32 = vsel %vm4730_vm1, %v5082_v59, 0  ;;  %v5169_v51 = vunpack.c.l.b16 %v3197_v35  ;;  %v3507_v55 = vrot.slane %v3506_v14, 4  ;;  %v13463_v25 = vrot.slane %v10803_v11, 4 }
 0x27c   :  { %5096 = vmatpush.bf16.xpose.msrb.mxu0 %v5087_v32  ;;  %v1526_v57 = vsel %vm1063_vm0, 0, %v1525_v20  ;;  %v11001_v36 = vperm.slane %v3524_v41, %v9285_v22  ;;  %v3564_v21 = vsel %vm1063_vm0, %v3563_v45, %v10803_v11  ;;  %v1498_v42 = vsel %vm1063_vm0, 0, %v1497_v37 }
 0x27d   :  { %v10997_v7 = vsel %vm1063_vm0, %v3562_v0, %v13463_v25  ;;  %v5170_v26 = vpack.c.b16 %v5169_v51, %v5168_v10  ;;  %v11012_v58 = vperm.slane %v10931_v60, %v9285_v22  ;;  %v1683_v61 = vpack.i.b16 %v1526_v57, %v1498_v42 }
 0x27e   :  { %v13464_v59 = vshrl.u32 %v10827_v17, 16  ;;  %v13465_v37 = vrot.slane %v10800_v44, 4  ;;  %v3139_v45 = vshrl.u32 %v10938_v49, 16  ;;  %v2867_v41 = vrot.slane %v10938_v49, 4 }
 0x27f   :  { %v5175_v11 = vsel %vm4730_vm1, %v5170_v26, 0  ;;  %8281 = vmatmul.msk.bf16.vlgmr.msra.gmra.mxu2 %vm4730_vm1, %v1683_v61  ;;  %v2895_v31 = vrot.slane %v10944_v29, 4  ;;  %v3150_v60 = vshrl.u32 %v10960_v52, 16 }
 0x280   :  { %v11016_v35 = vpack.i.b16 %v13464_v59, %v3835_v54  ;;  %v3510_v20 = vsel %vm1063_vm0, %v3506_v14, %v13465_v37  ;;  %v3508_v54 = vsel %vm1063_vm0, %v3507_v55, %v10800_v44  ;;  %v3138_v14 = vshrl.u32 %v10935_v47, 16 }
 0x281   :  { %v11037_v26 = vperm.slane %v3510_v20, %v9321_v53  ;;  %v3186_v59 = vshrl.u32 %v10944_v29, 16  ;;  %v11042_v44 = vperm.slane %v3508_v54, %v9321_v53  ;;  %v11045_v55 = vperm.slane %v3564_v21, %v9321_v53 }
 0x282   :  { %v3140_v61 = vpack.i.b16 %v3139_v45, %v3138_v14  ;;  %v2839_v37 = vrot.slane %v10935_v47, 4  ;;  %v2923_v20 = vrot.slane %v10952_v39, 4  ;;  %v3151_v54 = vshrl.u32 %v10963_v27, 16 }
 0x283   :  { %13466 = vst [vmem:[#allocation44_spill] sm:$0xff] %v11045_v55  ;;  %v2868_v21 = vsel %vm1063_vm0, 0, %v2867_v41  ;;  %v2896_v14 = vsel %vm1063_vm0, 0, %v2895_v31  ;;  %v3198_v29 = vshrl.u32 %v10968_v9, 16 }
 0x284   :  { %5184 = vmatpush.bf16.xpose.msra.mxu0 %v5175_v11  ;;  %v3187_v11 = vshrl.u32 %v10952_v39, 16  ;;  %v5102_v40 = vunpack.c.l.b16 %v3140_v61  ;;  %v2840_v32 = vsel %vm1063_vm0, 0, %v2839_v37  ;;  %v2924_v47 = vsel %vm1063_vm0, 0, %v2923_v20 }
 0x285   :  { %v3143_v45 = vpack.i.b16 %v2868_v21, %v2840_v32  ;;  %v3191_v49 = vpack.i.b16 %v2924_v47, %v2896_v14  ;;  %v1684_v61 = vshrl.u32 %v1498_v42, 16  ;;  %v1685_v37 = vshrl.u32 %v1526_v57, 16 }
 0x286   :  { %v3188_v4 = vpack.i.b16 %v3187_v11, %v3186_v59  ;;  %v3152_v59 = vpack.i.b16 %v3151_v54, %v3150_v60  ;;  %v3199_v11 = vshrl.u32 %v10971_v48, 16  ;;  %v2869_v20 = vrot.slane %v10963_v27, 4 }
 0x287   :  { %v5124_v0 = vunpack.c.l.b16 %v3143_v45  ;;  %v5125_v51 = vunpack.c.l.b16 %v3191_v49  ;;  %v1686_v63 = vpack.i.b16 %v1685_v37, %v1684_v61  ;;  %v2925_v42 = vrot.slane %v10971_v48, 4  ;;  %v3278_v61 = vpop.permute.xlu0 %3277 }
 0x288   :  { %v5103_v10 = vunpack.c.l.b16 %v3188_v4  ;;  %v5190_v25 = vunpack.c.l.b16 %v3152_v59  ;;  %v2841_v4 = vrot.slane %v10960_v52, 4  ;;  %v3200_v31 = vpack.i.b16 %v3199_v11, %v3198_v29 }
 0x289   :  { %v5126_v60 = vpack.c.b16 %v5125_v51, %v5124_v0  ;;  %8282 = vmatmul.msk.bf16.vlgmr.msra.gmra.mxu3 %vm4730_vm1, %v1686_v63  ;;  %v3144_v52 = vshrl.u32 %v2840_v32, 16  ;;  %v3145_v45 = vshrl.u32 %v2868_v21, 16  ;;  %v2926_v27 = vsel %vm1063_vm0, 0, %v2925_v42  ;;  %v3342_v63 = vpop.permute.xlu1 %3341 }
 0x28a   :  { %v5104_v39 = vpack.c.b16 %v5103_v10, %v5102_v40  ;;  %v2842_v54 = vsel %vm1063_vm0, 0, %v2841_v4  ;;  %v2897_v40 = vrot.slane %v10968_v9, 4  ;;  %v5191_v57 = vunpack.c.l.b16 %v3200_v31 }
 0x28b   :  { %v2870_v10 = vsel %vm1063_vm0, 0, %v2869_v20  ;;  %v5131_v49 = vsel %vm4730_vm1, %v5126_v60, 0  ;;  %v11072_v51 = vperm.slane %v10997_v7, %v9321_v53  ;;  %v3146_v29 = vpack.i.b16 %v3145_v45, %v3144_v52 }
 0x28c   :  { %v5109_v41 = vsel %vm4730_vm1, %v5104_v39, 0  ;;  %v2898_v59 = vsel %vm1063_vm0, 0, %v2897_v40  ;;  %v3155_v0 = vpack.i.b16 %v2870_v10, %v2842_v54  ;;  %5140 = vmatpush.bf16.xpose.msrb.mxu2 %v5131_v49  ;;  %v5192_v9 = vpack.c.b16 %v5191_v57, %v5190_v25 }
 0x28d   :  { %5118 = vmatpush.bf16.xpose.msrb.mxu1 %v5109_v41  ;;  %13467 = vst [vmem:[#allocation40_spill] sm:$0xff] %v11072_v51  ;;  %v3203_v48 = vpack.i.b16 %v2926_v27, %v2898_v59  ;;  %v3192_v39 = vshrl.u32 %v2896_v14, 16  ;;  %v3193_v11 = vshrl.u32 %v2924_v47, 16  ;;  %v3156_v32 = vshrl.u32 %v2842_v54, 16 }
 0x28e   :  { %v3157_v21 = vshrl.u32 %v2870_v10, 16  ;;  %v5197_v37 = vsel %vm4730_vm1, %v5192_v9, 0  ;;  %v5212_v4 = vunpack.c.l.b16 %v3155_v0  ;;  %v3204_v31 = vshrl.u32 %v2898_v59, 16 }
 0x28f   :  { %v5213_v41 = vunpack.c.l.b16 %v3203_v48  ;;  %v3194_v20 = vpack.i.b16 %v3193_v11, %v3192_v39  ;;  %v3205_v7 = vshrl.u32 %v2926_v27, 16  ;;  %v3529_v40 = vrot.slane %v3342_v63, 4 }
 0x290   :  { %v3158_v60 = vpack.i.b16 %v3157_v21, %v3156_v32  ;;  %v5146_v25 = vunpack.c.l.b16 %v3146_v29  ;;  %v3284_v57 = vrot.slane %v3278_v61, 4  ;;  %v13468_v14 = vpack.i.b16 %v10599_v24, %v10527_v16  ;;  %v13471_v32 = vld [vmem:[#allocation43_spill] sm:$0xff] }
 0x291   :  { %v5214_v42 = vpack.c.b16 %v5213_v41, %v5212_v4  ;;  %v5147_v54 = vunpack.c.l.b16 %v3194_v20  ;;  %v3206_v10 = vpack.i.b16 %v3205_v7, %v3204_v31  ;;  %v3530_v45 = vsel %vm1063_vm0, %v3529_v40, %v3278_v61  ;;  %v13473_v7 = vld [vmem:[#allocation42_spill] sm:$0xff] }
 0x292   :  { %v1534_v47 = vsel %vm1063_vm0, %v10785_v62, %v13468_v14  ;;  %v5234_v52 = vunpack.c.l.b16 %v3158_v60  ;;  %v3534_v59 = vperm.slane %v3530_v45, %v9285_v22  ;;  %v3586_v27 = vsel %vm1063_vm0, %v3342_v63, %v3284_v57  ;;  %v13469_v62 = vld [vmem:[#allocation23_spill] sm:$0xff] }
 0x293   :  { %v5219_v49 = vsel %vm4730_vm1, %v5214_v42, 0  ;;  %v11085_v0 = vperm.slane %v1534_v47, %v9285_v22  ;;  %v5148_v9 = vpack.c.b16 %v5147_v54, %v5146_v25  ;;  %v5235_v16 = vunpack.c.l.b16 %v3206_v10 }
 0x294   :  { %5228 = vmatpush.bf16.xpose.msra.mxu2 %v5219_v49  ;;  %v3590_v24 = vperm.slane %v3586_v27, %v9285_v22  ;;  %v13470_v48 = vrot.slane %v10593_v8, 4  ;;  %v3521_v39 = vrot.slane %v11037_v26, 4  ;;  %v3535_v11 = vrot.slane %v3534_v59, 4 }
 0x295   :  { %5206 = vmatpush.bf16.xpose.msra.mxu1 %v5197_v37  ;;  %v11095_v21 = vperm.slane %v13471_v32, %v9285_v22  ;;  %v1539_v63 = vrot.slane %v11085_v0, 4  ;;  %v3575_v61 = vrot.slane %v11045_v55, 4  ;;  %v5153_v37 = vsel %vm4730_vm1, %v5148_v9, 0 }
 0x296   :  { %v1556_v29 = vsel %vm1063_vm0, %v13470_v48, %v13469_v62  ;;  %v5236_v4 = vpack.c.b16 %v5235_v16, %v5234_v52  ;;  %v3591_v41 = vrot.slane %v3590_v24, 4  ;;  %v3577_v31 = vrot.slane %v11072_v51, 4  ;;  %5162 = vmatpush.bf16.xpose.msrb.mxu3 %v5153_v37 }
 0x297   :  { %v13472_v8 = vrot.slane %v11012_v58, 4  ;;  %v1540_v60 = vsel %vm1063_vm0, %v1539_v63, %v11095_v21  ;;  %v13474_v40 = vrot.slane %v10610_v23, 4  ;;  %v3519_v25 = vrot.slane %v11042_v44, 4 }
 0x298   :  { %v5241_v57 = vsel %vm4730_vm1, %v5236_v4, 0  ;;  %v13475_v14 = vrot.slane %v11001_v36, 4  ;;  %v3592_v54 = vsel %vm1063_vm0, %v3591_v41, %v11012_v58  ;;  %v13476_v10 = vshrl.u32 %v10879_v43, 16 }
 0x299   :  { %v3594_v20 = vsel %vm1063_vm0, %v3590_v24, %v13472_v8  ;;  %v1562_v42 = vsel %vm1063_vm0, %v13474_v40, %v13473_v7  ;;  %v13477_v52 = vshrl.u32 %v10778_v46, 16  ;;  %v3536_v23 = vsel %vm1063_vm0, %v3535_v11, %v11001_v36 }
 0x29a   :  { %v3538_v47 = vsel %vm1063_vm0, %v3534_v59, %v13475_v14  ;;  %v11126_v49 = vperm.slane %v3592_v54, %v9321_v53  ;;  %v11129_v27 = vperm.slane %v3594_v20, %v9321_v53  ;;  %v13480_v59 = vshrl.u32 %v10992_v34, 16 }
 0x29b   :  { %v11121_v45 = vpack.i.b16 %v13477_v52, %v13476_v10  ;;  %v13481_v58 = vshrl.u32 %v10849_v33, 16  ;;  %v13482_v16 = vpack.i.b16 %v10849_v33, %v10992_v34  ;;  %v11141_v62 = vsel %vm1063_vm0, 0, %v3521_v39 }
 0x29c   :  { %13478 = vst [vmem:[#allocation36_spill] sm:$0xff] %v11126_v49  ;;  %v11144_v36 = vsel %vm1063_vm0, 0, %v3575_v61  ;;  %v11147_v48 = vsel %vm1063_vm0, 0, %v3577_v31  ;;  %v11150_v11 = vperm.slane %v3538_v47, %v9321_v53  ;;  %v3603_v32 = vrot.slane %v11126_v49, 4  ;;  %v13498_v47 = vld [vmem:[#allocation39_spill] sm:$0xff] }
 0x29d   :  { %13479 = vst [vmem:[#allocation22_spill] sm:$0xff] %v11129_v27  ;;  %v11135_v9 = vpack.i.b16 %v13481_v58, %v13480_v59  ;;  %v4093_v24 = vrot.slane %v13482_v16, 4  ;;  %v3605_v63 = vrot.slane %v11129_v27, 4  ;;  %v11155_v37 = vsel %vm1063_vm0, 0, %v3519_v25 }
 0x29e   :  { %5250 = vmatpush.bf16.xpose.msra.mxu3 %v5241_v57  ;;  %13483 = vst [vmem:[#allocation51_spill] sm:$0xff] %v11144_v36  ;;  %v3995_v33 = vshrl.u32 %v11045_v55, 16  ;;  %v11159_v34 = vperm.slane %v3536_v23, %v9321_v53  ;;  %v4003_v61 = vshrl.u32 %v11144_v36, 16  ;;  %v4011_v4 = vshrl.u32 %v11072_v51, 16  ;;  %v13499_v57 = vld [vmem:[#allocation59_spill] sm:$0xff] }
 0x29f   :  { %13484 = vst [vmem:[#allocation26_spill] sm:$0xff] %v11147_v48  ;;  %v11166_v41 = vsel %vm1063_vm0, 0, %v3603_v32  ;;  %v11169_v31 = vsel %vm1063_vm0, 0, %v3605_v63  ;;  %v4019_v8 = vshrl.u32 %v11147_v48, 16  ;;  %v3996_v20 = vshrl.u32 %v11126_v49, 16 }
 0x2a0   :  { %13485 = vst [vmem:[#allocation24_spill] sm:$0xff] %v11166_v41  ;;  %v4004_v40 = vshrl.u32 %v11166_v41, 16  ;;  %v3549_v25 = vrot.slane %v11150_v11, 4  ;;  %v4012_v14 = vshrl.u32 %v11129_v27, 16  ;;  %v3547_v54 = vrot.slane %v11159_v34, 4 }
 0x2a1   :  { %13486 = vst [vmem:[#allocation54_spill] sm:$0xff] %v11169_v31  ;;  %v11183_v10 = vpack.i.b16 %v3996_v20, %v3995_v33  ;;  %v4020_v23 = vshrl.u32 %v11169_v31, 16  ;;  %v13489_v59 = vshrl.u32 %v10985_v6, 16  ;;  %v13490_v58 = vshrl.u32 %v10926_v18, 16  ;;  %v13502_v20 = vld [vmem:[#allocation31_spill] sm:$0xff] }
 0x2a2   :  { %v11185_v52 = vpack.i.b16 %v4004_v40, %v4003_v61  ;;  %v13491_v32 = vpack.i.b16 %v10778_v46, %v10879_v43  ;;  %v11200_v39 = vpack.i.b16 %v4012_v14, %v4011_v4  ;;  %v13493_v33 = vpack.i.b16 %v10926_v18, %v10985_v6  ;;  %v13503_v46 = vld [vmem:[#allocation60_spill] sm:$0xff]  ;;  %v13504_v4 = vld [vmem:[#allocation58_spill] sm:$0xff] }
 0x2a3   :  { %13487 = vst [vmem:[#allocation53_spill] sm:$0xff] %v11183_v10  ;;  %v11192_v16 = vpack.i.b16 %v13490_v58, %v13489_v59  ;;  %v11210_v59 = vpack.i.b16 %v4020_v23, %v4019_v8  ;;  %v11217_v14 = vperm.slane %v1556_v29, %v9285_v22  ;;  %v11220_v18 = vsel %vm1063_vm0, 0, %v3547_v54  ;;  %v13495_v58 = vld [vmem:[#allocation56_spill] sm:$0xff]  ;;  %v13500_v54 = vld [vmem:[#allocation57_spill] sm:$0xff] }
 0x2a4   :  { %13488 = vst [vmem:[#allocation62_spill] sm:$0xff] %v11185_v52  ;;  %v11197_v63 = vrot.slane %v13491_v32, 4  ;;  %v11206_v61 = vsel %vm1063_vm0, %v4093_v24, %v13493_v33  ;;  %v11223_v6 = vsel %vm1063_vm0, 0, %v3549_v25  ;;  %v11229_v23 = vperm.slane %v1562_v42, %v9285_v22  ;;  %v13496_v32 = vld [vmem:[#allocation52_spill] sm:$0xff] }
 0x2a5   :  { %13492 = vst [vmem:[#allocation55_spill] sm:$0xff] %v11200_v39  ;;  %v13497_v33 = vpack.i.b16 %v13495_v58, %v13496_v32  ;;  %v13501_v7 = vpack.i.b16 %v13499_v57, %v13500_v54  ;;  %v13505_v24 = vrot.slane %v13504_v4, 4  ;;  %v1546_v42 = vperm.slane %v1540_v60, %v9321_v53  ;;  %v13507_v32 = vld [vmem:[#allocation61_spill] sm:$0xff]  ;;  %v13509_v4 = vld [vmem:[#allocation32_spill] sm:$0xff] }
 0x2a6   :  { %13494 = vst [vmem:[#allocation20_spill] sm:$0xff] %v11210_v59  ;;  %v13513_v54 = vld [vmem:[#allocation33_spill] sm:$0xff] }
 0x2a7   :  { %v2928_v29 = vsel %vm1063_vm0, %v13498_v47, %v13497_v33  ;;  %v2934_v25 = vsel %vm1063_vm0, %v13502_v20, %v13501_v7  ;;  %v2956_v43 = vsel %vm1063_vm0, %v13505_v24, %v13503_v46  ;;  %v13506_v47 = vld [vmem:[#allocation63_spill] sm:$0xff]  ;;  %v13508_v33 = vrot.slane %v13507_v32, 4  ;;  %v13510_v46 = vld [vmem:[#allocation30_spill] sm:$0xff] }
 0x2a8   :  { %v11247_v8 = vperm.slane %v2928_v29, %v9285_v22  ;;  %v11250_v58 = vperm.slane %v2934_v25, %v9285_v22  ;;  %v1567_v7 = vrot.slane %v11229_v23, 4  ;;  %v13511_v24 = vpack.i.b16 %v13509_v4, %v13510_v46  ;;  %v13512_v29 = vld [vmem:[#allocation25_spill] sm:$0xff] }
 0x2a9   :  { %v2962_v57 = vsel %vm1063_vm0, %v13508_v33, %v13506_v47  ;;  %v13514_v25 = vpack.i.b16 %v13512_v29, %v13513_v54  ;;  %v11272_v47 = vperm.slane %v2956_v43, %v9285_v22  ;;  %v13516_v4 = vrot.slane %v10539_v13, 4  ;;  %v13517_v29 = vld [vmem:[#allocation27_spill] sm:$0xff] }
 0x2aa   :  { %v11258_v20 = vperm.slane %v2962_v57, %v9285_v22  ;;  %v2984_v60 = vsel %vm1063_vm0, %v10754_v12, %v13511_v24  ;;  %v2939_v32 = vrot.slane %v11250_v58, 4  ;;  %v13515_v57 = vld [vmem:[#allocation29_spill] sm:$0xff]  ;;  %v1568_v12 = vsel %vm1063_vm0, %v1567_v7, %v11217_v14 }
 0x2ab   :  { %v2990_v40 = vsel %vm1063_vm0, %v10765_v15, %v13514_v25  ;;  %v3012_v46 = vsel %vm1063_vm0, %v13516_v4, %v13515_v57  ;;  %v11285_v15 = vperm.slane %v2984_v60, %v9285_v22  ;;  %v13518_v43 = vrot.slane %v10544_v2, 4 }
 0x2ac   :  { %v11275_v33 = vperm.slane %v2990_v40, %v9285_v22  ;;  %v2967_v24 = vrot.slane %v11258_v20, 4  ;;  %v1574_v40 = vperm.slane %v1568_v12, %v9321_v53  ;;  %v2940_v13 = vsel %vm1063_vm0, %v2939_v32, %v11247_v8 }
 0x2ad   :  { %v3018_v54 = vsel %vm1063_vm0, %v13518_v43, %v13517_v29  ;;  %v2946_v7 = vperm.slane %v2940_v13, %v9321_v53  ;;  %v11302_v4 = vperm.slane %v3012_v46, %v9285_v22  ;;  %v1690_v2 = vshrl.u32 %v1546_v42, 16 }
 0x2ae   :  { %v2995_v25 = vrot.slane %v11275_v33, 4  ;;  %v11296_v57 = vperm.slane %v3018_v54, %v9285_v22  ;;  %v2968_v60 = vsel %vm1063_vm0, %v2967_v24, %v11272_v47  ;;  %v1689_v29 = vpack.i.b16 %v1574_v40, %v1546_v42 }
 0x2af   :  { %v2974_v12 = vperm.slane %v2968_v60, %v9321_v53  ;;  %v1691_v52 = vshrl.u32 %v1574_v40, 16  ;;  %v3162_v10 = vshrl.u32 %v2946_v7, 16  ;;  %v1551_v13 = vrot.slane %v1546_v42, 4 }
 0x2b0   :  { %v2996_v32 = vsel %vm1063_vm0, %v2995_v25, %v11285_v15  ;;  %v3023_v43 = vrot.slane %v11296_v57, 4  ;;  %8283 = vmatmul.msk.bf16.vlgmr.msrb.gmra.mxu0 %vm4730_vm1, %v1689_v29  ;;  %v1579_v41 = vrot.slane %v1574_v40, 4  ;;  %v2951_v48 = vrot.slane %v2946_v7, 4 }
 0x2b1   :  { %v3002_v54 = vperm.slane %v2996_v32, %v9321_v53  ;;  %v3161_v24 = vpack.i.b16 %v2974_v12, %v2946_v7  ;;  %v3163_v36 = vshrl.u32 %v2974_v12, 16  ;;  %v1692_v59 = vpack.i.b16 %v1691_v52, %v1690_v2 }
 0x2b2   :  { %v3024_v46 = vsel %vm1063_vm0, %v3023_v43, %v11302_v4  ;;  %v1552_v25 = vsel %vm1063_vm0, 0, %v1551_v13  ;;  %v1580_v32 = vsel %vm1063_vm0, 0, %v1579_v41  ;;  %v2979_v43 = vrot.slane %v2974_v12, 4 }
 0x2b3   :  { %v3030_v60 = vperm.slane %v3024_v46, %v9321_v53  ;;  %v3210_v55 = vshrl.u32 %v3002_v54, 16  ;;  %v5256_v49 = vunpack.c.l.b16 %v3161_v24  ;;  %v3164_v39 = vpack.i.b16 %v3163_v36, %v3162_v10  ;;  %8284 = vmatmul.msk.bf16.vlgmr.msrb.gmra.mxu1 %vm4730_vm1, %v1692_v59 }
 0x2b4   :  { %v1695_v31 = vpack.i.b16 %v1580_v32, %v1552_v25  ;;  %v2952_v40 = vsel %vm1063_vm0, 0, %v2951_v48  ;;  %v3007_v27 = vrot.slane %v3002_v54, 4  ;;  %v2980_v36 = vsel %vm1063_vm0, 0, %v2979_v43  ;;  %v11321_v48 = vpop.permute.xlu0 %3295 }
 0x2b5   :  { %v3209_v42 = vpack.i.b16 %v3030_v60, %v3002_v54  ;;  %v3211_v29 = vshrl.u32 %v3030_v60, 16  ;;  %v5278_v51 = vunpack.c.l.b16 %v3164_v39  ;;  %v3035_v46 = vrot.slane %v3030_v60, 4 }
 0x2b6   :  { %8285 = vmatmul.msk.bf16.vlgmr.msrb.gmra.mxu2 %vm4730_vm1, %v1695_v31  ;;  %v1696_v10 = vshrl.u32 %v1552_v25, 16  ;;  %v3008_v41 = vsel %vm1063_vm0, 0, %v3007_v27  ;;  %v3167_v59 = vpack.i.b16 %v2980_v36, %v2952_v40  ;;  %v1697_v13 = vshrl.u32 %v1580_v32, 16 }
 0x2b7   :  { %v5257_v52 = vunpack.c.l.b16 %v3209_v42  ;;  %v3212_v2 = vpack.i.b16 %v3211_v29, %v3210_v55  ;;  %v3036_v7 = vsel %vm1063_vm0, 0, %v3035_v46  ;;  %v3168_v1 = vshrl.u32 %v2952_v40, 16  ;;  %v3312_v29 = vpop.permute.xlu1 %3311 }
 0x2b8   :  { %v3215_v39 = vpack.i.b16 %v3036_v7, %v3008_v41  ;;  %v5300_v54 = vunpack.c.l.b16 %v3167_v59  ;;  %v1698_v60 = vpack.i.b16 %v1697_v13, %v1696_v10  ;;  %v3169_v55 = vshrl.u32 %v2980_v36, 16 }
 0x2b9   :  { %v5258_v24 = vpack.c.b16 %v5257_v52, %v5256_v49  ;;  %v5279_v12 = vunpack.c.l.b16 %v3212_v2  ;;  %v3216_v42 = vshrl.u32 %v3008_v41, 16  ;;  %v3217_v27 = vshrl.u32 %v3036_v7, 16 }
 0x2ba   :  { %v5301_v43 = vunpack.c.l.b16 %v3215_v39  ;;  %v13519_v32 = vshrl.u32 %v11037_v26, 16  ;;  %v13520_v49 = vshrl.u32 %v11150_v11, 16  ;;  %8286 = vmatmul.msk.bf16.vlgmr.msrb.gmra.mxu3 %vm4730_vm1, %v1698_v60  ;;  %v3170_v40 = vpack.i.b16 %v3169_v55, %v3168_v1 }
 0x2bb   :  { %v5263_v31 = vsel %vm4730_vm1, %v5258_v24, 0  ;;  %v5280_v25 = vpack.c.b16 %v5279_v12, %v5278_v51  ;;  %v3607_v2 = vrot.slane %v11321_v48, 4  ;;  %v3218_v51 = vpack.i.b16 %v3217_v27, %v3216_v42 }
 0x2bc   :  { %v11329_v52 = vpack.i.b16 %v13520_v49, %v13519_v32  ;;  %5272 = vmatpush.bf16.xpose.msrb.mxu0 %v5263_v31  ;;  %v5302_v10 = vpack.c.b16 %v5301_v43, %v5300_v54  ;;  %v1541_v41 = vrot.slane %v11095_v21, 4  ;;  %v3873_v7 = vpack.i.b16 %v11220_v18, %v11155_v37 }
 0x2bd   :  { %v5285_v36 = vsel %vm4730_vm1, %v5280_v25, 0  ;;  %v3889_v59 = vpack.i.b16 %v11223_v6, %v11141_v62  ;;  %v3892_v13 = vshrl.u32 %v11223_v6, 16  ;;  %v1569_v24 = vrot.slane %v11217_v14, 4  ;;  %v13521_v25 = vld [vmem:[#allocation34_spill] sm:$0xff] }
 0x2be   :  { %5294 = vmatpush.bf16.xpose.msrb.mxu1 %v5285_v36  ;;  %v3635_v1 = vrot.slane %v3312_v29, 4  ;;  %v5307_v12 = vsel %vm4730_vm1, %v5302_v10, 0  ;;  %v5322_v39 = vunpack.c.l.b16 %v3170_v40  ;;  %v5323_v60 = vunpack.c.l.b16 %v3218_v51  ;;  %v3248_v36 = vpop.permute.xlu0 %3247 }
 0x2bf   :  { %5316 = vmatpush.bf16.xpose.msrb.mxu2 %v5307_v12  ;;  %v1542_v21 = vsel %vm1063_vm0, %v11085_v0, %v1541_v41  ;;  %v1570_v54 = vsel %vm1063_vm0, %v11229_v23, %v1569_v24  ;;  %v2941_v55 = vrot.slane %v11247_v8, 4  ;;  %v2969_v42 = vrot.slane %v11272_v47, 4 }
 0x2c0   :  { %v5324_v31 = vpack.c.b16 %v5323_v60, %v5322_v39  ;;  %v3237_v43 = vrot.slane %v13521_v25, 4  ;;  %v3608_v14 = vsel %vm1063_vm0, %v3607_v2, %v13521_v25  ;;  %v1550_v27 = vperm.slane %v1542_v21, %v9321_v53 }
 0x2c1   :  { %v1578_v32 = vperm.slane %v1570_v54, %v9321_v53  ;;  %v2942_v0 = vsel %vm1063_vm0, %v11250_v58, %v2941_v55  ;;  %v2970_v23 = vsel %vm1063_vm0, %v11258_v20, %v2969_v42  ;;  %v2997_v8 = vrot.slane %v11285_v15, 4  ;;  %v11368_v15 = vpop.permute.xlu1 %3263 }
 0x2c2   :  { %v5329_v47 = vsel %vm4730_vm1, %v5324_v31, 0  ;;  %v2950_v49 = vperm.slane %v2942_v0, %v9321_v53  ;;  %v2978_v40 = vperm.slane %v2970_v23, %v9321_v53  ;;  %v3025_v2 = vrot.slane %v11302_v4, 4 }
 0x2c3   :  { %5338 = vmatpush.bf16.xpose.msrb.mxu3 %v5329_v47  ;;  %v1701_v10 = vpack.i.b16 %v1578_v32, %v1550_v27  ;;  %v2998_v51 = vsel %vm1063_vm0, %v11275_v33, %v2997_v8  ;;  %v3253_v58 = vrot.slane %v3248_v36, 4  ;;  %v11365_v41 = vsel %vm1063_vm0, %v3635_v1, %v3248_v36 }
 0x2c4   :  { %v3006_v24 = vperm.slane %v2998_v51, %v9321_v53  ;;  %v3026_v12 = vsel %vm1063_vm0, %v11296_v57, %v3025_v2  ;;  %v3173_v4 = vpack.i.b16 %v2978_v40, %v2950_v49  ;;  %v11373_v39 = vrot.slane %v3889_v59, 4 }
 0x2c5   :  { %v3269_v60 = vrot.slane %v11368_v15, 4  ;;  %8287 = vmatmul.msk.bf16.vlgmr.msra.gmra.mxu0 %vm4730_vm1, %v1701_v10  ;;  %v3034_v33 = vperm.slane %v3026_v12, %v9321_v53  ;;  %v11379_v1 = vsel %vm1063_vm0, %v3312_v29, %v3253_v58  ;;  %v11382_v21 = vperm.slane %v3608_v14, %v9285_v22 }
 0x2c6   :  { %v3664_v54 = vsel %vm1063_vm0, %v11321_v48, %v3237_v43  ;;  %v1702_v55 = vshrl.u32 %v1550_v27, 16  ;;  %v1703_v57 = vshrl.u32 %v1578_v32, 16  ;;  %v5344_v59 = vunpack.c.l.b16 %v3173_v4 }
 0x2c7   :  { %v3221_v42 = vpack.i.b16 %v3034_v33, %v3006_v24  ;;  %v3174_v31 = vshrl.u32 %v2950_v49, 16  ;;  %v3175_v0 = vshrl.u32 %v2978_v40, 16  ;;  %v3222_v8 = vshrl.u32 %v3006_v24, 16 }
 0x2c8   :  { %v1704_v23 = vpack.i.b16 %v1703_v57, %v1702_v55  ;;  %v3223_v47 = vshrl.u32 %v3034_v33, 16  ;;  %v1553_v2 = vrot.slane %v1550_v27, 4  ;;  %v1581_v29 = vrot.slane %v1578_v32, 4 }
 0x2c9   :  { %v5345_v36 = vunpack.c.l.b16 %v3221_v42  ;;  %v3176_v10 = vpack.i.b16 %v3175_v0, %v3174_v31  ;;  %v2953_v51 = vrot.slane %v2950_v49, 4  ;;  %v2981_v48 = vrot.slane %v2978_v40, 4  ;;  %v3328_v49 = vpop.permute.xlu0 %3327 }
 0x2ca   :  { %8288 = vmatmul.msk.bf16.vlgmr.msra.gmra.mxu1 %vm4730_vm1, %v1704_v23  ;;  %v3224_v14 = vpack.i.b16 %v3223_v47, %v3222_v8  ;;  %v1554_v58 = vsel %vm1063_vm0, 0, %v1553_v2  ;;  %v3009_v43 = vrot.slane %v3006_v24, 4  ;;  %v1582_v4 = vsel %vm1063_vm0, 0, %v1581_v29 }
 0x2cb   :  { %v5346_v12 = vpack.c.b16 %v5345_v36, %v5344_v59  ;;  %v5366_v46 = vunpack.c.l.b16 %v3176_v10  ;;  %v2954_v55 = vsel %vm1063_vm0, 0, %v2953_v51  ;;  %v1707_v20 = vpack.i.b16 %v1582_v4, %v1554_v58 }
 0x2cc   :  { %v5367_v57 = vunpack.c.l.b16 %v3224_v14  ;;  %v2982_v27 = vsel %vm1063_vm0, 0, %v2981_v48  ;;  %v3010_v32 = vsel %vm1063_vm0, 0, %v3009_v43  ;;  %v3037_v31 = vrot.slane %v3034_v33, 4 }
 0x2cd   :  { %v5351_v42 = vsel %vm4730_vm1, %v5346_v12, 0  ;;  %v3179_v0 = vpack.i.b16 %v2982_v27, %v2954_v55  ;;  %v1708_v23 = vshrl.u32 %v1554_v58, 16  ;;  %8289 = vmatmul.msk.bf16.vlgmr.msra.gmra.mxu2 %vm4730_vm1, %v1707_v20  ;;  %v1709_v24 = vshrl.u32 %v1582_v4, 16 }
 0x2ce   :  { %5360 = vmatpush.bf16.xpose.msra.mxu0 %v5351_v42  ;;  %v5368_v40 = vpack.c.b16 %v5367_v57, %v5366_v46  ;;  %v3180_v59 = vshrl.u32 %v2954_v55, 16  ;;  %v3181_v8 = vshrl.u32 %v2982_v27, 16  ;;  %v3621_v47 = vrot.slane %v11382_v21, 4 }
 0x2cf   :  { %v3668_v2 = vperm.slane %v3664_v54, %v9285_v22  ;;  %v3038_v36 = vsel %vm1063_vm0, 0, %v3037_v31  ;;  %v3613_v10 = vrot.slane %v3328_v49, 4  ;;  %v1710_v33 = vpack.i.b16 %v1709_v24, %v1708_v23 }
 0x2d0   :  { %v5373_v29 = vsel %vm4730_vm1, %v5368_v40, 0  ;;  %v3227_v51 = vpack.i.b16 %v3038_v36, %v3010_v32  ;;  %v3182_v14 = vpack.i.b16 %v3181_v8, %v3180_v59  ;;  %v3228_v58 = vshrl.u32 %v3010_v32, 16 }
 0x2d1   :  { %5382 = vmatpush.bf16.xpose.msra.mxu1 %v5373_v29  ;;  %v3229_v46 = vshrl.u32 %v3038_v36, 16  ;;  %v3614_v20 = vsel %vm1063_vm0, %v3613_v10, %v11368_v15  ;;  %v3670_v48 = vsel %vm1063_vm0, %v3328_v49, %v3269_v60  ;;  %v5388_v43 = vunpack.c.l.b16 %v3179_v0  ;;  %8290 = vmatmul.msk.bf16.vlgmr.msra.gmra.mxu3 %vm4730_vm1, %v1710_v33 }
 0x2d2   :  { %v5389_v12 = vunpack.c.l.b16 %v3227_v51  ;;  %v3618_v54 = vperm.slane %v3614_v20, %v9285_v22  ;;  %v3674_v4 = vperm.slane %v3670_v48, %v9285_v22  ;;  %v13522_v55 = vshrl.u32 %v11141_v62, 16 }
 0x2d3   :  { %v13523_v27 = vpack.i.b16 %v11150_v11, %v11037_v26  ;;  %v3677_v15 = vrot.slane %v3668_v2, 4  ;;  %v3230_v42 = vpack.i.b16 %v3229_v46, %v3228_v58  ;;  %v4150_v62 = vsel %vm1063_vm0, %v11373_v39, %v3873_v7 }
 0x2d4   :  { %v3893_v57 = vpack.i.b16 %v3892_v13, %v13522_v55  ;;  %v5390_v60 = vpack.c.b16 %v5389_v12, %v5388_v43  ;;  %v3619_v49 = vrot.slane %v3618_v54, 4  ;;  %v11412_v31 = vsel %vm1063_vm0, %v3618_v54, %v3621_v47 }
 0x2d5   :  { %v4143_v32 = vrot.slane %v13523_v27, 4  ;;  %v3675_v0 = vrot.slane %v3674_v4, 4  ;;  %v5410_v6 = vunpack.c.l.b16 %v3182_v14  ;;  %v5411_v13 = vunpack.c.l.b16 %v3230_v42 }
 0x2d6   :  { %v11420_v23 = vsel %vm1063_vm0, %v3674_v4, %v3677_v15  ;;  %v5395_v26 = vsel %vm4730_vm1, %v5390_v60, 0  ;;  %v11425_v11 = vsel %vm1063_vm0, %v3619_v49, %v11382_v21  ;;  %v1595_v24 = vrot.slane %v10846_v38, 4 }
 0x2d7   :  { %13524 = vst [vmem:[#allocation21_spill] sm:$0xff] %v11425_v11  ;;  %v11428_v40 = vsel %vm1063_vm0, %v3675_v0, %v3668_v2  ;;  %v4115_v59 = vrot.slane %v11121_v45, 4  ;;  %v13525_v7 = vshrl.u32 %v11155_v37, 16  ;;  %v13526_v39 = vshrl.u32 %v11220_v18, 16  ;;  %5404 = vmatpush.bf16.xpose.msra.mxu2 %v5395_v26 }
 0x2d8   :  { %v4177_v47 = vrot.slane %v3893_v57, 4  ;;  %v5412_v36 = vpack.c.b16 %v5411_v13, %v5410_v6  ;;  %v11438_v10 = vperm.slane %v11206_v61, %v9285_v22  ;;  %v13527_v21 = vshrl.u32 %v11042_v44, 16 }
 0x2d9   :  { %v3877_v8 = vpack.i.b16 %v13526_v39, %v13525_v7  ;;  %v13528_v2 = vshrl.u32 %v11159_v34, 16  ;;  %v4171_v51 = vrot.slane %v11329_v52, 4  ;;  %v13529_v45 = vpack.i.b16 %v10827_v17, %v10876_v28 }
 0x2da   :  { %v11451_v18 = vperm.slane %v4150_v62, %v9285_v22  ;;  %v5417_v33 = vsel %vm4730_vm1, %v5412_v36, 0  ;;  %v1597_v61 = vrot.slane %v10842_v56, 4  ;;  %v13530_v14 = vrot.slane %v11135_v9, 4 }
 0x2db   :  { %v3869_v29 = vpack.i.b16 %v13528_v2, %v13527_v21  ;;  %v4088_v37 = vsel %vm1063_vm0, %v11197_v63, %v13529_v45  ;;  %v13531_v52 = vpack.i.b16 %v11159_v34, %v11042_v44  ;;  %5426 = vmatpush.bf16.xpose.msra.mxu3 %v5417_v33  ;;  %v1596_v28 = vsel %vm1063_vm0, %v1595_v24, %v10842_v56 }
 0x2dc   :  { %v4122_v58 = vsel %vm1063_vm0, %v13530_v14, %v11192_v16  ;;  %v1625_v63 = vrot.slane %v10861_v5, 4  ;;  %v4116_v46 = vsel %vm1063_vm0, %v4115_v59, %v11016_v35  ;;  %v4178_v20 = vsel %vm1063_vm0, %v4177_v47, %v3877_v8 }
 0x2dd   :  { %v4144_v17 = vsel %vm1063_vm0, %v4143_v32, %v13531_v52  ;;  %v1623_v9 = vrot.slane %v10865_v3, 4  ;;  %v11471_v16 = vperm.slane %v4088_v37, %v9285_v22  ;;  %v4172_v44 = vsel %vm1063_vm0, %v4171_v51, %v3869_v29 }
 0x2de   :  { %v1602_v34 = vperm.slane %v1596_v28, %v9321_v53  ;;  %v4099_v48 = vrot.slane %v11438_v10, 4  ;;  %v11477_v43 = vperm.slane %v4144_v17, %v9285_v22  ;;  %v11482_v35 = vperm.slane %v4122_v58, %v9285_v22 }
 0x2df   :  { %v1624_v12 = vsel %vm1063_vm0, %v1623_v9, %v10861_v5  ;;  %v4155_v54 = vrot.slane %v11451_v18, 4  ;;  %v11489_v57 = vperm.slane %v4116_v46, %v9285_v22  ;;  %v11492_v27 = vperm.slane %v4178_v20, %v9285_v22 }
 0x2e0   :  { %v1630_v4 = vperm.slane %v1624_v12, %v9321_v53  ;;  %v4100_v55 = vsel %vm1063_vm0, %v4099_v48, %v11471_v16  ;;  %v4127_v15 = vrot.slane %v11482_v35, 4  ;;  %v11499_v60 = vperm.slane %v4172_v44, %v9285_v22 }
 0x2e1   :  { %v4106_v32 = vperm.slane %v4100_v55, %v9321_v53  ;;  %v4156_v42 = vsel %vm1063_vm0, %v4155_v54, %v11477_v43  ;;  %v4183_v0 = vrot.slane %v11492_v27, 4  ;;  %v1714_v62 = vshrl.u32 %v1602_v34, 16 }
 0x2e2   :  { %v1713_v49 = vpack.i.b16 %v1630_v4, %v1602_v34  ;;  %v1715_v6 = vshrl.u32 %v1630_v4, 16  ;;  %v4128_v13 = vsel %vm1063_vm0, %v4127_v15, %v11489_v57  ;;  %v4162_v26 = vperm.slane %v4156_v42, %v9321_v53 }
 0x2e3   :  { %v1607_v24 = vrot.slane %v1602_v34, 4  ;;  %v1635_v59 = vrot.slane %v1630_v4, 4  ;;  %v4134_v7 = vperm.slane %v4128_v13, %v9321_v53  ;;  %v4184_v39 = vsel %vm1063_vm0, %v4183_v0, %v11499_v60 }
 0x2e4   :  { %8291 = vmatmul.msk.bf16.vlgmr.msrb.gmra.mxu0 %vm4730_vm1, %v1713_v49  ;;  %v1716_v8 = vpack.i.b16 %v1715_v6, %v1714_v62  ;;  %v4538_v47 = vshrl.u32 %v4106_v32, 16  ;;  %v4190_v36 = vperm.slane %v4184_v39, %v9321_v53  ;;  %v4111_v29 = vrot.slane %v4106_v32, 4 }
 0x2e5   :  { %v1608_v21 = vsel %vm1063_vm0, 0, %v1607_v24  ;;  %v1636_v2 = vsel %vm1063_vm0, 0, %v1635_v59  ;;  %v4537_v51 = vpack.i.b16 %v4134_v7, %v4106_v32  ;;  %v4539_v45 = vshrl.u32 %v4134_v7, 16 }
 0x2e6   :  { %8292 = vmatmul.msk.bf16.vlgmr.msrb.gmra.mxu1 %vm4730_vm1, %v1716_v8  ;;  %v1719_v37 = vpack.i.b16 %v1636_v2, %v1608_v21  ;;  %v4139_v33 = vrot.slane %v4134_v7, 4  ;;  %v4585_v14 = vpack.i.b16 %v4190_v36, %v4162_v26  ;;  %v4586_v58 = vshrl.u32 %v4162_v26, 16  ;;  %v11518_v8 = vpop.f32.mrf.mxu0 }
 0x2e7   :  { %v4587_v52 = vshrl.u32 %v4190_v36, 16  ;;  %v4167_v17 = vrot.slane %v4162_v26, 4  ;;  %v4540_v28 = vpack.i.b16 %v4539_v45, %v4538_v47  ;;  %v4112_v46 = vsel %vm1063_vm0, 0, %v4111_v29  ;;  %v11520_v47 = vpop.f32.mrf.mxu1  ;;  %v11531_v29 = vpop.f32.mrf.mxu2 }
 0x2e8   :  { %8293 = vmatmul.msk.bf16.vlgmr.msrb.gmra.mxu2 %vm4730_vm1, %v1719_v37  ;;  %v4140_v20 = vsel %vm1063_vm0, 0, %v4139_v33  ;;  %v4195_v9 = vrot.slane %v4190_v36, 4  ;;  %v5854_v44 = vunpack.c.l.b16 %v4537_v51  ;;  %v5855_v34 = vunpack.c.l.b16 %v4585_v14  ;;  %v11533_v51 = vpop.f32.mrf.mxu3 }
 0x2e9   :  { %v4588_v48 = vpack.i.b16 %v4587_v52, %v4586_v58  ;;  %v4543_v12 = vpack.i.b16 %v4140_v20, %v4112_v46  ;;  %v4168_v54 = vsel %vm1063_vm0, 0, %v4167_v17  ;;  %v1720_v55 = vshrl.u32 %v1608_v21, 16 }
 0x2ea   :  { %v4196_v4 = vsel %vm1063_vm0, 0, %v4195_v9  ;;  %v1721_v32 = vshrl.u32 %v1636_v2, 16  ;;  %v5856_v15 = vpack.c.b16 %v5855_v34, %v5854_v44  ;;  %v5874_v42 = vunpack.c.l.b16 %v4540_v28 }
 0x2eb   :  { %v5875_v49 = vunpack.c.l.b16 %v4588_v48  ;;  %v4591_v0 = vpack.i.b16 %v4196_v4, %v4168_v54  ;;  %v5894_v62 = vunpack.c.l.b16 %v4543_v12  ;;  %v4544_v13 = vshrl.u32 %v4112_v46, 16 }
 0x2ec   :  { %v1722_v6 = vpack.i.b16 %v1721_v32, %v1720_v55  ;;  %v4545_v26 = vshrl.u32 %v4140_v20, 16  ;;  %5868 = vmatpush.bf16.msrb.mxu0 %v5856_v15  ;;  %v4592_v7 = vshrl.u32 %v4168_v54, 16  ;;  %v4593_v39 = vshrl.u32 %v4196_v4, 16  ;;  %v13535_v4 = vld [vmem:[#allocation48_spill] sm:$0xff] }
 0x2ed   :  { %v5876_v24 = vpack.c.b16 %v5875_v49, %v5874_v42  ;;  %v5895_v59 = vunpack.c.l.b16 %v4591_v0  ;;  %v1598_v21 = vsel %vm1063_vm0, %v10846_v38, %v1597_v61  ;;  %v1626_v2 = vsel %vm1063_vm0, %v10865_v3, %v1625_v63 }
 0x2ee   :  { %8294 = vmatmul.msk.bf16.vlgmr.msrb.gmra.mxu3 %vm4730_vm1, %v1722_v6  ;;  %v4546_v36 = vpack.i.b16 %v4545_v26, %v4544_v13  ;;  %v4594_v37 = vpack.i.b16 %v4593_v39, %v4592_v7  ;;  %v1606_v33 = vperm.slane %v1598_v21, %v9321_v53  ;;  %v1634_v14 = vperm.slane %v1626_v2, %v9321_v53  ;;  %v4748_v63 = vpop.f32.mrf.mxu0 }
 0x2ef   :  { %5888 = vmatpush.bf16.msrb.mxu1 %v5876_v24  ;;  %v5896_v45 = vpack.c.b16 %v5895_v59, %v5894_v62  ;;  %v4101_v38 = vrot.slane %v11471_v16, 4  ;;  %v4770_v52 = vpop.f32.mrf.mxu1  ;;  %v4129_v17 = vrot.slane %v11489_v57, 4  ;;  %v4792_v28 = vpop.f32.mrf.mxu2  ;;  %v4157_v16 = vrot.slane %v11477_v43, 4 }
 0x2f0   :  { %v5914_v56 = vunpack.c.l.b16 %v4546_v36  ;;  %v5915_v58 = vunpack.c.l.b16 %v4594_v37  ;;  %v1725_v5 = vpack.i.b16 %v1634_v14, %v1606_v33  ;;  %v4814_v46 = vpop.f32.mrf.mxu3  ;;  %v13532_v44 = vpack.i.b16 %v10748_v50, %v10797_v30 }
 0x2f1   :  { %5908 = vmatpush.bf16.msrb.mxu2 %v5896_v45  ;;  %v4102_v3 = vsel %vm1063_vm0, %v11438_v10, %v4101_v38  ;;  %v4130_v9 = vsel %vm1063_vm0, %v11482_v35, %v4129_v17  ;;  %v13533_v10 = vld [vmem:[#allocation41_spill] sm:$0xff]  ;;  %v4185_v54 = vrot.slane %v11499_v60, 4  ;;  %v4227_v55 = vrot.slane %v13535_v4, 4 }
 0x2f2   :  { %v5916_v61 = vpack.c.b16 %v5915_v58, %v5914_v56  ;;  %v4110_v20 = vperm.slane %v4102_v3, %v9321_v53  ;;  %v4199_v34 = vrot.slane %v13532_v44, 4  ;;  %v13534_v48 = vpack.i.b16 %v10806_v19, %v13533_v10 }
 0x2f3   :  { %v4138_v57 = vperm.slane %v4130_v9, %v9321_v53  ;;  %v4158_v35 = vsel %vm1063_vm0, %v11451_v18, %v4157_v16  ;;  %v1726_v32 = vshrl.u32 %v1606_v33, 16  ;;  %v1727_v43 = vshrl.u32 %v1634_v14, 16 }
 0x2f4   :  { %8295 = vmatmul.msk.bf16.vlgmr.msra.gmra.mxu0 %vm4730_vm1, %v1725_v5  ;;  %5928 = vmatpush.bf16.msrb.mxu3 %v5916_v61  ;;  %v11552_v12 = vrot.slane %v13534_v48, 4  ;;  %v4166_v15 = vperm.slane %v4158_v35, %v9321_v53  ;;  %v4186_v50 = vsel %vm1063_vm0, %v11492_v27, %v4185_v54  ;;  %v4550_v19 = vshrl.u32 %v4110_v20, 16 }
 0x2f5   :  { %v4549_v30 = vpack.i.b16 %v4138_v57, %v4110_v20  ;;  %v4194_v42 = vperm.slane %v4186_v50, %v9321_v53  ;;  %v1728_v49 = vpack.i.b16 %v1727_v43, %v1726_v32  ;;  %v4551_v0 = vshrl.u32 %v4138_v57, 16 }
 0x2f6   :  { %v1609_v62 = vrot.slane %v1606_v33, 4  ;;  %v4598_v6 = vshrl.u32 %v4166_v15, 16  ;;  %v1637_v13 = vrot.slane %v1634_v14, 4  ;;  %v4113_v26 = vrot.slane %v4110_v20, 4  ;;  %v11563_v24 = vpop.f32.mrf.mxu0  ;;  %v11578_v20 = vld [vmem:[#allocation7] sm:$0x3] }
 0x2f7   :  { %v5934_v60 = vunpack.c.l.b16 %v4549_v30  ;;  %v11565_v18 = vpop.f32.mrf.mxu1  ;;  %v4597_v59 = vpack.i.b16 %v4194_v42, %v4166_v15  ;;  %8296 = vmatmul.msk.bf16.vlgmr.msra.gmra.mxu1 %vm4730_vm1, %v1728_v49  ;;  %v4552_v7 = vpack.i.b16 %v4551_v0, %v4550_v19  ;;  %v4599_v27 = vshrl.u32 %v4194_v42, 16  ;;  %v11569_v36 = vpop.f32.mrf.mxu2  ;;  %v13536_v30 = vld [vmem:[#allocation35_spill] sm:$0xff]  ;;  %v13537_v19 = vld [vmem:[#allocation37_spill] sm:$0xff] }
 0x2f8   :  { %v1610_v39 = vsel %vm1063_vm0, 0, %v1609_v62  ;;  %v11571_v21 = vpop.f32.mrf.mxu3  ;;  %v1638_v2 = vsel %vm1063_vm0, 0, %v1637_v13  ;;  %v4114_v45 = vsel %vm1063_vm0, 0, %v4113_v26  ;;  %v4141_v37 = vrot.slane %v4138_v57, 4  ;;  %v13539_v13 = vld [vmem:[#allocation38_spill] sm:$0xff] }
 0x2f9   :  { %v4169_v33 = vrot.slane %v4166_v15, 4  ;;  %v5935_v14 = vunpack.c.l.b16 %v4597_v59  ;;  %v4600_v56 = vpack.i.b16 %v4599_v27, %v4598_v6  ;;  %v5954_v58 = vunpack.c.l.b16 %v4552_v7  ;;  %v13540_v26 = vld [vmem:[#allocation46_spill] sm:$0xff]  ;;  %v13542_v27 = vld [vmem:[#allocation47_spill] sm:$0xff] }
 0x2fa   :  { %v1731_v38 = vpack.i.b16 %v1638_v2, %v1610_v39  ;;  %v4142_v5 = vsel %vm1063_vm0, 0, %v4141_v37  ;;  %v4197_v3 = vrot.slane %v4194_v42, 4  ;;  %v1732_v63 = vshrl.u32 %v1610_v39, 16 }
 0x2fb   :  { %v4170_v61 = vsel %vm1063_vm0, 0, %v4169_v33  ;;  %v5936_v52 = vpack.c.b16 %v5935_v14, %v5934_v60  ;;  %v5955_v17 = vunpack.c.l.b16 %v4600_v56  ;;  %v4555_v28 = vpack.i.b16 %v4142_v5, %v4114_v45  ;;  %v13544_v33 = vld [vmem:[#allocation22_spill] sm:$0xff]  ;;  %v13545_v14 = vld [vmem:[#allocation40_spill] sm:$0xff] }
 0x2fc   :  { %8297 = vmatmul.msk.bf16.vlgmr.msra.gmra.mxu2 %vm4730_vm1, %v1731_v38  ;;  %v1733_v46 = vshrl.u32 %v1638_v2, 16  ;;  %v4198_v9 = vsel %vm1063_vm0, 0, %v4197_v3  ;;  %v4556_v16 = vshrl.u32 %v4114_v45, 16  ;;  %v4557_v44 = vshrl.u32 %v4142_v5, 16  ;;  %v13543_v2 = vld [vmem:[#allocation49_spill] sm:$0xff]  ;;  %v13548_v5 = vld [vmem:[#allocation26_spill] sm:$0xff] }
 0x2fd   :  { %5948 = vmatpush.bf16.msra.mxu0 %v5936_v52  ;;  %v5956_v10 = vpack.c.b16 %v5955_v17, %v5954_v58  ;;  %v4603_v48 = vpack.i.b16 %v4198_v9, %v4170_v61  ;;  %v4604_v54 = vshrl.u32 %v4170_v61, 16  ;;  %v4605_v32 = vshrl.u32 %v4198_v9, 16  ;;  %v13550_v17 = vld [vmem:[#allocation55_spill] sm:$0xff] }
 0x2fe   :  { %v1734_v57 = vpack.i.b16 %v1733_v46, %v1732_v63  ;;  %v4558_v35 = vpack.i.b16 %v4557_v44, %v4556_v16  ;;  %v11582_v43 = vperm.slane %v11578_v20, 0  ;;  %v4836_v15 = vpop.f32.mrf.mxu0  ;;  %v13538_v42 = vpack.i.b16 %v13536_v30, %v13537_v19 }
 0x2ff   :  { %v4858_v50 = vpop.f32.mrf.mxu1  ;;  %5968 = vmatpush.bf16.msra.mxu1 %v5956_v10  ;;  %v5974_v0 = vunpack.c.l.b16 %v4555_v28  ;;  %v5975_v62 = vunpack.c.l.b16 %v4603_v48  ;;  %v4880_v60 = vpop.f32.mrf.mxu2  ;;  %v13541_v59 = vpack.i.b16 %v13539_v13, %v13540_v26  ;;  %v4228_v39 = vsel %vm1063_vm0, %v4227_v55, %v13542_v27  ;;  %v13547_v55 = vld [vmem:[#allocation54_spill] sm:$0xff]  ;;  %v13557_v13 = vld [vmem:[#allocation51_spill] sm:$0xff] }
 0x300   :  { %v4200_v49 = vsel %vm1063_vm0, %v4199_v34, %v13538_v42  ;;  %8298 = vmatmul.msk.bf16.vlgmr.msra.gmra.mxu3 %vm4730_vm1, %v1734_v57  ;;  %v4902_v6 = vpop.f32.mrf.mxu3  ;;  %v4233_v34 = vrot.slane %v13543_v2, 4  ;;  %v4606_v45 = vpack.i.b16 %v4605_v32, %v4604_v54  ;;  %v11601_v37 = vadd.f32 %v11582_v43, %v11518_v8  ;;  %v13551_v57 = vld [vmem:[#allocation45_spill] sm:$0xff]  ;;  %v13553_v32 = vld [vmem:[#allocation44_spill] sm:$0xff] }
 0x301   :  { %v4206_v7 = vsel %vm1063_vm0, %v11552_v12, %v13541_v59  ;;  %v13546_v56 = vpack.i.b16 %v13544_v33, %v13545_v14  ;;  %v5976_v38 = vpack.c.b16 %v5975_v62, %v5974_v0  ;;  %v11608_v12 = vadd.f32 %v11582_v43, %v11531_v29  ;;  %v13556_v6 = vld [vmem:[#allocation24_spill] sm:$0xff]  ;;  %v13559_v59 = vld [vmem:[#allocation53_spill] sm:$0xff] }
 0x302   :  { %v11612_v4 = vadd.f32 %v11582_v43, %v11533_v51  ;;  %v13549_v61 = vpack.i.b16 %v13547_v55, %v13548_v5  ;;  %v5994_v63 = vunpack.c.l.b16 %v4558_v35  ;;  %v5995_v8 = vunpack.c.l.b16 %v4606_v45  ;;  %v13552_v35 = vld [vmem:[#allocation36_spill] sm:$0xff] }
 0x303   :  { %v4255_v58 = vrot.slane %v13546_v56, 4  ;;  %v5470_v52 = vsel %vm4730_vm1, %v11601_v37, -inf  ;;  %v4283_v28 = vrot.slane %v13550_v17, 4  ;;  %5988 = vmatpush.bf16.msra.mxu2 %v5976_v38  ;;  %v5476_v29 = vsel %vm4730_vm1, %v11608_v12, -inf }
 0x304   :  { %v4261_v3 = vrot.slane %v13549_v61, 4  ;;  %5471 = vmax.xlane.f32.xlu2 %v5470_v52  ;;  %v5479_v51 = vsel %vm4730_vm1, %v11612_v4, -inf  ;;  %v4204_v46 = vperm.slane %v4200_v49, %v9285_v22  ;;  %v5996_v9 = vpack.c.b16 %v5995_v8, %v5994_v63  ;;  %5477 = vmax.xlane.f32.xlu0 %v5476_v29  ;;  %v13555_v49 = vld [vmem:[#allocation20_spill] sm:$0xff] }
 0x305   :  { %v11627_v16 = vadd.f32 %v11582_v43, %v11520_v47  ;;  %5480 = vmax.xlane.f32.xlu1 %v5479_v51  ;;  %v4210_v44 = vperm.slane %v4206_v7, %v9285_v22  ;;  %v11632_v10 = vadd.f32 %v11582_v43, %v11565_v18  ;;  %v11636_v48 = vadd.f32 %v11582_v43, %v11571_v21 }
 0x306   :  { %v4234_v54 = vsel %vm1063_vm0, %v4233_v34, %v13551_v57  ;;  %v13554_v15 = vpack.i.b16 %v13552_v35, %v13553_v32  ;;  %6008 = vmatpush.bf16.msra.mxu3 %v5996_v9  ;;  %v11646_v50 = vadd.f32 %v11582_v43, %v11563_v24  ;;  %v11650_v18 = vadd.f32 %v11582_v43, %v11569_v36  ;;  %v4922_v30 = vpop.f32.mrf.mxu0 }
 0x307   :  { %v4944_v21 = vpop.f32.mrf.mxu1  ;;  %v4211_v19 = vrot.slane %v4210_v44, 4  ;;  %v11653_v42 = vperm.slane %v4234_v54, %v9285_v22  ;;  %v4289_v0 = vrot.slane %v13555_v49, 4  ;;  %v11656_v62 = vpop.f32.mrf.mxu2  ;;  %v13558_v26 = vpack.i.b16 %v13556_v6, %v13557_v13 }
 0x308   :  { %v4256_v47 = vsel %vm1063_vm0, %v4255_v58, %v13554_v15  ;;  %v4988_v60 = vpop.f32.mrf.mxu3  ;;  %v4284_v36 = vsel %vm1063_vm0, %v4283_v28, %v13559_v59  ;;  %v4232_v27 = vperm.slane %v4228_v39, %v9285_v22  ;;  %v5485_v34 = vsel %vm4730_vm1, %v11632_v10, -inf }
 0x309   :  { %v4262_v24 = vsel %vm1063_vm0, %v4261_v3, %v13558_v26  ;;  %v4212_v7 = vsel %vm1063_vm0, %v4211_v19, %v4204_v46  ;;  %v4239_v2 = vrot.slane %v11653_v42, 4  ;;  %v5491_v45 = vsel %vm4730_vm1, %v11636_v48, -inf  ;;  %v13560_v3 = vld [vmem:[#allocation62_spill] sm:$0xff] }
 0x30a   :  { %v4218_v33 = vperm.slane %v4212_v7, %v9321_v53  ;;  %v11673_v14 = vperm.slane %v4262_v24, %v9285_v22  ;;  %v5473_v56 = vsel %vm4730_vm1, %v11627_v16, -inf  ;;  %v5482_v58 = vsel %vm4730_vm1, %v11646_v50, -inf }
 0x30b   :  { %v5488_v39 = vsel %vm4730_vm1, %v11650_v18, -inf  ;;  %v4240_v38 = vsel %vm1063_vm0, %v4239_v2, %v4232_v27  ;;  %v4260_v5 = vperm.slane %v4256_v47, %v9285_v22  ;;  %v4290_v63 = vsel %vm1063_vm0, %v4289_v0, %v13560_v3 }
 0x30c   :  { %5474 = vmax.xlane.f32.xlu2 %v5473_v56  ;;  %v4246_v55 = vperm.slane %v4240_v38, %v9321_v53  ;;  %v4267_v61 = vrot.slane %v11673_v14, 4  ;;  %5486 = vmax.xlane.f32.xlu0 %v5485_v34  ;;  %v11688_v8 = vadd.f32 %v11582_v43, %v4988_v60  ;;  %v11691_v52 = vperm.slane %v4290_v63, %v9285_v22 }
 0x30d   :  { %5492 = vmax.xlane.f32.xlu1 %v5491_v45  ;;  %v4223_v17 = vrot.slane %v4218_v33, 4  ;;  %v4213_v28 = vrot.slane %v4204_v46, 4  ;;  %v4562_v9 = vshrl.u32 %v4218_v33, 16  ;;  %v11696_v15 = vperm.slane %v4284_v36, %v9285_v22 }
 0x30e   :  { %v4268_v29 = vsel %vm1063_vm0, %v4267_v61, %v4260_v5  ;;  %v4561_v51 = vpack.i.b16 %v4246_v55, %v4218_v33  ;;  %v4563_v57 = vshrl.u32 %v4246_v55, 16  ;;  %v4924_v54 = vpop.f32.mrf.mxu0  ;;  %v4295_v47 = vrot.slane %v11691_v52, 4 }
 0x30f   :  { %v4946_v35 = vpop.f32.mrf.mxu1  ;;  %v4274_v32 = vperm.slane %v4268_v29, %v9321_v53  ;;  %v4251_v19 = vrot.slane %v4246_v55, 4  ;;  %v11700_v49 = vadd.f32 %v11582_v43, %v4922_v30  ;;  %v4968_v0 = vpop.f32.mrf.mxu2  ;;  %v4224_v6 = vsel %vm1063_vm0, 0, %v4223_v17 }
 0x310   :  { %v4990_v46 = vpop.f32.mrf.mxu3  ;;  %v4564_v60 = vpack.i.b16 %v4563_v57, %v4562_v9  ;;  %v4214_v13 = vsel %vm1063_vm0, %v4210_v44, %v4213_v28  ;;  %v11705_v26 = vadd.f32 %v11582_v43, %v4944_v21  ;;  %v4296_v24 = vsel %vm1063_vm0, %v4295_v47, %v11696_v15 }
 0x311   :  { %v4252_v59 = vsel %vm1063_vm0, 0, %v4251_v19  ;;  %v4279_v36 = vrot.slane %v4274_v32, 4  ;;  %v5503_v30 = vsel %vm4730_vm1, %v11688_v8, -inf  ;;  %v4302_v7 = vperm.slane %v4296_v24, %v9321_v53 }
 0x312   :  { %v4567_v2 = vpack.i.b16 %v4252_v59, %v4224_v6  ;;  %v4569_v34 = vshrl.u32 %v4252_v59, 16  ;;  %v4610_v45 = vshrl.u32 %v4274_v32, 16  ;;  %v4568_v33 = vshrl.u32 %v4224_v6, 16 }
 0x313   :  { %v4241_v56 = vrot.slane %v4232_v27, 4  ;;  %v4269_v44 = vrot.slane %v4260_v5, 4  ;;  %v4609_v21 = vpack.i.b16 %v4302_v7, %v4274_v32  ;;  %v4611_v38 = vshrl.u32 %v4302_v7, 16 }
 0x314   :  { %5483 = vmax.xlane.f32.xlu2 %v5482_v58  ;;  %v4280_v55 = vsel %vm1063_vm0, 0, %v4279_v36  ;;  %v4307_v61 = vrot.slane %v4302_v7, 4  ;;  %5489 = vmax.xlane.f32.xlu0 %v5488_v39  ;;  %v11714_v3 = vunpack.c.l.b16 %v4561_v51  ;;  %v6034_v63 = vunpack.c.l.b16 %v4564_v60 }
 0x315   :  { %5504 = vmax.xlane.f32.xlu1 %v5503_v30  ;;  %v4570_v17 = vpack.i.b16 %v4569_v34, %v4568_v33  ;;  %v4242_v28 = vsel %vm1063_vm0, %v11653_v42, %v4241_v56  ;;  %v11718_v29 = vunpack.c.l.b16 %v4609_v21  ;;  %v4612_v9 = vpack.i.b16 %v4611_v38, %v4610_v45 }
 0x316   :  { %v4308_v27 = vsel %vm1063_vm0, 0, %v4307_v61  ;;  %v4222_v58 = vperm.slane %v4214_v13, %v9321_v53  ;;  %v5010_v5 = vpop.f32.mrf.mxu0  ;;  %v4616_v39 = vshrl.u32 %v4280_v55, 16  ;;  %v4270_v51 = vsel %vm1063_vm0, %v11673_v14, %v4269_v44 }
 0x317   :  { %v11722_v57 = vpop.f32.mrf.mxu1  ;;  %v4615_v54 = vpack.i.b16 %v4308_v27, %v4280_v55  ;;  %v4617_v35 = vshrl.u32 %v4308_v27, 16  ;;  %v11727_v32 = vadd.f32 %v11582_v43, %v5010_v5  ;;  %v5054_v42 = vpop.f32.mrf.mxu2  ;;  %v6035_v0 = vunpack.c.l.b16 %v4612_v9 }
 0x318   :  { %v5076_v47 = vpop.f32.mrf.mxu3  ;;  %v4250_v46 = vperm.slane %v4242_v28, %v9321_v53  ;;  %v5497_v60 = vsel %vm4730_vm1, %v11705_v26, -inf  ;;  %v11734_v6 = vunpack.c.l.b16 %v4567_v2  ;;  %v5494_v14 = vsel %vm4730_vm1, %v11700_v49, -inf }
 0x319   :  { %v11736_v13 = vunpack.c.l.b16 %v4615_v54  ;;  %v4618_v24 = vpack.i.b16 %v4617_v35, %v4616_v39  ;;  %v11742_v59 = vadd.f32 %v11582_v43, %v11656_v62  ;;  %v11744_v36 = vpack.c.b16 %v6035_v0, %v6034_v63 }
 0x31a   :  { %v4278_v30 = vperm.slane %v4270_v51, %v9321_v53  ;;  %v5506_v7 = vsel %vm4730_vm1, %v11727_v32, -inf  ;;  %v6074_v34 = vunpack.c.l.b16 %v4570_v17  ;;  %v4297_v33 = vrot.slane %v11696_v15, 4 }
 0x31b   :  { %v6075_v45 = vunpack.c.l.b16 %v4618_v24  ;;  %v4573_v56 = vpack.i.b16 %v4250_v46, %v4222_v58  ;;  %v4574_v44 = vshrl.u32 %v4222_v58, 16  ;;  %v4575_v21 = vshrl.u32 %v4250_v46, 16 }
 0x31c   :  { %5498 = vmax.xlane.f32.xlu2 %v5497_v60  ;;  %5495 = vmax.xlane.f32.xlu0 %v5494_v14  ;;  %v11753_v62 = vadd.f32 %v11582_v43, %v5054_v42  ;;  %v4225_v55 = vrot.slane %v4222_v58, 4  ;;  %v4253_v61 = vrot.slane %v4250_v46, 4  ;;  %v11758_v63 = vadd.f32 %v11582_v43, %v5076_v47 }
 0x31d   :  { %5507 = vmax.xlane.f32.xlu1 %v5506_v7  ;;  %v11755_v38 = vpack.c.b16 %v6075_v45, %v6074_v34  ;;  %v4298_v17 = vsel %vm1063_vm0, %v11691_v52, %v4297_v33  ;;  %v4576_v28 = vpack.i.b16 %v4575_v21, %v4574_v44  ;;  %v4281_v15 = vrot.slane %v4278_v30, 4 }
 0x31e   :  { %v5012_v9 = vpop.f32.mrf.mxu0  ;;  %v4306_v5 = vperm.slane %v4298_v17, %v9321_v53  ;;  %v4226_v54 = vsel %vm1063_vm0, 0, %v4225_v55  ;;  %v4254_v39 = vsel %vm1063_vm0, 0, %v4253_v61  ;;  %v5500_v58 = vsel %vm4730_vm1, %v11742_v59, -inf }
 0x31f   :  { %v5034_v27 = vpop.f32.mrf.mxu1  ;;  %v5056_v35 = vpop.f32.mrf.mxu2  ;;  %v4622_v42 = vshrl.u32 %v4278_v30, 16  ;;  %v4282_v47 = vsel %vm1063_vm0, 0, %v4281_v15  ;;  %v4579_v0 = vpack.i.b16 %v4254_v39, %v4226_v54  ;;  %v4581_v24 = vshrl.u32 %v4254_v39, 16 }
 0x320   :  { %v5078_v51 = vpop.f32.mrf.mxu3  ;;  %v4621_v52 = vpack.i.b16 %v4306_v5, %v4278_v30  ;;  %v4623_v46 = vshrl.u32 %v4306_v5, 16  ;;  %v4309_v60 = vrot.slane %v4306_v5, 4  ;;  %v5515_v14 = vsel %vm4730_vm1, %v11758_v63, -inf }
 0x321   :  { %v5512_v7 = vsel %vm4730_vm1, %v11753_v62, -inf  ;;  %v5433_v34 = vrot.slane %v11578_v20, 1  ;;  %v4580_v45 = vshrl.u32 %v4226_v54, 16  ;;  %v11773_v33 = vunpack.c.l.b16 %v4573_v56 }
 0x322   :  { %v11775_v44 = vunpack.c.l.b16 %v4621_v52  ;;  %v4624_v21 = vpack.i.b16 %v4623_v46, %v4622_v42  ;;  %v4310_v55 = vsel %vm1063_vm0, 0, %v4309_v60  ;;  %v4628_v17 = vshrl.u32 %v4282_v47, 16 }
 0x323   :  { %13561 = vst [vmem:[#allocation28_spill] sm:$0xff] %v11773_v33  ;;  %v4627_v30 = vpack.i.b16 %v4310_v55, %v4282_v47  ;;  %v4582_v61 = vpack.i.b16 %v4581_v24, %v4580_v45  ;;  %v4629_v15 = vshrl.u32 %v4310_v55, 16  ;;  %v11780_v9 = vadd.f32 %v11582_v43, %v11722_v57 }
 0x324   :  { %5501 = vmax.xlane.f32.xlu2 %v5500_v58  ;;  %5516 = vmax.xlane.f32.xlu0 %v5515_v14  ;;  %v6114_v56 = vunpack.c.l.b16 %v4576_v28  ;;  %v6115_v27 = vunpack.c.l.b16 %v4624_v21  ;;  %v11784_v5 = vunpack.c.l.b16 %v4579_v0  ;;  %v11794_v42 = vperm.slane %v5433_v34, 0 }
 0x325   :  { %5513 = vmax.xlane.f32.xlu1 %v5512_v7  ;;  %v11786_v54 = vunpack.c.l.b16 %v4627_v30  ;;  %v4630_v39 = vpack.i.b16 %v4629_v15, %v4628_v17  ;;  %v6154_v51 = vunpack.c.l.b16 %v4582_v61  ;;  %v5509_v57 = vsel %vm4730_vm1, %v11780_v9, -inf }
 0x326   :  { %13562 = vst [vmem:[#allocation23_spill] sm:$0xff] %v11784_v5  ;;  %v11788_v58 = vpack.c.b16 %v6115_v27, %v6114_v56 }
 0x327   :  { %13563 = vst [vmem:[#allocation43_spill] sm:$0xff] %v11786_v54  ;;  %v6155_v43 = vunpack.c.l.b16 %v4630_v39 }
 0x328   :  { %13564 = vst [vmem:[#allocation42_spill] sm:$0xff] %v11788_v58 }
 0x329   :  { %v11796_v28 = vpack.c.b16 %v6155_v43, %v6154_v51 }
 0x32b   :  { %13565 = vst [vmem:[#allocation56_spill] sm:$0xff] %v11796_v28 }
 0x32c   :  { %5510 = vmax.xlane.f32.xlu2 %v5509_v57 }
 0x32d   :  { %v5098_v47 = vpop.f32.mrf.mxu0 }
 0x32e   :  { %v11799_v0 = vadd.f32 %v11794_v42, %v5098_v47 }
 0x330   :  { %v5120_v52 = vpop.f32.mrf.mxu1  ;;  %v5518_v24 = vsel %vm4730_vm1, %v11799_v0, -inf }
 0x331   :  { %v11802_v46 = vadd.f32 %v11794_v42, %v5120_v52 }
 0x333   :  { %v5521_v60 = vsel %vm4730_vm1, %v11802_v46, -inf }
 0x334   :  { %5522 = vmax.xlane.f32.xlu0 %v5521_v60  ;;  %5519 = vmax.xlane.f32.xlu2 %v5518_v24 }
 0x335   :  { %v5100_v14 = vpop.f32.mrf.mxu0 }
 0x338   :  { %v5122_v34 = vpop.f32.mrf.mxu1 }
 0x339   :  { %v5142_v7 = vpop.f32.mrf.mxu2  ;;  %v11833_v34 = vpop.permute.xlu1 %3249 }
 0x33a   :  { %v11809_v45 = vadd.f32 %v11794_v42, %v5142_v7  ;;  %13566 = vst [vmem:[#allocation52_spill] sm:$0xff] %v11833_v34 }
 0x33c   :  { %v5524_v21 = vsel %vm4730_vm1, %v11809_v45, -inf }
 0x33d   :  { %v5164_v55 = vpop.f32.mrf.mxu3  ;;  %5525 = vmax.xlane.f32.xlu2 %v5524_v21 }
 0x33e   :  { %v11814_v30 = vadd.f32 %v11794_v42, %v5164_v55 }
 0x340   :  { %v5527_v61 = vsel %vm4730_vm1, %v11814_v30, -inf }
 0x341   :  { %v5144_v17 = vpop.f32.mrf.mxu2  ;;  %5528 = vmax.xlane.f32.xlu1 %v5527_v61 }
 0x342   :  { %v5186_v15 = vpop.f32.mrf.mxu0 }
 0x343   :  { %v11819_v56 = vadd.f32 %v11794_v42, %v5186_v15 }
 0x345   :  { %v5530_v27 = vsel %vm4730_vm1, %v11819_v56, -inf  ;;  %v5166_v39 = vpop.f32.mrf.mxu3 }
 0x346   :  { %5531 = vmax.xlane.f32.xlu0 %v5530_v27  ;;  %v11842_v27 = vpop.permute.xlu1 %3329 }
 0x347   :  { %v5208_v51 = vpop.f32.mrf.mxu1 }
 0x348   :  { %v11824_v43 = vadd.f32 %v11794_v42, %v5208_v51 }
 0x34a   :  { %v5533_v57 = vsel %vm4730_vm1, %v11824_v43, -inf  ;;  %v5188_v47 = vpop.f32.mrf.mxu0 }
 0x34b   :  { %5534 = vmax.xlane.f32.xlu1 %v5533_v57 }
 0x34f   :  { %v5210_v52 = vpop.f32.mrf.mxu1 }
 0x350   :  { %v5230_v60 = vpop.f32.mrf.mxu2  ;;  %v11848_v52 = vpop.permute.xlu1 %3345 }
 0x351   :  { %v11829_v24 = vadd.f32 %v11794_v42, %v5230_v60  ;;  %13567 = vst [vmem:[#allocation39_spill] sm:$0xff] %v11848_v52  ;;  %v11850_v60 = vpop.permute.xlu0 %3343 }
 0x352   :  { %13568 = vst [vmem:[#allocation59_spill] sm:$0xff] %v11850_v60 }
 0x353   :  { %v5536_v14 = vsel %vm4730_vm1, %v11829_v24, -inf }
 0x354   :  { %v5252_v7 = vpop.f32.mrf.mxu3  ;;  %5537 = vmax.xlane.f32.xlu0 %v5536_v14 }
 0x355   :  { %v11836_v21 = vadd.f32 %v11794_v42, %v5252_v7 }
 0x357   :  { %v5539_v55 = vsel %vm4730_vm1, %v11836_v21, -inf }
 0x358   :  { %5540 = vmax.xlane.f32.xlu2 %v5539_v55  ;;  %v5232_v61 = vpop.f32.mrf.mxu2 }
 0x359   :  { %v11856_v61 = vpop.permute.xlu2 %3297  ;;  %v11860_v35 = vpop.permute.xlu0 %3313 }
 0x35a   :  { %13569 = vst [vmem:[#allocation57_spill] sm:$0xff] %v11860_v35 }
 0x35c   :  { %v5254_v17 = vpop.f32.mrf.mxu3 }
 0x35d   :  { %v11858_v17 = vpop.permute.xlu1 %3265 }
 0x361   :  { %v11840_v15 = vpop.f32.mrf.mxu0 }
 0x363   :  { %v11844_v39 = vpop.f32.mrf.mxu1 }
 0x369   :  { %v5276_v51 = vpop.f32.mrf.mxu0 }
 0x36b   :  { %v11846_v57 = vpop.f32.mrf.mxu2  ;;  %v5298_v47 = vpop.f32.mrf.mxu1 }
 0x371   :  { %v11852_v14 = vpop.f32.mrf.mxu3  ;;  %v11854_v7 = vpop.f32.mrf.mxu0 }
 0x373   :  { %v5320_v55 = vpop.f32.mrf.mxu2 }
 0x374   :  { %v11862_v2 = vpop.f32.mrf.mxu1 }
 0x377   :  { %v5472_v47 = vpop.xlane.xlu2 %5471  ;;  %v5478_v28 = vpop.xlane.xlu0 %5477 }
 0x378   :  { %v5566_v19 = vsub.f32 %v11601_v37, %v5472_v47  ;;  %v5481_v60 = vpop.xlane.xlu1 %5480  ;;  %v5568_v5 = vsub.f32 %v11608_v12, %v5478_v28 }
 0x379   :  { %v5342_v20 = vpop.f32.mrf.mxu3  ;;  %v5364_v51 = vpop.f32.mrf.mxu0  ;;  %v5569_v12 = vsub.f32 %v11612_v4, %v5481_v60 }
 0x37a   :  { %v5598_v54 = vmul.f32 1.442695, %v5566_v19  ;;  %v5602_v58 = vmul.f32 1.442695, %v5568_v5 }
 0x37c   :  { %8683 = vpow2.f32 %v5598_v54  ;;  %v5386_v55 = vpop.f32.mrf.mxu1 }
 0x37d   :  { %8685 = vpow2.f32 %v5602_v58 }
 0x37f   :  { %v11866_v52 = vpop.f32.mrf.mxu2  ;;  %v5475_v11 = vpop.xlane.xlu2 %5474 }
 0x380   :  { %v5567_v20 = vsub.f32 %v11627_v16, %v5475_v11  ;;  %v5487_v51 = vpop.xlane.xlu0 %5486  ;;  %v5493_v35 = vpop.xlane.xlu1 %5492 }
 0x381   :  { %v5571_v34 = vsub.f32 %v11632_v10, %v5487_v51  ;;  %v5573_v37 = vsub.f32 %v11636_v48, %v5493_v35  ;;  %v5604_v10 = vmul.f32 1.442695, %v5569_v12 }
 0x382   :  { %v11871_v47 = vpop.eup %8683  ;;  %v5600_v33 = vmul.f32 1.442695, %v5567_v20 }
 0x383   :  { %v11874_v19 = vpop.eup %8685  ;;  %v11876_v5 = vpop.f32.mrf.mxu3  ;;  %v5662_v54 = vsel %vm4730_vm1, %v11871_v47, 0.0  ;;  %v5608_v58 = vmul.f32 1.442695, %v5571_v34  ;;  %v5612_v16 = vmul.f32 1.442695, %v5573_v37 }
 0x384   :  { %8687 = vpow2.f32 %v5600_v33  ;;  %5663 = vadd.xlane.f32.xlu1 %v5662_v54  ;;  %v5668_v11 = vsel %vm4730_vm1, %v11874_v19, 0.0 }
 0x385   :  { %8689 = vpow2.f32 %v5608_v58  ;;  %5669 = vadd.xlane.f32.xlu2 %v5668_v11 }
 0x386   :  { %8691 = vpow2.f32 %v5612_v16 }
 0x387   :  { %v5408_v48 = vpop.f32.mrf.mxu2  ;;  %v5484_v35 = vpop.xlane.xlu2 %5483  ;;  %8693 = vpow2.f32 %v5604_v10 }
 0x388   :  { %v5570_v4 = vsub.f32 %v11646_v50, %v5484_v35  ;;  %v5490_v28 = vpop.xlane.xlu0 %5489  ;;  %v5505_v12 = vpop.xlane.xlu1 %5504 }
 0x389   :  { %v5572_v60 = vsub.f32 %v11650_v18, %v5490_v28  ;;  %v5577_v48 = vsub.f32 %v11688_v8, %v5505_v12 }
 0x38a   :  { %v11884_v55 = vpop.eup %8687  ;;  %v5606_v33 = vmul.f32 1.442695, %v5570_v4 }
 0x38b   :  { %v11886_v34 = vpop.eup %8689  ;;  %v5430_v20 = vpop.f32.mrf.mxu3  ;;  %v5665_v51 = vsel %vm4730_vm1, %v11884_v55, 0.0  ;;  %v5610_v37 = vmul.f32 1.442695, %v5572_v60 }
 0x38c   :  { %8695 = vpow2.f32 %v5606_v33  ;;  %5666 = vadd.xlane.f32.xlu0 %v5665_v51  ;;  %v5677_v50 = vsel %vm4730_vm1, %v11886_v34, 0.0  ;;  %v11892_v18 = vpop.eup %8691 }
 0x38d   :  { %5678 = vadd.xlane.f32.xlu1 %v5677_v50  ;;  %v11894_v58 = vpop.eup %8693  ;;  %8697 = vpow2.f32 %v5610_v37  ;;  %v5683_v4 = vsel %vm4730_vm1, %v11892_v18, 0.0 }
 0x38e   :  { %v5671_v28 = vsel %vm4730_vm1, %v11894_v58, 0.0 }
 0x38f   :  { %v5499_v54 = vpop.xlane.xlu2 %5498 }
 0x390   :  { %v5575_v11 = vsub.f32 %v11705_v26, %v5499_v54  ;;  %v5496_v16 = vpop.xlane.xlu0 %5495  ;;  %v11914_v54 = vpop.xlane.xlu1 %5507 }
 0x391   :  { %v5574_v10 = vsub.f32 %v11700_v49, %v5496_v16  ;;  %v5620_v49 = vmul.f32 1.442695, %v5577_v48 }
 0x392   :  { %v11899_v35 = vpop.eup %8695  ;;  %v5616_v26 = vmul.f32 1.442695, %v5575_v11 }
 0x393   :  { %v5674_v60 = vsel %vm4730_vm1, %v11899_v35, 0.0  ;;  %v5614_v33 = vmul.f32 1.442695, %v5574_v10  ;;  %v11907_v20 = vpop.eup %8697 }
 0x394   :  { %5672 = vadd.xlane.f32.xlu0 %v5671_v28  ;;  %5675 = vadd.xlane.f32.xlu2 %v5674_v60  ;;  %v5680_v37 = vsel %vm4730_vm1, %v11907_v20, 0.0 }
 0x395   :  { %8699 = vpow2.f32 %v5614_v33  ;;  %5684 = vadd.xlane.f32.xlu1 %v5683_v4  ;;  %v11932_v33 = vadd.f32 %v11794_v42, %v11840_v15 }
 0x396   :  { %8701 = vpow2.f32 %v5616_v26 }
 0x397   :  { %v5502_v8 = vpop.xlane.xlu2 %5501  ;;  %8703 = vpow2.f32 %v5620_v49  ;;  %v5542_v49 = vsel %vm4730_vm1, %v11932_v33, -inf }
 0x398   :  { %v5576_v51 = vsub.f32 %v11742_v59, %v5502_v8  ;;  %v5514_v60 = vpop.xlane.xlu1 %5513 }
 0x399   :  { %v5580_v26 = vsub.f32 %v11753_v62, %v5514_v60 }
 0x39a   :  { %v5618_v50 = vmul.f32 1.442695, %v5576_v51 }
 0x39b   :  { %v11912_v12 = vpop.eup %8699  ;;  %v5626_v8 = vmul.f32 1.442695, %v5580_v26  ;;  %v13570_v26 = vld [vmem:[#allocation50_spill] sm:$0xff] }
 0x39c   :  { %5681 = vadd.xlane.f32.xlu0 %v5680_v37  ;;  %8705 = vpow2.f32 %v5618_v50  ;;  %v5686_v11 = vsel %vm4730_vm1, %v11912_v12, 0.0  ;;  %v11918_v16 = vpop.eup %8701  ;;  %v11939_v37 = vadd.f32 %v11794_v42, %v11844_v39  ;;  %v5517_v50 = vpop.xlane.xlu0 %5516 }
 0x39d   :  { %5687 = vadd.xlane.f32.xlu2 %v5686_v11  ;;  %v11920_v10 = vpop.eup %8703  ;;  %v5689_v59 = vsel %vm4730_vm1, %v11918_v16, 0.0  ;;  %8707 = vpow2.f32 %v5626_v8  ;;  %v5581_v11 = vsub.f32 %v11758_v63, %v5517_v50 }
 0x39e   :  { %v5695_v4 = vsel %vm4730_vm1, %v11920_v10, 0.0  ;;  %v5545_v15 = vsel %vm4730_vm1, %v11939_v37, -inf }
 0x39f   :  { %v5511_v51 = vpop.xlane.xlu2 %5510 }
 0x3a0   :  { %v5579_v60 = vsub.f32 %v11780_v9, %v5511_v51 }
 0x3a2   :  { %v11924_v48 = vpop.eup %8705  ;;  %v5624_v63 = vmul.f32 1.442695, %v5579_v60 }
 0x3a3   :  { %v5692_v28 = vsel %vm4730_vm1, %v11924_v48, 0.0  ;;  %v11946_v62 = vpop.eup %8707 }
 0x3a4   :  { %5690 = vadd.xlane.f32.xlu0 %v5689_v59  ;;  %5693 = vadd.xlane.f32.xlu1 %v5692_v28  ;;  %v5704_v28 = vsel %vm4730_vm1, %v11946_v62, 0.0 }
 0x3a5   :  { %5696 = vadd.xlane.f32.xlu2 %v5695_v4  ;;  %v5628_v4 = vmul.f32 1.442695, %v5581_v11 }
 0x3a7   :  { %v11944_v59 = vpop.xlane.xlu2 %5519  ;;  %8709 = vpow2.f32 %v5628_v4  ;;  %v5523_v39 = vpop.xlane.xlu0 %5522 }
 0x3a8   :  { %8711 = vpow2.f32 %v5624_v63 }
 0x3ac   :  { %5543 = vmax.xlane.f32.xlu0 %v5542_v49 }
 0x3ad   :  { %v11955_v8 = vpop.eup %8709 }
 0x3ae   :  { %v5707_v11 = vsel %vm4730_vm1, %v11955_v8, 0.0 }
 0x3b0   :  { %v5526_v49 = vpop.xlane.xlu2 %5525 }
 0x3b1   :  { %v5584_v50 = vsub.f32 %v11809_v45, %v5526_v49 }
 0x3b3   :  { %v5634_v51 = vmul.f32 1.442695, %v5584_v50  ;;  %v11971_v50 = vadd.f32 %v11794_v42, %v11862_v2 }
 0x3b4   :  { %5546 = vmax.xlane.f32.xlu0 %v5545_v15  ;;  %v11960_v15 = vpop.eup %8711 }
 0x3b5   :  { %13571 = vst [vmem:[#allocation31_spill] sm:$0xff] %v11960_v15  ;;  %8713 = vpow2.f32 %v5634_v51  ;;  %v5701_v4 = vsel %vm4730_vm1, %v11960_v15, 0.0 }
 0x3b9   :  { %v5532_v9 = vpop.xlane.xlu0 %5531 }
 0x3bb   :  { %v11964_v60 = vpop.eup %8713 }
 0x3bc   :  { %5705 = vadd.xlane.f32.xlu0 %v5704_v28  ;;  %v5716_v45 = vsel %vm4730_vm1, %v11964_v60, 0.0 }
 0x3bd   :  { %3281 = vrot.lane.b32.xlu1 %v13570_v26, %s9029_s24  ;;  %3279 = vrot.lane.b32.xlu2 %v13521_v25, %s9029_s24  ;;  %v5529_v25 = vpop.xlane.xlu1 %5528 }
 0x3c4   :  { %5708 = vadd.xlane.f32.xlu0 %v5707_v11 }
 0x3c5   :  { %v5535_v11 = vpop.xlane.xlu1 %5534 }
 0x3c6   :  { %v5587_v51 = vsub.f32 %v11824_v43, %v5535_v11  ;;  %v11999_v11 = vadd.f32 %v11794_v42, %v11876_v5 }
 0x3c7   :  { %v5538_v28 = vpop.xlane.xlu0 %5537 }
 0x3c8   :  { %v5588_v63 = vsub.f32 %v11829_v24, %v5538_v28  ;;  %v5578_v24 = vsub.f32 %v11727_v32, %v11914_v54  ;;  %v5640_v28 = vmul.f32 1.442695, %v5587_v51 }
 0x3ca   :  { %v5642_v49 = vmul.f32 1.442695, %v5588_v63  ;;  %v11982_v63 = vadd.f32 %v11794_v42, %v11852_v14  ;;  %v5622_v2 = vmul.f32 1.442695, %v5578_v24 }
 0x3cb   :  { %v5541_v5 = vpop.xlane.xlu2 %5540 }
 0x3cc   :  { %5702 = vadd.xlane.f32.xlu0 %v5701_v4  ;;  %8715 = vpow2.f32 %v5642_v49  ;;  %v5557_v4 = vsel %vm4730_vm1, %v11971_v50, -inf  ;;  %v5585_v49 = vsub.f32 %v11814_v30, %v5529_v25  ;;  %v5551_v32 = vsel %vm4730_vm1, %v11982_v63, -inf }
 0x3cd   :  { %8717 = vpow2.f32 %v5640_v28  ;;  %v5583_v25 = vsub.f32 %v11802_v46, %v5523_v39  ;;  %v5586_v46 = vsub.f32 %v11819_v56, %v5532_v9  ;;  %v5582_v39 = vsub.f32 %v11799_v0, %v11944_v59 }
 0x3ce   :  { %8719 = vpow2.f32 %v5622_v2  ;;  %v12027_v56 = vadd.f32 %v11794_v42, %v11854_v7  ;;  %v5589_v0 = vsub.f32 %v11836_v21, %v5541_v5 }
 0x3cf   :  { %v5632_v28 = vmul.f32 1.442695, %v5583_v25 }
 0x3d0   :  { %v5644_v7 = vmul.f32 1.442695, %v5589_v0 }
 0x3d2   :  { %v11978_v15 = vpop.eup %8715 }
 0x3d3   :  { %v5728_v43 = vsel %vm4730_vm1, %v11978_v15, 0.0  ;;  %v11995_v54 = vpop.eup %8717 }
 0x3d4   :  { %5717 = vadd.xlane.f32.xlu0 %v5716_v45  ;;  %v11986_v45 = vadd.f32 %v11794_v42, %v11846_v57  ;;  %13572 = vst [vmem:[#allocation60_spill] sm:$0xff] %v11995_v54  ;;  %v5636_v57 = vmul.f32 1.442695, %v5585_v49  ;;  %v12001_v51 = vpop.eup %8719  ;;  %v5725_v30 = vsel %vm4730_vm1, %v11995_v54, 0.0 }
 0x3d5   :  { %v5698_v24 = vsel %vm4730_vm1, %v12001_v51, 0.0 }
 0x3d6   :  { %v5548_v14 = vsel %vm4730_vm1, %v11986_v45, -inf  ;;  %8721 = vpow2.f32 %v5636_v57  ;;  %v5638_v57 = vmul.f32 1.442695, %v5586_v46 }
 0x3d7   :  { %8723 = vpow2.f32 %v5632_v28 }
 0x3dc   :  { %5558 = vmax.xlane.f32.xlu0 %v5557_v4  ;;  %v5563_v4 = vsel %vm4730_vm1, %v11999_v11, -inf  ;;  %v12010_v2 = vpop.eup %8721 }
 0x3dd   :  { %v5719_v49 = vsel %vm4730_vm1, %v12010_v2, 0.0  ;;  %v12023_v25 = vpop.eup %8723 }
 0x3de   :  { %v5713_v59 = vsel %vm4730_vm1, %v12023_v25, 0.0 }
 0x3e4   :  { %5729 = vadd.xlane.f32.xlu0 %v5728_v43  ;;  %v12014_v43 = vadd.f32 %v11794_v42, %v11866_v52  ;;  %v5630_v52 = vmul.f32 1.442695, %v5582_v39 }
 0x3e6   :  { %5552 = vmax.xlane.f32.xlu2 %v5551_v32  ;;  %v5560_v32 = vsel %vm4730_vm1, %v12014_v43, -inf }
 0x3e7   :  { %5549 = vmax.xlane.f32.xlu1 %v5548_v14 }
 0x3ec   :  { %5726 = vadd.xlane.f32.xlu0 %v5725_v30 }
 0x3ee   :  { %5564 = vmax.xlane.f32.xlu2 %v5563_v4  ;;  %v5554_v4 = vsel %vm4730_vm1, %v12027_v56, -inf }
 0x3ef   :  { %5699 = vadd.xlane.f32.xlu1 %v5698_v24 }
 0x3f6   :  { %5720 = vadd.xlane.f32.xlu2 %v5719_v49 }
 0x3f7   :  { %v5664_v14 = vpop.xlane.xlu1 %5663  ;;  %5561 = vmax.xlane.f32.xlu1 %v5560_v32  ;;  %v3719_v32 = vrot.slane %v11856_v61, 4 }
 0x3f8   :  { %8725 = vrcp.f32 %v5664_v14  ;;  %v5670_v30 = vpop.xlane.xlu2 %5669  ;;  %v13575_v14 = vpack.c.b16 %v11718_v29, %v11714_v3  ;;  %v3270_v29 = vrot.slane %v11858_v17, 4 }
 0x3f9   :  { %8727 = vrcp.f32 %v5670_v30  ;;  %v13576_v30 = vpack.c.b16 %v11736_v13, %v11734_v6 }
 0x3fa   :  { %8729 = vpow2.f32 %v5638_v57 }
 0x3fb   :  { %8731 = vpow2.f32 %v5630_v52 }
 0x3fe   :  { %v8726_v9 = vpop.eup %8725  ;;  %5714 = vadd.xlane.f32.xlu2 %v5713_v59 }
 0x3ff   :  { %v8728_v24 = vpop.eup %8727  ;;  %v5790_v28 = vmul.f32 %v8726_v9, %v11871_v47  ;;  %v5667_v46 = vpop.xlane.xlu0 %5666  ;;  %5555 = vmax.xlane.f32.xlu1 %v5554_v4  ;;  %v3725_v47 = vrot.slane %v11842_v27, 4 }
 0x400   :  { %8733 = vrcp.f32 %v5667_v46  ;;  %v5792_v42 = vmul.f32 %v8728_v24, %v11874_v19  ;;  %v12036_v49 = vpop.eup %8729  ;;  %v3238_v19 = vrot.slane %v13570_v26, 4  ;;  %v5679_v57 = vpop.xlane.xlu1 %5678  ;;  %v3720_v24 = vsel %vm1063_vm0, %v3719_v32, %v13570_v26 }
 0x401   :  { %v5822_v39 = vpack.c.bf16 %v5790_v28, %v5790_v28  ;;  %13573 = vst [vmem:[#allocation58_spill] sm:$0xff] %v12036_v49  ;;  %v12038_v5 = vpop.eup %8731  ;;  %8735 = vpow2.f32 %v5644_v7  ;;  %v5722_v52 = vsel %vm4730_vm1, %v12036_v49, 0.0  ;;  %v3726_v13 = vsel %vm1063_vm0, %v3725_v47, %v11858_v17 }
 0x402   :  { %v5824_v21 = vpack.c.bf16 %v5792_v42, %v5792_v42  ;;  %13574 = vst [vmem:[#allocation63_spill] sm:$0xff] %v12038_v5  ;;  %v5710_v3 = vsel %vm4730_vm1, %v12038_v5, 0.0  ;;  %v3776_v6 = vsel %vm1063_vm0, %v11856_v61, %v3238_v19  ;;  %v3724_v42 = vperm.slane %v3720_v24, %v9285_v22 }
 0x403   :  { %8299 = vmatmul.msk.bf16.vlgmr.msrb.gmra.mxu0 %vm4730_vm1, %v5822_v39  ;;  %v3780_v26 = vperm.slane %v3776_v6, %v9285_v22  ;;  %v3730_v7 = vperm.slane %v3726_v13, %v9285_v22  ;;  %v12077_v32 = vperm.slane %v11428_v40, %v9321_v53 }
 0x404   :  { %6028 = vmatpush.bf16.msrb.mxu0 %v13575_v14  ;;  %8301 = vmatmul.msk.bf16.vlgmr.msrb.gmra.mxu2 %vm4730_vm1, %v5824_v21  ;;  %v3733_v14 = vrot.slane %v3724_v42, 4 }
 0x405   :  { %6068 = vmatpush.bf16.msrb.mxu2 %v13576_v30  ;;  %v3731_v30 = vrot.slane %v3730_v7, 4 }
 0x406   :  { %v8734_v0 = vpop.eup %8733  ;;  %5723 = vadd.xlane.f32.xlu2 %v5722_v52 }
 0x407   :  { %v5791_v59 = vmul.f32 %v8734_v0, %v11884_v55  ;;  %v5673_v9 = vpop.xlane.xlu0 %5672  ;;  %v5676_v4 = vpop.xlane.xlu2 %5675  ;;  %5711 = vadd.xlane.f32.xlu1 %v5710_v3  ;;  %v3782_v55 = vsel %vm1063_vm0, %v11842_v27, %v3270_v29  ;;  %v12081_v27 = vperm.slane %v11420_v23, %v9321_v53  ;;  %v3734_v3 = vsel %vm1063_vm0, %v3730_v7, %v3733_v14 }
 0x408   :  { %8737 = vrcp.f32 %v5673_v9  ;;  %v12063_v46 = vpop.eup %8735  ;;  %v3786_v17 = vperm.slane %v3782_v55, %v9285_v22  ;;  %v12088_v23 = vperm.slane %v11365_v41, %v9285_v22  ;;  %v3687_v41 = vrot.slane %v12077_v32, 4 }
 0x409   :  { %v5823_v28 = vpack.c.bf16 %v5791_v59, %v5791_v59  ;;  %8739 = vrcp.f32 %v5676_v4  ;;  %13577 = vst [vmem:[#allocation61_spill] sm:$0xff] %v12063_v46  ;;  %v5731_v39 = vsel %vm4730_vm1, %v12063_v46, 0.0  ;;  %v3689_v4 = vrot.slane %v12081_v27, 4 }
 0x40a   :  { %8741 = vrcp.f32 %v5679_v57  ;;  %v3789_v57 = vrot.slane %v3780_v26, 4  ;;  %v3787_v24 = vrot.slane %v3786_v17, 4  ;;  %v3732_v6 = vsel %vm1063_vm0, %v3731_v30, %v3724_v42 }
 0x40b   :  { %8300 = vmatmul.msk.bf16.vlgmr.msrb.gmra.mxu1 %vm4730_vm1, %v5823_v28  ;;  %v13578_v28 = vld [vmem:[#allocation28_spill] sm:$0xff]  ;;  %v3649_v42 = vrot.slane %v12088_v23, 4  ;;  %v12123_v14 = vperm.slane %v3732_v6, %v9321_v53  ;;  %v12132_v30 = vsel %vm1063_vm0, 0, %v3689_v4 }
 0x40c   :  { %6048 = vmatpush.bf16.msrb.mxu1 %v11744_v36  ;;  %v5685_v36 = vpop.xlane.xlu1 %5684  ;;  %v3790_v59 = vsel %vm1063_vm0, %v3786_v17, %v3789_v57  ;;  %v13579_v55 = vpack.c.b16 %v11775_v44, %v13578_v28  ;;  %v12129_v57 = vsel %vm1063_vm0, 0, %v3687_v41  ;;  %v13582_v28 = vld [vmem:[#allocation39_spill] sm:$0xff] }
 0x40d   :  { %v3743_v6 = vrot.slane %v12123_v14, 4 }
 0x40e   :  { %v8738_v61 = vpop.eup %8737 }
 0x40f   :  { %v8740_v21 = vpop.eup %8739  ;;  %v5793_v47 = vmul.f32 %v8738_v61, %v11894_v58  ;;  %v5682_v19 = vpop.xlane.xlu0 %5681  ;;  %5732 = vadd.xlane.f32.xlu1 %v5731_v39  ;;  %v12092_v58 = vperm.slane %v11379_v1, %v9285_v22  ;;  %v12104_v1 = vperm.slane %v3734_v3, %v9321_v53  ;;  %v13580_v61 = vld [vmem:[#allocation52_spill] sm:$0xff]  ;;  %v13581_v39 = vld [vmem:[#allocation21_spill] sm:$0xff] }
 0x410   :  { %v5794_v52 = vmul.f32 %v8740_v21, %v11899_v35  ;;  %8743 = vrcp.f32 %v5682_v19  ;;  %v5688_v0 = vpop.xlane.xlu2 %5687  ;;  %v8742_v29 = vpop.eup %8741  ;;  %v12097_v35 = vperm.slane %v11412_v31, %v9321_v53  ;;  %v12109_v31 = vperm.slane %v3790_v59, %v9321_v53 }
 0x411   :  { %v5825_v40 = vpack.c.bf16 %v5793_v47, %v5793_v47  ;;  %8745 = vrcp.f32 %v5688_v0  ;;  %v5795_v13 = vmul.f32 %v8742_v29, %v11886_v34  ;;  %v3254_v17 = vrot.slane %v13580_v61, 4 }
 0x412   :  { %v5826_v9 = vpack.c.bf16 %v5794_v52, %v5794_v52  ;;  %8747 = vrcp.f32 %v5685_v36  ;;  %v12119_v21 = vperm.slane %v13581_v39, %v9321_v53  ;;  %v3788_v34 = vsel %vm1063_vm0, %v3787_v24, %v3780_v26 }
 0x413   :  { %8302 = vmatmul.msk.bf16.vlgmr.msrb.gmra.mxu3 %vm4730_vm1, %v5825_v40  ;;  %v3633_v36 = vrot.slane %v12097_v35, 4  ;;  %v3745_v52 = vrot.slane %v12104_v1, 4  ;;  %v3801_v40 = vrot.slane %v12109_v31, 4  ;;  %v5827_v29 = vpack.c.bf16 %v5795_v13, %v5795_v13 }
 0x414   :  { %6088 = vmatpush.bf16.msrb.mxu3 %v11755_v38  ;;  %8303 = vmatmul.msk.bf16.vlgmr.msra.gmra.mxu0 %vm4730_vm1, %v5826_v9  ;;  %v3631_v59 = vrot.slane %v12119_v21, 4  ;;  %v12139_v24 = vperm.slane %v3788_v34, %v9321_v53  ;;  %v13583_v34 = vld [vmem:[#allocation42_spill] sm:$0xff] }
 0x415   :  { %6108 = vmatpush.bf16.msra.mxu0 %v13579_v55 }
 0x416   :  { %v8744_v7 = vpop.eup %8743 }
 0x417   :  { %v5796_v47 = vmul.f32 %v8744_v7, %v11907_v20  ;;  %v5691_v44 = vpop.xlane.xlu0 %5690  ;;  %v5694_v19 = vpop.xlane.xlu1 %5693  ;;  %v12149_v7 = vsel %vm1063_vm0, 0, %v3745_v52 }
 0x418   :  { %v5697_v0 = vpop.xlane.xlu2 %5696  ;;  %v8746_v3 = vpop.eup %8745  ;;  %8749 = vrcp.f32 %v5694_v19 }
 0x419   :  { %v5828_v26 = vpack.c.bf16 %v5796_v47, %v5796_v47  ;;  %v8748_v20 = vpop.eup %8747  ;;  %8751 = vrcp.f32 %v5691_v44  ;;  %v5798_v39 = vmul.f32 %v8746_v3, %v11912_v12  ;;  %v13584_v47 = vld [vmem:[#allocation43_spill] sm:$0xff] }
 0x41a   :  { %8753 = vrcp.f32 %v5697_v0  ;;  %v13585_v44 = vld [vmem:[#allocation23_spill] sm:$0xff]  ;;  %v5797_v55 = vmul.f32 %v8748_v20, %v11892_v18 }
 0x41b   :  { %8304 = vmatmul.msk.bf16.vlgmr.msra.gmra.mxu1 %vm4730_vm1, %v5827_v29  ;;  %8305 = vmatmul.msk.bf16.vlgmr.msra.gmra.mxu2 %vm4730_vm1, %v5828_v26  ;;  %v13586_v19 = vpack.c.b16 %v13584_v47, %v13585_v44  ;;  %v12157_v29 = vsel %vm1063_vm0, 0, %v3801_v40  ;;  %v13587_v26 = vld [vmem:[#allocation57_spill] sm:$0xff]  ;;  %v12168_v44 = vsel %vm1063_vm0, 0, %v3743_v6  ;;  %v13588_v0 = vld [vmem:[#allocation59_spill] sm:$0xff]  ;;  %v5830_v3 = vpack.c.bf16 %v5798_v39, %v5798_v39 }
 0x41c   :  { %6128 = vmatpush.bf16.msra.mxu1 %v13583_v34  ;;  %v3804_v41 = vsel %vm1063_vm0, %v13587_v26, %v3254_v17  ;;  %v3747_v34 = vrot.slane %v13587_v26, 4  ;;  %v3641_v17 = vrot.slane %v13588_v0, 4  ;;  %v12178_v26 = vsel %vm1063_vm0, 0, %v3631_v59 }
 0x41d   :  { %6148 = vmatpush.bf16.msra.mxu2 %v13586_v19  ;;  %v12175_v12 = vperm.slane %v3804_v41, %v9285_v22  ;;  %v5829_v13 = vpack.c.bf16 %v5797_v55, %v5797_v55  ;;  %v12188_v41 = vsel %vm1063_vm0, 0, %v3633_v36  ;;  %v3907_v55 = vshrl.u32 %v12178_v26, 16 }
 0x41e   :  { %v8750_v47 = vpop.eup %8749  ;;  %v12184_v38 = vsel %vm1063_vm0, %v3747_v34, %v13580_v61  ;;  %v3915_v34 = vshrl.u32 %v12097_v35, 16 }
 0x41f   :  { %v5544_v9 = vpop.xlane.xlu0 %5543  ;;  %v8752_v18 = vpop.eup %8751  ;;  %v5800_v40 = vmul.f32 %v8750_v47, %v11924_v48  ;;  %v3899_v48 = vshrl.u32 %v12119_v21, 16  ;;  %v3923_v47 = vshrl.u32 %v12188_v41, 16 }
 0x420   :  { %v3280_v52 = vpop.permute.xlu2 %3279  ;;  %v8754_v6 = vpop.eup %8753  ;;  %v5590_v20 = vsub.f32 %v11932_v33, %v5544_v9  ;;  %v5799_v39 = vmul.f32 %v8752_v18, %v11918_v16  ;;  %v13589_v33 = vld [vmem:[#allocation56_spill] sm:$0xff] }
 0x421   :  { %v3285_v4 = vrot.slane %v3280_v52, 4  ;;  %v3642_v19 = vsel %vm1063_vm0, %v3641_v17, %v3280_v52  ;;  %v12198_v61 = vmul.f32 %v8754_v6, %v11920_v10 }
 0x422   :  { %v3646_v59 = vperm.slane %v3642_v19, %v9285_v22  ;;  %v5646_v10 = vmul.f32 1.442695, %v5590_v20 }
 0x423   :  { %8306 = vmatmul.msk.bf16.vlgmr.msra.gmra.mxu3 %vm4730_vm1, %v5829_v13  ;;  %v3698_v52 = vsel %vm1063_vm0, %v13588_v0, %v3285_v4  ;;  %v5832_v13 = vpack.c.bf16 %v5800_v40, %v5800_v40  ;;  %v5833_v20 = vpack.c.bf16 %v12198_v61, %v12198_v61 }
 0x424   :  { %6168 = vmatpush.bf16.msra.mxu3 %v13589_v33  ;;  %8307 = vmatmul.msk.bf16.vlgmr.msrb.gmra.mxu0 %vm4730_vm1, %v5830_v3  ;;  %v3647_v36 = vrot.slane %v3646_v59, 4  ;;  %v3650_v16 = vsel %vm1063_vm0, %v3646_v59, %v3649_v42  ;;  %v3702_v9 = vperm.slane %v3698_v52, %v9285_v22  ;;  %v13590_v3 = vrot.slane %v12092_v58, 4 }
 0x425   :  { %v3658_v4 = vperm.slane %v3650_v16, %v9321_v53  ;;  %v5831_v52 = vpack.c.bf16 %v5799_v39, %v5799_v39  ;;  %8755 = vpow2.f32 %v5646_v10 }
 0x426   :  { %v3648_v0 = vsel %vm1063_vm0, %v3647_v36, %v12088_v23  ;;  %v3703_v19 = vrot.slane %v3702_v9, 4  ;;  %v3706_v17 = vsel %vm1063_vm0, %v3702_v9, %v13590_v3 }
 0x427   :  { %v12214_v18 = vpop.xlane.xlu0 %5546  ;;  %v3654_v42 = vperm.slane %v3648_v0, %v9321_v53  ;;  %v3661_v40 = vrot.slane %v3658_v4, 4  ;;  %v3714_v6 = vperm.slane %v3706_v17, %v9321_v53  ;;  %v3913_v59 = vpack.i.b16 %v3658_v4, %v12097_v35 }
 0x428   :  { %v3704_v23 = vsel %vm1063_vm0, %v3703_v19, %v12092_v58  ;;  %v3916_v33 = vshrl.u32 %v3658_v4, 16  ;;  %v5591_v35 = vsub.f32 %v11939_v37, %v12214_v18 }
 0x429   :  { %v3659_v36 = vrot.slane %v3654_v42, 4  ;;  %v3662_v16 = vsel %vm1063_vm0, 0, %v3661_v40  ;;  %v3710_v9 = vperm.slane %v3704_v23, %v9321_v53  ;;  %v3717_v3 = vrot.slane %v3714_v6, 4 }
 0x42a   :  { %v3897_v0 = vpack.i.b16 %v3654_v42, %v12119_v21  ;;  %v3900_v17 = vshrl.u32 %v3654_v42, 16  ;;  %v3917_v49 = vpack.i.b16 %v3916_v33, %v3915_v34  ;;  %v3921_v58 = vpack.i.b16 %v3662_v16, %v12188_v41 }
 0x42b   :  { %v3660_v39 = vsel %vm1063_vm0, 0, %v3659_v36  ;;  %v3715_v61 = vrot.slane %v3710_v9, 4  ;;  %8308 = vmatmul.msk.bf16.vlgmr.msrb.gmra.mxu1 %vm4730_vm1, %v5831_v52  ;;  %8309 = vmatmul.msk.bf16.vlgmr.msrb.gmra.mxu2 %vm4730_vm1, %v5832_v13  ;;  %v3718_v4 = vsel %vm1063_vm0, 0, %v3717_v3  ;;  %v3924_v42 = vshrl.u32 %v3662_v16, 16 }
 0x42c   :  { %v3901_v19 = vpack.i.b16 %v3900_v17, %v3899_v48  ;;  %v3905_v10 = vpack.i.b16 %v3660_v39, %v12178_v26  ;;  %v3908_v21 = vshrl.u32 %v3660_v39, 16  ;;  %v4025_v37 = vpack.i.b16 %v3710_v9, %v12077_v32  ;;  %v12243_v17 = vpop.eup %8755 }
 0x42d   :  { %v3716_v34 = vsel %vm1063_vm0, 0, %v3715_v61  ;;  %v4028_v18 = vshrl.u32 %v3710_v9, 16  ;;  %v4041_v52 = vpack.i.b16 %v3714_v6, %v12081_v27  ;;  %v3925_v33 = vpack.i.b16 %v3924_v42, %v3923_v47  ;;  %13592 = vst [vmem:[#allocation32_spill] sm:$0xff] %v12243_v17 }
 0x42e   :  { %v3909_v40 = vpack.i.b16 %v3908_v21, %v3907_v55  ;;  %v4033_v23 = vpack.i.b16 %v3716_v34, %v12129_v57  ;;  %v4036_v41 = vshrl.u32 %v3716_v34, 16  ;;  %v13591_v13 = vshrl.u32 %v12077_v32, 16 }
 0x42f   :  { %v4044_v48 = vshrl.u32 %v3714_v6, 16  ;;  %v4049_v26 = vpack.i.b16 %v3718_v4, %v12132_v30  ;;  %v5706_v3 = vpop.xlane.xlu0 %5705  ;;  %v13593_v16 = vshrl.u32 %v12129_v57, 16  ;;  %v4052_v55 = vshrl.u32 %v3718_v4, 16 }
 0x430   :  { %v12240_v36 = vpack.i.b16 %v4028_v18, %v13591_v13  ;;  %v4311_v39 = vrot.slane %v3913_v59, 4  ;;  %v4317_v61 = vrot.slane %v3921_v58, 4  ;;  %v13594_v21 = vshrl.u32 %v12081_v27, 16 }
 0x431   :  { %v12247_v9 = vpack.i.b16 %v4036_v41, %v13593_v16  ;;  %v4339_v32 = vrot.slane %v3917_v49, 4  ;;  %v4345_v34 = vrot.slane %v3925_v33, 4  ;;  %v4423_v42 = vrot.slane %v4041_v52, 4  ;;  %v3282_v16 = vpop.permute.xlu1 %3281 }
 0x432   :  { %v12251_v47 = vpack.i.b16 %v4044_v48, %v13594_v21  ;;  %v13595_v6 = vshrl.u32 %v12132_v30, 16  ;;  %v4312_v13 = vsel %vm1063_vm0, %v4311_v39, %v3897_v0  ;;  %v4318_v57 = vsel %vm1063_vm0, %v4317_v61, %v3905_v10 }
 0x433   :  { %v4429_v41 = vrot.slane %v4049_v26, 4  ;;  %v3752_v59 = vperm.slane %v12184_v38, %v9285_v22  ;;  %v12262_v27 = vperm.slane %v4318_v57, %v9285_v22  ;;  %v4340_v49 = vsel %vm1063_vm0, %v4339_v32, %v3901_v19  ;;  %8310 = vmatmul.msk.bf16.vlgmr.msrb.gmra.mxu3 %vm4730_vm1, %v5833_v20 }
 0x434   :  { %v12255_v18 = vpack.i.b16 %v4052_v55, %v13595_v6  ;;  %v4346_v58 = vsel %vm1063_vm0, %v4345_v34, %v3909_v40  ;;  %v13596_v30 = vrot.slane %v12139_v24, 4  ;;  %v12274_v10 = vsel %vm1063_vm0, %v4423_v42, %v4025_v37 }
 0x435   :  { %v12277_v38 = vsel %vm1063_vm0, %v4429_v41, %v4033_v23  ;;  %v5648_v52 = vmul.f32 1.442695, %v5591_v35  ;;  %v5734_v19 = vsel %vm4730_vm1, %v12243_v17, 0.0  ;;  %8757 = vrcp.f32 %v5706_v3 }
 0x436   :  { %v12270_v0 = vsel %vm1063_vm0, 0, %v13596_v30  ;;  %v3286_v40 = vrot.slane %v3282_v16, 4  ;;  %v12282_v20 = vperm.slane %v4312_v13, %v9285_v22  ;;  %5735 = vadd.xlane.f32.xlu0 %v5734_v19  ;;  %v13597_v33 = vrot.slane %v13582_v28, 4 }
 0x437   :  { %v4323_v37 = vrot.slane %v12262_v27, 4  ;;  %v12289_v26 = vperm.slane %v4346_v58, %v9285_v22  ;;  %v3761_v23 = vrot.slane %v3752_v59, 4  ;;  %v3817_v35 = vrot.slane %v12175_v12, 4  ;;  %v5709_v39 = vpop.xlane.xlu0 %5708 }
 0x438   :  { %v3754_v48 = vsel %vm1063_vm0, %v13597_v33, %v3282_v16  ;;  %v3810_v3 = vsel %vm1063_vm0, %v13582_v28, %v3286_v40  ;;  %v12299_v32 = vperm.slane %v4340_v49, %v9285_v22  ;;  %v4067_v42 = vshrl.u32 %v12270_v0, 16 }
 0x439   :  { %v3758_v55 = vperm.slane %v3754_v48, %v9285_v22  ;;  %v3814_v61 = vperm.slane %v3810_v3, %v9285_v22  ;;  %v4324_v21 = vsel %vm1063_vm0, %v4323_v37, %v12282_v20  ;;  %v4351_v34 = vrot.slane %v12289_v26, 4 }
 0x43a   :  { %8759 = vpow2.f32 %v5648_v52  ;;  %v13598_v30 = vshrl.u32 %v12104_v1, 16  ;;  %v13600_v4 = vshrl.u32 %v12123_v14, 16  ;;  %v13601_v17 = vshrl.u32 %v12168_v44, 16 }
 0x43b   :  { %v3759_v6 = vrot.slane %v3758_v55, 4  ;;  %v3762_v13 = vsel %vm1063_vm0, %v3758_v55, %v3761_v23  ;;  %v3815_v28 = vrot.slane %v3814_v61, 4  ;;  %v3818_v41 = vsel %vm1063_vm0, %v3814_v61, %v3817_v35  ;;  %v8758_v58 = vpop.eup %8757 }
 0x43c   :  { %v3770_v57 = vperm.slane %v3762_v13, %v9321_v53  ;;  %v4352_v16 = vsel %vm1063_vm0, %v4351_v34, %v12299_v32  ;;  %v3826_v52 = vperm.slane %v3818_v41, %v9321_v53  ;;  %v5804_v40 = vmul.f32 %v8758_v58, %v11946_v62 }
 0x43d   :  { %v3760_v19 = vsel %vm1063_vm0, %v3759_v6, %v3752_v59  ;;  %v3816_v37 = vsel %vm1063_vm0, %v3815_v28, %v12175_v12  ;;  %v12322_v6 = vperm.slane %v4324_v21, %v9321_v53  ;;  %8761 = vrcp.f32 %v5709_v39 }
 0x43e   :  { %v3766_v33 = vperm.slane %v3760_v19, %v9321_v53  ;;  %v3773_v48 = vrot.slane %v3770_v57, 4  ;;  %v12318_v35 = vperm.slane %v3816_v37, %v9321_v53  ;;  %v3829_v55 = vrot.slane %v3826_v52, 4 }
 0x43f   :  { %v3948_v3 = vshrl.u32 %v3770_v57, 16  ;;  %v5836_v61 = vpack.c.bf16 %v5804_v40, %v5804_v40  ;;  %v5703_v12 = vpop.xlane.xlu0 %5702  ;;  %v12328_v28 = vperm.slane %v4352_v16, %v9321_v53  ;;  %v3945_v40 = vpack.i.b16 %v3770_v57, %v12104_v1 }
 0x440   :  { %v3771_v34 = vrot.slane %v3766_v33, 4  ;;  %v3774_v59 = vsel %vm1063_vm0, 0, %v3773_v48  ;;  %v12324_v62 = vpop.eup %8759  ;;  %v3827_v13 = vrot.slane %v12318_v35, 4  ;;  %v3932_v41 = vshrl.u32 %v3766_v33, 16 }
 0x441   :  { %v3830_v19 = vsel %vm1063_vm0, 0, %v3829_v55  ;;  %v3956_v48 = vshrl.u32 %v3774_v59, 16  ;;  %8313 = vmatmul.msk.bf16.vlgmr.msra.gmra.mxu2 %vm4730_vm1, %v5836_v61  ;;  %v3949_v49 = vpack.i.b16 %v3948_v3, %v13598_v30  ;;  %v3953_v39 = vpack.i.b16 %v3774_v59, %v12149_v7 }
 0x442   :  { %v3772_v58 = vsel %vm1063_vm0, 0, %v3771_v34  ;;  %v3828_v21 = vsel %vm1063_vm0, 0, %v3827_v13  ;;  %v3929_v16 = vpack.i.b16 %v3766_v33, %v12123_v14  ;;  %v13599_v23 = vshrl.u32 %v12149_v7, 16 }
 0x443   :  { %v3940_v37 = vshrl.u32 %v3772_v58, 16  ;;  %v4060_v55 = vshrl.u32 %v12318_v35, 16  ;;  %v4634_v57 = vshrl.u32 %v12322_v6, 16  ;;  %v3933_v61 = vpack.i.b16 %v3932_v41, %v13600_v4  ;;  %v8762_v7 = vpop.eup %8761 }
 0x444   :  { %v3957_v34 = vpack.i.b16 %v3956_v48, %v13599_v23  ;;  %v3937_v13 = vpack.i.b16 %v3772_v58, %v12168_v44  ;;  %v4068_v30 = vshrl.u32 %v3828_v21, 16  ;;  %v4073_v3 = vpack.i.b16 %v3826_v52, %v12109_v31 }
 0x445   :  { %v3941_v1 = vpack.i.b16 %v3940_v37, %v13601_v17  ;;  %v4076_v59 = vshrl.u32 %v3826_v52, 16  ;;  %v4084_v33 = vshrl.u32 %v3830_v19, 16  ;;  %v4367_v54 = vrot.slane %v3945_v40, 4 }
 0x446   :  { %v4081_v23 = vpack.i.b16 %v3830_v19, %v12157_v29  ;;  %v4373_v48 = vrot.slane %v3953_v39, 4  ;;  %v4395_v46 = vrot.slane %v3949_v49, 4  ;;  %v4401_v5 = vrot.slane %v3957_v34, 4 }
 0x447   :  { %v4057_v14 = vpack.i.b16 %v12318_v35, %v12139_v24  ;;  %v13602_v4 = vshrl.u32 %v12139_v24, 16  ;;  %v4065_v44 = vpack.i.b16 %v3828_v21, %v12270_v0  ;;  %v4368_v17 = vsel %vm1063_vm0, %v4367_v54, %v3929_v16  ;;  %v5718_v40 = vpop.xlane.xlu0 %5717 }
 0x448   :  { %v12358_v52 = vpack.i.b16 %v4068_v30, %v4067_v42  ;;  %v4374_v58 = vsel %vm1063_vm0, %v4373_v48, %v3937_v13  ;;  %v4396_v19 = vsel %vm1063_vm0, %v4395_v46, %v3933_v61  ;;  %v4402_v49 = vsel %vm1063_vm0, %v4401_v5, %v3941_v1 }
 0x449   :  { %v12354_v41 = vpack.i.b16 %v4060_v55, %v13602_v4  ;;  %v13603_v37 = vshrl.u32 %v12109_v31, 16  ;;  %v13604_v24 = vshrl.u32 %v12157_v29, 16  ;;  %v4378_v0 = vperm.slane %v4374_v58, %v9285_v22 }
 0x44a   :  { %v4479_v54 = vrot.slane %v4073_v3, 4  ;;  %v4372_v42 = vperm.slane %v4368_v17, %v9285_v22  ;;  %v4485_v21 = vrot.slane %v4081_v23, 4  ;;  %v5805_v16 = vmul.f32 %v8762_v7, %v11955_v8 }
 0x44b   :  { %v12365_v35 = vpack.i.b16 %v4076_v59, %v13603_v37  ;;  %v12369_v39 = vpack.i.b16 %v4084_v33, %v13604_v24  ;;  %8763 = vrcp.f32 %v5703_v12  ;;  %v4379_v5 = vrot.slane %v4378_v0, 4 }
 0x44c   :  { %8765 = vrcp.f32 %v5718_v40  ;;  %v4400_v46 = vperm.slane %v4396_v19, %v9285_v22  ;;  %v4406_v31 = vperm.slane %v4402_v49, %v9285_v22  ;;  %v5837_v34 = vpack.c.bf16 %v5805_v16, %v5805_v16 }
 0x44d   :  { %v4633_v29 = vpack.i.b16 %v12328_v28, %v12322_v6  ;;  %v4635_v55 = vshrl.u32 %v12328_v28, 16  ;;  %v4335_v61 = vrot.slane %v12322_v6, 4  ;;  %v4380_v13 = vsel %vm1063_vm0, %v4379_v5, %v4372_v42 }
 0x44e   :  { %v4407_v1 = vrot.slane %v4406_v31, 4  ;;  %v4363_v8 = vrot.slane %v12328_v28, 4  ;;  %v13605_v12 = vrot.slane %v12282_v20, 4  ;;  %v12387_v3 = vsel %vm1063_vm0, %v4479_v54, %v4057_v14  ;;  %8314 = vmatmul.msk.bf16.vlgmr.msra.gmra.mxu3 %vm4730_vm1, %v5837_v34 }
 0x44f   :  { %v12390_v59 = vsel %vm1063_vm0, %v4485_v21, %v4065_v44  ;;  %v4386_v6 = vperm.slane %v4380_v13, %v9321_v53  ;;  %v4636_v33 = vpack.i.b16 %v4635_v55, %v4634_v57  ;;  %v4507_v7 = vrot.slane %v12365_v35, 4  ;;  %v12400_v14 = vpop.xlane.xlu0 %5558  ;;  %v13606_v57 = vld [vmem:[#allocation31_spill] sm:$0xff] }
 0x450   :  { %v4326_v30 = vsel %vm1063_vm0, %v12262_v27, %v13605_v12  ;;  %v4408_v28 = vsel %vm1063_vm0, %v4407_v1, %v4400_v46  ;;  %v12397_v20 = vsel %vm1063_vm0, 0, %v4363_v8  ;;  %v4353_v27 = vrot.slane %v12299_v32, 4 }
 0x451   :  { %v8764_v23 = vpop.eup %8763  ;;  %v4381_v48 = vrot.slane %v4372_v42, 4  ;;  %v4414_v4 = vperm.slane %v4408_v28, %v9321_v53  ;;  %v4336_v44 = vsel %vm1063_vm0, 0, %v4335_v61  ;;  %v4391_v17 = vrot.slane %v4386_v6, 4 }
 0x452   :  { %v8766_v58 = vpop.eup %8765  ;;  %v5803_v19 = vmul.f32 %v8764_v23, %v13606_v57  ;;  %v6174_v49 = vunpack.c.l.b16 %v4633_v29  ;;  %v4639_v40 = vpack.i.b16 %v12397_v20, %v4336_v44  ;;  %v4354_v37 = vsel %vm1063_vm0, %v12289_v26, %v4353_v27 }
 0x453   :  { %v4681_v24 = vpack.i.b16 %v4414_v4, %v4386_v6  ;;  %v4682_v32 = vshrl.u32 %v4386_v6, 16  ;;  %v4683_v54 = vshrl.u32 %v4414_v4, 16  ;;  %v12409_v42 = vperm.slane %v4326_v30, %v9321_v53 }
 0x454   :  { %v5835_v21 = vpack.c.bf16 %v5803_v19, %v5803_v19  ;;  %v5808_v16 = vmul.f32 %v8766_v58, %v11964_v60  ;;  %v6194_v5 = vunpack.c.l.b16 %v4636_v33  ;;  %v4419_v34 = vrot.slane %v4414_v4, 4 }
 0x455   :  { %v6175_v55 = vunpack.c.l.b16 %v4681_v24  ;;  %v4684_v61 = vpack.i.b16 %v4683_v54, %v4682_v32  ;;  %v4392_v29 = vsel %vm1063_vm0, 0, %v4391_v17  ;;  %v12414_v13 = vperm.slane %v4354_v37, %v9321_v53 }
 0x456   :  { %8312 = vmatmul.msk.bf16.vlgmr.msra.gmra.mxu1 %vm4730_vm1, %v5835_v21  ;;  %v4420_v26 = vsel %vm1063_vm0, 0, %v4419_v34  ;;  %v6214_v1 = vunpack.c.l.b16 %v4639_v40  ;;  %v4382_v8 = vsel %vm1063_vm0, %v4378_v0, %v4381_v48  ;;  %v4409_v12 = vrot.slane %v4400_v46, 4 }
 0x457   :  { %v6176_v30 = vpack.c.b16 %v6175_v55, %v6174_v49  ;;  %v6195_v6 = vunpack.c.l.b16 %v4684_v61  ;;  %v4687_v60 = vpack.i.b16 %v4420_v26, %v4392_v29  ;;  %v12420_v33 = vperm.slane %v4382_v8, %v9321_v53  ;;  %v5730_v46 = vpop.xlane.xlu0 %5729 }
 0x458   :  { %v4410_v28 = vsel %vm1063_vm0, %v4406_v31, %v4409_v12  ;;  %v4646_v27 = vshrl.u32 %v12409_v42, 16  ;;  %v4647_v23 = vshrl.u32 %v12414_v13, 16  ;;  %v4337_v4 = vrot.slane %v12409_v42, 4 }
 0x459   :  { %v5840_v17 = vpack.c.bf16 %v5808_v16, %v5808_v16  ;;  %6188 = vmatpush.bf16.msrb.mxu0 %v6176_v30  ;;  %v6196_v58 = vpack.c.b16 %v6195_v6, %v6194_v5  ;;  %v6215_v57 = vunpack.c.l.b16 %v4687_v60  ;;  %v12427_v0 = vperm.slane %v4410_v28, %v9321_v53  ;;  %v12434_v32 = vpop.xlane.xlu2 %5552 }
 0x45a   :  { %v4648_v48 = vpack.i.b16 %v4647_v23, %v4646_v27  ;;  %v4694_v19 = vshrl.u32 %v12420_v33, 16  ;;  %8767 = vrcp.f32 %v5730_v46  ;;  %v4365_v31 = vrot.slane %v12414_v13, 4  ;;  %v12439_v34 = vpop.xlane.xlu1 %5549 }
 0x45b   :  { %6208 = vmatpush.bf16.msrb.mxu1 %v6196_v58  ;;  %v6216_v49 = vpack.c.b16 %v6215_v57, %v6214_v1  ;;  %v4695_v40 = vshrl.u32 %v12427_v0, 16  ;;  %v4393_v37 = vrot.slane %v12420_v33, 4  ;;  %v4421_v24 = vrot.slane %v12427_v0, 4 }
 0x45c   :  { %v4338_v54 = vsel %vm1063_vm0, 0, %v4337_v4  ;;  %v4366_v21 = vsel %vm1063_vm0, 0, %v4365_v31  ;;  %v4640_v16 = vshrl.u32 %v4336_v44, 16  ;;  %v4641_v5 = vshrl.u32 %v12397_v20, 16 }
 0x45d   :  { %6228 = vmatpush.bf16.msrb.mxu2 %v6216_v49  ;;  %v4696_v55 = vpack.i.b16 %v4695_v40, %v4694_v19  ;;  %v4394_v61 = vsel %vm1063_vm0, 0, %v4393_v37  ;;  %v4422_v1 = vsel %vm1063_vm0, 0, %v4421_v24  ;;  %v4651_v8 = vpack.i.b16 %v4366_v21, %v4338_v54 }
 0x45e   :  { %v4699_v12 = vpack.i.b16 %v4422_v1, %v4394_v61  ;;  %v4642_v30 = vpack.i.b16 %v4641_v5, %v4640_v16  ;;  %v4688_v6 = vshrl.u32 %v4392_v29, 16  ;;  %v4689_v60 = vshrl.u32 %v4420_v26, 16 }
 0x45f   :  { %v6274_v28 = vunpack.c.l.b16 %v4648_v48  ;;  %v6275_v27 = vunpack.c.l.b16 %v4696_v55  ;;  %v4652_v23 = vshrl.u32 %v4338_v54, 16  ;;  %v4653_v4 = vshrl.u32 %v4366_v21, 16 }
 0x460   :  { %v8768_v44 = vpop.eup %8767  ;;  %v4513_v20 = vrot.slane %v12369_v39, 4  ;;  %v6294_v58 = vunpack.c.l.b16 %v4651_v8  ;;  %v6295_v57 = vunpack.c.l.b16 %v4699_v12  ;;  %v4690_v46 = vpack.i.b16 %v4689_v60, %v4688_v6  ;;  %8317 = vmatmul.msk.bf16.vlgmr.msrb.gmra.mxu2 %vm4730_vm1, %v5840_v17 }
 0x461   :  { %v6276_v19 = vpack.c.b16 %v6275_v27, %v6274_v28  ;;  %v4654_v31 = vpack.i.b16 %v4653_v4, %v4652_v23  ;;  %v4700_v49 = vshrl.u32 %v4394_v61, 16  ;;  %v4701_v40 = vshrl.u32 %v4422_v1, 16  ;;  %v5565_v16 = vpop.xlane.xlu2 %5564 }
 0x462   :  { %v6296_v37 = vpack.c.b16 %v6295_v57, %v6294_v58  ;;  %v6234_v24 = vunpack.c.l.b16 %v4642_v30  ;;  %v6235_v29 = vunpack.c.l.b16 %v4690_v46  ;;  %v4434_v26 = vperm.slane %v12277_v38, %v9285_v22 }
 0x463   :  { %6288 = vmatpush.bf16.msra.mxu1 %v6276_v19  ;;  %v5812_v48 = vmul.f32 %v8768_v44, %v11978_v15  ;;  %v4702_v54 = vpack.i.b16 %v4701_v40, %v4700_v49  ;;  %v4428_v39 = vperm.slane %v12274_v10, %v9285_v22  ;;  %v13607_v17 = vrot.slane %v12251_v47, 4  ;;  %v5700_v15 = vpop.xlane.xlu1 %5699 }
 0x464   :  { %6308 = vmatpush.bf16.msra.mxu2 %v6296_v37  ;;  %v6236_v5 = vpack.c.b16 %v6235_v29, %v6234_v24  ;;  %v6314_v55 = vunpack.c.l.b16 %v4654_v31  ;;  %v4435_v61 = vrot.slane %v4434_v26, 4  ;;  %v13608_v38 = vrot.slane %v12255_v18, 4 }
 0x465   :  { %v4452_v21 = vsel %vm1063_vm0, %v13607_v17, %v12240_v36  ;;  %v6315_v8 = vunpack.c.l.b16 %v4702_v54  ;;  %v4490_v47 = vperm.slane %v12390_v59, %v9285_v22  ;;  %v4484_v30 = vperm.slane %v12387_v3, %v9285_v22 }
 0x466   :  { %v4458_v1 = vsel %vm1063_vm0, %v13608_v38, %v12247_v9  ;;  %v4456_v12 = vperm.slane %v4452_v21, %v9285_v22  ;;  %6248 = vmatpush.bf16.msrb.mxu3 %v6236_v5  ;;  %v4436_v36 = vsel %vm1063_vm0, %v4435_v61, %v4428_v39  ;;  %v4508_v9 = vsel %vm1063_vm0, %v4507_v7, %v12354_v41 }
 0x467   :  { %v4462_v10 = vperm.slane %v4458_v1, %v9285_v22  ;;  %v4514_v18 = vsel %vm1063_vm0, %v4513_v20, %v12358_v52  ;;  %v6316_v6 = vpack.c.b16 %v6315_v8, %v6314_v55  ;;  %v12472_v60 = vperm.slane %v4436_v36, %v9321_v53 }
 0x468   :  { %v4491_v59 = vrot.slane %v4490_v47, 4  ;;  %v4512_v27 = vperm.slane %v4508_v9, %v9285_v22  ;;  %v4518_v23 = vperm.slane %v4514_v18, %v9285_v22  ;;  %v5593_v3 = vsub.f32 %v11982_v63, %v12434_v32 }
 0x469   :  { %v4463_v28 = vrot.slane %v4462_v10, 4  ;;  %v5592_v35 = vsub.f32 %v11986_v45, %v12439_v34  ;;  %v4447_v41 = vrot.slane %v12472_v60, 4  ;;  %v5597_v4 = vsub.f32 %v11999_v11, %v5565_v16  ;;  %v5721_v37 = vpop.xlane.xlu2 %5720 }
 0x46a   :  { %6328 = vmatpush.bf16.msra.mxu3 %v6316_v6  ;;  %v4492_v7 = vsel %vm1063_vm0, %v4491_v59, %v4484_v30  ;;  %v4519_v58 = vrot.slane %v4518_v23, 4  ;;  %v5652_v63 = vmul.f32 1.442695, %v5593_v3  ;;  %v5595_v45 = vsub.f32 %v11971_v50, %v12400_v14 }
 0x46b   :  { %v4464_v52 = vsel %vm1063_vm0, %v4463_v28, %v4456_v12  ;;  %v12488_v20 = vperm.slane %v4492_v7, %v9321_v53  ;;  %v5650_v32 = vmul.f32 1.442695, %v5592_v35  ;;  %v5660_v34 = vmul.f32 1.442695, %v5597_v4  ;;  %v5562_v19 = vpop.xlane.xlu1 %5561 }
 0x46c   :  { %v12485_v44 = vperm.slane %v4464_v52, %v9321_v53  ;;  %8769 = vrcp.f32 %v5700_v15  ;;  %v4520_v11 = vsel %vm1063_vm0, %v4519_v58, %v4512_v27  ;;  %v5844_v31 = vpack.c.bf16 %v5812_v48, %v5812_v48 }
 0x46d   :  { %v4503_v46 = vrot.slane %v12488_v20, 4  ;;  %8771 = vpow2.f32 %v5652_v63  ;;  %v12496_v49 = vperm.slane %v4520_v11, %v9321_v53  ;;  %v4437_v40 = vrot.slane %v4428_v39, 4 }
 0x46e   :  { %v4475_v57 = vrot.slane %v12485_v44, 4  ;;  %8773 = vpow2.f32 %v5650_v32  ;;  %v12499_v50 = vsel %vm1063_vm0, 0, %v4447_v41  ;;  %v4465_v24 = vrot.slane %v4456_v12, 4 }
 0x46f   :  { %8775 = vpow2.f32 %v5660_v34  ;;  %v12505_v29 = vsel %vm1063_vm0, 0, %v4503_v46  ;;  %v4531_v54 = vrot.slane %v12496_v49, 4  ;;  %v4438_v17 = vsel %vm1063_vm0, %v4434_v26, %v4437_v40 }
 0x470   :  { %v12502_v14 = vsel %vm1063_vm0, 0, %v4475_v57  ;;  %8321 = vmatmul.msk.bf16.vlgmr.msra.gmra.mxu2 %vm4730_vm1, %v5844_v31  ;;  %v12513_v39 = vperm.slane %v4438_v17, %v9321_v53  ;;  %v4466_v21 = vsel %vm1063_vm0, %v4462_v10, %v4465_v24  ;;  %v4493_v16 = vrot.slane %v4484_v30, 4 }
 0x471   :  { %v4663_v48 = vpack.i.b16 %v12502_v14, %v12499_v50  ;;  %v4521_v5 = vrot.slane %v4512_v27, 4  ;;  %v12517_v61 = vsel %vm1063_vm0, 0, %v4531_v54  ;;  %v12520_v1 = vperm.slane %v4466_v21, %v9321_v53  ;;  %v5715_v11 = vpop.xlane.xlu2 %5714 }
 0x472   :  { %v8770_v55 = vpop.eup %8769  ;;  %8777 = vrcp.f32 %v5721_v37  ;;  %v4711_v26 = vpack.i.b16 %v12517_v61, %v12505_v29  ;;  %v4449_v12 = vrot.slane %v12513_v39, 4  ;;  %v4494_v10 = vsel %vm1063_vm0, %v4490_v47, %v4493_v16 }
 0x473   :  { %v6374_v38 = vunpack.c.l.b16 %v4663_v48  ;;  %v12522_v15 = vpop.eup %8771  ;;  %v5802_v8 = vmul.f32 %v8770_v55, %v12001_v51  ;;  %v4477_v30 = vrot.slane %v12520_v1, 4  ;;  %v12533_v9 = vperm.slane %v4494_v10, %v9321_v53  ;;  %v5556_v3 = vpop.xlane.xlu1 %5555 }
 0x474   :  { %v12529_v36 = vpop.eup %8773  ;;  %v4522_v18 = vsel %vm1063_vm0, %v4518_v23, %v4521_v5  ;;  %v5743_v6 = vsel %vm4730_vm1, %v12522_v15, 0.0  ;;  %v6375_v59 = vunpack.c.l.b16 %v4711_v26  ;;  %v12541_v27 = vsel %vm1063_vm0, 0, %v4449_v12 }
 0x475   :  { %v12538_v28 = vpop.eup %8775  ;;  %v5834_v51 = vpack.c.bf16 %v5802_v8, %v5802_v8  ;;  %v12544_v47 = vperm.slane %v4522_v18, %v9321_v53  ;;  %5744 = vadd.xlane.f32.xlu2 %v5743_v6  ;;  %v12547_v35 = vsel %vm1063_vm0, 0, %v4477_v30  ;;  %v4505_v23 = vrot.slane %v12533_v9, 4 }
 0x476   :  { %v5740_v41 = vsel %vm4730_vm1, %v12529_v36, 0.0  ;;  %v5596_v52 = vsub.f32 %v12014_v43, %v5562_v19  ;;  %v6376_v7 = vpack.c.b16 %v6375_v59, %v6374_v38  ;;  %v4675_v58 = vpack.i.b16 %v12547_v35, %v12541_v27 }
 0x477   :  { %v4533_v4 = vrot.slane %v12544_v47, 4  ;;  %5741 = vadd.xlane.f32.xlu1 %v5740_v41  ;;  %v5755_v63 = vsel %vm4730_vm1, %v12538_v28, 0.0  ;;  %8311 = vmatmul.msk.bf16.vlgmr.msra.gmra.mxu0 %vm4730_vm1, %v5834_v51  ;;  %v5656_v34 = vmul.f32 1.442695, %v5595_v45  ;;  %v4645_v46 = vpack.i.b16 %v12414_v13, %v12409_v42 }
 0x478   :  { %v8778_v32 = vpop.eup %8777  ;;  %v5658_v57 = vmul.f32 1.442695, %v5596_v52  ;;  %5756 = vadd.xlane.f32.xlu0 %v5755_v63  ;;  %v4693_v43 = vpack.i.b16 %v12427_v0, %v12420_v33  ;;  %6388 = vmatpush.bf16.msrb.mxu2 %v6376_v7  ;;  %v12564_v19 = vsel %vm1063_vm0, 0, %v4505_v23  ;;  %v6454_v40 = vunpack.c.l.b16 %v4675_v58 }
 0x479   :  { %v12567_v31 = vsel %vm1063_vm0, 0, %v4533_v4  ;;  %v5809_v37 = vmul.f32 %v8778_v32, %v12010_v2  ;;  %v6254_v24 = vunpack.c.l.b16 %v4645_v46  ;;  %v5737_v33 = vsel %vm4730_vm1, %v12324_v62, 0.0 }
 0x47a   :  { %v4723_v45 = vpack.i.b16 %v12567_v31, %v12564_v19  ;;  %8779 = vpow2.f32 %v5658_v57  ;;  %v6255_v42 = vunpack.c.l.b16 %v4693_v43  ;;  %v5594_v0 = vsub.f32 %v12027_v56, %v5556_v3 }
 0x47b   :  { %v5841_v13 = vpack.c.bf16 %v5809_v37, %v5809_v37  ;;  %8781 = vrcp.f32 %v5715_v11  ;;  %v4664_v17 = vshrl.u32 %v12499_v50, 16  ;;  %v4665_v21 = vshrl.u32 %v12502_v14, 16  ;;  %v5712_v55 = vpop.xlane.xlu1 %5711 }
 0x47c   :  { %v6455_v54 = vunpack.c.l.b16 %v4723_v45  ;;  %v6256_v48 = vpack.c.b16 %v6255_v42, %v6254_v24  ;;  %v5654_v2 = vmul.f32 1.442695, %v5594_v0  ;;  %v4712_v16 = vshrl.u32 %v12505_v29, 16 }
 0x47d   :  { %8318 = vmatmul.msk.bf16.vlgmr.msrb.gmra.mxu3 %vm4730_vm1, %v5841_v13  ;;  %v4713_v5 = vshrl.u32 %v12517_v61, 16  ;;  %v4658_v38 = vshrl.u32 %v12472_v60, 16  ;;  %v4666_v8 = vpack.i.b16 %v4665_v21, %v4664_v17  ;;  %8783 = vrcp.f32 %v5712_v55  ;;  %v5724_v13 = vpop.xlane.xlu2 %5723 }
 0x47e   :  { %v6456_v26 = vpack.c.b16 %v6455_v54, %v6454_v40  ;;  %6268 = vmatpush.bf16.msra.mxu0 %v6256_v48  ;;  %v4659_v56 = vshrl.u32 %v12485_v44, 16  ;;  %8785 = vpow2.f32 %v5654_v2  ;;  %v4706_v14 = vshrl.u32 %v12488_v20, 16 }
 0x47f   :  { %5738 = vadd.xlane.f32.xlu1 %v5737_v33  ;;  %v4714_v50 = vpack.i.b16 %v4713_v5, %v4712_v16  ;;  %v4707_v12 = vshrl.u32 %v12496_v49, 16  ;;  %8787 = vpow2.f32 %v5656_v34  ;;  %v6394_v29 = vunpack.c.l.b16 %v4666_v8  ;;  %v5727_v34 = vpop.xlane.xlu0 %5726 }
 0x480   :  { %v12584_v10 = vpop.eup %8779  ;;  %6468 = vmatpush.bf16.msra.mxu2 %v6456_v26  ;;  %v4660_v61 = vpack.i.b16 %v4659_v56, %v4658_v38  ;;  %v4657_v30 = vpack.i.b16 %v12485_v44, %v12472_v60  ;;  %v4705_v3 = vpack.i.b16 %v12496_v49, %v12488_v20  ;;  %v4670_v7 = vshrl.u32 %v12513_v39, 16  ;;  %v5870_v58 = vpop.f32.mrf.mxu0  ;;  %v13609_v20 = vld [vmem:[#allocation63_spill] sm:$0xff] }
 0x481   :  { %v8782_v18 = vpop.eup %8781  ;;  %v6395_v6 = vunpack.c.l.b16 %v4714_v50  ;;  %v5752_v59 = vsel %vm4730_vm1, %v12584_v10, 0.0  ;;  %v4708_v51 = vpack.i.b16 %v4707_v12, %v4706_v14  ;;  %v4671_v44 = vshrl.u32 %v12520_v1, 16 }
 0x482   :  { %v5807_v23 = vmul.f32 %v8782_v18, %v12023_v25  ;;  %5753 = vadd.xlane.f32.xlu2 %v5752_v59  ;;  %v6354_v41 = vunpack.c.l.b16 %v4660_v61  ;;  %v6334_v52 = vunpack.c.l.b16 %v4657_v30  ;;  %v6335_v60 = vunpack.c.l.b16 %v4705_v3 }
 0x483   :  { %v6396_v4 = vpack.c.b16 %v6395_v6, %v6394_v29  ;;  %v6355_v63 = vunpack.c.l.b16 %v4708_v51  ;;  %v8784_v32 = vpop.eup %8783  ;;  %v5733_v43 = vpop.xlane.xlu1 %5732  ;;  %v4672_v40 = vpack.i.b16 %v4671_v44, %v4670_v7  ;;  %v4718_v24 = vshrl.u32 %v12533_v9, 16  ;;  %v13612_v7 = vld [vmem:[#allocation58_spill] sm:$0xff] }
 0x484   :  { %v5839_v57 = vpack.c.bf16 %v5807_v23, %v5807_v23  ;;  %v12595_v46 = vpop.eup %8785  ;;  %v5806_v49 = vmul.f32 %v8784_v32, %v13609_v20  ;;  %v6336_v11 = vpack.c.b16 %v6335_v60, %v6334_v52  ;;  %8789 = vrcp.f32 %v5733_v43  ;;  %v13611_v23 = vld [vmem:[#allocation60_spill] sm:$0xff] }
 0x485   :  { %6408 = vmatpush.bf16.msrb.mxu3 %v6396_v4  ;;  %v6356_v25 = vpack.c.b16 %v6355_v63, %v6354_v41  ;;  %v12598_v37 = vpop.eup %8787  ;;  %v5746_v45 = vsel %vm4730_vm1, %v12595_v46, 0.0  ;;  %v4719_v42 = vshrl.u32 %v12544_v47, 16  ;;  %8791 = vrcp.f32 %v5727_v34 }
 0x486   :  { %8316 = vmatmul.msk.bf16.vlgmr.msrb.gmra.mxu1 %vm4730_vm1, %v5839_v57  ;;  %v5838_v33 = vpack.c.bf16 %v5806_v49, %v5806_v49  ;;  %v4676_v0 = vshrl.u32 %v12541_v27, 16  ;;  %v4677_v54 = vshrl.u32 %v12547_v35, 16  ;;  %v4724_v17 = vshrl.u32 %v12564_v19, 16 }
 0x487   :  { %6368 = vmatpush.bf16.msrb.mxu1 %v6356_v25  ;;  %5747 = vadd.xlane.f32.xlu1 %v5746_v45  ;;  %v4720_v48 = vpack.i.b16 %v4719_v42, %v4718_v24  ;;  %v4725_v21 = vshrl.u32 %v12567_v31, 16  ;;  %v4669_v2 = vpack.i.b16 %v12520_v1, %v12513_v39  ;;  %v6497_v16 = vrot.slane %v5870_v58, 4  ;;  %v5910_v35 = vpop.f32.mrf.mxu2 }
 0x488   :  { %v5749_v5 = vsel %vm4730_vm1, %v12598_v37, 0.0  ;;  %8315 = vmatmul.msk.bf16.vlgmr.msrb.gmra.mxu0 %vm4730_vm1, %v5838_v33  ;;  %v4678_v55 = vpack.i.b16 %v4677_v54, %v4676_v0  ;;  %v4717_v27 = vpack.i.b16 %v12544_v47, %v12533_v9  ;;  %8793 = vrcp.f32 %v5724_v13  ;;  %v5872_v26 = vpop.f32.mrf.mxu0  ;;  %v5890_v8 = vpop.f32.mrf.mxu1  ;;  %v13610_v9 = vld [vmem:[#allocation61_spill] sm:$0xff] }
 0x489   :  { %6348 = vmatpush.bf16.msrb.mxu0 %v6336_v11  ;;  %v6434_v19 = vunpack.c.l.b16 %v4672_v40  ;;  %v6435_v38 = vunpack.c.l.b16 %v4720_v48  ;;  %v4726_v31 = vpack.i.b16 %v4725_v21, %v4724_v17  ;;  %v6494_v39 = vrot.slane %v5910_v35, 4 }
 0x48a   :  { %5750 = vadd.xlane.f32.xlu2 %v5749_v5  ;;  %v6498_v1 = vsel %vm1063_vm0, %v5910_v35, %v6497_v16  ;;  %v6414_v56 = vunpack.c.l.b16 %v4669_v2  ;;  %v6415_v50 = vunpack.c.l.b16 %v4717_v27  ;;  %v8790_v14 = vpop.eup %8789  ;;  %v6474_v29 = vunpack.c.l.b16 %v4678_v55 }
 0x48b   :  { %v6436_v12 = vpack.c.b16 %v6435_v38, %v6434_v19  ;;  %v6475_v61 = vunpack.c.l.b16 %v4726_v31  ;;  %v8792_v30 = vpop.eup %8791  ;;  %v5813_v47 = vmul.f32 %v8790_v14, %v13610_v9  ;;  %v6496_v18 = vsel %vm1063_vm0, %v6494_v39, %v5870_v58 }
 0x48c   :  { %v6416_v6 = vpack.c.b16 %v6415_v50, %v6414_v56  ;;  %v5811_v41 = vmul.f32 %v8792_v30, %v13611_v23  ;;  %v6506_v58 = vperm.slane %v6498_v1, %v9285_v22  ;;  %v6509_v34 = vrot.slane %v5890_v8, 4 }
 0x48d   :  { %v6476_v59 = vpack.c.b16 %v6475_v61, %v6474_v29  ;;  %v5845_v51 = vpack.c.bf16 %v5813_v47, %v5813_v47  ;;  %v6502_v57 = vperm.slane %v6496_v18, %v9285_v22 }
 0x48e   :  { %v8794_v3 = vpop.eup %8793  ;;  %v5843_v60 = vpack.c.bf16 %v5811_v41, %v5811_v41  ;;  %v6557_v43 = vrot.slane %v6506_v58, 4 }
 0x48f   :  { %8322 = vmatmul.msk.bf16.vlgmr.msra.gmra.mxu3 %vm4730_vm1, %v5845_v51  ;;  %v5912_v52 = vpop.f32.mrf.mxu2  ;;  %v5810_v4 = vmul.f32 %v8794_v3, %v13612_v7  ;;  %v6545_v42 = vrot.slane %v6502_v57, 4 }
 0x490   :  { %6488 = vmatpush.bf16.msra.mxu3 %v6476_v59  ;;  %v5892_v63 = vpop.f32.mrf.mxu1 }
 0x491   :  { %v5950_v44 = vpop.f32.mrf.mxu0  ;;  %v5842_v32 = vpack.c.bf16 %v5810_v4, %v5810_v4 }
 0x492   :  { %v6521_v21 = vrot.slane %v5950_v44, 4 }
 0x496   :  { %8320 = vmatmul.msk.bf16.vlgmr.msra.gmra.mxu1 %vm4730_vm1, %v5843_v60  ;;  %v5930_v20 = vpop.f32.mrf.mxu3 }
 0x497   :  { %6448 = vmatpush.bf16.msra.mxu1 %v6436_v12  ;;  %v6507_v49 = vrot.slane %v5930_v20, 4  ;;  %v6510_v25 = vsel %vm1063_vm0, %v5930_v20, %v6509_v34 }
 0x498   :  { %8319 = vmatmul.msk.bf16.vlgmr.msra.gmra.mxu0 %vm4730_vm1, %v5842_v32  ;;  %v6518_v11 = vperm.slane %v6510_v25, %v9285_v22  ;;  %v5970_v40 = vpop.f32.mrf.mxu1 }
 0x499   :  { %6428 = vmatpush.bf16.msra.mxu0 %v6416_v6  ;;  %v6508_v45 = vsel %vm1063_vm0, %v6507_v49, %v5890_v8  ;;  %v5952_v24 = vpop.f32.mrf.mxu0  ;;  %v6533_v26 = vrot.slane %v5970_v40, 4 }
 0x49a   :  { %v6514_v13 = vperm.slane %v6508_v45, %v9285_v22  ;;  %v6555_v33 = vrot.slane %v6518_v11, 4  ;;  %v6558_v0 = vsel %vm1063_vm0, %v6518_v11, %v6557_v43 }
 0x49b   :  { %v6566_v56 = vperm.slane %v6558_v0, %v9321_v53 }
 0x49c   :  { %v6543_v54 = vrot.slane %v6514_v13, 4  ;;  %v6546_v48 = vsel %vm1063_vm0, %v6514_v13, %v6545_v42  ;;  %v6556_v17 = vsel %vm1063_vm0, %v6555_v33, %v6506_v58 }
 0x49d   :  { %v6554_v12 = vperm.slane %v6546_v48, %v9321_v53  ;;  %v12643_v9 = vperm.slane %v6556_v17, %v9321_v53  ;;  %v6605_v52 = vrot.slane %v6566_v56, 4  ;;  %v13613_v48 = vld [vmem:[#allocation32_spill] sm:$0xff] }
 0x49e   :  { %v6544_v2 = vsel %vm1063_vm0, %v6543_v54, %v6502_v57  ;;  %v5932_v16 = vpop.f32.mrf.mxu3  ;;  %v5990_v5 = vpop.f32.mrf.mxu2 }
 0x49f   :  { %v6519_v55 = vrot.slane %v5990_v5, 4  ;;  %v6522_v35 = vsel %vm1063_vm0, %v5990_v5, %v6521_v21  ;;  %v12649_v41 = vperm.slane %v6544_v2, %v9321_v53  ;;  %v6597_v4 = vrot.slane %v6554_v12, 4 }
 0x4a0   :  { %v5972_v27 = vpop.f32.mrf.mxu1  ;;  %v6530_v31 = vperm.slane %v6522_v35, %v9285_v22  ;;  %v6601_v20 = vrot.slane %v12643_v9, 4 }
 0x4a1   :  { %v6520_v19 = vsel %vm1063_vm0, %v6519_v55, %v5950_v44  ;;  %v6030_v38 = vpop.f32.mrf.mxu0  ;;  %v6593_v11 = vrot.slane %v12649_v41, 4 }
 0x4a2   :  { %v6526_v8 = vperm.slane %v6520_v19, %v9285_v22  ;;  %v6581_v29 = vrot.slane %v6530_v31, 4  ;;  %v6609_v21 = vrot.slane %v6030_v38, 4 }
 0x4a4   :  { %v6569_v47 = vrot.slane %v6526_v8, 4 }
 0x4a6   :  { %v6010_v39 = vpop.f32.mrf.mxu3  ;;  %v5992_v1 = vpop.f32.mrf.mxu2 }
 0x4a7   :  { %v6531_v50 = vrot.slane %v6010_v39, 4  ;;  %v6534_v14 = vsel %vm1063_vm0, %v6010_v39, %v6533_v26 }
 0x4a8   :  { %v6542_v61 = vperm.slane %v6534_v14, %v9285_v22  ;;  %v6050_v30 = vpop.f32.mrf.mxu1 }
 0x4a9   :  { %v5736_v18 = vpop.xlane.xlu0 %5735  ;;  %v6532_v6 = vsel %vm1063_vm0, %v6531_v50, %v5970_v40  ;;  %v6032_v59 = vpop.f32.mrf.mxu0  ;;  %v6621_v26 = vrot.slane %v6050_v30, 4 }
 0x4aa   :  { %8795 = vrcp.f32 %v5736_v18  ;;  %v6538_v51 = vperm.slane %v6532_v6, %v9285_v22  ;;  %v6579_v3 = vrot.slane %v6542_v61, 4  ;;  %v6582_v23 = vsel %vm1063_vm0, %v6542_v61, %v6581_v29 }
 0x4ab   :  { %v6590_v7 = vperm.slane %v6582_v23, %v9321_v53 }
 0x4ac   :  { %v6567_v63 = vrot.slane %v6538_v51, 4  ;;  %v6570_v60 = vsel %vm1063_vm0, %v6538_v51, %v6569_v47  ;;  %v6580_v44 = vsel %vm1063_vm0, %v6579_v3, %v6530_v31 }
 0x4ad   :  { %v6578_v32 = vperm.slane %v6570_v60, %v9321_v53  ;;  %v12656_v58 = vperm.slane %v6580_v44, %v9321_v53  ;;  %v6603_v34 = vrot.slane %v6590_v7, 4  ;;  %v12659_v57 = vsel %vm1063_vm0, %v6590_v7, %v6605_v52 }
 0x4ae   :  { %v6568_v49 = vsel %vm1063_vm0, %v6567_v63, %v6526_v8  ;;  %v6012_v25 = vpop.f32.mrf.mxu3  ;;  %v6070_v43 = vpop.f32.mrf.mxu2 }
 0x4af   :  { %v12665_v40 = vperm.slane %v6568_v49, %v9321_v53  ;;  %v6595_v45 = vrot.slane %v6578_v32, 4  ;;  %v12668_v24 = vsel %vm1063_vm0, %v6578_v32, %v6597_v4  ;;  %v6602_v13 = vsel %vm1063_vm0, %v12656_v58, %v6601_v20 }
 0x4b0   :  { %v8796_v42 = vpop.eup %8795  ;;  %v12673_v33 = vsel %vm1063_vm0, %v6603_v34, %v6566_v56  ;;  %v6052_v0 = vpop.f32.mrf.mxu1  ;;  %v6607_v54 = vrot.slane %v6070_v43, 4  ;;  %v6981_v5 = vrot.slane %v6602_v13, 4  ;;  %v6610_v35 = vsel %vm1063_vm0, %v6070_v43, %v6609_v21 }
 0x4b1   :  { %v5814_v17 = vmul.f32 %v8796_v42, %v13613_v48  ;;  %v12678_v2 = vsel %vm1063_vm0, %v12665_v40, %v6593_v11  ;;  %v12681_v16 = vsel %vm1063_vm0, %v6595_v45, %v6554_v12  ;;  %v6618_v31 = vperm.slane %v6610_v35, %v9285_v22 }
 0x4b2   :  { %v6608_v55 = vsel %vm1063_vm0, %v6607_v54, %v6030_v38  ;;  %v12687_v19 = vsel %vm1063_vm0, %v12659_v57, %v6981_v5  ;;  %v6979_v43 = vrot.slane %v12659_v57, 4  ;;  %v6599_v45 = vrot.slane %v12656_v58, 4 }
 0x4b3   :  { %v5846_v27 = vpack.c.bf16 %v5814_v17, %v5814_v17  ;;  %v6614_v8 = vperm.slane %v6608_v55, %v9285_v22  ;;  %v6669_v38 = vrot.slane %v6618_v31, 4  ;;  %v6955_v0 = vrot.slane %v12668_v24, 4 }
 0x4b4   :  { %v6967_v54 = vrot.slane %v12673_v33, 4  ;;  %v6591_v48 = vrot.slane %v12665_v40, 4  ;;  %v6957_v17 = vrot.slane %v12678_v2, 4  ;;  %v6980_v35 = vsel %vm1063_vm0, %v6979_v43, %v6602_v13 }
 0x4b5   :  { %8323 = vmatmul.msk.bf16.vlgmr.msrb.gmra.mxu0 %vm4730_vm1, %v5846_v27  ;;  %v6657_v29 = vrot.slane %v6614_v8, 4 }
 0x4b6   :  { %v6090_v39 = vpop.f32.mrf.mxu3  ;;  %v6072_v1 = vpop.f32.mrf.mxu2 }
 0x4b7   :  { %v6619_v56 = vrot.slane %v6090_v39, 4  ;;  %v6622_v50 = vsel %vm1063_vm0, %v6090_v39, %v6621_v26  ;;  %v12730_v26 = vsel %vm1063_vm0, %v6599_v45, %v12643_v9  ;;  %v6943_v1 = vrot.slane %v12681_v16, 4 }
 0x4b8   :  { %v6630_v14 = vperm.slane %v6622_v50, %v9285_v22  ;;  %v6968_v13 = vsel %vm1063_vm0, %v6967_v54, %v12730_v26 }
 0x4b9   :  { %v6620_v12 = vsel %vm1063_vm0, %v6619_v56, %v6050_v30  ;;  %v6956_v56 = vsel %vm1063_vm0, %v6955_v0, %v12678_v2  ;;  %v12747_v2 = vsel %vm1063_vm0, %v12668_v24, %v6957_v17 }
 0x4ba   :  { %v6626_v61 = vperm.slane %v6620_v12, %v9285_v22  ;;  %v6667_v47 = vrot.slane %v6630_v14, 4  ;;  %v6670_v18 = vsel %vm1063_vm0, %v6630_v14, %v6669_v38  ;;  %v6592_v38 = vsel %vm1063_vm0, %v6591_v48, %v12649_v41 }
 0x4bb   :  { %v12708_v11 = vperm.slane %v6670_v18, %v9321_v53  ;;  %v6962_v9 = vperm.slane %v6956_v56, %v9285_v22  ;;  %v6974_v14 = vperm.slane %v6968_v13, %v9285_v22 }
 0x4bc   :  { %v6655_v6 = vrot.slane %v6626_v61, 4  ;;  %v6658_v59 = vsel %vm1063_vm0, %v6626_v61, %v6657_v29  ;;  %v6668_v51 = vsel %vm1063_vm0, %v6667_v47, %v6618_v31  ;;  %v6944_v61 = vsel %vm1063_vm0, %v6943_v1, %v6592_v38 }
 0x4bd   :  { %v12716_v21 = vperm.slane %v6658_v59, %v9321_v53  ;;  %v12722_v58 = vperm.slane %v6668_v51, %v9321_v53  ;;  %v6717_v27 = vrot.slane %v12708_v11, 4  ;;  %v6950_v41 = vperm.slane %v6944_v61, %v9285_v22 }
 0x4be   :  { %v6656_v3 = vsel %vm1063_vm0, %v6655_v6, %v6614_v8  ;;  %v6092_v23 = vpop.f32.mrf.mxu3  ;;  %v6986_v8 = vperm.slane %v6980_v35, %v9285_v22  ;;  %v6991_v59 = vrot.slane %v6962_v9, 4  ;;  %v6945_v51 = vrot.slane %v6592_v38, 4 }
 0x4bf   :  { %v12719_v55 = vperm.slane %v6656_v3, %v9321_v53  ;;  %v7017_v23 = vrot.slane %v6974_v14, 4 }
 0x4c0   :  { %v7015_v47 = vrot.slane %v6986_v8, 4  ;;  %v6946_v17 = vsel %vm1063_vm0, %v12681_v16, %v6945_v51 }
 0x4c1   :  { %v7018_v48 = vsel %vm1063_vm0, %v6986_v8, %v7017_v23 }
 0x4c2   :  { %v7016_v3 = vsel %vm1063_vm0, %v7015_v47, %v6974_v14 }
 0x4c3   :  { %v12777_v8 = vperm.slane %v7016_v3, %v9321_v53 }
 0x4c4   :  { %v12700_v52 = vpop.f32.mrf.mxu2 }
 0x4c5   :  { %v6631_v31 = vrot.slane %v12700_v52, 4 }
 0x4cc   :  { %v6152_v7 = vpop.f32.mrf.mxu2 }
 0x4cd   :  { %v6709_v7 = vrot.slane %v12716_v21, 4 }
 0x4d1   :  { %v6170_v4 = vpop.f32.mrf.mxu3 }
 0x4d2   :  { %v6643_v63 = vrot.slane %v6170_v4, 4 }
 0x4d3   :  { %v6130_v30 = vpop.f32.mrf.mxu1 }
 0x4d4   :  { %v6645_v60 = vrot.slane %v6130_v30, 4  ;;  %v6644_v44 = vsel %vm1063_vm0, %v6643_v63, %v6130_v30  ;;  %v6992_v30 = vsel %vm1063_vm0, %v6991_v59, %v6950_v41 }
 0x4d5   :  { %v6650_v40 = vperm.slane %v6644_v44, %v9285_v22  ;;  %v6705_v44 = vrot.slane %v12719_v55, 4 }
 0x4d6   :  { %v6646_v32 = vsel %vm1063_vm0, %v6170_v4, %v6645_v60 }
 0x4d7   :  { %v6654_v29 = vperm.slane %v6646_v32, %v9285_v22  ;;  %v6713_v32 = vrot.slane %v12722_v58, 4  ;;  %v6679_v43 = vrot.slane %v6650_v40, 4 }
 0x4d9   :  { %v6172_v34 = vpop.f32.mrf.mxu3  ;;  %v6691_v45 = vrot.slane %v6654_v29, 4 }
 0x4db   :  { %v6132_v20 = vpop.f32.mrf.mxu1 }
 0x4e3   :  { %v12704_v49 = vpop.f32.mrf.mxu2 }
 0x4e8   :  { %v5745_v25 = vpop.xlane.xlu2 %5744 }
 0x4e9   :  { %8797 = vrcp.f32 %v5745_v25 }
 0x4ea   :  { %v5742_v42 = vpop.xlane.xlu1 %5741 }
 0x4eb   :  { %8799 = vrcp.f32 %v5742_v42  ;;  %v6232_v57 = vpop.f32.mrf.mxu2  ;;  %v5757_v5 = vpop.xlane.xlu0 %5756 }
 0x4ec   :  { %8801 = vrcp.f32 %v5757_v5 }
 0x4ef   :  { %v8798_v39 = vpop.eup %8797 }
 0x4f0   :  { %v5817_v50 = vmul.f32 %v8798_v39, %v12522_v15 }
 0x4f1   :  { %v8800_v12 = vpop.eup %8799 }
 0x4f2   :  { %v5849_v18 = vpack.c.bf16 %v5817_v50, %v5817_v50  ;;  %v5816_v15 = vmul.f32 %v8800_v12, %v12529_v36  ;;  %v5739_v6 = vpop.xlane.xlu1 %5738  ;;  %v6993_v36 = vrot.slane %v6950_v41, 4  ;;  %v8802_v60 = vpop.eup %8801 }
 0x4f3   :  { %8803 = vrcp.f32 %v5739_v6  ;;  %v12754_v63 = vpop.f32.mrf.mxu2  ;;  %v5821_v1 = vmul.f32 %v8802_v60, %v12538_v28 }
 0x4f4   :  { %v5848_v4 = vpack.c.bf16 %v5816_v15, %v5816_v15  ;;  %8326 = vmatmul.msk.bf16.vlgmr.msrb.gmra.mxu3 %vm4730_vm1, %v5849_v18  ;;  %v6110_v24 = vpop.f32.mrf.mxu0  ;;  %v6994_v54 = vsel %vm1063_vm0, %v6962_v9, %v6993_v36 }
 0x4f5   :  { %v5754_v34 = vpop.xlane.xlu2 %5753  ;;  %v6632_v20 = vsel %vm1063_vm0, %v6631_v31, %v6110_v24  ;;  %v6633_v25 = vrot.slane %v6110_v24, 4  ;;  %v6969_v31 = vrot.slane %v12730_v26, 4  ;;  %v5853_v36 = vpack.c.bf16 %v5821_v1, %v5821_v1 }
 0x4f6   :  { %8325 = vmatmul.msk.bf16.vlgmr.msrb.gmra.mxu2 %vm4730_vm1, %v5848_v4  ;;  %8805 = vrcp.f32 %v5754_v34  ;;  %v6638_v42 = vperm.slane %v6632_v20, %v9285_v22 }
 0x4f7   :  { %v6634_v0 = vsel %vm1063_vm0, %v12700_v52, %v6633_v25  ;;  %v12774_v52 = vperm.slane %v6992_v30, %v9321_v53  ;;  %v7026_v30 = vperm.slane %v7018_v48, %v9321_v53  ;;  %v6954_v25 = vperm.slane %v6946_v17, %v9285_v22 }
 0x4f8   :  { %v6642_v57 = vperm.slane %v6634_v0, %v9285_v22  ;;  %v6680_v5 = vsel %vm1063_vm0, %v6679_v43, %v6638_v42  ;;  %v6681_v35 = vrot.slane %v6638_v42, 4 }
 0x4f9   :  { %v8804_v39 = vpop.eup %8803  ;;  %v6686_v56 = vperm.slane %v6680_v5, %v9321_v53  ;;  %v7041_v4 = vrot.slane %v12774_v52, 4  ;;  %v7043_v17 = vrot.slane %v7026_v30, 4 }
 0x4fa   :  { %v5815_v16 = vmul.f32 %v8804_v39, %v12324_v62  ;;  %v6682_v13 = vsel %vm1063_vm0, %v6650_v40, %v6681_v35  ;;  %v6692_v50 = vsel %vm1063_vm0, %v6691_v45, %v6642_v57  ;;  %v6693_v38 = vrot.slane %v6642_v57, 4  ;;  %v5748_v9 = vpop.xlane.xlu1 %5747 }
 0x4fb   :  { %v6690_v26 = vperm.slane %v6682_v13, %v9321_v53  ;;  %v12784_v28 = vperm.slane %v6692_v50, %v9321_v53  ;;  %v6703_v14 = vrot.slane %v6686_v56, 4  ;;  %v6706_v12 = vsel %vm1063_vm0, %v6686_v56, %v6705_v44  ;;  %v6312_v62 = vpop.f32.mrf.mxu2 }
 0x4fc   :  { %v8806_v61 = vpop.eup %8805  ;;  %v5847_v47 = vpack.c.bf16 %v5815_v16, %v5815_v16  ;;  %v6694_v18 = vsel %vm1063_vm0, %v6654_v29, %v6693_v38  ;;  %v7181_v15 = vrot.slane %v6706_v12, 4  ;;  %8807 = vrcp.f32 %v5748_v9  ;;  %v6112_v40 = vpop.f32.mrf.mxu0 }
 0x4fd   :  { %v5820_v6 = vmul.f32 %v8806_v61, %v12584_v10  ;;  %v6702_v41 = vperm.slane %v6694_v18, %v9321_v53  ;;  %v12792_v59 = vsel %vm1063_vm0, %v6703_v14, %v12719_v55  ;;  %v6707_v51 = vrot.slane %v6690_v26, 4  ;;  %v5751_v29 = vpop.xlane.xlu2 %5750 }
 0x4fe   :  { %v6710_v3 = vsel %vm1063_vm0, %v6690_v26, %v6709_v7  ;;  %v12797_v23 = vsel %vm1063_vm0, %v12784_v28, %v6713_v32  ;;  %8324 = vmatmul.msk.bf16.vlgmr.msrb.gmra.mxu1 %vm4730_vm1, %v5847_v47  ;;  %v7002_v10 = vperm.slane %v6994_v54, %v9321_v53  ;;  %8809 = vrcp.f32 %v5751_v29 }
 0x4ff   :  { %v12804_v24 = vsel %vm1063_vm0, %v6707_v51, %v12716_v21  ;;  %v6715_v55 = vrot.slane %v6702_v41, 4  ;;  %v12809_v7 = vsel %vm1063_vm0, %v6702_v41, %v6717_v27  ;;  %v7179_v44 = vrot.slane %v6710_v3, 4 }
 0x500   :  { %v7167_v60 = vrot.slane %v12804_v24, 4  ;;  %v12814_v32 = vsel %vm1063_vm0, %v6710_v3, %v7181_v15  ;;  %v6250_v34 = vpop.f32.mrf.mxu3  ;;  %v5852_v20 = vpack.c.bf16 %v5820_v6, %v5820_v6  ;;  %v12830_v42 = vsel %vm1063_vm0, %v12777_v8, %v7041_v4 }
 0x501   :  { %v12818_v21 = vsel %vm1063_vm0, %v6715_v55, %v12708_v11  ;;  %v12826_v45 = vsel %vm1063_vm0, %v7179_v44, %v6706_v12  ;;  %v7045_v0 = vrot.slane %v7002_v10, 4  ;;  %v6990_v11 = vperm.slane %v12687_v19, %v9285_v22 }
 0x502   :  { %v8808_v27 = vpop.eup %8807  ;;  %v12823_v43 = vsel %vm1063_vm0, %v7167_v60, %v12792_v59  ;;  %v6966_v57 = vperm.slane %v12747_v2, %v9285_v22  ;;  %v6970_v35 = vsel %vm1063_vm0, %v12673_v33, %v6969_v31  ;;  %v12844_v1 = vsel %vm1063_vm0, %v7043_v17, %v7002_v10 }
 0x503   :  { %v5818_v54 = vmul.f32 %v8808_v27, %v12595_v46  ;;  %v6210_v48 = vpop.f32.mrf.mxu1  ;;  %v12839_v5 = vsel %vm1063_vm0, %v7026_v30, %v7045_v0  ;;  %v6978_v19 = vperm.slane %v6970_v35, %v9285_v22  ;;  %v7005_v56 = vrot.slane %v6954_v25, 4 }
 0x504   :  { %8330 = vmatmul.msk.bf16.vlgmr.msra.gmra.mxu3 %vm4730_vm1, %v5853_v36  ;;  %v7003_v16 = vrot.slane %v6966_v57, 4  ;;  %v8810_v2 = vpop.eup %8809  ;;  %v6719_v13 = vrot.slane %v12704_v49, 4  ;;  %v6731_v50 = vrot.slane %v6250_v34, 4  ;;  %v7027_v9 = vrot.slane %v6990_v11, 4 }
 0x505   :  { %v5850_v39 = vpack.c.bf16 %v5818_v54, %v5818_v54  ;;  %v6190_v46 = vpop.f32.mrf.mxu0  ;;  %v5819_v33 = vmul.f32 %v8810_v2, %v12598_v37  ;;  %v6733_v31 = vrot.slane %v6210_v48, 4  ;;  %v7006_v14 = vsel %vm1063_vm0, %v6966_v57, %v7005_v56 }
 0x506   :  { %8329 = vmatmul.msk.bf16.vlgmr.msra.gmra.mxu2 %vm4730_vm1, %v5852_v20  ;;  %v6721_v38 = vrot.slane %v6190_v46, 4  ;;  %v7029_v12 = vrot.slane %v6978_v19, 4  ;;  %v7004_v61 = vsel %vm1063_vm0, %v7003_v16, %v6954_v25  ;;  %v6720_v18 = vsel %vm1063_vm0, %v6719_v13, %v6190_v46 }
 0x507   :  { %8327 = vmatmul.msk.bf16.vlgmr.msra.gmra.mxu0 %vm4730_vm1, %v5850_v39  ;;  %v5851_v47 = vpack.c.bf16 %v5819_v33, %v5819_v33  ;;  %v7014_v15 = vperm.slane %v7006_v14, %v9321_v53  ;;  %v7010_v37 = vperm.slane %v7004_v61, %v9321_v53  ;;  %v7028_v41 = vsel %vm1063_vm0, %v7027_v9, %v6978_v19 }
 0x508   :  { %v6252_v26 = vpop.f32.mrf.mxu3  ;;  %v6722_v40 = vsel %vm1063_vm0, %v12704_v49, %v6721_v38  ;;  %v7030_v6 = vsel %vm1063_vm0, %v6990_v11, %v7029_v12  ;;  %v6732_v51 = vsel %vm1063_vm0, %v6731_v50, %v6210_v48  ;;  %v6734_v3 = vsel %vm1063_vm0, %v6250_v34, %v6733_v31 }
 0x509   :  { %v7039_v29 = vrot.slane %v12777_v8, 4  ;;  %v7038_v4 = vperm.slane %v7030_v6, %v9321_v53  ;;  %v6726_v10 = vperm.slane %v6720_v18, %v9285_v22  ;;  %v7034_v55 = vperm.slane %v7028_v41, %v9321_v53 }
 0x50a   :  { %v6730_v49 = vperm.slane %v6722_v40, %v9285_v22  ;;  %v7049_v60 = vrot.slane %v7010_v37, 4  ;;  %v7053_v44 = vrot.slane %v7014_v15, 4  ;;  %v6738_v20 = vperm.slane %v6732_v51, %v9285_v22 }
 0x50b   :  { %v6212_v62 = vpop.f32.mrf.mxu1  ;;  %v7051_v36 = vrot.slane %v7038_v4, 4  ;;  %v6742_v34 = vperm.slane %v6734_v3, %v9285_v22  ;;  %v7047_v25 = vrot.slane %v7034_v55, 4  ;;  %v12881_v11 = vsel %vm1063_vm0, %v7039_v29, %v12774_v52 }
 0x50c   :  { %v12874_v27 = vsel %vm1063_vm0, %v7034_v55, %v7049_v60  ;;  %v12877_v0 = vsel %vm1063_vm0, %v7038_v4, %v7053_v44  ;;  %v6769_v48 = vrot.slane %v6726_v10, 4  ;;  %v6781_v17 = vrot.slane %v6730_v49, 4 }
 0x50d   :  { %v6192_v30 = vpop.f32.mrf.mxu0  ;;  %v12871_v8 = vsel %vm1063_vm0, %v7051_v36, %v7014_v15  ;;  %v12884_v54 = vsel %vm1063_vm0, %v7047_v25, %v7010_v37  ;;  %v6767_v57 = vrot.slane %v6738_v20, 4  ;;  %v6779_v39 = vrot.slane %v6742_v34, 4 }
 0x50e   :  { %8328 = vmatmul.msk.bf16.vlgmr.msra.gmra.mxu1 %vm4730_vm1, %v5851_v47  ;;  %v6743_v56 = vrot.slane %v12754_v63, 4  ;;  %v6770_v13 = vsel %vm1063_vm0, %v6738_v20, %v6769_v48  ;;  %v6782_v50 = vsel %vm1063_vm0, %v6742_v34, %v6781_v17 }
 0x50f   :  { %v6768_v16 = vsel %vm1063_vm0, %v6767_v57, %v6726_v10  ;;  %v6780_v52 = vsel %vm1063_vm0, %v6779_v39, %v6730_v49  ;;  %v6778_v18 = vperm.slane %v6770_v13, %v9321_v53  ;;  %v6790_v62 = vperm.slane %v6782_v50, %v9321_v53 }
 0x510   :  { %v6774_v12 = vperm.slane %v6768_v16, %v9321_v53  ;;  %v6786_v15 = vperm.slane %v6780_v52, %v9321_v53 }
 0x511   :  { %v6821_v44 = vrot.slane %v6778_v18, 4  ;;  %v6829_v34 = vrot.slane %v6790_v62, 4 }
 0x512   :  { %v6330_v46 = vpop.f32.mrf.mxu3  ;;  %v6817_v30 = vrot.slane %v6774_v12, 4  ;;  %v6825_v20 = vrot.slane %v6786_v15, 4 }
 0x513   :  { %v6290_v35 = vpop.f32.mrf.mxu1  ;;  %v6755_v2 = vrot.slane %v6330_v46, 4 }
 0x514   :  { %v6757_v19 = vrot.slane %v6290_v35, 4 }
 0x515   :  { %v6270_v9 = vpop.f32.mrf.mxu0  ;;  %v6756_v33 = vsel %vm1063_vm0, %v6755_v2, %v6290_v35 }
 0x516   :  { %v6758_v38 = vsel %vm1063_vm0, %v6330_v46, %v6757_v19  ;;  %v6744_v26 = vsel %vm1063_vm0, %v6743_v56, %v6270_v9  ;;  %v6745_v14 = vrot.slane %v6270_v9, 4  ;;  %v6762_v61 = vperm.slane %v6756_v33, %v9285_v22 }
 0x517   :  { %v6766_v31 = vperm.slane %v6758_v38, %v9285_v22  ;;  %v6750_v47 = vperm.slane %v6744_v26, %v9285_v22 }
 0x518   :  { %v6746_v40 = vsel %vm1063_vm0, %v12754_v63, %v6745_v14  ;;  %v6791_v6 = vrot.slane %v6762_v61, 4 }
 0x519   :  { %v6803_v37 = vrot.slane %v6766_v31, 4  ;;  %v6754_v41 = vperm.slane %v6746_v40, %v9285_v22  ;;  %v6793_v51 = vrot.slane %v6750_v47, 4 }
 0x51a   :  { %v6792_v29 = vsel %vm1063_vm0, %v6791_v6, %v6750_v47  ;;  %v6332_v49 = vpop.f32.mrf.mxu3 }
 0x51b   :  { %v6292_v3 = vpop.f32.mrf.mxu1  ;;  %v6794_v4 = vsel %vm1063_vm0, %v6762_v61, %v6793_v51  ;;  %v6804_v10 = vsel %vm1063_vm0, %v6803_v37, %v6754_v41  ;;  %v6805_v55 = vrot.slane %v6754_v41, 4  ;;  %v6798_v36 = vperm.slane %v6792_v29, %v9321_v53 }
 0x51c   :  { %v6802_v60 = vperm.slane %v6794_v4, %v9321_v53  ;;  %v6810_v63 = vperm.slane %v6804_v10, %v9321_v53 }
 0x51d   :  { %v6806_v25 = vsel %vm1063_vm0, %v6766_v31, %v6805_v55  ;;  %v6272_v48 = vpop.f32.mrf.mxu0  ;;  %v6815_v57 = vrot.slane %v6798_v36, 4  ;;  %v6818_v35 = vsel %vm1063_vm0, %v6798_v36, %v6817_v30 }
 0x51e   :  { %v6814_v17 = vperm.slane %v6806_v25, %v9321_v53  ;;  %v6819_v39 = vrot.slane %v6802_v60, 4  ;;  %v6822_v19 = vsel %vm1063_vm0, %v6802_v60, %v6821_v44  ;;  %v6823_v46 = vrot.slane %v6810_v63, 4 }
 0x51f   :  { %v6826_v56 = vsel %vm1063_vm0, %v6810_v63, %v6825_v20  ;;  %v7069_v16 = vrot.slane %v6818_v35, 4  ;;  %v6816_v2 = vsel %vm1063_vm0, %v6815_v57, %v6774_v12  ;;  %v7067_v33 = vrot.slane %v6822_v19, 4 }
 0x520   :  { %v6820_v13 = vsel %vm1063_vm0, %v6819_v39, %v6778_v18  ;;  %v6827_v52 = vrot.slane %v6814_v17, 4  ;;  %v6830_v50 = vsel %vm1063_vm0, %v6814_v17, %v6829_v34  ;;  %v7057_v9 = vrot.slane %v6816_v2, 4 }
 0x521   :  { %v7055_v38 = vrot.slane %v6820_v13, 4  ;;  %v7093_v31 = vrot.slane %v6826_v56, 4  ;;  %v6824_v26 = vsel %vm1063_vm0, %v6823_v46, %v6786_v15  ;;  %v7091_v61 = vrot.slane %v6830_v50, 4 }
 0x522   :  { %v6828_v14 = vsel %vm1063_vm0, %v6827_v52, %v6790_v62  ;;  %v7070_v47 = vsel %vm1063_vm0, %v6822_v19, %v7069_v16  ;;  %v7068_v40 = vsel %vm1063_vm0, %v7067_v33, %v6818_v35  ;;  %v7081_v18 = vrot.slane %v6824_v26, 4 }
 0x523   :  { %v7056_v12 = vsel %vm1063_vm0, %v7055_v38, %v6816_v2  ;;  %v7079_v6 = vrot.slane %v6828_v14, 4  ;;  %v7074_v37 = vperm.slane %v7068_v40, %v9285_v22  ;;  %v7092_v51 = vsel %vm1063_vm0, %v7091_v61, %v6826_v56 }
 0x524   :  { %v7062_v41 = vperm.slane %v7056_v12, %v9285_v22  ;;  %v7058_v3 = vsel %vm1063_vm0, %v6820_v13, %v7057_v9  ;;  %v7098_v62 = vperm.slane %v7092_v51, %v9285_v22  ;;  %v7078_v4 = vperm.slane %v7070_v47, %v9285_v22 }
 0x525   :  { %v7080_v15 = vsel %vm1063_vm0, %v7079_v6, %v6824_v26  ;;  %v7066_v29 = vperm.slane %v7058_v3, %v9285_v22  ;;  %v7103_v55 = vrot.slane %v7074_v37, 4  ;;  %v7082_v30 = vsel %vm1063_vm0, %v6828_v14, %v7081_v18 }
 0x526   :  { %v7086_v10 = vperm.slane %v7080_v15, %v9285_v22  ;;  %v7105_v49 = vrot.slane %v7062_v41, 4  ;;  %v7127_v36 = vrot.slane %v7098_v62, 4  ;;  %v7090_v60 = vperm.slane %v7082_v30, %v9285_v22 }
 0x527   :  { %v7094_v63 = vsel %vm1063_vm0, %v6830_v50, %v7093_v31  ;;  %v7117_v44 = vrot.slane %v7066_v29, 4  ;;  %v7104_v20 = vsel %vm1063_vm0, %v7103_v55, %v7062_v41  ;;  %v7115_v13 = vrot.slane %v7078_v4, 4 }
 0x528   :  { %v7129_v34 = vrot.slane %v7086_v10, 4  ;;  %v7106_v25 = vsel %vm1063_vm0, %v7074_v37, %v7105_v49  ;;  %v7102_v48 = vperm.slane %v7094_v63, %v9285_v22  ;;  %v12939_v17 = vperm.slane %v7104_v20, %v9321_v53 }
 0x529   :  { %v7128_v57 = vsel %vm1063_vm0, %v7127_v36, %v7086_v10  ;;  %v7114_v35 = vperm.slane %v7106_v25, %v9321_v53  ;;  %v7141_v46 = vrot.slane %v7090_v60, 4  ;;  %v7118_v52 = vsel %vm1063_vm0, %v7078_v4, %v7117_v44 }
 0x52a   :  { %v12944_v39 = vperm.slane %v7128_v57, %v9321_v53  ;;  %v7130_v19 = vsel %vm1063_vm0, %v7098_v62, %v7129_v34  ;;  %v7153_v56 = vrot.slane %v12939_v17, 4  ;;  %v7139_v38 = vrot.slane %v7102_v48, 4 }
 0x52b   :  { %v7138_v16 = vperm.slane %v7130_v19, %v9321_v53  ;;  %v7157_v2 = vrot.slane %v7114_v35, 4  ;;  %v7142_v50 = vsel %vm1063_vm0, %v7102_v48, %v7141_v46  ;;  %v7116_v47 = vsel %vm1063_vm0, %v7115_v13, %v7066_v29 }
 0x52c   :  { %v7154_v9 = vsel %vm1063_vm0, %v12944_v39, %v7153_v56  ;;  %v7150_v26 = vperm.slane %v7142_v50, %v9321_v53  ;;  %v7140_v40 = vsel %vm1063_vm0, %v7139_v38, %v7090_v60  ;;  %v7122_v18 = vperm.slane %v7116_v47, %v9321_v53 }
 0x52d   :  { %v7158_v33 = vsel %vm1063_vm0, %v7138_v16, %v7157_v2  ;;  %v7155_v31 = vrot.slane %v7138_v16, 4  ;;  %v8613_v14 = vpack.i.bf16 %v7154_v9, %v12830_v42  ;;  %v7146_v37 = vperm.slane %v7140_v40, %v9321_v53 }
 0x52e   :  { %v8628_v61 = vpack.i.bf16 %v7158_v33, %v12839_v5  ;;  %v7163_v6 = vrot.slane %v7150_v26, 4  ;;  %v7126_v42 = vperm.slane %v7118_v52, %v9321_v53  ;;  %v7161_v5 = vrot.slane %v7122_v18, 4 }
 0x52f   :  { %v7156_v12 = vsel %vm1063_vm0, %v7155_v31, %v7114_v35  ;;  %8614 = vrot.lane.b32.xlu0 %v8613_v14, %s9019_s28  ;;  %v7159_v51 = vrot.slane %v7146_v37, 4  ;;  %v7169_v30 = vrot.slane %v12792_v59, 4  ;;  %v7205_v36 = vrot.slane %v12797_v23, 4 }
 0x530   :  { %8629 = vrot.lane.b32.xlu2 %v8628_v61, %s9025_s18  ;;  %v8618_v41 = vpack.i.bf16 %v7156_v12, %v12844_v1  ;;  %v7164_v3 = vsel %vm1063_vm0, %v7163_v6, %v7126_v42  ;;  %v7162_v15 = vsel %vm1063_vm0, %v7146_v37, %v7161_v5  ;;  %v6711_v1 = vrot.slane %v12784_v28, 4 }
 0x531   :  { %v7160_v29 = vsel %vm1063_vm0, %v7159_v51, %v7122_v18  ;;  %v8638_v4 = vpack.i.bf16 %v7164_v3, %v12871_v8  ;;  %v8633_v10 = vpack.i.bf16 %v7162_v15, %v12874_v27  ;;  %v7165_v49 = vrot.slane %v7126_v42, 4 }
 0x532   :  { %8619 = vrot.lane.b32.xlu1 %v8618_v41, %s9028_s23  ;;  %v12969_v62 = vpop.f32.mrf.mxu0  ;;  %v8623_v55 = vpack.i.bf16 %v7160_v29, %v12884_v54  ;;  %v7203_v60 = vrot.slane %v12809_v7, 4  ;;  %v7186_v8 = vperm.slane %v12826_v45, %v9285_v22  ;;  %v6712_v63 = vsel %vm1063_vm0, %v6711_v1, %v12722_v58 }
 0x533   :  { %v7166_v28 = vsel %vm1063_vm0, %v7150_v26, %v7165_v49  ;;  %v7190_v54 = vperm.slane %v12814_v32, %v9285_v22  ;;  %v7193_v44 = vrot.slane %v6712_v63, 4  ;;  %v7170_v59 = vsel %vm1063_vm0, %v12804_v24, %v7169_v30 }
 0x534   :  { %v7206_v20 = vsel %vm1063_vm0, %v12809_v7, %v7205_v36  ;;  %v7178_v34 = vperm.slane %v7170_v59, %v9285_v22  ;;  %v8643_v48 = vpack.i.bf16 %v7166_v28, %v12877_v0  ;;  %v7191_v57 = vrot.slane %v12818_v21, 4 }
 0x535   :  { %v7214_v45 = vperm.slane %v7206_v20, %v9285_v22  ;;  %v7227_v25 = vrot.slane %v7190_v54, 4  ;;  %v7204_v58 = vsel %vm1063_vm0, %v7203_v60, %v12797_v23  ;;  %v7194_v32 = vsel %vm1063_vm0, %v12818_v21, %v7193_v44 }
 0x536   :  { %v7174_v24 = vperm.slane %v12823_v43, %v9285_v22  ;;  %v7210_v7 = vperm.slane %v7204_v58, %v9285_v22  ;;  %v7215_v35 = vrot.slane %v7186_v8, 4  ;;  %v7202_v19 = vperm.slane %v7194_v32, %v9285_v22 }
 0x537   :  { %8639 = vrot.lane.b32.xlu0 %v8638_v4, %s9027_s3  ;;  %v7192_v46 = vsel %vm1063_vm0, %v7191_v57, %v6712_v63  ;;  %v7228_v0 = vsel %vm1063_vm0, %v7227_v25, %v7178_v34  ;;  %v7251_v56 = vrot.slane %v7214_v45, 4  ;;  %v7229_v16 = vrot.slane %v7178_v34, 4 }
 0x538   :  { %8634 = vrot.lane.b32.xlu2 %v8633_v10, %s9029_s24  ;;  %v7198_v23 = vperm.slane %v7192_v46, %v9285_v22  ;;  %v7216_v21 = vsel %vm1063_vm0, %v7215_v35, %v7174_v24  ;;  %v7217_v2 = vrot.slane %v7174_v24, 4  ;;  %v7239_v13 = vrot.slane %v7210_v7, 4 }
 0x539   :  { %v7222_v43 = vperm.slane %v7216_v21, %v9321_v53  ;;  %v7234_v52 = vperm.slane %v7228_v0, %v9321_v53  ;;  %v7252_v50 = vsel %vm1063_vm0, %v7251_v56, %v7202_v19  ;;  %v7230_v38 = vsel %vm1063_vm0, %v7190_v54, %v7229_v16 }
 0x53a   :  { %8624 = vrot.lane.b32.xlu1 %v8623_v55, %s9024_s4  ;;  %v6352_v27 = vpop.f32.mrf.mxu0  ;;  %v7240_v9 = vsel %vm1063_vm0, %v7239_v13, %v7198_v23  ;;  %v7241_v33 = vrot.slane %v7198_v23, 4  ;;  %v7258_v31 = vperm.slane %v7252_v50, %v9321_v53  ;;  %v7218_v26 = vsel %vm1063_vm0, %v7186_v8, %v7217_v2  ;;  %v8389_v50 = vld [vmem:[#allocation13 + $0x70] sm:$0xf] }
 0x53b   :  { %v7246_v14 = vperm.slane %v7240_v9, %v9321_v53  ;;  %v7265_v61 = vrot.slane %v7222_v43, 4  ;;  %v7273_v47 = vrot.slane %v7234_v52, 4  ;;  %v7226_v40 = vperm.slane %v7218_v26, %v9321_v53  ;;  %v8575_v9 = vld [vmem:[#allocation13 + $0x74] sm:$0xf] }
 0x53c   :  { %v7271_v12 = vrot.slane %v7258_v31, 4  ;;  %v7242_v6 = vsel %vm1063_vm0, %v7210_v7, %v7241_v33  ;;  %v7238_v18 = vperm.slane %v7230_v38, %v9321_v53  ;;  %v7253_v37 = vrot.slane %v7202_v19, 4  ;;  %v8576_v38 = vld [vmem:[#allocation13 + $0x74] sm:$0xf0] }
 0x53d   :  { %v7263_v41 = vrot.slane %v7246_v14, 4  ;;  %v13022_v42 = vsel %vm1063_vm0, %v7246_v14, %v7265_v61  ;;  %v7250_v5 = vperm.slane %v7242_v6, %v9321_v53  ;;  %v7269_v51 = vrot.slane %v7226_v40, 4  ;;  %v8391_v61 = vld [vmem:[#allocation13 + $0x78] sm:$0xf0] }
 0x53e   :  { %v13026_v3 = vsel %vm1063_vm0, %v7271_v12, %v7234_v52  ;;  %v7254_v15 = vsel %vm1063_vm0, %v7214_v45, %v7253_v37  ;;  %v7277_v29 = vrot.slane %v7238_v18, 4  ;;  %v13030_v4 = vsel %vm1063_vm0, %v7258_v31, %v7273_v47 }
 0x53f   :  { %v13033_v10 = vsel %vm1063_vm0, %v7250_v5, %v7269_v51  ;;  %v7267_v1 = vrot.slane %v7250_v5, 4  ;;  %v7262_v55 = vperm.slane %v7254_v15, %v9321_v53  ;;  %v13037_v49 = vsel %vm1063_vm0, %v7263_v41, %v7222_v43 }
 0x540   :  { %v6833_v45 = vrot.slane %v12969_v62, 4  ;;  %v8390_v14 = vor.u32 %v8576_v38, %v8389_v50 }
 0x541   :  { %v13040_v30 = vsel %vm1063_vm0, %v7267_v1, %v7226_v40  ;;  %v7275_v36 = vrot.slane %v7262_v55, 4  ;;  %v13043_v60 = vsel %vm1063_vm0, %v7262_v55, %v7277_v29 }
 0x542   :  { %8644 = vrot.lane.b32.xlu1 %v8643_v48, %s9026_s6  ;;  %7737 = vmatpush.bf16.msrb.mxu0 %v8390_v14 }
 0x543   :  { %v13046_v8 = vsel %vm1063_vm0, %v7275_v36, %v7238_v18  ;;  %v8394_v18 = vor.u32 %v8575_v9, %v8391_v61 }
 0x545   :  { %7765 = vmatpush.bf16.msrb.mxu2 %v8394_v18 }
 0x577   :  { %v6410_v27 = vpop.f32.mrf.mxu3 }
 0x578   :  { %v6843_v28 = vrot.slane %v6410_v27, 4 }
 0x579   :  { %v6390_v63 = vpop.f32.mrf.mxu2 }
 0x57a   :  { %v6831_v54 = vrot.slane %v6390_v63, 4  ;;  %v6834_v58 = vsel %vm1063_vm0, %v6390_v63, %v6833_v45  ;;  %v8381_v63 = vld [vmem:[#allocation13 + $0x60] sm:$0xf] }
 0x57b   :  { %v6370_v44 = vpop.f32.mrf.mxu1  ;;  %v6842_v19 = vperm.slane %v6834_v58, %v9285_v22 }
 0x57c   :  { %v6845_v59 = vrot.slane %v6370_v44, 4  ;;  %v6844_v20 = vsel %vm1063_vm0, %v6843_v28, %v6370_v44  ;;  %v6832_v34 = vsel %vm1063_vm0, %v6831_v54, %v12969_v62  ;;  %v8574_v54 = vld [vmem:[#allocation13 + $0x64] sm:$0xf0]  ;;  %v8573_v44 = vld [vmem:[#allocation13 + $0x64] sm:$0xf] }
 0x57d   :  { %v6850_v57 = vperm.slane %v6844_v20, %v9285_v22  ;;  %v6838_v32 = vperm.slane %v6832_v34, %v9285_v22  ;;  %v6893_v21 = vrot.slane %v6842_v19, 4 }
 0x57e   :  { %v6846_v48 = vsel %vm1063_vm0, %v6410_v27, %v6845_v59 }
 0x57f   :  { %v6412_v25 = vpop.f32.mrf.mxu3  ;;  %v6854_v7 = vperm.slane %v6846_v48, %v9285_v22  ;;  %v6879_v46 = vrot.slane %v6850_v57, 4  ;;  %v6881_v56 = vrot.slane %v6838_v32, 4  ;;  %v8383_v48 = vld [vmem:[#allocation13 + $0x68] sm:$0xf0] }
 0x580   :  { %v8382_v25 = vor.u32 %v8574_v54, %v8381_v63 }
 0x581   :  { %v6392_v24 = vpop.f32.mrf.mxu2  ;;  %v6891_v62 = vrot.slane %v6854_v7, 4  ;;  %v6880_v2 = vsel %vm1063_vm0, %v6879_v46, %v6838_v32  ;;  %v6882_v43 = vsel %vm1063_vm0, %v6850_v57, %v6881_v56  ;;  %v6894_v33 = vsel %vm1063_vm0, %v6854_v7, %v6893_v21  ;;  %v8572_v56 = vld [vmem:[#allocation13 + $0x54] sm:$0xf0] }
 0x582   :  { %v6886_v47 = vperm.slane %v6880_v2, %v9321_v53  ;;  %v6890_v37 = vperm.slane %v6882_v43, %v9321_v53  ;;  %v6902_v27 = vperm.slane %v6894_v33, %v9321_v53  ;;  %v8386_v32 = vor.u32 %v8573_v44, %v8383_v48  ;;  %7738 = vmatpush.bf16.msrb.mxu0 %v8382_v25  ;;  %v8571_v2 = vld [vmem:[#allocation13 + $0x54] sm:$0xf] }
 0x583   :  { %v6372_v35 = vpop.f32.mrf.mxu1  ;;  %v6892_v40 = vsel %vm1063_vm0, %v6891_v62, %v6842_v19 }
 0x584   :  { %v6430_v0 = vpop.f32.mrf.mxu0  ;;  %v6898_v36 = vperm.slane %v6892_v40, %v9321_v53  ;;  %v6929_v57 = vrot.slane %v6886_v47, 4  ;;  %v6933_v58 = vrot.slane %v6890_v37, 4  ;;  %7766 = vmatpush.bf16.msrb.mxu2 %v8386_v32 }
 0x585   :  { %v6857_v16 = vrot.slane %v6430_v0, 4 }
 0x586   :  { %v6937_v43 = vrot.slane %v6898_v36, 4 }
 0x587   :  { %v6490_v23 = vpop.f32.mrf.mxu3 }
 0x588   :  { %v6867_v13 = vrot.slane %v6490_v23, 4 }
 0x589   :  { %v6470_v52 = vpop.f32.mrf.mxu2 }
 0x58a   :  { %v6855_v31 = vrot.slane %v6470_v52, 4  ;;  %v6858_v26 = vsel %vm1063_vm0, %v6470_v52, %v6857_v16  ;;  %v6941_v52 = vrot.slane %v6902_v27, 4 }
 0x58b   :  { %v6866_v12 = vperm.slane %v6858_v26, %v9285_v22  ;;  %v6450_v6 = vpop.f32.mrf.mxu1 }
 0x58c   :  { %v6856_v41 = vsel %vm1063_vm0, %v6855_v31, %v6430_v0  ;;  %v6868_v5 = vsel %vm1063_vm0, %v6867_v13, %v6450_v6  ;;  %v6869_v51 = vrot.slane %v6450_v6, 4  ;;  %v6432_v15 = vpop.f32.mrf.mxu0  ;;  %v8373_v0 = vld [vmem:[#allocation13 + $0x50] sm:$0xf]  ;;  %v8375_v13 = vld [vmem:[#allocation13 + $0x58] sm:$0xf0] }
 0x58d   :  { %v6862_v29 = vperm.slane %v6856_v41, %v9285_v22  ;;  %v6917_v1 = vrot.slane %v6866_v12, 4  ;;  %v6874_v55 = vperm.slane %v6868_v5, %v9285_v22  ;;  %v8374_v21 = vor.u32 %v8572_v56, %v8373_v0 }
 0x58e   :  { %v6870_v28 = vsel %vm1063_vm0, %v6490_v23, %v6869_v51  ;;  %v8378_v9 = vor.u32 %v8571_v2, %v8375_v13 }
 0x58f   :  { %v6905_v59 = vrot.slane %v6862_v29, 4  ;;  %v6878_v20 = vperm.slane %v6870_v28, %v9285_v22  ;;  %v6903_v34 = vrot.slane %v6874_v55, 4  ;;  %v6492_v45 = vpop.f32.mrf.mxu3  ;;  %7739 = vmatpush.bf16.msrb.mxu0 %v8374_v21 }
 0x590   :  { %7767 = vmatpush.bf16.msrb.mxu2 %v8378_v9 }
 0x591   :  { %v6904_v24 = vsel %vm1063_vm0, %v6903_v34, %v6862_v29  ;;  %v6906_v7 = vsel %vm1063_vm0, %v6874_v55, %v6905_v59  ;;  %v6915_v35 = vrot.slane %v6878_v20, 4  ;;  %v6918_v19 = vsel %vm1063_vm0, %v6878_v20, %v6917_v1  ;;  %v6472_v46 = vpop.f32.mrf.mxu2 }
 0x592   :  { %v6910_v16 = vperm.slane %v6904_v24, %v9321_v53  ;;  %v6914_v62 = vperm.slane %v6906_v7, %v9321_v53  ;;  %v6926_v23 = vperm.slane %v6918_v19, %v9321_v53 }
 0x593   :  { %v6916_v50 = vsel %vm1063_vm0, %v6915_v35, %v6866_v12  ;;  %v6452_v38 = vpop.f32.mrf.mxu1 }
 0x594   :  { %v6922_v33 = vperm.slane %v6916_v50, %v9321_v53  ;;  %v6927_v31 = vrot.slane %v6910_v16, 4  ;;  %v6930_v26 = vsel %vm1063_vm0, %v6910_v16, %v6929_v57  ;;  %v6931_v14 = vrot.slane %v6914_v62, 4 }
 0x595   :  { %v6934_v61 = vsel %vm1063_vm0, %v6914_v62, %v6933_v58  ;;  %v6939_v40 = vrot.slane %v6926_v23, 4  ;;  %v6942_v6 = vsel %vm1063_vm0, %v6926_v23, %v6941_v52  ;;  %v7293_v18 = vrot.slane %v6930_v26, 4 }
 0x596   :  { %v6928_v41 = vsel %vm1063_vm0, %v6927_v31, %v6886_v47  ;;  %v6932_v5 = vsel %vm1063_vm0, %v6931_v14, %v6890_v37  ;;  %v6935_v12 = vrot.slane %v6922_v33, 4  ;;  %v6938_v51 = vsel %vm1063_vm0, %v6922_v33, %v6937_v43 }
 0x597   :  { %v6940_v15 = vsel %vm1063_vm0, %v6939_v40, %v6902_v27  ;;  %v7279_v29 = vrot.slane %v6932_v5, 4  ;;  %v7281_v1 = vrot.slane %v6928_v41, 4  ;;  %v7291_v55 = vrot.slane %v6934_v61, 4 }
 0x598   :  { %v7294_v28 = vsel %vm1063_vm0, %v6934_v61, %v7293_v18  ;;  %v7303_v63 = vrot.slane %v6940_v15, 4  ;;  %v7315_v54 = vrot.slane %v6942_v6, 4  ;;  %v7317_v44 = vrot.slane %v6938_v51, 4 }
 0x599   :  { %v7292_v59 = vsel %vm1063_vm0, %v7291_v55, %v6930_v26  ;;  %v7302_v47 = vperm.slane %v7294_v28, %v9285_v22  ;;  %v6936_v34 = vsel %vm1063_vm0, %v6935_v12, %v6898_v36  ;;  %v7280_v27 = vsel %vm1063_vm0, %v7279_v29, %v6928_v41 }
 0x59a   :  { %v7298_v37 = vperm.slane %v7292_v59, %v9285_v22  ;;  %v7318_v20 = vsel %vm1063_vm0, %v6942_v6, %v7317_v44  ;;  %v7286_v45 = vperm.slane %v7280_v27, %v9285_v22  ;;  %v7304_v25 = vsel %vm1063_vm0, %v7303_v63, %v6936_v34 }
 0x59b   :  { %v7305_v48 = vrot.slane %v6936_v34, 4  ;;  %v7316_v57 = vsel %vm1063_vm0, %v7315_v54, %v6938_v51  ;;  %v7310_v58 = vperm.slane %v7304_v25, %v9285_v22  ;;  %v7282_v7 = vsel %vm1063_vm0, %v6932_v5, %v7281_v1  ;;  %v13134_v1 = vpop.permute.xlu2 %8629  ;;  %v8365_v54 = vld [vmem:[#allocation13 + $0x40] sm:$0xf] }
 0x59c   :  { %v7322_v32 = vperm.slane %v7316_v57, %v9285_v22  ;;  %v7327_v24 = vrot.slane %v7298_v37, 4  ;;  %v7329_v35 = vrot.slane %v7286_v45, 4  ;;  %v7290_v19 = vperm.slane %v7282_v7, %v9285_v22  ;;  %v8568_v57 = vld [vmem:[#allocation13 + $0x34] sm:$0xf0] }
 0x59d   :  { %v7306_v36 = vsel %vm1063_vm0, %v6940_v15, %v7305_v48  ;;  %v7326_v46 = vperm.slane %v7318_v20, %v9285_v22  ;;  %v7353_v16 = vrot.slane %v7310_v58, 4  ;;  %v7339_v21 = vrot.slane %v7302_v47, 4  ;;  %v8367_v20 = vld [vmem:[#allocation13 + $0x48] sm:$0xf0]  ;;  %v8357_v48 = vld [vmem:[#allocation13 + $0x30] sm:$0xf] }
 0x59e   :  { %v7328_v0 = vsel %vm1063_vm0, %v7327_v24, %v7286_v45  ;;  %v7351_v56 = vrot.slane %v7322_v32, 4  ;;  %v7314_v62 = vperm.slane %v7306_v36, %v9285_v22  ;;  %v7330_v13 = vsel %vm1063_vm0, %v7298_v37, %v7329_v35  ;;  %v8569_v37 = vld [vmem:[#allocation13 + $0x44] sm:$0xf]  ;;  %v8567_v35 = vld [vmem:[#allocation13 + $0x34] sm:$0xf] }
 0x59f   :  { %v13108_v23 = vperm.slane %v7328_v0, %v9321_v53  ;;  %v7363_v2 = vrot.slane %v7326_v46, 4  ;;  %v7338_v52 = vperm.slane %v7330_v13, %v9321_v53  ;;  %v7354_v50 = vsel %vm1063_vm0, %v7322_v32, %v7353_v16  ;;  %v8349_v13 = vld [vmem:[#allocation13 + $0x20] sm:$0xf] }
 0x5a0   :  { %v7352_v43 = vsel %vm1063_vm0, %v7351_v56, %v7310_v58  ;;  %v7341_v38 = vrot.slane %v7290_v19, 4  ;;  %v7340_v22 = vsel %vm1063_vm0, %v7339_v21, %v7290_v19  ;;  %v7362_v14 = vperm.slane %v7354_v50, %v9321_v53  ;;  %v8359_v19 = vld [vmem:[#allocation13 + $0x38] sm:$0xf0] }
 0x5a1   :  { %v13115_v9 = vperm.slane %v7352_v43, %v9321_v53  ;;  %v7377_v33 = vrot.slane %v13108_v23, 4  ;;  %v7364_v31 = vsel %vm1063_vm0, %v7363_v2, %v7314_v62  ;;  %v7381_v61 = vrot.slane %v7338_v52, 4  ;;  %v8615_v15 = vpop.permute.xlu0 %8614  ;;  %v8566_v43 = vld [vmem:[#allocation13 + $0x24] sm:$0xf0] }
 0x5a2   :  { %v13121_v26 = vperm.slane %v7364_v31, %v9321_v53  ;;  %v7342_v6 = vsel %vm1063_vm0, %v7302_v47, %v7341_v38  ;;  %v7365_v18 = vrot.slane %v7314_v62, 4  ;;  %v13129_v5 = vperm.slane %v7340_v22, %v9321_v53  ;;  %v8570_v47 = vld [vmem:[#allocation13 + $0x44] sm:$0xf0]  ;;  %v8351_v22 = vld [vmem:[#allocation13 + $0x28] sm:$0xf0] }
 0x5a3   :  { %v7378_v40 = vsel %vm1063_vm0, %v13115_v9, %v7377_v33  ;;  %v7382_v51 = vsel %vm1063_vm0, %v7362_v14, %v7381_v61  ;;  %v7151_v29 = vrot.slane %v12944_v39, 4  ;;  %v7379_v28 = vrot.slane %v7362_v14, 4  ;;  %v8565_v33 = vld [vmem:[#allocation13 + $0x24] sm:$0xf]  ;;  %v8635_v61 = vpop.permute.xlu2 %8634 }
 0x5a4   :  { %v8648_v41 = vpack.i.bf16 %v7378_v40, %v13022_v42  ;;  %v7383_v12 = vrot.slane %v13121_v26, 4  ;;  %v8663_v55 = vpack.i.bf16 %v7382_v51, %v13033_v10  ;;  %v8620_v63 = vpop.permute.xlu1 %8619  ;;  %v7350_v44 = vperm.slane %v7342_v6, %v9321_v53  ;;  %v8564_v51 = vld [vmem:[#allocation13 + $0x14] sm:$0xf0] }
 0x5a5   :  { %v7366_v59 = vsel %vm1063_vm0, %v7326_v46, %v7365_v18  ;;  %v8616_v10 = vunpack.i.l.bf16 %v8615_v15  ;;  %v8617_v34 = vunpack.i.h.bf16 %v8615_v15  ;;  %v8622_v25 = vunpack.i.h.bf16 %v8620_v63 }
 0x5a6   :  { %8649 = vrot.lane.b32.xlu0 %v8648_v41, %s9019_s28  ;;  %v7384_v42 = vsel %vm1063_vm0, %v7383_v12, %v13129_v5  ;;  %8664 = vrot.lane.b32.xlu1 %v8663_v55, %s9025_s18  ;;  %v7374_v27 = vperm.slane %v7366_v59, %v9321_v53  ;;  %v7389_v45 = vrot.slane %v7350_v44, 4  ;;  %v7380_v58 = vsel %vm1063_vm0, %v7379_v28, %v7338_v52  ;;  %v8341_v12 = vld [vmem:[#allocation13 + $0x10] sm:$0xf] }
 0x5a7   :  { %v8658_v39 = vpack.i.bf16 %v7384_v42, %v13026_v3  ;;  %v8621_v32 = vunpack.i.l.bf16 %v8620_v63  ;;  %v8366_v24 = vor.u32 %v8570_v47, %v8365_v54  ;;  %v8370_v7 = vor.u32 %v8569_v37, %v8367_v20  ;;  %v8333_v47 = vld [vmem:[#allocation13] sm:$0xf]  ;;  %v8562_v37 = vld [vmem:[#allocation13 + $0x4] sm:$0xf0] }
 0x5a8   :  { %v7152_v3 = vsel %vm1063_vm0, %v7151_v29, %v12939_v17  ;;  %v7387_v36 = vrot.slane %v7374_v27, 4  ;;  %v7390_v46 = vsel %vm1063_vm0, %v7374_v27, %v7389_v45  ;;  %v8632_v53 = vunpack.i.h.bf16 %v13134_v1  ;;  %v8563_v29 = vld [vmem:[#allocation13 + $0x14] sm:$0xf]  ;;  %v8335_v27 = vld [vmem:[#allocation13 + $0x8] sm:$0xf0] }
 0x5a9   :  { %8659 = vrot.lane.b32.xlu2 %v8658_v39, %s9024_s4  ;;  %v7385_v0 = vrot.slane %v13129_v5, 4  ;;  %v7503_v56 = vsel %vm4730_vm1, %v12881_v11, %v8616_v10  ;;  %7740 = vmatpush.bf16.msrb.mxu0 %v8366_v24  ;;  %v8358_v16 = vor.u32 %v8568_v57, %v8357_v48  ;;  %v8653_v62 = vpack.i.bf16 %v7380_v58, %v13040_v30 }
 0x5aa   :  { %7768 = vmatpush.bf16.msrb.mxu2 %v8370_v7  ;;  %v7504_v21 = vsel %vm4730_vm1, %v7152_v3, %v8617_v34  ;;  %v7388_v17 = vsel %vm1063_vm0, %v7387_v36, %v7350_v44  ;;  %v8362_v2 = vor.u32 %v8567_v35, %v8359_v19  ;;  %v8678_v52 = vpack.i.bf16 %v7390_v46, %v13043_v60  ;;  %v8561_v34 = vld [vmem:[#allocation13 + $0x4] sm:$0xf]  ;;  %v8453_v3 = vld [vmem:[#allocation13 + $0xf0] sm:$0xf]  ;;  %v8592_v36 = vld [vmem:[#allocation13 + $0xf4] sm:$0xf0] }
 0x5ab   :  { %v7506_v50 = vsel %vm7505_vm2, %v7503_v56, %v8621_v32  ;;  %v7507_v38 = vsel %vm7505_vm2, %v7504_v21, %v8622_v25  ;;  %v8631_v31 = vunpack.i.l.bf16 %v13134_v1  ;;  %v8673_v40 = vpack.i.bf16 %v7388_v17, %v13046_v8  ;;  %v8343_v1 = vld [vmem:[#allocation13 + $0x18] sm:$0xf0]  ;;  %v8591_v46 = vld [vmem:[#allocation13 + $0xf4] sm:$0xf]  ;;  %v8445_v56 = vld [vmem:[#allocation13 + $0xe0] sm:$0xf] }
 0x5ac   :  { %v8625_v11 = vpop.permute.xlu1 %8624  ;;  %v8350_v60 = vor.u32 %v8566_v43, %v8349_v13  ;;  %v7386_v6 = vsel %vm1063_vm0, %v13121_v26, %v7385_v0  ;;  %v7510_v41 = vsel %vm7508_vm3, %v7507_v38, %v8632_v53  ;;  %v8354_v5 = vor.u32 %v8565_v33, %v8351_v22  ;;  %v8640_v26 = vpop.permute.xlu0 %8639  ;;  %v8455_v0 = vld [vmem:[#allocation13 + $0xf8] sm:$0xf0]  ;;  %v8589_v21 = vld [vmem:[#allocation13 + $0xe4] sm:$0xf]  ;;  %v8447_v17 = vld [vmem:[#allocation13 + $0xe8] sm:$0xf0] }
 0x5ad   :  { %v8627_v30 = vunpack.i.h.bf16 %v8625_v11  ;;  %v8626_v14 = vunpack.i.l.bf16 %v8625_v11  ;;  %7741 = vmatpush.bf16.msrb.mxu0 %v8358_v16  ;;  %v7509_v18 = vsel %vm7508_vm3, %v7506_v50, %v8631_v31  ;;  %v8637_v55 = vunpack.i.h.bf16 %v8635_v61  ;;  %v8590_v16 = vld [vmem:[#allocation13 + $0xe4] sm:$0xf0]  ;;  %v8588_v43 = vld [vmem:[#allocation13 + $0xd4] sm:$0xf0]  ;;  %v8439_v50 = vld [vmem:[#allocation13 + $0xd8] sm:$0xf0] }
 0x5ae   :  { %8654 = vrot.lane.b32.xlu0 %v8653_v62, %s9028_s23  ;;  %8679 = vrot.lane.b32.xlu1 %v8678_v52, %s9026_s6  ;;  %v8636_v28 = vunpack.i.l.bf16 %v8635_v61  ;;  %v8668_v63 = vpack.i.bf16 %v7386_v6, %v13030_v4  ;;  %v8342_v54 = vor.u32 %v8564_v51, %v8341_v12  ;;  %v8346_v59 = vor.u32 %v8563_v29, %v8343_v1  ;;  %v8429_v38 = vld [vmem:[#allocation13 + $0xc0] sm:$0xf]  ;;  %v8586_v11 = vld [vmem:[#allocation13 + $0xc4] sm:$0xf0]  ;;  %v8585_v22 = vld [vmem:[#allocation13 + $0xc4] sm:$0xf] }
 0x5af   :  { %7769 = vmatpush.bf16.msrb.mxu2 %v8362_v2  ;;  %v7512_v8 = vsel %vm7511_vm4, %v7509_v18, %v8626_v14  ;;  %v7513_v15 = vsel %vm7511_vm4, %v7510_v41, %v8627_v30  ;;  %v8642_v20 = vunpack.i.h.bf16 %v8640_v26  ;;  %v8641_v39 = vunpack.i.l.bf16 %v8640_v26  ;;  %v8431_v31 = vld [vmem:[#allocation13 + $0xc8] sm:$0xf0]  ;;  %v8421_v61 = vld [vmem:[#allocation13 + $0xb0] sm:$0xf]  ;;  %v8423_v18 = vld [vmem:[#allocation13 + $0xb8] sm:$0xf0] }
 0x5b0   :  { %v7515_v42 = vsel %vm7514_vm5, %v7512_v8, %v8636_v28  ;;  %v7516_v44 = vsel %vm7514_vm5, %v7513_v15, %v8637_v55  ;;  %v8334_v57 = vor.u32 %v8562_v37, %v8333_v47  ;;  %v8338_v24 = vor.u32 %v8561_v34, %v8335_v27  ;;  %v8413_v41 = vld [vmem:[#allocation13 + $0xa0] sm:$0xf]  ;;  %v8581_v51 = vld [vmem:[#allocation13 + $0xa4] sm:$0xf]  ;;  %v8415_v8 = vld [vmem:[#allocation13 + $0xa8] sm:$0xf0] }
 0x5b1   :  { %8674 = vrot.lane.b32.xlu2 %v8673_v40, %s9027_s3  ;;  %7742 = vmatpush.bf16.msrb.mxu0 %v8350_v60  ;;  %v7518_v25 = vsel %vm7517_vm6, %v7515_v42, %v8641_v39  ;;  %v7519_v48 = vsel %vm7517_vm6, %v7516_v44, %v8642_v20  ;;  %v7375_v35 = vrot.slane %v13115_v9, 4  ;;  %v8454_v53 = vor.u32 %v8592_v36, %v8453_v3  ;;  %v8437_v9 = vld [vmem:[#allocation13 + $0xd0] sm:$0xf]  ;;  %v8584_v40 = vld [vmem:[#allocation13 + $0xb4] sm:$0xf0] }
 0x5b2   :  { %v8458_v62 = vor.u32 %v8591_v46, %v8455_v0  ;;  %v8446_v2 = vor.u32 %v8590_v16, %v8445_v56  ;;  %v8450_v13 = vor.u32 %v8589_v21, %v8447_v17  ;;  %v8438_v52 = vor.u32 %v8588_v43, %v8437_v9  ;;  %v8583_v60 = vld [vmem:[#allocation13 + $0xb4] sm:$0xf]  ;;  %v8405_v1 = vld [vmem:[#allocation13 + $0x90] sm:$0xf]  ;;  %v8580_v55 = vld [vmem:[#allocation13 + $0x94] sm:$0xf0] }
 0x5b3   :  { %7770 = vmatpush.bf16.msrb.mxu2 %v8354_v5  ;;  %v13182_v19 = vsel %vm1063_vm0, %v7375_v35, %v13108_v23  ;;  %7751 = vmatpush.bf16.msrb.mxu1 %v8454_v53  ;;  %v8587_v23 = vld [vmem:[#allocation13 + $0xd4] sm:$0xf]  ;;  %v8430_v30 = vor.u32 %v8586_v11, %v8429_v38  ;;  %v8434_v14 = vor.u32 %v8585_v22, %v8431_v31  ;;  %v8582_v5 = vld [vmem:[#allocation13 + $0xa4] sm:$0xf0]  ;;  %v8399_v47 = vld [vmem:[#allocation13 + $0x88] sm:$0xf0] }
 0x5b4   :  { %v8645_v10 = vpop.permute.xlu1 %8644  ;;  %7779 = vmatpush.bf16.msrb.mxu3 %v8458_v62  ;;  %v8442_v33 = vor.u32 %v8587_v23, %v8439_v50  ;;  %v8422_v6 = vor.u32 %v8584_v40, %v8421_v61  ;;  %v8426_v12 = vor.u32 %v8583_v60, %v8423_v18  ;;  %v8414_v15 = vor.u32 %v8582_v5, %v8413_v41  ;;  %v8579_v28 = vld [vmem:[#allocation13 + $0x94] sm:$0xf]  ;;  %v8578_v42 = vld [vmem:[#allocation13 + $0x84] sm:$0xf0]  ;;  %v7571_v22 = vld [vmem:[%s13217_s8] sm:$0x3] }
 0x5b5   :  { %v8647_v4 = vunpack.i.h.bf16 %v8645_v10  ;;  %v8646_v45 = vunpack.i.l.bf16 %v8645_v10  ;;  %7743 = vmatpush.bf16.msrb.mxu0 %v8342_v54  ;;  %v8418_v29 = vor.u32 %v8581_v51, %v8415_v8  ;;  %v8406_v26 = vor.u32 %v8580_v55, %v8405_v1  ;;  %v8397_v54 = vld [vmem:[#allocation13 + $0x80] sm:$0xf]  ;;  %s7801_s8 = sshll.u32 %s9032_s5, 4  ;;  %s7802_s8 = int_to_ptr.vmem [resolvable:$true] %s7801_s8 }
 0x5b6   :  { %8669 = vrot.lane.b32.xlu0 %v8668_v63, %s9029_s24  ;;  %v8407_v63 = vld [vmem:[#allocation13 + $0x98] sm:$0xf0]  ;;  %v8398_v37 = vor.u32 %v8578_v42, %v8397_v54  ;;  %v7574_v60 = vperm.slane %v7571_v22, 1 }
 0x5b7   :  { %7771 = vmatpush.bf16.msrb.mxu2 %v8346_v59  ;;  %v7521_v58 = vsel %vm7520_vm7, %v7518_v25, %v8646_v45  ;;  %v7522_v32 = vsel %vm7520_vm7, %v7519_v48, %v8647_v4  ;;  %7752 = vmatpush.bf16.msrb.mxu1 %v8446_v2  ;;  %v8410_v44 = vor.u32 %v8579_v28, %v8407_v63  ;;  %v8577_v59 = vld [vmem:[#allocation13 + $0x84] sm:$0xf] }
 0x5b8   :  { %v7537_v7 = vpack.c.bf16 %v7522_v32, %v7521_v58  ;;  %7780 = vmatpush.bf16.msrb.mxu3 %v8450_v13  ;;  %v8402_v20 = vor.u32 %v8577_v59, %v8399_v47 }
 0x5b9   :  { %7744 = vmatpush.bf16.msrb.mxu0 %v8334_v57 }
 0x5bb   :  { %7772 = vmatpush.bf16.msrb.mxu2 %v8338_v24  ;;  %7753 = vmatpush.bf16.msrb.mxu1 %v8438_v52 }
 0x5bc   :  { %7745 = vmatmul.bf16.vlgmr.msrb.gmra.mxu0 %v7537_v7  ;;  %7781 = vmatpush.bf16.msrb.mxu3 %v8442_v33 }
 0x5be   :  { %7773 = vmatmul.bf16.vlgmr.msrb.gmra.mxu2 %v7537_v7 }
 0x5bf   :  { %7754 = vmatpush.bf16.msrb.mxu1 %v8430_v30  ;;  %v7573_v30 = vperm.slane %v7571_v22, 0 }
 0x5c0   :  { %7782 = vmatpush.bf16.msrb.mxu3 %v8434_v14 }
 0x5c3   :  { %7755 = vmatpush.bf16.msrb.mxu1 %v8422_v6 }
 0x5c4   :  { %7783 = vmatpush.bf16.msrb.mxu3 %v8426_v12 }
 0x5c7   :  { %7756 = vmatpush.bf16.msrb.mxu1 %v8414_v15 }
 0x5c8   :  { %7784 = vmatpush.bf16.msrb.mxu3 %v8418_v29 }
 0x5cb   :  { %7757 = vmatpush.bf16.msrb.mxu1 %v8406_v26 }
 0x5cc   :  { %7785 = vmatpush.bf16.msrb.mxu3 %v8410_v44 }
 0x5cf   :  { %7758 = vmatpush.bf16.msrb.mxu1 %v8398_v37 }
 0x5d0   :  { %7786 = vmatpush.bf16.msrb.mxu3 %v8402_v20 }
 0x603   :  { %v8660_v10 = vpop.permute.xlu2 %8659 }
 0x604   :  { %v8662_v53 = vunpack.i.h.bf16 %v8660_v10  ;;  %v8661_v0 = vunpack.i.l.bf16 %v8660_v10 }
 0x60b   :  { %v8675_v3 = vpop.permute.xlu2 %8674 }
 0x60c   :  { %v8677_v21 = vunpack.i.h.bf16 %v8675_v3  ;;  %v8676_v17 = vunpack.i.l.bf16 %v8675_v3 }
 0x618   :  { %v8650_v39 = vpop.permute.xlu0 %8649  ;;  %v8665_v34 = vpop.permute.xlu1 %8664 }
 0x619   :  { %v8652_v27 = vunpack.i.h.bf16 %v8650_v39  ;;  %v8651_v4 = vunpack.i.l.bf16 %v8650_v39  ;;  %v8667_v7 = vunpack.i.h.bf16 %v8665_v34  ;;  %v8666_v35 = vunpack.i.l.bf16 %v8665_v34 }
 0x61b   :  { %v7523_v57 = vsel %vm4730_vm1, %v13037_v49, %v8651_v4  ;;  %v7524_v58 = vsel %vm4730_vm1, %v13182_v19, %v8652_v27 }
 0x620   :  { %v8655_v45 = vpop.permute.xlu0 %8654  ;;  %v8680_v56 = vpop.permute.xlu1 %8679 }
 0x621   :  { %v8657_v25 = vunpack.i.h.bf16 %v8655_v45  ;;  %v8656_v48 = vunpack.i.l.bf16 %v8655_v45  ;;  %v8682_v13 = vunpack.i.h.bf16 %v8680_v56  ;;  %v8681_v9 = vunpack.i.l.bf16 %v8680_v56 }
 0x623   :  { %v7525_v32 = vsel %vm7505_vm2, %v7523_v57, %v8656_v48  ;;  %v7526_v24 = vsel %vm7505_vm2, %v7524_v58, %v8657_v25 }
 0x624   :  { %v7527_v36 = vsel %vm7508_vm3, %v7525_v32, %v8666_v35  ;;  %v7528_v46 = vsel %vm7508_vm3, %v7526_v24, %v8667_v7 }
 0x625   :  { %v7529_v19 = vsel %vm7511_vm4, %v7527_v36, %v8661_v0  ;;  %v7530_v2 = vsel %vm7511_vm4, %v7528_v46, %v8662_v53 }
 0x628   :  { %v8670_v16 = vpop.permute.xlu0 %8669 }
 0x629   :  { %v8672_v62 = vunpack.i.h.bf16 %v8670_v16  ;;  %v8671_v49 = vunpack.i.l.bf16 %v8670_v16 }
 0x62b   :  { %v7531_v43 = vsel %vm7514_vm5, %v7529_v19, %v8671_v49  ;;  %v7532_v23 = vsel %vm7514_vm5, %v7530_v2, %v8672_v62 }
 0x62c   :  { %v7533_v52 = vsel %vm7517_vm6, %v7531_v43, %v8676_v17  ;;  %v7534_v50 = vsel %vm7517_vm6, %v7532_v23, %v8677_v21 }
 0x62d   :  { %v7535_v38 = vsel %vm7520_vm7, %v7533_v52, %v8681_v9  ;;  %v7536_v11 = vsel %vm7520_vm7, %v7534_v50, %v8682_v13 }
 0x62e   :  { %v7538_v33 = vpack.c.bf16 %v7536_v11, %v7535_v38 }
 0x630   :  { %7759 = vmatmul.bf16.vlgmr.msrb.gmra.mxu1 %v7538_v33  ;;  %7787 = vmatmul.bf16.vlgmr.msrb.gmra.mxu3 %v7538_v33 }
 0x639   :  { %v7746_v31 = vpop.f32.mrf.mxu0 }
 0x63a   :  { %v7747_v14 = vadd.f32 %v7746_v31, %v7573_v30 }
 0x641   :  { %v7774_v61 = vpop.f32.mrf.mxu2  ;;  %v7748_v18 = vpop.f32.mrf.mxu0 }
 0x642   :  { %v7775_v41 = vadd.f32 %v7774_v61, %v7574_v60  ;;  %v7749_v12 = vadd.f32 %v7748_v18, %v7573_v30 }
 0x649   :  { %v7776_v29 = vpop.f32.mrf.mxu2 }
 0x64a   :  { %v7777_v1 = vadd.f32 %v7776_v29, %v7574_v60 }
 0x6ad   :  { %v7760_v40 = vpop.f32.mrf.mxu1 }
 0x6ae   :  { %v7761_v6 = vadd.f32 %v7760_v40, %v7747_v14 }
 0x6b0   :  { %7793 = vst [vmem:[#allocation14] sm:$0xff] %v7761_v6 }
 0x6b3   :  { %v7788_v5 = vpop.f32.mrf.mxu3 }
 0x6b4   :  { %v7789_v51 = vadd.f32 %v7788_v5, %v7775_v41 }
 0x6b5   :  { %v7762_v8 = vpop.f32.mrf.mxu1 }
 0x6b6   :  { %7794 = vst [vmem:[#allocation14 + $0x8] sm:$0xff] %v7789_v51  ;;  %v7763_v15 = vadd.f32 %v7762_v8, %v7749_v12 }
 0x6b8   :  { %7795 = vst [vmem:[#allocation14 + $0x10] sm:$0xff] %v7763_v15 }
 0x6bb   :  { %v7790_v55 = vpop.f32.mrf.mxu3 }
 0x6bc   :  { %v7791_v28 = vadd.f32 %v7790_v55, %v7777_v1 }
 0x6be   :  { %7796 = vst [vmem:[#allocation14 + $0x18] sm:$0xff] %v7791_v28 }
 0x6bf   :  { %7809 = dma.vmem_to_hbm [thread:$0]  %s7802_s8, 512, %s7804_s10, [#allocation4], %s9018_s27, %s9018_s27, %s9019_s28  }
 0x6c0   :  { %9011 = dma.done.wait [#allocation4], 512  }
 0x6c1   :  { %9012 = vsyncadd [#allocation4], 4294966784 }
 0x6c2   :  { %7814 = vsyncpa [#allocation3], 1 }
 0x6c3   :  { %7815 = vsyncpa [#allocation6], 1 }
 0x6c4   :  { %7816 = vsyncpa [#allocation9], 1 }
 0x6c5   :  { %7817 = vsyncpa [#allocation12], 1 }
 0x6c6   :  { %7818 = vsyncpa [#allocation4], 1 }

</bundles_post_ra>
